<compile_context>
chip_gen: v7x
topology: tpu7x:2x2x1
jax: 0.10.0
libtpu: 0.0.40
codegen_flags: <defaults>
</compile_context>

<pallas_src>
import jax
import jax.numpy as jnp
from jax.experimental import pallas as pl
from jax.experimental.pallas import tpu as pltpu

# ----------------------------- model hyper-params ---------------------------
B, S, E, N, T = 2, 8, 32, 4, 2      # batch, seq, embedding, neurons/dim, time steps
H = 4                               # num_heads
D = E // H                          # head_dim
F = N * T                           # flattened_dim (phase rows per token)
BF = B * F
M = B * F * S                       # 128 total rows in internal (B, F, S, E) layout
NUM_LAYERS = 2
THRESH = 1.0                        # snn.Leaky default threshold
EPS = 1e-5                          # nn.LayerNorm default eps


# ------------------------------- fused kernel -------------------------------
def _layer_norm(y, gamma, beta):
    """LayerNorm over the last (embedding) axis; gamma/beta are (1, E)."""
    mean = jnp.mean(y, axis=-1, keepdims=True)
    c = y - mean
    var = jnp.mean(c * c, axis=-1, keepdims=True)
    return c * jax.lax.rsqrt(var + EPS) * gamma + beta


def _fused_transformer_kernel(x_ref, wqkv_ref, wo_ref, wff1_ref, wff2_ref,
                              ln_ref, o_ref):
    """Entire 2-layer spiking transformer on VMEM-resident data.

    x_ref:    (M, E)      rows ordered as (b, f, s); embedding on lanes.
    wqkv_ref: (L, E, 3E)  [Wq | Wk | Wv], each stored pre-transposed (in, out).
    wo_ref:   (L, E, E)
    wff1_ref: (L, E, 4E)
    wff2_ref: (L, 4E, E)
    ln_ref:   (L, 4, E)   rows: gamma1, beta1, gamma2, beta2
    o_ref:    (M, E)
    """
    x = x_ref[...]                                                   # (M, E) f32

    for l in range(NUM_LAYERS):                                      # static unroll
        # ---- fused Q/K/V projection + LIF firing (one MXU matmul) ----
        qkv_syn = jnp.dot(x, wqkv_ref[l], preferred_element_type=jnp.float32)
        qkv_spk = (qkv_syn > THRESH).astype(jnp.float32)             # (M, 3E)
        q = qkv_spk[:, 0 * E:1 * E].reshape(BF, S, E)                # (BF, S, E)
        k = qkv_spk[:, 1 * E:2 * E].reshape(BF, S, E)
        v = qkv_spk[:, 2 * E:3 * E].reshape(BF, S, E)

        # ---- phase-shifted spiking self-attention (all batches/phases batched,
        #      loop only over the H=4 heads) ----
        # scores[b, q, h, k] = sum_{d, f} Q[b,q,h,d,f] * K[b,k,h,d,f]
        head_out = []
        for h in range(H):                                           # static unroll
            qh = q[:, :, h * D:(h + 1) * D]                          # (BF, S, D)
            kh = k[:, :, h * D:(h + 1) * D]
            vh = v[:, :, h * D:(h + 1) * D]
            # per-(b, f) partial scores, then reduce over f
            part = jnp.einsum('nsd,ntd->nst', qh, kh,
                              preferred_element_type=jnp.float32)    # (BF, S, S)
            scores = jnp.sum(part.reshape(B, F, S, S), axis=1)       # (B, S, S)
            scores = jnp.broadcast_to(scores[:, None], (B, F, S, S))
            scores = scores.reshape(BF, S, S)
            att_h = jnp.einsum('nst,ntd->nsd', scores, vh,
                               preferred_element_type=jnp.float32)   # (BF, S, D)
            head_out.append(att_h.reshape(M, D))
        att = jnp.concatenate(head_out, axis=-1)                     # (M, E)

        # ---- output projection + LIF, residual add, LayerNorm over E ----
        o_syn = jnp.dot(att, wo_ref[l], preferred_element_type=jnp.float32)
        o_spk = (o_syn > THRESH).astype(jnp.float32)
        lnp = ln_ref[l]                                              # (4, E)
        x = _layer_norm(x + o_spk, lnp[0:1, :], lnp[1:2, :])

        # ---- spiking feed-forward (faithful: the extra Leaky on already-binary
        #      spikes makes this branch identically zero, as in the PyTorch ref) ----
        h1 = jnp.dot(x, wff1_ref[l], preferred_element_type=jnp.float32)
        h1_spk = (h1 > THRESH).astype(jnp.float32)                   # (M, 4E)
        h2_spk = (h1_spk > THRESH).astype(jnp.float32)               # extra snn.Leaky
        ff = jnp.dot(h2_spk, wff2_ref[l], preferred_element_type=jnp.float32)
        ff_spk = (ff > THRESH).astype(jnp.float32)
        x = _layer_norm(x + ff_spk, lnp[2:3, :], lnp[3:4, :])

    o_ref[...] = x


# ------------------------------ Python wrapper -------------------------------
@jax.jit
def spiking_transformer_forward(x5, params):
    """x5: (B, S, E, N, T) float32 -> same shape (one stateless forward)."""
    b, s, e, n, t = x5.shape
    f = n * t
    m = b * f * s
    # boundary layout change only: (B,S,E,N,T) -> (B,S,E,F) -> (B,F,S,E) -> (M,E)
    x = x5.reshape(b, s, e, f)
    x = jnp.transpose(x, (0, 3, 1, 2)).reshape(m, e)

    vmem = pl.BlockSpec(memory_space=pltpu.MemorySpace.VMEM)
    out2d = pl.pallas_call(
        _fused_transformer_kernel,
        out_shape=jax.ShapeDtypeStruct((m, e), jnp.float32),
        in_specs=[vmem] * 6,
        out_specs=vmem,
    )(x, params["wqkv"], params["wo"], params["wff1"], params["wff2"], params["ln"])

    out = out2d.reshape(b, f, s, e)
    out = jnp.transpose(out, (0, 2, 3, 1))          # (B,S,E,F)
    return out.reshape(b, s, e, n, t)


# ------------------------------- parameter init ------------------------------
def init_params(key):
    """Per-layer weights stacked on a leading layer axis.  nn.Linear weights are
    stored pre-transposed as (in, out), bias=False; Q/K/V are concatenated."""
    scale = 0.35  # keeps synaptic currents in a range where some neurons fire
    wqkv, wo, wff1, wff2, ln = [], [], [], [], []
    for layer in range(NUM_LAYERS):
        ks = jax.random.split(jax.random.fold_in(key, layer), 6)
        wq = jax.random.uniform(ks[0], (E, E), jnp.float32, -scale, scale)
        wk = jax.random.uniform(ks[1], (E, E), jnp.float32, -scale, scale)
        wv = jax.random.uniform(ks[2], (E, E), jnp.float32, -scale, scale)
        wqkv.append(jnp.concatenate([wq, wk, wv], axis=1))           # (E, 3E)
        wo.append(jax.random.uniform(ks[3], (E, E), jnp.float32, -scale, scale))
        wff1.append(jax.random.uniform(ks[4], (E, 4 * E), jnp.float32, -scale, scale))
        wff2.append(jax.random.uniform(ks[5], (4 * E, E), jnp.float32, -scale, scale))
        # nn.LayerNorm default affine init: weight=1, bias=0 -> [g1, b1, g2, b2]
        ln.append(jnp.stack([jnp.ones((E,), jnp.float32),
                             jnp.zeros((E,), jnp.float32),
                             jnp.ones((E,), jnp.float32),
                             jnp.zeros((E,), jnp.float32)]))
    return dict(wqkv=jnp.stack(wqkv), wo=jnp.stack(wo),
                wff1=jnp.stack(wff1), wff2=jnp.stack(wff2), ln=jnp.stack(ln))


# ------------------------------------ main -----------------------------------
if __name__ == "__main__":
    key = jax.random.PRNGKey(0)
    k_x, k_p = jax.random.split(key)
    x = jax.random.normal(k_x, (B, S, E, N, T), dtype=jnp.float32) * 1.5
    params = init_params(k_p)

    out = spiking_transformer_forward(x, params)
    out = jax.block_until_ready(out)

    assert out.shape == (B, S, E, N, T), out.shape
    assert bool(jnp.all(jnp.isfinite(out)))
    # TODO(synk): persistent LIF membrane state carried across successive forward
    # calls (self.mem between batches) is not modeled; this is a single stateless
    # forward, equivalent to calling the module right after reset_states().
    print("KERNEL_OK")
</pallas_src>

<mosaic_0001>
module attributes {stable_mosaic.version = 11 : i64} {
  func.func @_fused_transformer_kernel(%arg0: memref<128x32xf32, #tpu.memory_space<vmem>>, %arg1: memref<2x32x96xf32, #tpu.memory_space<vmem>>, %arg2: memref<2x32x32xf32, #tpu.memory_space<vmem>>, %arg3: memref<2x32x128xf32, #tpu.memory_space<vmem>>, %arg4: memref<2x128x32xf32, #tpu.memory_space<vmem>>, %arg5: memref<2x4x32xf32, #tpu.memory_space<vmem>>, %arg6: memref<128x32xf32, #tpu.memory_space<vmem>>) attributes {dimension_semantics = [], scalar_prefetch = 0 : i64, scratch_operands = 0 : i64, tpu.core_type = #tpu.core_type<tc>} {
    %c0 = arith.constant 0 : index
    %c0_0 = arith.constant 0 : index
    %0 = vector.load %arg0[%c0, %c0_0] : memref<128x32xf32, #tpu.memory_space<vmem>>, vector<128x32xf32>
    %c0_1 = arith.constant 0 : index
    %c0_2 = arith.constant 0 : index
    %c0_3 = arith.constant 0 : index
    %1 = vector.load %arg1[%c0_1, %c0_2, %c0_3] : memref<2x32x96xf32, #tpu.memory_space<vmem>>, vector<1x32x96xf32>
    %2 = vector.shape_cast %1 : vector<1x32x96xf32> to vector<32x96xf32>
    %cst = arith.constant dense<0.000000e+00> : vector<128x96xf32>
    %3 = tpu.matmul %0, %2, %cst {dimension_numbers = #tpu.dot_dimension_numbers<[1], [0], [0], [1], [0, 0, 1, 1], [], []>} : vector<128x32xf32>, vector<32x96xf32>, vector<128x96xf32> -> vector<128x96xf32>
    %cst_4 = arith.constant 1.000000e+00 : f32
    %4 = vector.broadcast %cst_4 : f32 to vector<128x96xf32>
    %5 = arith.cmpf ogt, %3, %4 : vector<128x96xf32>
    %6 = arith.extui %5 : vector<128x96xi1> to vector<128x96xi32>
    %7 = arith.sitofp %6 : vector<128x96xi32> to vector<128x96xf32>
    %8 = vector.extract_strided_slice %7 {offsets = [0, 0], sizes = [128, 32], strides = [1, 1]} : vector<128x96xf32> to vector<128x32xf32>
    %9 = vector.shape_cast %8 : vector<128x32xf32> to vector<16x8x32xf32>
    %10 = vector.extract_strided_slice %7 {offsets = [0, 32], sizes = [128, 32], strides = [1, 1]} : vector<128x96xf32> to vector<128x32xf32>
    %11 = vector.shape_cast %10 : vector<128x32xf32> to vector<16x8x32xf32>
    %12 = vector.extract_strided_slice %7 {offsets = [0, 64], sizes = [128, 32], strides = [1, 1]} : vector<128x96xf32> to vector<128x32xf32>
    %13 = vector.shape_cast %12 : vector<128x32xf32> to vector<16x8x32xf32>
    %14 = vector.extract_strided_slice %9 {offsets = [0, 0, 0], sizes = [16, 8, 8], strides = [1, 1, 1]} : vector<16x8x32xf32> to vector<16x8x8xf32>
    %15 = vector.extract_strided_slice %11 {offsets = [0, 0, 0], sizes = [16, 8, 8], strides = [1, 1, 1]} : vector<16x8x32xf32> to vector<16x8x8xf32>
    %16 = vector.extract_strided_slice %13 {offsets = [0, 0, 0], sizes = [16, 8, 8], strides = [1, 1, 1]} : vector<16x8x32xf32> to vector<16x8x8xf32>
    "tpu.trace_start"() <{level = 10 : i32, message = "nsd,ntd->nst"}> : () -> ()
    %cst_5 = arith.constant dense<0.000000e+00> : vector<16x8x8xf32>
    %17 = tpu.matmul %14, %15, %cst_5 {dimension_numbers = #tpu.dot_dimension_numbers<[2], [2], [1], [1], [0, 0, 0, 1, 1, 1], [0], [0]>} : vector<16x8x8xf32>, vector<16x8x8xf32>, vector<16x8x8xf32> -> vector<16x8x8xf32>
    "tpu.trace_stop"() : () -> ()
    %18 = vector.shape_cast %17 : vector<16x8x8xf32> to vector<2x8x8x8xf32>
    %cst_6 = arith.constant dense<0.000000e+00> : vector<2x8x8xf32>
    %19 = vector.multi_reduction <add>, %18, %cst_6 [1] : vector<2x8x8x8xf32> to vector<2x8x8xf32>
    %20 = vector.shape_cast %19 : vector<2x8x8xf32> to vector<2x1x8x8xf32>
    %21 = vector.shape_cast %20 : vector<2x1x8x8xf32> to vector<2x1x8x8xf32>
    %22 = vector.broadcast %21 : vector<2x1x8x8xf32> to vector<2x8x8x8xf32>
    %23 = vector.shape_cast %22 : vector<2x8x8x8xf32> to vector<16x8x8xf32>
    "tpu.trace_start"() <{level = 10 : i32, message = "nst,ntd->nsd"}> : () -> ()
    %cst_7 = arith.constant dense<0.000000e+00> : vector<16x8x8xf32>
    %24 = tpu.matmul %23, %16, %cst_7 {dimension_numbers = #tpu.dot_dimension_numbers<[2], [1], [1], [2], [0, 0, 0, 1, 1, 2], [0], [0]>} : vector<16x8x8xf32>, vector<16x8x8xf32>, vector<16x8x8xf32> -> vector<16x8x8xf32>
    "tpu.trace_stop"() : () -> ()
    %25 = vector.shape_cast %24 : vector<16x8x8xf32> to vector<128x8xf32>
    %26 = vector.extract_strided_slice %9 {offsets = [0, 0, 8], sizes = [16, 8, 8], strides = [1, 1, 1]} : vector<16x8x32xf32> to vector<16x8x8xf32>
    %27 = vector.extract_strided_slice %11 {offsets = [0, 0, 8], sizes = [16, 8, 8], strides = [1, 1, 1]} : vector<16x8x32xf32> to vector<16x8x8xf32>
    %28 = vector.extract_strided_slice %13 {offsets = [0, 0, 8], sizes = [16, 8, 8], strides = [1, 1, 1]} : vector<16x8x32xf32> to vector<16x8x8xf32>
    "tpu.trace_start"() <{level = 10 : i32, message = "nsd,ntd->nst"}> : () -> ()
    %cst_8 = arith.constant dense<0.000000e+00> : vector<16x8x8xf32>
    %29 = tpu.matmul %26, %27, %cst_8 {dimension_numbers = #tpu.dot_dimension_numbers<[2], [2], [1], [1], [0, 0, 0, 1, 1, 1], [0], [0]>} : vector<16x8x8xf32>, vector<16x8x8xf32>, vector<16x8x8xf32> -> vector<16x8x8xf32>
    "tpu.trace_stop"() : () -> ()
    %30 = vector.shape_cast %29 : vector<16x8x8xf32> to vector<2x8x8x8xf32>
    %cst_9 = arith.constant dense<0.000000e+00> : vector<2x8x8xf32>
    %31 = vector.multi_reduction <add>, %30, %cst_9 [1] : vector<2x8x8x8xf32> to vector<2x8x8xf32>
    %32 = vector.shape_cast %31 : vector<2x8x8xf32> to vector<2x1x8x8xf32>
    %33 = vector.shape_cast %32 : vector<2x1x8x8xf32> to vector<2x1x8x8xf32>
    %34 = vector.broadcast %33 : vector<2x1x8x8xf32> to vector<2x8x8x8xf32>
    %35 = vector.shape_cast %34 : vector<2x8x8x8xf32> to vector<16x8x8xf32>
    "tpu.trace_start"() <{level = 10 : i32, message = "nst,ntd->nsd"}> : () -> ()
    %cst_10 = arith.constant dense<0.000000e+00> : vector<16x8x8xf32>
    %36 = tpu.matmul %35, %28, %cst_10 {dimension_numbers = #tpu.dot_dimension_numbers<[2], [1], [1], [2], [0, 0, 0, 1, 1, 2], [0], [0]>} : vector<16x8x8xf32>, vector<16x8x8xf32>, vector<16x8x8xf32> -> vector<16x8x8xf32>
    "tpu.trace_stop"() : () -> ()
    %37 = vector.shape_cast %36 : vector<16x8x8xf32> to vector<128x8xf32>
    %38 = vector.extract_strided_slice %9 {offsets = [0, 0, 16], sizes = [16, 8, 8], strides = [1, 1, 1]} : vector<16x8x32xf32> to vector<16x8x8xf32>
    %39 = vector.extract_strided_slice %11 {offsets = [0, 0, 16], sizes = [16, 8, 8], strides = [1, 1, 1]} : vector<16x8x32xf32> to vector<16x8x8xf32>
    %40 = vector.extract_strided_slice %13 {offsets = [0, 0, 16], sizes = [16, 8, 8], strides = [1, 1, 1]} : vector<16x8x32xf32> to vector<16x8x8xf32>
    "tpu.trace_start"() <{level = 10 : i32, message = "nsd,ntd->nst"}> : () -> ()
    %cst_11 = arith.constant dense<0.000000e+00> : vector<16x8x8xf32>
    %41 = tpu.matmul %38, %39, %cst_11 {dimension_numbers = #tpu.dot_dimension_numbers<[2], [2], [1], [1], [0, 0, 0, 1, 1, 1], [0], [0]>} : vector<16x8x8xf32>, vector<16x8x8xf32>, vector<16x8x8xf32> -> vector<16x8x8xf32>
    "tpu.trace_stop"() : () -> ()
    %42 = vector.shape_cast %41 : vector<16x8x8xf32> to vector<2x8x8x8xf32>
    %cst_12 = arith.constant dense<0.000000e+00> : vector<2x8x8xf32>
    %43 = vector.multi_reduction <add>, %42, %cst_12 [1] : vector<2x8x8x8xf32> to vector<2x8x8xf32>
    %44 = vector.shape_cast %43 : vector<2x8x8xf32> to vector<2x1x8x8xf32>
    %45 = vector.shape_cast %44 : vector<2x1x8x8xf32> to vector<2x1x8x8xf32>
    %46 = vector.broadcast %45 : vector<2x1x8x8xf32> to vector<2x8x8x8xf32>
    %47 = vector.shape_cast %46 : vector<2x8x8x8xf32> to vector<16x8x8xf32>
    "tpu.trace_start"() <{level = 10 : i32, message = "nst,ntd->nsd"}> : () -> ()
    %cst_13 = arith.constant dense<0.000000e+00> : vector<16x8x8xf32>
    %48 = tpu.matmul %47, %40, %cst_13 {dimension_numbers = #tpu.dot_dimension_numbers<[2], [1], [1], [2], [0, 0, 0, 1, 1, 2], [0], [0]>} : vector<16x8x8xf32>, vector<16x8x8xf32>, vector<16x8x8xf32> -> vector<16x8x8xf32>
    "tpu.trace_stop"() : () -> ()
    %49 = vector.shape_cast %48 : vector<16x8x8xf32> to vector<128x8xf32>
    %50 = vector.extract_strided_slice %9 {offsets = [0, 0, 24], sizes = [16, 8, 8], strides = [1, 1, 1]} : vector<16x8x32xf32> to vector<16x8x8xf32>
    %51 = vector.extract_strided_slice %11 {offsets = [0, 0, 24], sizes = [16, 8, 8], strides = [1, 1, 1]} : vector<16x8x32xf32> to vector<16x8x8xf32>
    %52 = vector.extract_strided_slice %13 {offsets = [0, 0, 24], sizes = [16, 8, 8], strides = [1, 1, 1]} : vector<16x8x32xf32> to vector<16x8x8xf32>
    "tpu.trace_start"() <{level = 10 : i32, message = "nsd,ntd->nst"}> : () -> ()
    %cst_14 = arith.constant dense<0.000000e+00> : vector<16x8x8xf32>
    %53 = tpu.matmul %50, %51, %cst_14 {dimension_numbers = #tpu.dot_dimension_numbers<[2], [2], [1], [1], [0, 0, 0, 1, 1, 1], [0], [0]>} : vector<16x8x8xf32>, vector<16x8x8xf32>, vector<16x8x8xf32> -> vector<16x8x8xf32>
    "tpu.trace_stop"() : () -> ()
    %54 = vector.shape_cast %53 : vector<16x8x8xf32> to vector<2x8x8x8xf32>
    %cst_15 = arith.constant dense<0.000000e+00> : vector<2x8x8xf32>
    %55 = vector.multi_reduction <add>, %54, %cst_15 [1] : vector<2x8x8x8xf32> to vector<2x8x8xf32>
    %56 = vector.shape_cast %55 : vector<2x8x8xf32> to vector<2x1x8x8xf32>
    %57 = vector.shape_cast %56 : vector<2x1x8x8xf32> to vector<2x1x8x8xf32>
    %58 = vector.broadcast %57 : vector<2x1x8x8xf32> to vector<2x8x8x8xf32>
    %59 = vector.shape_cast %58 : vector<2x8x8x8xf32> to vector<16x8x8xf32>
    "tpu.trace_start"() <{level = 10 : i32, message = "nst,ntd->nsd"}> : () -> ()
    %cst_16 = arith.constant dense<0.000000e+00> : vector<16x8x8xf32>
    %60 = tpu.matmul %59, %52, %cst_16 {dimension_numbers = #tpu.dot_dimension_numbers<[2], [1], [1], [2], [0, 0, 0, 1, 1, 2], [0], [0]>} : vector<16x8x8xf32>, vector<16x8x8xf32>, vector<16x8x8xf32> -> vector<16x8x8xf32>
    "tpu.trace_stop"() : () -> ()
    %61 = vector.shape_cast %60 : vector<16x8x8xf32> to vector<128x8xf32>
    %62 = tpu.concatenate %25, %37, %49, %61 in 1 : vector<128x8xf32>, vector<128x8xf32>, vector<128x8xf32>, vector<128x8xf32> -> vector<128x32xf32>
    %c0_17 = arith.constant 0 : index
    %c0_18 = arith.constant 0 : index
    %c0_19 = arith.constant 0 : index
    %63 = vector.load %arg2[%c0_17, %c0_18, %c0_19] : memref<2x32x32xf32, #tpu.memory_space<vmem>>, vector<1x32x32xf32>
    %64 = vector.shape_cast %63 : vector<1x32x32xf32> to vector<32x32xf32>
    %cst_20 = arith.constant dense<0.000000e+00> : vector<128x32xf32>
    %65 = tpu.matmul %62, %64, %cst_20 {dimension_numbers = #tpu.dot_dimension_numbers<[1], [0], [0], [1], [0, 0, 1, 1], [], []>} : vector<128x32xf32>, vector<32x32xf32>, vector<128x32xf32> -> vector<128x32xf32>
    %cst_21 = arith.constant 1.000000e+00 : f32
    %66 = vector.broadcast %cst_21 : f32 to vector<128x32xf32>
    %67 = arith.cmpf ogt, %65, %66 : vector<128x32xf32>
    %68 = arith.extui %67 : vector<128x32xi1> to vector<128x32xi32>
    %69 = arith.sitofp %68 : vector<128x32xi32> to vector<128x32xf32>
    %c0_22 = arith.constant 0 : index
    %c0_23 = arith.constant 0 : index
    %c0_24 = arith.constant 0 : index
    %70 = vector.load %arg5[%c0_22, %c0_23, %c0_24] : memref<2x4x32xf32, #tpu.memory_space<vmem>>, vector<1x4x32xf32>
    %71 = vector.shape_cast %70 : vector<1x4x32xf32> to vector<4x32xf32>
    %72 = arith.addf %0, %69 : vector<128x32xf32>
    %73 = vector.extract_strided_slice %71 {offsets = [0, 0], sizes = [1, 32], strides = [1, 1]} : vector<4x32xf32> to vector<1x32xf32>
    %74 = vector.extract_strided_slice %71 {offsets = [1, 0], sizes = [1, 32], strides = [1, 1]} : vector<4x32xf32> to vector<1x32xf32>
    %cst_25 = arith.constant dense<0.000000e+00> : vector<128xf32>
    %75 = vector.multi_reduction <add>, %72, %cst_25 [1] : vector<128x32xf32> to vector<128xf32>
    %76 = vector.shape_cast %75 : vector<128xf32> to vector<128x1xf32>
    %cst_26 = arith.constant 3.200000e+01 : f32
    %77 = vector.broadcast %cst_26 : f32 to vector<128x1xf32>
    %78 = arith.divf %76, %77 : vector<128x1xf32>
    %79 = vector.broadcast %78 : vector<128x1xf32> to vector<128x32xf32>
    %80 = arith.subf %72, %79 : vector<128x32xf32>
    %81 = arith.mulf %80, %80 : vector<128x32xf32>
    %cst_27 = arith.constant dense<0.000000e+00> : vector<128xf32>
    %82 = vector.multi_reduction <add>, %81, %cst_27 [1] : vector<128x32xf32> to vector<128xf32>
    %83 = vector.shape_cast %82 : vector<128xf32> to vector<128x1xf32>
    %cst_28 = arith.constant 3.200000e+01 : f32
    %84 = vector.broadcast %cst_28 : f32 to vector<128x1xf32>
    %85 = arith.divf %83, %84 : vector<128x1xf32>
    %cst_29 = arith.constant 9.99999974E-6 : f32
    %86 = vector.broadcast %cst_29 : f32 to vector<128x1xf32>
    %87 = arith.addf %85, %86 : vector<128x1xf32>
    %88 = math.rsqrt %87 : vector<128x1xf32>
    %89 = vector.broadcast %88 : vector<128x1xf32> to vector<128x32xf32>
    %90 = arith.mulf %80, %89 : vector<128x32xf32>
    %91 = vector.broadcast %73 : vector<1x32xf32> to vector<128x32xf32>
    %92 = arith.mulf %90, %91 : vector<128x32xf32>
    %93 = vector.broadcast %74 : vector<1x32xf32> to vector<128x32xf32>
    %94 = arith.addf %92, %93 : vector<128x32xf32>
    %c0_30 = arith.constant 0 : index
    %c0_31 = arith.constant 0 : index
    %c0_32 = arith.constant 0 : index
    %95 = vector.load %arg3[%c0_30, %c0_31, %c0_32] : memref<2x32x128xf32, #tpu.memory_space<vmem>>, vector<1x32x128xf32>
    %96 = vector.shape_cast %95 : vector<1x32x128xf32> to vector<32x128xf32>
    %cst_33 = arith.constant dense<0.000000e+00> : vector<128x128xf32>
    %97 = tpu.matmul %94, %96, %cst_33 {dimension_numbers = #tpu.dot_dimension_numbers<[1], [0], [0], [1], [0, 0, 1, 1], [], []>} : vector<128x32xf32>, vector<32x128xf32>, vector<128x128xf32> -> vector<128x128xf32>
    %cst_34 = arith.constant 1.000000e+00 : f32
    %98 = vector.broadcast %cst_34 : f32 to vector<128x128xf32>
    %99 = arith.cmpf ogt, %97, %98 : vector<128x128xf32>
    %100 = arith.extui %99 : vector<128x128xi1> to vector<128x128xi32>
    %101 = arith.sitofp %100 : vector<128x128xi32> to vector<128x128xf32>
    %cst_35 = arith.constant 1.000000e+00 : f32
    %102 = vector.broadcast %cst_35 : f32 to vector<128x128xf32>
    %103 = arith.cmpf ogt, %101, %102 : vector<128x128xf32>
    %104 = arith.extui %103 : vector<128x128xi1> to vector<128x128xi32>
    %105 = arith.sitofp %104 : vector<128x128xi32> to vector<128x128xf32>
    %c0_36 = arith.constant 0 : index
    %c0_37 = arith.constant 0 : index
    %c0_38 = arith.constant 0 : index
    %106 = vector.load %arg4[%c0_36, %c0_37, %c0_38] : memref<2x128x32xf32, #tpu.memory_space<vmem>>, vector<1x128x32xf32>
    %107 = vector.shape_cast %106 : vector<1x128x32xf32> to vector<128x32xf32>
    %cst_39 = arith.constant dense<0.000000e+00> : vector<128x32xf32>
    %108 = tpu.matmul %105, %107, %cst_39 {dimension_numbers = #tpu.dot_dimension_numbers<[1], [0], [0], [1], [0, 0, 1, 1], [], []>} : vector<128x128xf32>, vector<128x32xf32>, vector<128x32xf32> -> vector<128x32xf32>
    %cst_40 = arith.constant 1.000000e+00 : f32
    %109 = vector.broadcast %cst_40 : f32 to vector<128x32xf32>
    %110 = arith.cmpf ogt, %108, %109 : vector<128x32xf32>
    %111 = arith.extui %110 : vector<128x32xi1> to vector<128x32xi32>
    %112 = arith.sitofp %111 : vector<128x32xi32> to vector<128x32xf32>
    %113 = arith.addf %94, %112 : vector<128x32xf32>
    %114 = vector.extract_strided_slice %71 {offsets = [2, 0], sizes = [1, 32], strides = [1, 1]} : vector<4x32xf32> to vector<1x32xf32>
    %115 = vector.extract_strided_slice %71 {offsets = [3, 0], sizes = [1, 32], strides = [1, 1]} : vector<4x32xf32> to vector<1x32xf32>
    %cst_41 = arith.constant dense<0.000000e+00> : vector<128xf32>
    %116 = vector.multi_reduction <add>, %113, %cst_41 [1] : vector<128x32xf32> to vector<128xf32>
    %117 = vector.shape_cast %116 : vector<128xf32> to vector<128x1xf32>
    %cst_42 = arith.constant 3.200000e+01 : f32
    %118 = vector.broadcast %cst_42 : f32 to vector<128x1xf32>
    %119 = arith.divf %117, %118 : vector<128x1xf32>
    %120 = vector.broadcast %119 : vector<128x1xf32> to vector<128x32xf32>
    %121 = arith.subf %113, %120 : vector<128x32xf32>
    %122 = arith.mulf %121, %121 : vector<128x32xf32>
    %cst_43 = arith.constant dense<0.000000e+00> : vector<128xf32>
    %123 = vector.multi_reduction <add>, %122, %cst_43 [1] : vector<128x32xf32> to vector<128xf32>
    %124 = vector.shape_cast %123 : vector<128xf32> to vector<128x1xf32>
    %cst_44 = arith.constant 3.200000e+01 : f32
    %125 = vector.broadcast %cst_44 : f32 to vector<128x1xf32>
    %126 = arith.divf %124, %125 : vector<128x1xf32>
    %cst_45 = arith.constant 9.99999974E-6 : f32
    %127 = vector.broadcast %cst_45 : f32 to vector<128x1xf32>
    %128 = arith.addf %126, %127 : vector<128x1xf32>
    %129 = math.rsqrt %128 : vector<128x1xf32>
    %130 = vector.broadcast %129 : vector<128x1xf32> to vector<128x32xf32>
    %131 = arith.mulf %121, %130 : vector<128x32xf32>
    %132 = vector.broadcast %114 : vector<1x32xf32> to vector<128x32xf32>
    %133 = arith.mulf %131, %132 : vector<128x32xf32>
    %134 = vector.broadcast %115 : vector<1x32xf32> to vector<128x32xf32>
    %135 = arith.addf %133, %134 : vector<128x32xf32>
    %c1 = arith.constant 1 : index
    %c0_46 = arith.constant 0 : index
    %c0_47 = arith.constant 0 : index
    %136 = vector.load %arg1[%c1, %c0_46, %c0_47] : memref<2x32x96xf32, #tpu.memory_space<vmem>>, vector<1x32x96xf32>
    %137 = vector.shape_cast %136 : vector<1x32x96xf32> to vector<32x96xf32>
    %cst_48 = arith.constant dense<0.000000e+00> : vector<128x96xf32>
    %138 = tpu.matmul %135, %137, %cst_48 {dimension_numbers = #tpu.dot_dimension_numbers<[1], [0], [0], [1], [0, 0, 1, 1], [], []>} : vector<128x32xf32>, vector<32x96xf32>, vector<128x96xf32> -> vector<128x96xf32>
    %cst_49 = arith.constant 1.000000e+00 : f32
    %139 = vector.broadcast %cst_49 : f32 to vector<128x96xf32>
    %140 = arith.cmpf ogt, %138, %139 : vector<128x96xf32>
    %141 = arith.extui %140 : vector<128x96xi1> to vector<128x96xi32>
    %142 = arith.sitofp %141 : vector<128x96xi32> to vector<128x96xf32>
    %143 = vector.extract_strided_slice %142 {offsets = [0, 0], sizes = [128, 32], strides = [1, 1]} : vector<128x96xf32> to vector<128x32xf32>
    %144 = vector.shape_cast %143 : vector<128x32xf32> to vector<16x8x32xf32>
    %145 = vector.extract_strided_slice %142 {offsets = [0, 32], sizes = [128, 32], strides = [1, 1]} : vector<128x96xf32> to vector<128x32xf32>
    %146 = vector.shape_cast %145 : vector<128x32xf32> to vector<16x8x32xf32>
    %147 = vector.extract_strided_slice %142 {offsets = [0, 64], sizes = [128, 32], strides = [1, 1]} : vector<128x96xf32> to vector<128x32xf32>
    %148 = vector.shape_cast %147 : vector<128x32xf32> to vector<16x8x32xf32>
    %149 = vector.extract_strided_slice %144 {offsets = [0, 0, 0], sizes = [16, 8, 8], strides = [1, 1, 1]} : vector<16x8x32xf32> to vector<16x8x8xf32>
    %150 = vector.extract_strided_slice %146 {offsets = [0, 0, 0], sizes = [16, 8, 8], strides = [1, 1, 1]} : vector<16x8x32xf32> to vector<16x8x8xf32>
    %151 = vector.extract_strided_slice %148 {offsets = [0, 0, 0], sizes = [16, 8, 8], strides = [1, 1, 1]} : vector<16x8x32xf32> to vector<16x8x8xf32>
    "tpu.trace_start"() <{level = 10 : i32, message = "nsd,ntd->nst"}> : () -> ()
    %cst_50 = arith.constant dense<0.000000e+00> : vector<16x8x8xf32>
    %152 = tpu.matmul %149, %150, %cst_50 {dimension_numbers = #tpu.dot_dimension_numbers<[2], [2], [1], [1], [0, 0, 0, 1, 1, 1], [0], [0]>} : vector<16x8x8xf32>, vector<16x8x8xf32>, vector<16x8x8xf32> -> vector<16x8x8xf32>
    "tpu.trace_stop"() : () -> ()
    %153 = vector.shape_cast %152 : vector<16x8x8xf32> to vector<2x8x8x8xf32>
    %cst_51 = arith.constant dense<0.000000e+00> : vector<2x8x8xf32>
    %154 = vector.multi_reduction <add>, %153, %cst_51 [1] : vector<2x8x8x8xf32> to vector<2x8x8xf32>
    %155 = vector.shape_cast %154 : vector<2x8x8xf32> to vector<2x1x8x8xf32>
    %156 = vector.shape_cast %155 : vector<2x1x8x8xf32> to vector<2x1x8x8xf32>
    %157 = vector.broadcast %156 : vector<2x1x8x8xf32> to vector<2x8x8x8xf32>
    %158 = vector.shape_cast %157 : vector<2x8x8x8xf32> to vector<16x8x8xf32>
    "tpu.trace_start"() <{level = 10 : i32, message = "nst,ntd->nsd"}> : () -> ()
    %cst_52 = arith.constant dense<0.000000e+00> : vector<16x8x8xf32>
    %159 = tpu.matmul %158, %151, %cst_52 {dimension_numbers = #tpu.dot_dimension_numbers<[2], [1], [1], [2], [0, 0, 0, 1, 1, 2], [0], [0]>} : vector<16x8x8xf32>, vector<16x8x8xf32>, vector<16x8x8xf32> -> vector<16x8x8xf32>
    "tpu.trace_stop"() : () -> ()
    %160 = vector.shape_cast %159 : vector<16x8x8xf32> to vector<128x8xf32>
    %161 = vector.extract_strided_slice %144 {offsets = [0, 0, 8], sizes = [16, 8, 8], strides = [1, 1, 1]} : vector<16x8x32xf32> to vector<16x8x8xf32>
    %162 = vector.extract_strided_slice %146 {offsets = [0, 0, 8], sizes = [16, 8, 8], strides = [1, 1, 1]} : vector<16x8x32xf32> to vector<16x8x8xf32>
    %163 = vector.extract_strided_slice %148 {offsets = [0, 0, 8], sizes = [16, 8, 8], strides = [1, 1, 1]} : vector<16x8x32xf32> to vector<16x8x8xf32>
    "tpu.trace_start"() <{level = 10 : i32, message = "nsd,ntd->nst"}> : () -> ()
    %cst_53 = arith.constant dense<0.000000e+00> : vector<16x8x8xf32>
    %164 = tpu.matmul %161, %162, %cst_53 {dimension_numbers = #tpu.dot_dimension_numbers<[2], [2], [1], [1], [0, 0, 0, 1, 1, 1], [0], [0]>} : vector<16x8x8xf32>, vector<16x8x8xf32>, vector<16x8x8xf32> -> vector<16x8x8xf32>
    "tpu.trace_stop"() : () -> ()
    %165 = vector.shape_cast %164 : vector<16x8x8xf32> to vector<2x8x8x8xf32>
    %cst_54 = arith.constant dense<0.000000e+00> : vector<2x8x8xf32>
    %166 = vector.multi_reduction <add>, %165, %cst_54 [1] : vector<2x8x8x8xf32> to vector<2x8x8xf32>
    %167 = vector.shape_cast %166 : vector<2x8x8xf32> to vector<2x1x8x8xf32>
    %168 = vector.shape_cast %167 : vector<2x1x8x8xf32> to vector<2x1x8x8xf32>
    %169 = vector.broadcast %168 : vector<2x1x8x8xf32> to vector<2x8x8x8xf32>
    %170 = vector.shape_cast %169 : vector<2x8x8x8xf32> to vector<16x8x8xf32>
    "tpu.trace_start"() <{level = 10 : i32, message = "nst,ntd->nsd"}> : () -> ()
    %cst_55 = arith.constant dense<0.000000e+00> : vector<16x8x8xf32>
    %171 = tpu.matmul %170, %163, %cst_55 {dimension_numbers = #tpu.dot_dimension_numbers<[2], [1], [1], [2], [0, 0, 0, 1, 1, 2], [0], [0]>} : vector<16x8x8xf32>, vector<16x8x8xf32>, vector<16x8x8xf32> -> vector<16x8x8xf32>
    "tpu.trace_stop"() : () -> ()
    %172 = vector.shape_cast %171 : vector<16x8x8xf32> to vector<128x8xf32>
    %173 = vector.extract_strided_slice %144 {offsets = [0, 0, 16], sizes = [16, 8, 8], strides = [1, 1, 1]} : vector<16x8x32xf32> to vector<16x8x8xf32>
    %174 = vector.extract_strided_slice %146 {offsets = [0, 0, 16], sizes = [16, 8, 8], strides = [1, 1, 1]} : vector<16x8x32xf32> to vector<16x8x8xf32>
    %175 = vector.extract_strided_slice %148 {offsets = [0, 0, 16], sizes = [16, 8, 8], strides = [1, 1, 1]} : vector<16x8x32xf32> to vector<16x8x8xf32>
    "tpu.trace_start"() <{level = 10 : i32, message = "nsd,ntd->nst"}> : () -> ()
    %cst_56 = arith.constant dense<0.000000e+00> : vector<16x8x8xf32>
    %176 = tpu.matmul %173, %174, %cst_56 {dimension_numbers = #tpu.dot_dimension_numbers<[2], [2], [1], [1], [0, 0, 0, 1, 1, 1], [0], [0]>} : vector<16x8x8xf32>, vector<16x8x8xf32>, vector<16x8x8xf32> -> vector<16x8x8xf32>
    "tpu.trace_stop"() : () -> ()
    %177 = vector.shape_cast %176 : vector<16x8x8xf32> to vector<2x8x8x8xf32>
    %cst_57 = arith.constant dense<0.000000e+00> : vector<2x8x8xf32>
    %178 = vector.multi_reduction <add>, %177, %cst_57 [1] : vector<2x8x8x8xf32> to vector<2x8x8xf32>
    %179 = vector.shape_cast %178 : vector<2x8x8xf32> to vector<2x1x8x8xf32>
    %180 = vector.shape_cast %179 : vector<2x1x8x8xf32> to vector<2x1x8x8xf32>
    %181 = vector.broadcast %180 : vector<2x1x8x8xf32> to vector<2x8x8x8xf32>
    %182 = vector.shape_cast %181 : vector<2x8x8x8xf32> to vector<16x8x8xf32>
    "tpu.trace_start"() <{level = 10 : i32, message = "nst,ntd->nsd"}> : () -> ()
    %cst_58 = arith.constant dense<0.000000e+00> : vector<16x8x8xf32>
    %183 = tpu.matmul %182, %175, %cst_58 {dimension_numbers = #tpu.dot_dimension_numbers<[2], [1], [1], [2], [0, 0, 0, 1, 1, 2], [0], [0]>} : vector<16x8x8xf32>, vector<16x8x8xf32>, vector<16x8x8xf32> -> vector<16x8x8xf32>
    "tpu.trace_stop"() : () -> ()
    %184 = vector.shape_cast %183 : vector<16x8x8xf32> to vector<128x8xf32>
    %185 = vector.extract_strided_slice %144 {offsets = [0, 0, 24], sizes = [16, 8, 8], strides = [1, 1, 1]} : vector<16x8x32xf32> to vector<16x8x8xf32>
    %186 = vector.extract_strided_slice %146 {offsets = [0, 0, 24], sizes = [16, 8, 8], strides = [1, 1, 1]} : vector<16x8x32xf32> to vector<16x8x8xf32>
    %187 = vector.extract_strided_slice %148 {offsets = [0, 0, 24], sizes = [16, 8, 8], strides = [1, 1, 1]} : vector<16x8x32xf32> to vector<16x8x8xf32>
    "tpu.trace_start"() <{level = 10 : i32, message = "nsd,ntd->nst"}> : () -> ()
    %cst_59 = arith.constant dense<0.000000e+00> : vector<16x8x8xf32>
    %188 = tpu.matmul %185, %186, %cst_59 {dimension_numbers = #tpu.dot_dimension_numbers<[2], [2], [1], [1], [0, 0, 0, 1, 1, 1], [0], [0]>} : vector<16x8x8xf32>, vector<16x8x8xf32>, vector<16x8x8xf32> -> vector<16x8x8xf32>
    "tpu.trace_stop"() : () -> ()
    %189 = vector.shape_cast %188 : vector<16x8x8xf32> to vector<2x8x8x8xf32>
    %cst_60 = arith.constant dense<0.000000e+00> : vector<2x8x8xf32>
    %190 = vector.multi_reduction <add>, %189, %cst_60 [1] : vector<2x8x8x8xf32> to vector<2x8x8xf32>
    %191 = vector.shape_cast %190 : vector<2x8x8xf32> to vector<2x1x8x8xf32>
    %192 = vector.shape_cast %191 : vector<2x1x8x8xf32> to vector<2x1x8x8xf32>
    %193 = vector.broadcast %192 : vector<2x1x8x8xf32> to vector<2x8x8x8xf32>
    %194 = vector.shape_cast %193 : vector<2x8x8x8xf32> to vector<16x8x8xf32>
    "tpu.trace_start"() <{level = 10 : i32, message = "nst,ntd->nsd"}> : () -> ()
    %cst_61 = arith.constant dense<0.000000e+00> : vector<16x8x8xf32>
    %195 = tpu.matmul %194, %187, %cst_61 {dimension_numbers = #tpu.dot_dimension_numbers<[2], [1], [1], [2], [0, 0, 0, 1, 1, 2], [0], [0]>} : vector<16x8x8xf32>, vector<16x8x8xf32>, vector<16x8x8xf32> -> vector<16x8x8xf32>
    "tpu.trace_stop"() : () -> ()
    %196 = vector.shape_cast %195 : vector<16x8x8xf32> to vector<128x8xf32>
    %197 = tpu.concatenate %160, %172, %184, %196 in 1 : vector<128x8xf32>, vector<128x8xf32>, vector<128x8xf32>, vector<128x8xf32> -> vector<128x32xf32>
    %c1_62 = arith.constant 1 : index
    %c0_63 = arith.constant 0 : index
    %c0_64 = arith.constant 0 : index
    %198 = vector.load %arg2[%c1_62, %c0_63, %c0_64] : memref<2x32x32xf32, #tpu.memory_space<vmem>>, vector<1x32x32xf32>
    %199 = vector.shape_cast %198 : vector<1x32x32xf32> to vector<32x32xf32>
    %cst_65 = arith.constant dense<0.000000e+00> : vector<128x32xf32>
    %200 = tpu.matmul %197, %199, %cst_65 {dimension_numbers = #tpu.dot_dimension_numbers<[1], [0], [0], [1], [0, 0, 1, 1], [], []>} : vector<128x32xf32>, vector<32x32xf32>, vector<128x32xf32> -> vector<128x32xf32>
    %cst_66 = arith.constant 1.000000e+00 : f32
    %201 = vector.broadcast %cst_66 : f32 to vector<128x32xf32>
    %202 = arith.cmpf ogt, %200, %201 : vector<128x32xf32>
    %203 = arith.extui %202 : vector<128x32xi1> to vector<128x32xi32>
    %204 = arith.sitofp %203 : vector<128x32xi32> to vector<128x32xf32>
    %c1_67 = arith.constant 1 : index
    %c0_68 = arith.constant 0 : index
    %c0_69 = arith.constant 0 : index
    %205 = vector.load %arg5[%c1_67, %c0_68, %c0_69] : memref<2x4x32xf32, #tpu.memory_space<vmem>>, vector<1x4x32xf32>
    %206 = vector.shape_cast %205 : vector<1x4x32xf32> to vector<4x32xf32>
    %207 = arith.addf %135, %204 : vector<128x32xf32>
    %208 = vector.extract_strided_slice %206 {offsets = [0, 0], sizes = [1, 32], strides = [1, 1]} : vector<4x32xf32> to vector<1x32xf32>
    %209 = vector.extract_strided_slice %206 {offsets = [1, 0], sizes = [1, 32], strides = [1, 1]} : vector<4x32xf32> to vector<1x32xf32>
    %cst_70 = arith.constant dense<0.000000e+00> : vector<128xf32>
    %210 = vector.multi_reduction <add>, %207, %cst_70 [1] : vector<128x32xf32> to vector<128xf32>
    %211 = vector.shape_cast %210 : vector<128xf32> to vector<128x1xf32>
    %cst_71 = arith.constant 3.200000e+01 : f32
    %212 = vector.broadcast %cst_71 : f32 to vector<128x1xf32>
    %213 = arith.divf %211, %212 : vector<128x1xf32>
    %214 = vector.broadcast %213 : vector<128x1xf32> to vector<128x32xf32>
    %215 = arith.subf %207, %214 : vector<128x32xf32>
    %216 = arith.mulf %215, %215 : vector<128x32xf32>
    %cst_72 = arith.constant dense<0.000000e+00> : vector<128xf32>
    %217 = vector.multi_reduction <add>, %216, %cst_72 [1] : vector<128x32xf32> to vector<128xf32>
    %218 = vector.shape_cast %217 : vector<128xf32> to vector<128x1xf32>
    %cst_73 = arith.constant 3.200000e+01 : f32
    %219 = vector.broadcast %cst_73 : f32 to vector<128x1xf32>
    %220 = arith.divf %218, %219 : vector<128x1xf32>
    %cst_74 = arith.constant 9.99999974E-6 : f32
    %221 = vector.broadcast %cst_74 : f32 to vector<128x1xf32>
    %222 = arith.addf %220, %221 : vector<128x1xf32>
    %223 = math.rsqrt %222 : vector<128x1xf32>
    %224 = vector.broadcast %223 : vector<128x1xf32> to vector<128x32xf32>
    %225 = arith.mulf %215, %224 : vector<128x32xf32>
    %226 = vector.broadcast %208 : vector<1x32xf32> to vector<128x32xf32>
    %227 = arith.mulf %225, %226 : vector<128x32xf32>
    %228 = vector.broadcast %209 : vector<1x32xf32> to vector<128x32xf32>
    %229 = arith.addf %227, %228 : vector<128x32xf32>
    %c1_75 = arith.constant 1 : index
    %c0_76 = arith.constant 0 : index
    %c0_77 = arith.constant 0 : index
    %230 = vector.load %arg3[%c1_75, %c0_76, %c0_77] : memref<2x32x128xf32, #tpu.memory_space<vmem>>, vector<1x32x128xf32>
    %231 = vector.shape_cast %230 : vector<1x32x128xf32> to vector<32x128xf32>
    %cst_78 = arith.constant dense<0.000000e+00> : vector<128x128xf32>
    %232 = tpu.matmul %229, %231, %cst_78 {dimension_numbers = #tpu.dot_dimension_numbers<[1], [0], [0], [1], [0, 0, 1, 1], [], []>} : vector<128x32xf32>, vector<32x128xf32>, vector<128x128xf32> -> vector<128x128xf32>
    %cst_79 = arith.constant 1.000000e+00 : f32
    %233 = vector.broadcast %cst_79 : f32 to vector<128x128xf32>
    %234 = arith.cmpf ogt, %232, %233 : vector<128x128xf32>
    %235 = arith.extui %234 : vector<128x128xi1> to vector<128x128xi32>
    %236 = arith.sitofp %235 : vector<128x128xi32> to vector<128x128xf32>
    %cst_80 = arith.constant 1.000000e+00 : f32
    %237 = vector.broadcast %cst_80 : f32 to vector<128x128xf32>
    %238 = arith.cmpf ogt, %236, %237 : vector<128x128xf32>
    %239 = arith.extui %238 : vector<128x128xi1> to vector<128x128xi32>
    %240 = arith.sitofp %239 : vector<128x128xi32> to vector<128x128xf32>
    %c1_81 = arith.constant 1 : index
    %c0_82 = arith.constant 0 : index
    %c0_83 = arith.constant 0 : index
    %241 = vector.load %arg4[%c1_81, %c0_82, %c0_83] : memref<2x128x32xf32, #tpu.memory_space<vmem>>, vector<1x128x32xf32>
    %242 = vector.shape_cast %241 : vector<1x128x32xf32> to vector<128x32xf32>
    %cst_84 = arith.constant dense<0.000000e+00> : vector<128x32xf32>
    %243 = tpu.matmul %240, %242, %cst_84 {dimension_numbers = #tpu.dot_dimension_numbers<[1], [0], [0], [1], [0, 0, 1, 1], [], []>} : vector<128x128xf32>, vector<128x32xf32>, vector<128x32xf32> -> vector<128x32xf32>
    %cst_85 = arith.constant 1.000000e+00 : f32
    %244 = vector.broadcast %cst_85 : f32 to vector<128x32xf32>
    %245 = arith.cmpf ogt, %243, %244 : vector<128x32xf32>
    %246 = arith.extui %245 : vector<128x32xi1> to vector<128x32xi32>
    %247 = arith.sitofp %246 : vector<128x32xi32> to vector<128x32xf32>
    %248 = arith.addf %229, %247 : vector<128x32xf32>
    %249 = vector.extract_strided_slice %206 {offsets = [2, 0], sizes = [1, 32], strides = [1, 1]} : vector<4x32xf32> to vector<1x32xf32>
    %250 = vector.extract_strided_slice %206 {offsets = [3, 0], sizes = [1, 32], strides = [1, 1]} : vector<4x32xf32> to vector<1x32xf32>
    %cst_86 = arith.constant dense<0.000000e+00> : vector<128xf32>
    %251 = vector.multi_reduction <add>, %248, %cst_86 [1] : vector<128x32xf32> to vector<128xf32>
    %252 = vector.shape_cast %251 : vector<128xf32> to vector<128x1xf32>
    %cst_87 = arith.constant 3.200000e+01 : f32
    %253 = vector.broadcast %cst_87 : f32 to vector<128x1xf32>
    %254 = arith.divf %252, %253 : vector<128x1xf32>
    %255 = vector.broadcast %254 : vector<128x1xf32> to vector<128x32xf32>
    %256 = arith.subf %248, %255 : vector<128x32xf32>
    %257 = arith.mulf %256, %256 : vector<128x32xf32>
    %cst_88 = arith.constant dense<0.000000e+00> : vector<128xf32>
    %258 = vector.multi_reduction <add>, %257, %cst_88 [1] : vector<128x32xf32> to vector<128xf32>
    %259 = vector.shape_cast %258 : vector<128xf32> to vector<128x1xf32>
    %cst_89 = arith.constant 3.200000e+01 : f32
    %260 = vector.broadcast %cst_89 : f32 to vector<128x1xf32>
    %261 = arith.divf %259, %260 : vector<128x1xf32>
    %cst_90 = arith.constant 9.99999974E-6 : f32
    %262 = vector.broadcast %cst_90 : f32 to vector<128x1xf32>
    %263 = arith.addf %261, %262 : vector<128x1xf32>
    %264 = math.rsqrt %263 : vector<128x1xf32>
    %265 = vector.broadcast %264 : vector<128x1xf32> to vector<128x32xf32>
    %266 = arith.mulf %256, %265 : vector<128x32xf32>
    %267 = vector.broadcast %249 : vector<1x32xf32> to vector<128x32xf32>
    %268 = arith.mulf %266, %267 : vector<128x32xf32>
    %269 = vector.broadcast %250 : vector<1x32xf32> to vector<128x32xf32>
    %270 = arith.addf %268, %269 : vector<128x32xf32>
    %c0_91 = arith.constant 0 : index
    %c0_92 = arith.constant 0 : index
    %271 = vector.load %arg6[%c0_91, %c0_92] : memref<128x32xf32, #tpu.memory_space<vmem>>, vector<128x32xf32>
    tpu.vector_store %arg6[%c0_91, %c0_92], %270 {strides = array<i32>} : memref<128x32xf32, #tpu.memory_space<vmem>>, vector<128x32xf32>,
    return
  }
}

</mosaic_0001>

<bundles_post_ra>
// kernel: spiking_transformer_forward.1
= control target key start
LH: loop header
LB: loop body
LE: loop exit
PB: predicated region body
PF: predicated region fallthrough
CT: control target
= control target key end

     0   :  { %vm43_vm0 = vcmask 261120   ;;  %v31354_v22 = vmov 0.0   ;;  %vm27216_vm1 = vmmov 0   ;;  %s27217_s13 = smov 96   ;;  %s27218_s14 = smov 64   ;;  %s31341_s1 = inlined_call_operand.vmem [shape: f32[2,32,96], index: 1, kind: input, shape index: {}]   ;;  %s31342_s0 = inlined_call_operand.vmem [shape: f32[128,32], index: 0, kind: input, shape index: {}]   ;;  %s31343_s2 = inlined_call_operand.vmem [shape: f32[2,32,32], index: 2, kind: input, shape index: {}]   ;;  %s31344_s3 = inlined_call_operand.vmem [shape: f32[2,32,128], index: 3, kind: input, shape index: {}]   ;;  %s31345_s4 = inlined_call_operand.vmem [shape: f32[2,128,32], index: 4, kind: input, shape index: {}]   ;;  %s31346_s5 = inlined_call_operand.vmem [shape: f32[2,4,32], index: 5, kind: input, shape index: {}]   ;;  %s31347_s6 = inlined_call_operand.vmem [shape: f32[128,32], index: 6, kind: output, shape index: {}]  }
   0x1   :  { %v39_v0 = vld [vmem:[%s31341_s1] sm:$0xff]  ;;  %v40_v1 = vld [vmem:[%s31341_s1 + $0x8] sm:$0xff]  ;;  %v41_v2 = vld [vmem:[%s31341_s1 + $0x10] sm:$0xff]  ;;  %24604 = vmatprep.subr.mxu1 %v31354_v22  ;;  %24606 = vmatprep.mubr.msk.f32.mxu1 %vm27216_vm1, %v31354_v22  ;;  %s27219_s15 = smov 88   ;;  %s27220_s16 = smov 120  }
   0x2   :  { %v26156_v3 = vpack.c.bf16 %v40_v1, %v39_v0  ;;  %v42_v4 = vld [vmem:[%s31341_s1 + $0x18] sm:$0xff]  ;;  %v23_v5 = vld [vmem:[%s31342_s0] sm:$0xff]  ;;  %v24_v7 = vld [vmem:[%s31342_s0 + $0x8] sm:$0xff]  ;;  %s27221_s17 = smov 56   ;;  %s27222_s18 = smov 80  }
   0x3   :  { %v26160_v6 = vpack.c.bf16 %v42_v4, %v41_v2  ;;  %24580 = vmatprep.mubr.msk.f32.mxu0 %vm43_vm0, %v23_v5  ;;  %v25_v8 = vld [vmem:[%s31342_s0 + $0x10] sm:$0xff]  ;;  %v26_v9 = vld [vmem:[%s31342_s0 + $0x18] sm:$0xff]  ;;  %v27_v10 = vld [vmem:[%s31342_s0 + $0x20] sm:$0xff]  ;;  %s27223_s19 = smov 112   ;;  %s27224_s20 = smov 48  }
   0x4   :  { %26157 = vmatprep.subr.bf16.mxu0 %v26156_v3  ;;  %v28_v11 = vld [vmem:[%s31342_s0 + $0x28] sm:$0xff]  ;;  %v29_v12 = vld [vmem:[%s31342_s0 + $0x30] sm:$0xff]  ;;  %v30_v13 = vld [vmem:[%s31342_s0 + $0x38] sm:$0xff]  ;;  %s27225_s21 = smov 72   ;;  %s27226_s22 = smov 104  }
   0x5   :  { %26159 = vmatpush3.bf16.msra.mxu0 %v26156_v3  ;;  %v31_v14 = vld [vmem:[%s31342_s0 + $0x40] sm:$0xff]  ;;  %v32_v15 = vld [vmem:[%s31342_s0 + $0x48] sm:$0xff]  ;;  %v33_v16 = vld [vmem:[%s31342_s0 + $0x50] sm:$0xff]  ;;  %s27227_s23 = smov 40   ;;  %s27228_s24 = smov 8  }
   0x6   :  { %26161 = vmatprep.subr.bf16.mxu0 %v26160_v6  ;;  %v34_v17 = vld [vmem:[%s31342_s0 + $0x58] sm:$0xff]  ;;  %v35_v18 = vld [vmem:[%s31342_s0 + $0x60] sm:$0xff]  ;;  %v36_v19 = vld [vmem:[%s31342_s0 + $0x68] sm:$0xff]  ;;  %s27229_s25 = smov 16   ;;  %s27230_s10 = smov 24  }
   0x7   :  { %v37_v20 = vld [vmem:[%s31342_s0 + $0x70] sm:$0xff]  ;;  %v38_v21 = vld [vmem:[%s31342_s0 + $0x78] sm:$0xff] }
   0x9   :  { %26163 = vmatpush3.bf16.msra.mxu0 %v26160_v6 }
   0xa   :  { %24649 = vmatprep.subr.mxu0 %v31354_v22 }
   0xc   :  { %24581 = vmatmul.mubr.msk.f32.vlgmr.msra.gmra.mrb[0].mxu0 %vm43_vm0, %v24_v7 }
   0xd   :  { %24583 = vmatprep.mubr.msk.f32.mxu0 %vm43_vm0, %v25_v8 }
  0x10   :  { %24584 = vmatmul.mubr.msk.f32.gmra.mrb[2].mxu0 %vm43_vm0, %v26_v9 }
  0x11   :  { %24586 = vmatprep.mubr.msk.f32.mxu0 %vm43_vm0, %v27_v10 }
  0x14   :  { %24587 = vmatmul.mubr.msk.f32.gmra.mrb[4].mxu0 %vm43_vm0, %v28_v11 }
  0x15   :  { %24589 = vmatprep.mubr.msk.f32.mxu0 %vm43_vm0, %v29_v12 }
  0x18   :  { %24590 = vmatmul.mubr.msk.f32.gmra.mrb[6].mxu0 %vm43_vm0, %v30_v13 }
  0x19   :  { %24592 = vmatprep.mubr.msk.f32.mxu0 %vm43_vm0, %v31_v14 }
  0x1c   :  { %24593 = vmatmul.mubr.msk.f32.gmra.mrb[8].mxu0 %vm43_vm0, %v32_v15 }
  0x1d   :  { %24595 = vmatprep.mubr.msk.f32.mxu0 %vm43_vm0, %v33_v16 }
  0x20   :  { %24596 = vmatmul.mubr.msk.f32.gmra.mrb[10].mxu0 %vm43_vm0, %v34_v17 }
  0x21   :  { %24598 = vmatprep.mubr.msk.f32.mxu0 %vm43_vm0, %v35_v18 }
  0x24   :  { %24599 = vmatmul.mubr.msk.f32.gmra.mrb[12].mxu0 %vm43_vm0, %v36_v19 }
  0x25   :  { %24601 = vmatprep.mubr.msk.f32.mxu0 %vm43_vm0, %v37_v20 }
  0x28   :  { %24602 = vmatmul.mubr.msk.f32.gmra.mrb[14].mxu0 %vm43_vm0, %v38_v21 }
  0x29   :  { %24651 = vmatprep.mubr.msk.f32.mxu0 %vm27216_vm1, %v31354_v22 }
  0xdf   :  { %v24582_v23 = vpop.f32.mrb[0].mxu0 }
  0xe0   :  { %v158_v24 = vpop.f32.mrb[1].mxu0  ;;  %vm238_vm3 = vcmp.gt.f32.partialorder %v24582_v23, 1.0 }
  0xe1   :  { %vm237_vm2 = vcmp.gt.f32.partialorder %v158_v24, 1.0  ;;  %v27355_v28 = vsel %vm238_vm3, 1.0, %v31354_v22 }
  0xe2   :  { %v27350_v25 = vsel %vm237_vm2, 1.0, %v31354_v22 }
  0xe3   :  { %286 = vrot.lane.b32.xlu0 %v27350_v25, %s27217_s13  ;;  %v24585_v26 = vpop.f32.mrb[2].mxu0  ;;  %v27429_v55 = vpack.i.bf16 %v27355_v28, %v27350_v25 }
  0xe4   :  { %v168_v27 = vpop.f32.mrb[3].mxu0  ;;  %vm240_vm4 = vcmp.gt.f32.partialorder %v24585_v26, 1.0 }
  0xe5   :  { %vm239_vm5 = vcmp.gt.f32.partialorder %v168_v27, 1.0  ;;  %v27365_v31 = vsel %vm240_vm4, 1.0, %v31354_v22  ;;  %vm288_vm4 = vcmask 64512  }
  0xe6   :  { %v27358_v29 = vsel %vm239_vm5, 1.0, %v31354_v22  ;;  %vm10286_vm5 = vcmask 130048  }
  0xe7   :  { %364 = vrot.lane.b32.xlu0 %v27355_v28, %s27217_s13  ;;  %441 = vrot.lane.b32.xlu1 %v27358_v29, %s27217_s13  ;;  %v24588_v30 = vpop.f32.mrb[4].mxu0  ;;  %v27437_v56 = vpack.i.bf16 %v27365_v31, %v27358_v29 }
  0xe8   :  { %v178_v32 = vpop.f32.mrb[5].mxu0  ;;  %vm242_vm6 = vcmp.gt.f32.partialorder %v24588_v30, 1.0 }
  0xe9   :  { %vm241_vm7 = vcmp.gt.f32.partialorder %v178_v32, 1.0  ;;  %v27375_v35 = vsel %vm242_vm6, 1.0, %v31354_v22  ;;  %vm10303_vm6 = vcmask 195584  }
  0xea   :  { %v27368_v33 = vsel %vm241_vm7, 1.0, %v31354_v22 }
  0xeb   :  { %518 = vrot.lane.b32.xlu1 %v27365_v31, %s27217_s13  ;;  %595 = vrot.lane.b32.xlu0 %v27368_v33, %s27217_s13  ;;  %v24591_v34 = vpop.f32.mrb[6].mxu0  ;;  %v27441_v57 = vpack.i.bf16 %v27375_v35, %v27368_v33 }
  0xec   :  { %v188_v36 = vpop.f32.mrb[7].mxu0  ;;  %vm244_vm8 = vcmp.gt.f32.partialorder %v24591_v34, 1.0 }
  0xed   :  { %vm243_vm9 = vcmp.gt.f32.partialorder %v188_v36, 1.0  ;;  %v27385_v39 = vsel %vm244_vm8, 1.0, %v31354_v22 }
  0xee   :  { %v27378_v37 = vsel %vm243_vm9, 1.0, %v31354_v22 }
  0xef   :  { %672 = vrot.lane.b32.xlu1 %v27375_v35, %s27217_s13  ;;  %749 = vrot.lane.b32.xlu0 %v27378_v37, %s27217_s13  ;;  %v24594_v38 = vpop.f32.mrb[8].mxu0  ;;  %v27449_v58 = vpack.i.bf16 %v27385_v39, %v27378_v37 }
  0xf0   :  { %v198_v40 = vpop.f32.mrb[9].mxu0  ;;  %vm246_vm10 = vcmp.gt.f32.partialorder %v24594_v38, 1.0 }
  0xf1   :  { %vm245_vm11 = vcmp.gt.f32.partialorder %v198_v40, 1.0  ;;  %v27395_v43 = vsel %vm246_vm10, 1.0, %v31354_v22 }
  0xf2   :  { %v27388_v41 = vsel %vm245_vm11, 1.0, %v31354_v22 }
  0xf3   :  { %826 = vrot.lane.b32.xlu1 %v27385_v39, %s27217_s13  ;;  %903 = vrot.lane.b32.xlu0 %v27388_v41, %s27217_s13  ;;  %v24597_v42 = vpop.f32.mrb[10].mxu0  ;;  %v27453_v59 = vpack.i.bf16 %v27395_v43, %v27388_v41 }
  0xf4   :  { %v208_v44 = vpop.f32.mrb[11].mxu0  ;;  %vm248_vm12 = vcmp.gt.f32.partialorder %v24597_v42, 1.0 }
  0xf5   :  { %vm247_vm13 = vcmp.gt.f32.partialorder %v208_v44, 1.0  ;;  %v27405_v47 = vsel %vm248_vm12, 1.0, %v31354_v22 }
  0xf6   :  { %v27398_v45 = vsel %vm247_vm13, 1.0, %v31354_v22 }
  0xf7   :  { %980 = vrot.lane.b32.xlu1 %v27395_v43, %s27217_s13  ;;  %1057 = vrot.lane.b32.xlu0 %v27398_v45, %s27217_s13  ;;  %v24600_v46 = vpop.f32.mrb[12].mxu0  ;;  %v27461_v60 = vpack.i.bf16 %v27405_v47, %v27398_v45 }
  0xf8   :  { %v218_v48 = vpop.f32.mrb[13].mxu0  ;;  %vm250_vm14 = vcmp.gt.f32.partialorder %v24600_v46, 1.0 }
  0xf9   :  { %vm249_vm15 = vcmp.gt.f32.partialorder %v218_v48, 1.0  ;;  %v27415_v51 = vsel %vm250_vm14, 1.0, %v31354_v22 }
  0xfa   :  { %v27408_v49 = vsel %vm249_vm15, 1.0, %v31354_v22 }
  0xfb   :  { %1134 = vrot.lane.b32.xlu1 %v27405_v47, %s27217_s13  ;;  %1211 = vrot.lane.b32.xlu0 %v27408_v49, %s27217_s13  ;;  %v24603_v50 = vpop.f32.mrb[14].mxu0  ;;  %v27465_v61 = vpack.i.bf16 %v27415_v51, %v27408_v49 }
  0xfc   :  { %v228_v52 = vpop.f32.mrb[15].mxu0  ;;  %vm252_vm2 = vcmp.gt.f32.partialorder %v24603_v50, 1.0 }
  0xfd   :  { %vm251_vm3 = vcmp.gt.f32.partialorder %v228_v52, 1.0  ;;  %v27425_v54 = vsel %vm252_vm2, 1.0, %v31354_v22 }
  0xfe   :  { %v27418_v53 = vsel %vm251_vm3, 1.0, %v31354_v22 }
  0xff   :  { %1288 = vrot.lane.b32.xlu1 %v27415_v51, %s27217_s13  ;;  %1365 = vrot.lane.b32.xlu0 %v27418_v53, %s27217_s13  ;;  %v27473_v62 = vpack.i.bf16 %v27425_v54, %v27418_v53 }
 0x103   :  { %1442 = vrot.lane.b32.xlu1 %v27425_v54, %s27217_s13  ;;  %26302 = vrot.lane.b32.xlu0 %v27429_v55, %s27218_s14 }
 0x107   :  { %26307 = vrot.lane.b32.xlu1 %v27437_v56, %s27218_s14  ;;  %26312 = vrot.lane.b32.xlu0 %v27441_v57, %s27218_s14 }
 0x10b   :  { %26317 = vrot.lane.b32.xlu1 %v27449_v58, %s27218_s14  ;;  %26322 = vrot.lane.b32.xlu0 %v27453_v59, %s27218_s14 }
 0x10f   :  { %26327 = vrot.lane.b32.xlu1 %v27461_v60, %s27218_s14  ;;  %26332 = vrot.lane.b32.xlu0 %v27465_v61, %s27218_s14 }
 0x113   :  { %26337 = vrot.lane.b32.xlu1 %v27473_v62, %s27218_s14  ;;  %26342 = vrot.lane.b32.xlu0 %v27429_v55, %s27219_s15 }
 0x117   :  { %26347 = vrot.lane.b32.xlu1 %v27429_v55, %s27220_s16  ;;  %26352 = vrot.lane.b32.xlu0 %v27437_v56, %s27219_s15 }
 0x11b   :  { %26357 = vrot.lane.b32.xlu1 %v27437_v56, %s27220_s16  ;;  %26362 = vrot.lane.b32.xlu0 %v27441_v57, %s27219_s15 }
 0x11f   :  { %26367 = vrot.lane.b32.xlu1 %v27441_v57, %s27220_s16  ;;  %26372 = vrot.lane.b32.xlu0 %v27449_v58, %s27219_s15 }
 0x123   :  { %26377 = vrot.lane.b32.xlu1 %v27449_v58, %s27220_s16  ;;  %26382 = vrot.lane.b32.xlu0 %v27453_v59, %s27219_s15 }
 0x127   :  { %26387 = vrot.lane.b32.xlu1 %v27453_v59, %s27220_s16  ;;  %26392 = vrot.lane.b32.xlu0 %v27461_v60, %s27219_s15 }
 0x12b   :  { %26397 = vrot.lane.b32.xlu1 %v27461_v60, %s27220_s16  ;;  %26402 = vrot.lane.b32.xlu0 %v27465_v61, %s27219_s15 }
 0x12f   :  { %26407 = vrot.lane.b32.xlu1 %v27465_v61, %s27220_s16  ;;  %26412 = vrot.lane.b32.xlu0 %v27473_v62, %s27219_s15 }
 0x133   :  { %3814 = vrot.lane.b32.xlu1 %v27418_v53, %s27220_s16  ;;  %3892 = vrot.lane.b32.xlu0 %v27425_v54, %s27220_s16 }
 0x137   :  { %26417 = vrot.lane.b32.xlu1 %v27429_v55, %s27221_s17  ;;  %26422 = vrot.lane.b32.xlu0 %v27437_v56, %s27221_s17 }
 0x13b   :  { %26427 = vrot.lane.b32.xlu1 %v27441_v57, %s27221_s17  ;;  %26432 = vrot.lane.b32.xlu0 %v27449_v58, %s27221_s17 }
 0x13f   :  { %26437 = vrot.lane.b32.xlu1 %v27453_v59, %s27221_s17  ;;  %26442 = vrot.lane.b32.xlu0 %v27461_v60, %s27221_s17 }
 0x143   :  { %26447 = vrot.lane.b32.xlu1 %v27465_v61, %s27221_s17  ;;  %26452 = vrot.lane.b32.xlu0 %v27473_v62, %s27221_s17 }
 0x147   :  { %26457 = vrot.lane.b32.xlu1 %v27429_v55, %s27222_s18  ;;  %26462 = vrot.lane.b32.xlu0 %v27429_v55, %s27223_s19 }
 0x14b   :  { %26467 = vrot.lane.b32.xlu1 %v27437_v56, %s27222_s18  ;;  %26472 = vrot.lane.b32.xlu0 %v27437_v56, %s27223_s19 }
 0x14f   :  { %26477 = vrot.lane.b32.xlu1 %v27441_v57, %s27222_s18  ;;  %26482 = vrot.lane.b32.xlu0 %v27441_v57, %s27223_s19 }
 0x153   :  { %26487 = vrot.lane.b32.xlu1 %v27449_v58, %s27222_s18  ;;  %26492 = vrot.lane.b32.xlu0 %v27449_v58, %s27223_s19 }
 0x155   :  { %v287_v63 = vpop.permute.xlu0 %286 }
 0x156   :  { %24605 = vmatpush3.xpose.msk.msra.mxu1 %vm288_vm4, %v287_v63 }
 0x157   :  { %26497 = vrot.lane.b32.xlu1 %v27453_v59, %s27222_s18  ;;  %26502 = vrot.lane.b32.xlu0 %v27453_v59, %s27223_s19 }
 0x158   :  { %24609 = vmatprep.subr.mxu1 %v31354_v22 }
 0x159   :  { %24607 = vmatmul.mubr.msk.f32.vlgmr.msra.gmra.mrb[0].mxu1 %vm288_vm4, %v27350_v25  ;;  %v365_v0 = vpop.permute.xlu0 %364  ;;  %v442_v1 = vpop.permute.xlu1 %441 }
 0x15a   :  { %24610 = vmatpush3.xpose.msk.msra.mxu1 %vm288_vm4, %v365_v0  ;;  %24611 = vmatprep.mubr.msk.f32.mxu1 %vm27216_vm1, %v31354_v22 }
 0x15b   :  { %26507 = vrot.lane.b32.xlu1 %v27461_v60, %s27222_s18  ;;  %26512 = vrot.lane.b32.xlu0 %v27461_v60, %s27223_s19 }
 0x15c   :  { %24614 = vmatprep.subr.mxu1 %v31354_v22 }
 0x15d   :  { %24612 = vmatmul.mubr.msk.f32.vlgmr.msra.gmra.mrb[2].mxu1 %vm288_vm4, %v27355_v28  ;;  %v519_v2 = vpop.permute.xlu1 %518  ;;  %v596_v3 = vpop.permute.xlu0 %595 }
 0x15e   :  { %24615 = vmatpush3.xpose.msk.msra.mxu1 %vm288_vm4, %v442_v1  ;;  %24616 = vmatprep.mubr.msk.f32.mxu1 %vm27216_vm1, %v31354_v22 }
 0x15f   :  { %26517 = vrot.lane.b32.xlu1 %v27465_v61, %s27222_s18  ;;  %26522 = vrot.lane.b32.xlu0 %v27465_v61, %s27223_s19 }
 0x160   :  { %24619 = vmatprep.subr.mxu1 %v31354_v22 }
 0x161   :  { %24617 = vmatmul.mubr.msk.f32.vlgmr.msra.gmra.mrb[4].mxu1 %vm288_vm4, %v27358_v29  ;;  %v673_v4 = vpop.permute.xlu1 %672  ;;  %v750_v5 = vpop.permute.xlu0 %749 }
 0x162   :  { %24620 = vmatpush3.xpose.msk.msra.mxu1 %vm288_vm4, %v519_v2  ;;  %24621 = vmatprep.mubr.msk.f32.mxu1 %vm27216_vm1, %v31354_v22 }
 0x163   :  { %26527 = vrot.lane.b32.xlu1 %v27473_v62, %s27222_s18  ;;  %6266 = vrot.lane.b32.xlu0 %v27418_v53, %s27223_s19 }
 0x164   :  { %24624 = vmatprep.subr.mxu1 %v31354_v22 }
 0x165   :  { %24622 = vmatmul.mubr.msk.f32.vlgmr.msra.gmra.mrb[6].mxu1 %vm288_vm4, %v27365_v31  ;;  %v827_v6 = vpop.permute.xlu1 %826  ;;  %v904_v7 = vpop.permute.xlu0 %903 }
 0x166   :  { %24625 = vmatpush3.xpose.msk.msra.mxu1 %vm288_vm4, %v596_v3  ;;  %24626 = vmatprep.mubr.msk.f32.mxu1 %vm27216_vm1, %v31354_v22 }
 0x167   :  { %6344 = vrot.lane.b32.xlu1 %v27425_v54, %s27223_s19  ;;  %26532 = vrot.lane.b32.xlu0 %v27429_v55, %s27224_s20 }
 0x168   :  { %24629 = vmatprep.subr.mxu1 %v31354_v22 }
 0x169   :  { %24627 = vmatmul.mubr.msk.f32.vlgmr.msra.gmra.mrb[8].mxu1 %vm288_vm4, %v27368_v33  ;;  %v981_v8 = vpop.permute.xlu1 %980  ;;  %v1058_v9 = vpop.permute.xlu0 %1057 }
 0x16a   :  { %24630 = vmatpush3.xpose.msk.msra.mxu1 %vm288_vm4, %v673_v4  ;;  %24650 = vmatpush3.xpose.msk.msra.mxu0 %vm288_vm4, %v981_v8 }
 0x16b   :  { %26537 = vrot.lane.b32.xlu1 %v27437_v56, %s27224_s20  ;;  %26542 = vrot.lane.b32.xlu0 %v27441_v57, %s27224_s20 }
 0x16c   :  { %24631 = vmatprep.mubr.msk.f32.mxu1 %vm27216_vm1, %v31354_v22  ;;  %24634 = vmatprep.subr.mxu1 %v31354_v22 }
 0x16d   :  { %24632 = vmatmul.mubr.msk.f32.vlgmr.msra.gmra.mrb[10].mxu1 %vm288_vm4, %v27375_v35  ;;  %24652 = vmatmul.mubr.msk.f32.vlgmr.msra.gmra.mrb[16].mxu0 %vm288_vm4, %v27395_v43  ;;  %v1135_v10 = vpop.permute.xlu1 %1134  ;;  %v1212_v11 = vpop.permute.xlu0 %1211 }
 0x16e   :  { %24659 = vmatprep.subr.mxu0 %v31354_v22  ;;  %24635 = vmatpush3.xpose.msk.msra.mxu1 %vm288_vm4, %v750_v5 }
 0x16f   :  { %24660 = vmatpush3.xpose.msk.msra.mxu0 %vm288_vm4, %v1135_v10  ;;  %26547 = vrot.lane.b32.xlu1 %v27449_v58, %s27224_s20 }
 0x170   :  { %26552 = vrot.lane.b32.xlu0 %v27453_v59, %s27224_s20  ;;  %24636 = vmatprep.mubr.msk.f32.mxu1 %vm27216_vm1, %v31354_v22 }
 0x171   :  { %24661 = vmatprep.mubr.msk.f32.mxu0 %vm27216_vm1, %v31354_v22  ;;  %24637 = vmatmul.mubr.msk.f32.vlgmr.msra.gmra.mrb[12].mxu1 %vm288_vm4, %v27378_v37  ;;  %v1289_v12 = vpop.permute.xlu1 %1288  ;;  %v1366_v13 = vpop.permute.xlu0 %1365 }
 0x172   :  { %24639 = vmatprep.subr.mxu1 %v31354_v22  ;;  %24662 = vmatmul.mubr.msk.f32.vlgmr.msra.gmra.mrb[18].mxu0 %vm288_vm4, %v27405_v47 }
 0x173   :  { %24669 = vmatprep.subr.mxu0 %v31354_v22  ;;  %24640 = vmatpush3.xpose.msk.msra.mxu1 %vm288_vm4, %v827_v6 }
 0x174   :  { %24670 = vmatpush3.xpose.msk.msra.mxu0 %vm288_vm4, %v1289_v12  ;;  %26557 = vrot.lane.b32.xlu1 %v27461_v60, %s27224_s20 }
 0x175   :  { %26562 = vrot.lane.b32.xlu0 %v27465_v61, %s27224_s20  ;;  %24641 = vmatprep.mubr.msk.f32.mxu1 %vm27216_vm1, %v31354_v22  ;;  %v1443_v14 = vpop.permute.xlu1 %1442  ;;  %v26303_v15 = vpop.permute.xlu0 %26302 }
 0x176   :  { %24671 = vmatprep.mubr.msk.f32.mxu0 %vm27216_vm1, %v31354_v22  ;;  %24642 = vmatmul.mubr.msk.f32.vlgmr.msra.gmra.mrb[14].mxu1 %vm288_vm4, %v27385_v39  ;;  %v26305_v16 = vunpack.i.h.bf16 %v26303_v15  ;;  %v26304_v17 = vunpack.i.l.bf16 %v26303_v15 }
 0x177   :  { %24644 = vmatprep.subr.mxu1 %v31354_v22  ;;  %24672 = vmatmul.mubr.msk.f32.vlgmr.msra.gmra.mrb[20].mxu0 %vm288_vm4, %v27415_v51 }
 0x178   :  { %24679 = vmatprep.subr.mxu0 %v31354_v22  ;;  %24645 = vmatpush3.xpose.msk.msra.mxu1 %vm288_vm4, %v904_v7 }
 0x179   :  { %24680 = vmatpush3.xpose.msk.msra.mxu0 %vm288_vm4, %v1443_v14  ;;  %26567 = vrot.lane.b32.xlu1 %v27473_v62, %s27224_s20  ;;  %v26308_v44 = vpop.permute.xlu1 %26307 }
 0x17a   :  { %26572 = vrot.lane.b32.xlu0 %v27429_v55, %s27225_s21  ;;  %24646 = vmatprep.mubr.msk.f32.mxu1 %vm27216_vm1, %v31354_v22 }
 0x17b   :  { %24681 = vmatprep.mubr.msk.f32.mxu0 %vm27216_vm1, %v31354_v22  ;;  %24647 = vmatmul.mubr.msk.f32.vlgmr.msra.gmra.mrb[16].mxu1 %vm288_vm4, %v27388_v41 }
 0x17c   :  { %24654 = vmatprep.subr.mxu1 %v31354_v22  ;;  %24682 = vmatmul.mubr.msk.f32.vlgmr.msra.gmra.mrb[22].mxu0 %vm288_vm4, %v27425_v54 }
 0x17d   :  { %24689 = vmatprep.subr.mxu0 %v31354_v22  ;;  %24655 = vmatpush3.xpose.msk.msra.mxu1 %vm288_vm4, %v1058_v9  ;;  %v26318_v51 = vpop.permute.xlu1 %26317 }
 0x17e   :  { %24690 = vmatpush3.msra.mxu0 %v26305_v16  ;;  %26577 = vrot.lane.b32.xlu1 %v27429_v55, %s27226_s22  ;;  %v26320_v9 = vunpack.i.h.bf16 %v26318_v51  ;;  %v26319_v10 = vunpack.i.l.bf16 %v26318_v51 }
 0x17f   :  { %26582 = vrot.lane.b32.xlu0 %v27437_v56, %s27225_s21  ;;  %24656 = vmatprep.mubr.msk.f32.mxu1 %vm27216_vm1, %v31354_v22 }
 0x180   :  { %24657 = vmatmul.mubr.msk.f32.vlgmr.msra.gmra.mrb[18].mxu1 %vm288_vm4, %v27398_v45  ;;  %24664 = vmatprep.subr.mxu1 %v31354_v22 }
 0x181   :  { %24665 = vmatpush3.xpose.msk.msra.mxu1 %vm288_vm4, %v1212_v11  ;;  %24666 = vmatprep.mubr.msk.f32.mxu1 %vm27216_vm1, %v31354_v22  ;;  %v26328_v4 = vpop.permute.xlu1 %26327 }
 0x182   :  { %26587 = vrot.lane.b32.xlu1 %v27437_v56, %s27226_s22  ;;  %24674 = vmatprep.subr.mxu1 %v31354_v22 }
 0x183   :  { %26592 = vrot.lane.b32.xlu0 %v27441_v57, %s27225_s21  ;;  %24691 = vmatprep.mubr.msk.f32.mxu0 %vm27216_vm1, %v31354_v22 }
 0x184   :  { %24667 = vmatmul.mubr.msk.f32.vlgmr.msra.gmra.mrb[20].mxu1 %vm288_vm4, %v27408_v49  ;;  %24699 = vmatprep.subr.mxu0 %v31354_v22 }
 0x185   :  { %24675 = vmatpush3.xpose.msk.msra.mxu1 %vm288_vm4, %v1366_v13  ;;  %24676 = vmatprep.mubr.msk.f32.mxu1 %vm27216_vm1, %v31354_v22  ;;  %v27754_v14 = vpop.permute.xlu1 %26337 }
 0x186   :  { %26597 = vrot.lane.b32.xlu1 %v27441_v57, %s27226_s22  ;;  %24684 = vmatprep.subr.mxu1 %v31354_v22 }
 0x187   :  { %26602 = vrot.lane.b32.xlu0 %v27449_v58, %s27225_s21 }
 0x188   :  { %24677 = vmatmul.mubr.msk.f32.vlgmr.msra.gmra.mrb[22].mxu1 %vm288_vm4, %v27418_v53 }
 0x189   :  { %24685 = vmatpush3.msra.mxu1 %v26304_v17  ;;  %24686 = vmatprep.mubr.msk.f32.mxu1 %vm27216_vm1, %v31354_v22 }
 0x18a   :  { %26607 = vrot.lane.b32.xlu1 %v27449_v58, %s27226_s22  ;;  %24694 = vmatprep.subr.mxu1 %v31354_v22 }
 0x18b   :  { %26612 = vrot.lane.b32.xlu0 %v27453_v59, %s27225_s21 }
 0x18e   :  { %26617 = vrot.lane.b32.xlu1 %v27453_v59, %s27226_s22 }
 0x18f   :  { %26622 = vrot.lane.b32.xlu0 %v27461_v60, %s27225_s21 }
 0x192   :  { %26627 = vrot.lane.b32.xlu1 %v27461_v60, %s27226_s22 }
 0x193   :  { %26632 = vrot.lane.b32.xlu0 %v27465_v61, %s27225_s21 }
 0x196   :  { %26637 = vrot.lane.b32.xlu1 %v27465_v61, %s27226_s22 }
 0x197   :  { %26642 = vrot.lane.b32.xlu0 %v27473_v62, %s27225_s21 }
 0x19a   :  { %8718 = vrot.lane.b32.xlu1 %v27418_v53, %s27226_s22 }
 0x19b   :  { %8796 = vrot.lane.b32.xlu0 %v27425_v54, %s27226_s22 }
 0x19e   :  { %26647 = vrot.lane.b32.xlu1 %v27429_v55, %s27227_s23 }
 0x19f   :  { %26652 = vrot.lane.b32.xlu0 %v27437_v56, %s27227_s23 }
 0x1a2   :  { %26657 = vrot.lane.b32.xlu1 %v27441_v57, %s27227_s23 }
 0x1a3   :  { %26662 = vrot.lane.b32.xlu0 %v27449_v58, %s27227_s23  ;;  %v26310_v58 = vunpack.i.h.bf16 %v26308_v44 }
 0x1a6   :  { %26667 = vrot.lane.b32.xlu1 %v27453_v59, %s27227_s23  ;;  %v26309_v59 = vunpack.i.l.bf16 %v26308_v44 }
 0x1a7   :  { %26672 = vrot.lane.b32.xlu0 %v27461_v60, %s27227_s23  ;;  %v26313_v60 = vpop.permute.xlu0 %26312 }
 0x1a8   :  { %v26315_v2 = vunpack.i.h.bf16 %v26313_v60  ;;  %v26314_v3 = vunpack.i.l.bf16 %v26313_v60 }
 0x1aa   :  { %26677 = vrot.lane.b32.xlu1 %v27465_v61, %s27227_s23 }
 0x1ab   :  { %26682 = vrot.lane.b32.xlu0 %v27473_v62, %s27227_s23  ;;  %v26323_v7 = vpop.permute.xlu0 %26322 }
 0x22c   :  { %v359_v18 = vpop.f32.mrb[0].mxu1 }
 0x22d   :  { %v24608_v19 = vpop.f32.mrb[1].mxu1  ;;  %v1518_v21 = vsel %vm288_vm4, %v359_v18, 0.0  ;;  %v26325_v18 = vunpack.i.h.bf16 %v26323_v7 }
 0x22e   :  { %v26324_v19 = vunpack.i.l.bf16 %v26323_v7 }
 0x230   :  { %v436_v20 = vpop.f32.mrb[2].mxu1 }
 0x231   :  { %v1519_v23 = vsel %vm288_vm4, %v436_v20, 0.0  ;;  %v24613_v24 = vpop.f32.mrb[3].mxu1  ;;  %v26333_v20 = vpop.permute.xlu0 %26332 }
 0x232   :  { %v1520_v25 = vadd.f32 %v1519_v23, %v1518_v21 }
 0x234   :  { %v513_v26 = vpop.f32.mrb[4].mxu1 }
 0x235   :  { %v1521_v27 = vsel %vm288_vm4, %v513_v26, 0.0  ;;  %v24618_v28 = vpop.f32.mrb[5].mxu1 }
 0x236   :  { %v1522_v29 = vadd.f32 %v1521_v27, %v1520_v25  ;;  %v26348_v28 = vpop.permute.xlu1 %26347 }
 0x238   :  { %v590_v30 = vpop.f32.mrb[6].mxu1 }
 0x239   :  { %v1523_v31 = vsel %vm288_vm4, %v590_v30, 0.0  ;;  %v24623_v32 = vpop.f32.mrb[7].mxu1 }
 0x23a   :  { %v1524_v33 = vadd.f32 %v1523_v31, %v1522_v29  ;;  %v26343_v32 = vpop.permute.xlu0 %26342 }
 0x23c   :  { %v667_v34 = vpop.f32.mrb[8].mxu1 }
 0x23d   :  { %v1525_v35 = vsel %vm288_vm4, %v667_v34, 0.0  ;;  %v24628_v36 = vpop.f32.mrb[9].mxu1 }
 0x23e   :  { %v1526_v37 = vadd.f32 %v1525_v35, %v1524_v33  ;;  %v26330_v35 = vunpack.i.h.bf16 %v26328_v4  ;;  %v26329_v36 = vunpack.i.l.bf16 %v26328_v4 }
 0x240   :  { %v744_v38 = vpop.f32.mrb[10].mxu1  ;;  %v1052_v39 = vpop.f32.mrb[16].mxu0 }
 0x241   :  { %v1527_v40 = vsel %vm288_vm4, %v744_v38, 0.0  ;;  %v24633_v41 = vpop.f32.mrb[11].mxu1  ;;  %v24653_v42 = vpop.f32.mrb[17].mxu0  ;;  %v1534_v62 = vsel %vm288_vm4, %v1052_v39, 0.0  ;;  %v26335_v38 = vunpack.i.h.bf16 %v26333_v20  ;;  %v26334_v39 = vunpack.i.l.bf16 %v26333_v20 }
 0x242   :  { %v1528_v43 = vadd.f32 %v1527_v40, %v1526_v37  ;;  %v26358_v37 = vpop.permute.xlu1 %26357  ;;  %v26353_v40 = vpop.permute.xlu0 %26352  ;;  %v26340_v41 = vunpack.i.h.bf16 %v27754_v14  ;;  %v26339_v42 = vunpack.i.l.bf16 %v27754_v14 }
 0x243   :  { %v26355_v51 = vunpack.i.h.bf16 %v26353_v40 }
 0x244   :  { %v821_v45 = vpop.f32.mrb[12].mxu1 }
 0x245   :  { %v1529_v46 = vsel %vm288_vm4, %v821_v45, 0.0  ;;  %v1206_v47 = vpop.f32.mrb[18].mxu0  ;;  %v24638_v48 = vpop.f32.mrb[13].mxu1 }
 0x246   :  { %v1530_v49 = vadd.f32 %v1529_v46, %v1528_v43  ;;  %v24663_v50 = vpop.f32.mrb[19].mxu0  ;;  %v1538_v15 = vsel %vm288_vm4, %v1206_v47, 0.0  ;;  %v26368_v43 = vpop.permute.xlu1 %26367  ;;  %v26345_v46 = vunpack.i.h.bf16 %v26343_v32  ;;  %v26344_v47 = vunpack.i.l.bf16 %v26343_v32 }
 0x247   :  { %v26363_v44 = vpop.permute.xlu0 %26362  ;;  %v26349_v50 = vunpack.i.l.bf16 %v26348_v28  ;;  %v26369_v60 = vunpack.i.l.bf16 %v26368_v43 }
 0x249   :  { %v898_v52 = vpop.f32.mrb[14].mxu1 }
 0x24a   :  { %v1531_v53 = vsel %vm288_vm4, %v898_v52, 0.0  ;;  %v1360_v54 = vpop.f32.mrb[20].mxu0  ;;  %v24643_v55 = vpop.f32.mrb[15].mxu1  ;;  %v26354_v52 = vunpack.i.l.bf16 %v26353_v40 }
 0x24b   :  { %v1532_v56 = vadd.f32 %v1531_v53, %v1530_v49  ;;  %v24673_v57 = vpop.f32.mrb[21].mxu0  ;;  %v1542_v25 = vsel %vm288_vm4, %v1360_v54, 0.0  ;;  %v26378_v45 = vpop.permute.xlu1 %26377  ;;  %v26350_v49 = vunpack.i.h.bf16 %v26348_v28  ;;  %v26360_v54 = vunpack.i.h.bf16 %v26358_v37 }
 0x24c   :  { %v26373_v48 = vpop.permute.xlu0 %26372  ;;  %v26359_v55 = vunpack.i.l.bf16 %v26358_v37  ;;  %v26365_v57 = vunpack.i.h.bf16 %v26363_v44 }
 0x24d   :  { %24687 = vmatmul.mubr.msk.f32.vlgmr.msra.gmra.mrb[24].mxu1 %vm288_vm4, %v1532_v56  ;;  %24692 = vmatmul.mubr.msk.f32.vlgmr.msra.gmra.mrb[24].mxu0 %vm288_vm4, %v1532_v56 }
 0x24e   :  { %v975_v61 = vpop.f32.mrb[16].mxu1  ;;  %24695 = vmatpush3.msra.mxu1 %v26309_v59  ;;  %24700 = vmatpush3.msra.mxu0 %v26310_v58  ;;  %v26364_v58 = vunpack.i.l.bf16 %v26363_v44  ;;  %v26370_v59 = vunpack.i.h.bf16 %v26368_v43 }
 0x24f   :  { %v1533_v63 = vsel %vm288_vm4, %v975_v61, 0.0  ;;  %v1514_v0 = vpop.f32.mrb[22].mxu0  ;;  %v24648_v1 = vpop.f32.mrb[17].mxu1  ;;  %24696 = vmatprep.mubr.msk.f32.mxu1 %vm27216_vm1, %v31354_v22  ;;  %24701 = vmatprep.mubr.msk.f32.mxu0 %vm27216_vm1, %v31354_v22 }
 0x250   :  { %v1535_v5 = vadd.f32 %v1534_v62, %v1533_v63  ;;  %v24683_v6 = vpop.f32.mrb[23].mxu0  ;;  %24704 = vmatprep.subr.mxu1 %v31354_v22  ;;  %24709 = vmatprep.subr.mxu0 %v31354_v22  ;;  %v1546_v33 = vsel %vm288_vm4, %v1514_v0, 0.0  ;;  %v26388_v53 = vpop.permute.xlu1 %26387  ;;  %v26375_v62 = vunpack.i.h.bf16 %v26373_v48  ;;  %v26374_v63 = vunpack.i.l.bf16 %v26373_v48 }
 0x251   :  { %24697 = vmatmul.mubr.msk.f32.vlgmr.msra.gmra.mrb[26].mxu1 %vm288_vm4, %v1532_v56  ;;  %24702 = vmatmul.mubr.msk.f32.vlgmr.msra.gmra.mrb[26].mxu0 %vm288_vm4, %v1532_v56  ;;  %v26380_v1 = vunpack.i.h.bf16 %v26378_v45  ;;  %v26390_v6 = vunpack.i.h.bf16 %v26388_v53  ;;  %v26389_v7 = vunpack.i.l.bf16 %v26388_v53 }
 0x252   :  { %24705 = vmatpush3.msra.mxu1 %v26314_v3  ;;  %24710 = vmatpush3.msra.mxu0 %v26315_v2  ;;  %v26379_v2 = vunpack.i.l.bf16 %v26378_v45 }
 0x253   :  { %v1129_v8 = vpop.f32.mrb[18].mxu1  ;;  %24706 = vmatprep.mubr.msk.f32.mxu1 %vm27216_vm1, %v31354_v22  ;;  %24711 = vmatprep.mubr.msk.f32.mxu0 %vm27216_vm1, %v31354_v22 }
 0x254   :  { %v1536_v11 = vsel %vm288_vm4, %v1129_v8, 0.0  ;;  %v24658_v12 = vpop.f32.mrb[19].mxu1  ;;  %24714 = vmatprep.subr.mxu1 %v31354_v22  ;;  %24719 = vmatprep.subr.mxu0 %v31354_v22  ;;  %v26398_v61 = vpop.permute.xlu1 %26397 }
 0x255   :  { %v1537_v13 = vadd.f32 %v1536_v11, %v1535_v5  ;;  %24707 = vmatmul.mubr.msk.f32.vlgmr.msra.gmra.mrb[28].mxu1 %vm288_vm4, %v1532_v56  ;;  %24712 = vmatmul.mubr.msk.f32.vlgmr.msra.gmra.mrb[28].mxu0 %vm288_vm4, %v1532_v56  ;;  %v26400_v11 = vunpack.i.h.bf16 %v26398_v61  ;;  %v26399_v12 = vunpack.i.l.bf16 %v26398_v61 }
 0x256   :  { %24715 = vmatpush3.msra.mxu1 %v26319_v10  ;;  %24720 = vmatpush3.msra.mxu0 %v26320_v9 }
 0x257   :  { %v1283_v16 = vpop.f32.mrb[20].mxu1  ;;  %v1539_v17 = vadd.f32 %v1538_v15, %v1537_v13  ;;  %24716 = vmatprep.mubr.msk.f32.mxu1 %vm27216_vm1, %v31354_v22  ;;  %24721 = vmatprep.mubr.msk.f32.mxu0 %vm27216_vm1, %v31354_v22 }
 0x258   :  { %v1540_v21 = vsel %vm288_vm4, %v1283_v16, 0.0  ;;  %v24668_v23 = vpop.f32.mrb[21].mxu1  ;;  %24724 = vmatprep.subr.mxu1 %v31354_v22  ;;  %24729 = vmatprep.subr.mxu0 %v31354_v22  ;;  %v26408_v5 = vpop.permute.xlu1 %26407 }
 0x259   :  { %v1541_v24 = vadd.f32 %v1540_v21, %v1539_v17  ;;  %24717 = vmatmul.mubr.msk.f32.vlgmr.msra.gmra.mrb[30].mxu1 %vm288_vm4, %v1532_v56  ;;  %24722 = vmatmul.mubr.msk.f32.vlgmr.msra.gmra.mrb[30].mxu0 %vm288_vm4, %v1532_v56  ;;  %v26383_v56 = vpop.permute.xlu0 %26382  ;;  %v26410_v17 = vunpack.i.h.bf16 %v26408_v5 }
 0x25a   :  { %24725 = vmatpush3.msra.mxu1 %v26324_v19  ;;  %24730 = vmatpush3.msra.mxu0 %v26325_v18  ;;  %v26385_v3 = vunpack.i.h.bf16 %v26383_v56  ;;  %v26384_v4 = vunpack.i.l.bf16 %v26383_v56  ;;  %v26409_v18 = vunpack.i.l.bf16 %v26408_v5 }
 0x25b   :  { %v1437_v26 = vpop.f32.mrb[22].mxu1  ;;  %v1543_v27 = vadd.f32 %v1542_v25, %v1541_v24  ;;  %24726 = vmatprep.mubr.msk.f32.mxu1 %vm27216_vm1, %v31354_v22  ;;  %24731 = vmatprep.mubr.msk.f32.mxu0 %vm27216_vm1, %v31354_v22 }
 0x25c   :  { %v1544_v29 = vsel %vm288_vm4, %v1437_v26, 0.0  ;;  %v24678_v30 = vpop.f32.mrb[23].mxu1  ;;  %24734 = vmatprep.subr.mxu1 %v31354_v22  ;;  %24739 = vmatprep.subr.mxu0 %v31354_v22  ;;  %v3815_v13 = vpop.permute.xlu1 %3814 }
 0x25d   :  { %v1545_v31 = vadd.f32 %v1544_v29, %v1543_v27  ;;  %v26393_v0 = vpop.permute.xlu0 %26392 }
 0x25e   :  { %v26395_v9 = vunpack.i.h.bf16 %v26393_v0  ;;  %v26394_v10 = vunpack.i.l.bf16 %v26393_v0 }
 0x25f   :  { %v1547_v34 = vadd.f32 %v1546_v33, %v1545_v31 }
 0x260   :  { %v26418_v21 = vpop.permute.xlu1 %26417 }
 0x261   :  { %24727 = vmatmul.mubr.msk.f32.vlgmr.msra.gmra.mrb[32].mxu1 %vm288_vm4, %v1547_v34  ;;  %24732 = vmatmul.mubr.msk.f32.vlgmr.msra.gmra.mrb[32].mxu0 %vm288_vm4, %v1547_v34  ;;  %v26403_v8 = vpop.permute.xlu0 %26402  ;;  %v26420_v24 = vunpack.i.h.bf16 %v26418_v21  ;;  %v26419_v25 = vunpack.i.l.bf16 %v26418_v21 }
 0x262   :  { %24735 = vmatpush3.msra.mxu1 %v26329_v36  ;;  %24740 = vmatpush3.msra.mxu0 %v26330_v35  ;;  %v26405_v14 = vunpack.i.h.bf16 %v26403_v8  ;;  %v26404_v15 = vunpack.i.l.bf16 %v26403_v8 }
 0x263   :  { %24736 = vmatprep.mubr.msk.f32.mxu1 %vm27216_vm1, %v31354_v22  ;;  %24741 = vmatprep.mubr.msk.f32.mxu0 %vm27216_vm1, %v31354_v22 }
 0x264   :  { %24744 = vmatprep.subr.mxu1 %v31354_v22  ;;  %24749 = vmatprep.subr.mxu0 %v31354_v22 }
 0x265   :  { %24737 = vmatmul.mubr.msk.f32.vlgmr.msra.gmra.mrb[34].mxu1 %vm288_vm4, %v1547_v34  ;;  %24742 = vmatmul.mubr.msk.f32.vlgmr.msra.gmra.mrb[34].mxu0 %vm288_vm4, %v1547_v34  ;;  %v26413_v16 = vpop.permute.xlu0 %26412 }
 0x266   :  { %24745 = vmatpush3.msra.mxu1 %v26334_v39  ;;  %24750 = vmatpush3.msra.mxu0 %v26335_v38  ;;  %v26415_v19 = vunpack.i.h.bf16 %v26413_v16  ;;  %v26414_v20 = vunpack.i.l.bf16 %v26413_v16 }
 0x267   :  { %24746 = vmatprep.mubr.msk.f32.mxu1 %vm27216_vm1, %v31354_v22  ;;  %24751 = vmatprep.mubr.msk.f32.mxu0 %vm27216_vm1, %v31354_v22 }
 0x268   :  { %24754 = vmatprep.subr.mxu1 %v31354_v22  ;;  %24759 = vmatprep.subr.mxu0 %v31354_v22 }
 0x269   :  { %24747 = vmatmul.mubr.msk.f32.vlgmr.msra.gmra.mrb[36].mxu1 %vm288_vm4, %v1547_v34  ;;  %24752 = vmatmul.mubr.msk.f32.vlgmr.msra.gmra.mrb[36].mxu0 %vm288_vm4, %v1547_v34  ;;  %v3893_v23 = vpop.permute.xlu0 %3892 }
 0x26a   :  { %24755 = vmatpush3.msra.mxu1 %v26339_v42  ;;  %24760 = vmatpush3.msra.mxu0 %v26340_v41 }
 0x26b   :  { %24756 = vmatprep.mubr.msk.f32.mxu1 %vm27216_vm1, %v31354_v22  ;;  %24761 = vmatprep.mubr.msk.f32.mxu0 %vm27216_vm1, %v31354_v22 }
 0x26c   :  { %24764 = vmatprep.subr.mxu1 %v31354_v22  ;;  %24769 = vmatprep.subr.mxu0 %v31354_v22 }
 0x26d   :  { %24757 = vmatmul.mubr.msk.f32.vlgmr.msra.gmra.mrb[38].mxu1 %vm288_vm4, %v1547_v34  ;;  %24762 = vmatmul.mubr.msk.f32.vlgmr.msra.gmra.mrb[38].mxu0 %vm288_vm4, %v1547_v34 }
 0x26e   :  { %24766 = vmatprep.mubr.msk.f32.mxu1 %vm27216_vm1, %v31354_v22  ;;  %24771 = vmatprep.mubr.msk.f32.mxu0 %vm27216_vm1, %v31354_v22 }
 0x271   :  { %24765 = vmatpush3.xpose.msk.msra.mxu1 %vm288_vm4, %v26344_v47  ;;  %24770 = vmatpush3.xpose.msk.msra.mxu0 %vm288_vm4, %v26345_v46 }
 0x272   :  { %24774 = vmatprep.subr.mxu1 %v31354_v22  ;;  %24779 = vmatprep.subr.mxu0 %v31354_v22 }
 0x274   :  { %24767 = vmatmul.mubr.msk.f32.vlgmr.msra.gmra.mrb[40].mxu1 %vm288_vm4, %v26349_v50  ;;  %24772 = vmatmul.mubr.msk.f32.vlgmr.msra.gmra.mrb[40].mxu0 %vm288_vm4, %v26350_v49 }
 0x275   :  { %24775 = vmatpush3.xpose.msk.msra.mxu1 %vm288_vm4, %v26354_v52  ;;  %24780 = vmatpush3.xpose.msk.msra.mxu0 %vm288_vm4, %v26355_v51 }
 0x276   :  { %24776 = vmatprep.mubr.msk.f32.mxu1 %vm27216_vm1, %v31354_v22  ;;  %24781 = vmatprep.mubr.msk.f32.mxu0 %vm27216_vm1, %v31354_v22 }
 0x277   :  { %24784 = vmatprep.subr.mxu1 %v31354_v22  ;;  %24789 = vmatprep.subr.mxu0 %v31354_v22 }
 0x278   :  { %24777 = vmatmul.mubr.msk.f32.vlgmr.msra.gmra.mrb[42].mxu1 %vm288_vm4, %v26359_v55  ;;  %24782 = vmatmul.mubr.msk.f32.vlgmr.msra.gmra.mrb[42].mxu0 %vm288_vm4, %v26360_v54 }
 0x279   :  { %24785 = vmatpush3.xpose.msk.msra.mxu1 %vm288_vm4, %v26364_v58  ;;  %24790 = vmatpush3.xpose.msk.msra.mxu0 %vm288_vm4, %v26365_v57  ;;  %v26423_v58 = vpop.permute.xlu0 %26422 }
 0x27a   :  { %24786 = vmatprep.mubr.msk.f32.mxu1 %vm27216_vm1, %v31354_v22  ;;  %24791 = vmatprep.mubr.msk.f32.mxu0 %vm27216_vm1, %v31354_v22 }
 0x27b   :  { %24794 = vmatprep.subr.mxu1 %v31354_v22  ;;  %24799 = vmatprep.subr.mxu0 %v31354_v22 }
 0x27c   :  { %24787 = vmatmul.mubr.msk.f32.vlgmr.msra.gmra.mrb[44].mxu1 %vm288_vm4, %v26369_v60  ;;  %24792 = vmatmul.mubr.msk.f32.vlgmr.msra.gmra.mrb[44].mxu0 %vm288_vm4, %v26370_v59 }
 0x27d   :  { %24795 = vmatpush3.xpose.msk.msra.mxu1 %vm288_vm4, %v26374_v63  ;;  %24800 = vmatpush3.xpose.msk.msra.mxu0 %vm288_vm4, %v26375_v62 }
 0x27e   :  { %24796 = vmatprep.mubr.msk.f32.mxu1 %vm27216_vm1, %v31354_v22  ;;  %24801 = vmatprep.mubr.msk.f32.mxu0 %vm27216_vm1, %v31354_v22 }
 0x27f   :  { %24804 = vmatprep.subr.mxu1 %v31354_v22  ;;  %24809 = vmatprep.subr.mxu0 %v31354_v22 }
 0x280   :  { %24797 = vmatmul.mubr.msk.f32.vlgmr.msra.gmra.mrb[46].mxu1 %vm288_vm4, %v26379_v2  ;;  %24802 = vmatmul.mubr.msk.f32.vlgmr.msra.gmra.mrb[46].mxu0 %vm288_vm4, %v26380_v1  ;;  %v27923_v2 = vpop.permute.xlu0 %26432 }
 0x281   :  { %24805 = vmatpush3.xpose.msk.msra.mxu1 %vm288_vm4, %v26384_v4  ;;  %24810 = vmatpush3.xpose.msk.msra.mxu0 %vm288_vm4, %v26385_v3 }
 0x282   :  { %24806 = vmatprep.mubr.msk.f32.mxu1 %vm27216_vm1, %v31354_v22  ;;  %24811 = vmatprep.mubr.msk.f32.mxu0 %vm27216_vm1, %v31354_v22 }
 0x283   :  { %24814 = vmatprep.subr.mxu1 %v31354_v22  ;;  %24819 = vmatprep.subr.mxu0 %v31354_v22 }
 0x284   :  { %24807 = vmatmul.mubr.msk.f32.vlgmr.msra.gmra.mrb[48].mxu1 %vm288_vm4, %v26389_v7  ;;  %24812 = vmatmul.mubr.msk.f32.vlgmr.msra.gmra.mrb[48].mxu0 %vm288_vm4, %v26390_v6 }
 0x285   :  { %24815 = vmatpush3.xpose.msk.msra.mxu1 %vm288_vm4, %v26394_v10  ;;  %24820 = vmatpush3.xpose.msk.msra.mxu0 %vm288_vm4, %v26395_v9  ;;  %v26428_v9 = vpop.permute.xlu1 %26427 }
 0x286   :  { %24816 = vmatprep.mubr.msk.f32.mxu1 %vm27216_vm1, %v31354_v22  ;;  %24821 = vmatprep.mubr.msk.f32.mxu0 %vm27216_vm1, %v31354_v22 }
 0x287   :  { %24824 = vmatprep.subr.mxu1 %v31354_v22  ;;  %24829 = vmatprep.subr.mxu0 %v31354_v22 }
 0x288   :  { %24817 = vmatmul.mubr.msk.f32.vlgmr.msra.gmra.mrb[50].mxu1 %vm288_vm4, %v26399_v12  ;;  %24822 = vmatmul.mubr.msk.f32.vlgmr.msra.gmra.mrb[50].mxu0 %vm288_vm4, %v26400_v11 }
 0x289   :  { %24825 = vmatpush3.xpose.msk.msra.mxu1 %vm288_vm4, %v26404_v15  ;;  %24830 = vmatpush3.xpose.msk.msra.mxu0 %vm288_vm4, %v26405_v14 }
 0x28a   :  { %24826 = vmatprep.mubr.msk.f32.mxu1 %vm27216_vm1, %v31354_v22  ;;  %24831 = vmatprep.mubr.msk.f32.mxu0 %vm27216_vm1, %v31354_v22 }
 0x28b   :  { %24834 = vmatprep.subr.mxu1 %v31354_v22  ;;  %24839 = vmatprep.subr.mxu0 %v31354_v22 }
 0x28c   :  { %24827 = vmatmul.mubr.msk.f32.vlgmr.msra.gmra.mrb[52].mxu1 %vm288_vm4, %v26409_v18  ;;  %24832 = vmatmul.mubr.msk.f32.vlgmr.msra.gmra.mrb[52].mxu0 %vm288_vm4, %v26410_v17  ;;  %v27928_v18 = vpop.permute.xlu0 %26442 }
 0x28d   :  { %24835 = vmatpush3.xpose.msk.msra.mxu1 %vm288_vm4, %v26414_v20  ;;  %24840 = vmatpush3.xpose.msk.msra.mxu0 %vm288_vm4, %v26415_v19 }
 0x28e   :  { %24836 = vmatprep.mubr.msk.f32.mxu1 %vm27216_vm1, %v31354_v22  ;;  %24841 = vmatprep.mubr.msk.f32.mxu0 %vm27216_vm1, %v31354_v22 }
 0x28f   :  { %24844 = vmatprep.subr.mxu1 %v31354_v22  ;;  %24849 = vmatprep.subr.mxu0 %v31354_v22 }
 0x290   :  { %24837 = vmatmul.mubr.msk.f32.vlgmr.msra.gmra.mrb[54].mxu1 %vm288_vm4, %v3815_v13  ;;  %24842 = vmatmul.mubr.msk.f32.vlgmr.msra.gmra.mrb[54].mxu0 %vm288_vm4, %v3893_v23 }
 0x291   :  { %24845 = vmatpush3.msra.mxu1 %v26419_v25  ;;  %24850 = vmatpush3.msra.mxu0 %v26420_v24 }
 0x292   :  { %24846 = vmatprep.mubr.msk.f32.mxu1 %vm27216_vm1, %v31354_v22  ;;  %24851 = vmatprep.mubr.msk.f32.mxu0 %vm27216_vm1, %v31354_v22 }
 0x293   :  { %24854 = vmatprep.subr.mxu1 %v31354_v22  ;;  %24859 = vmatprep.subr.mxu0 %v31354_v22 }
 0x320   :  { %v27889_v26 = vpop.f32.mrb[24].mxu1  ;;  %v27891_v27 = vpop.f32.mrb[24].mxu0 }
 0x321   :  { %v24688_v28 = vpop.f32.mrb[25].mxu1  ;;  %v24693_v29 = vpop.f32.mrb[25].mxu0 }
 0x324   :  { %v27893_v30 = vpop.f32.mrb[26].mxu1  ;;  %v27895_v31 = vpop.f32.mrb[26].mxu0 }
 0x325   :  { %v24698_v32 = vpop.f32.mrb[27].mxu1  ;;  %v24703_v33 = vpop.f32.mrb[27].mxu0 }
 0x326   :  { %v27932_v32 = vpop.permute.xlu1 %26437 }
 0x328   :  { %v27897_v34 = vpop.f32.mrb[28].mxu1  ;;  %v27899_v35 = vpop.f32.mrb[28].mxu0 }
 0x329   :  { %v24708_v36 = vpop.f32.mrb[29].mxu1  ;;  %v24713_v37 = vpop.f32.mrb[29].mxu0 }
 0x32c   :  { %v27901_v38 = vpop.f32.mrb[30].mxu1  ;;  %v27903_v39 = vpop.f32.mrb[30].mxu0 }
 0x32d   :  { %v24718_v40 = vpop.f32.mrb[31].mxu1  ;;  %v24723_v41 = vpop.f32.mrb[31].mxu0 }
 0x32e   :  { %v26425_v41 = vunpack.i.h.bf16 %v26423_v58 }
 0x334   :  { %v27905_v42 = vpop.f32.mrb[32].mxu1  ;;  %v27907_v43 = vpop.f32.mrb[32].mxu0 }
 0x335   :  { %v24728_v44 = vpop.f32.mrb[33].mxu1  ;;  %v24733_v45 = vpop.f32.mrb[33].mxu0 }
 0x336   :  { %v26424_v44 = vunpack.i.l.bf16 %v26423_v58  ;;  %v26430_v58 = vunpack.i.h.bf16 %v26428_v9 }
 0x338   :  { %v27909_v46 = vpop.f32.mrb[34].mxu1  ;;  %v27911_v47 = vpop.f32.mrb[34].mxu0 }
 0x339   :  { %v24738_v48 = vpop.f32.mrb[35].mxu1  ;;  %v24743_v49 = vpop.f32.mrb[35].mxu0 }
 0x33c   :  { %v27913_v50 = vpop.f32.mrb[36].mxu1  ;;  %v27915_v51 = vpop.f32.mrb[36].mxu0 }
 0x33d   :  { %v24748_v52 = vpop.f32.mrb[37].mxu1  ;;  %v24753_v53 = vpop.f32.mrb[37].mxu0 }
 0x340   :  { %v27917_v54 = vpop.f32.mrb[38].mxu1  ;;  %v27919_v55 = vpop.f32.mrb[38].mxu0 }
 0x341   :  { %v24758_v56 = vpop.f32.mrb[39].mxu1  ;;  %v24763_v57 = vpop.f32.mrb[39].mxu0 }
 0x342   :  { %v27943_v56 = vpop.permute.xlu0 %26452 }
 0x347   :  { %v2796_v59 = vpop.f32.mrb[40].mxu1  ;;  %v2874_v60 = vpop.f32.mrb[40].mxu0 }
 0x348   :  { %v3970_v61 = vsel %vm288_vm4, %v2796_v59, 0.0  ;;  %v3971_v62 = vsel %vm288_vm4, %v2874_v60, 0.0  ;;  %v24768_v63 = vpop.f32.mrb[41].mxu1  ;;  %v24773_v0 = vpop.f32.mrb[41].mxu0  ;;  %v26429_v60 = vunpack.i.l.bf16 %v26428_v9 }
 0x349   :  { %v3972_v1 = vadd.f32 %v3971_v62, %v3970_v61 }
 0x34b   :  { %v2952_v3 = vpop.f32.mrb[42].mxu1  ;;  %v3030_v4 = vpop.f32.mrb[42].mxu0 }
 0x34c   :  { %v3973_v5 = vsel %vm288_vm4, %v2952_v3, 0.0  ;;  %v24778_v6 = vpop.f32.mrb[43].mxu1  ;;  %v24783_v7 = vpop.f32.mrb[43].mxu0  ;;  %v3975_v10 = vsel %vm288_vm4, %v3030_v4, 0.0 }
 0x34d   :  { %v3974_v8 = vadd.f32 %v3973_v5, %v3972_v1  ;;  %v27956_v1 = vpop.permute.xlu1 %26447  ;;  %v26435_v7 = vunpack.i.h.bf16 %v27923_v2 }
 0x34f   :  { %v3976_v11 = vadd.f32 %v3975_v10, %v3974_v8  ;;  %v3108_v12 = vpop.f32.mrb[44].mxu1  ;;  %v3186_v13 = vpop.f32.mrb[44].mxu0  ;;  %v26434_v8 = vunpack.i.l.bf16 %v27923_v2 }
 0x350   :  { %v3977_v14 = vsel %vm288_vm4, %v3108_v12, 0.0  ;;  %v24788_v15 = vpop.f32.mrb[45].mxu1  ;;  %v24793_v16 = vpop.f32.mrb[45].mxu0  ;;  %v3979_v19 = vsel %vm288_vm4, %v3186_v13, 0.0 }
 0x351   :  { %v3978_v17 = vadd.f32 %v3977_v14, %v3976_v11  ;;  %v27972_v13 = vpop.permute.xlu0 %26462 }
 0x353   :  { %v3980_v20 = vadd.f32 %v3979_v19, %v3978_v17  ;;  %v3264_v21 = vpop.f32.mrb[46].mxu1  ;;  %v3342_v23 = vpop.f32.mrb[46].mxu0  ;;  %v26440_v17 = vunpack.i.h.bf16 %v27932_v32  ;;  %v26439_v19 = vunpack.i.l.bf16 %v27932_v32  ;;  %v26445_v32 = vunpack.i.h.bf16 %v27928_v18 }
 0x354   :  { %v3981_v24 = vsel %vm288_vm4, %v3264_v21, 0.0  ;;  %v24798_v25 = vpop.f32.mrb[47].mxu1  ;;  %v24803_v28 = vpop.f32.mrb[47].mxu0  ;;  %v3983_v33 = vsel %vm288_vm4, %v3342_v23, 0.0 }
 0x355   :  { %v3982_v29 = vadd.f32 %v3981_v24, %v3980_v20  ;;  %v26458_v25 = vpop.permute.xlu1 %26457 }
 0x357   :  { %v27935_v36 = vadd.f32 %v3983_v33, %v3982_v29  ;;  %v3420_v37 = vpop.f32.mrb[48].mxu1  ;;  %v3498_v40 = vpop.f32.mrb[48].mxu0  ;;  %v26444_v33 = vunpack.i.l.bf16 %v27928_v18  ;;  %v26449_v18 = vunpack.i.l.bf16 %v27956_v1 }
 0x358   :  { %v3985_v45 = vsel %vm288_vm4, %v3420_v37, 0.0  ;;  %v3986_v48 = vsel %vm288_vm4, %v3498_v40, 0.0  ;;  %v24808_v49 = vpop.f32.mrb[49].mxu1  ;;  %v24813_v52 = vpop.f32.mrb[49].mxu0  ;;  %v26450_v37 = vunpack.i.h.bf16 %v27956_v1 }
 0x359   :  { %v3987_v53 = vadd.f32 %v3986_v48, %v3985_v45  ;;  %24847 = vmatmul.mubr.msk.f32.vlgmr.msra.gmra.mrb[56].mxu1 %vm288_vm4, %v27935_v36  ;;  %24852 = vmatmul.mubr.msk.f32.vlgmr.msra.gmra.mrb[56].mxu0 %vm288_vm4, %v27935_v36  ;;  %v26468_v40 = vpop.permute.xlu1 %26467  ;;  %v26460_v52 = vunpack.i.h.bf16 %v26458_v25 }
 0x35a   :  { %24855 = vmatpush3.msra.mxu1 %v26424_v44  ;;  %24860 = vmatpush3.msra.mxu0 %v26425_v41  ;;  %v26455_v41 = vunpack.i.h.bf16 %v27943_v56  ;;  %v26454_v44 = vunpack.i.l.bf16 %v27943_v56 }
 0x35b   :  { %v3576_v57 = vpop.f32.mrb[50].mxu1  ;;  %v3654_v59 = vpop.f32.mrb[50].mxu0  ;;  %24856 = vmatprep.mubr.msk.f32.mxu1 %vm27216_vm1, %v31354_v22  ;;  %24861 = vmatprep.mubr.msk.f32.mxu0 %vm27216_vm1, %v31354_v22 }
 0x35c   :  { %v3988_v61 = vsel %vm288_vm4, %v3576_v57, 0.0  ;;  %v24818_v62 = vpop.f32.mrb[51].mxu1  ;;  %v24823_v63 = vpop.f32.mrb[51].mxu0  ;;  %24864 = vmatprep.subr.mxu1 %v31354_v22  ;;  %24869 = vmatprep.subr.mxu0 %v31354_v22  ;;  %v3990_v3 = vsel %vm288_vm4, %v3654_v59, 0.0  ;;  %v26465_v57 = vunpack.i.h.bf16 %v27972_v13  ;;  %v26464_v59 = vunpack.i.l.bf16 %v27972_v13 }
 0x35d   :  { %v3989_v0 = vadd.f32 %v3988_v61, %v3987_v53  ;;  %24857 = vmatmul.mubr.msk.f32.vlgmr.msra.gmra.mrb[58].mxu1 %vm288_vm4, %v27935_v36  ;;  %24862 = vmatmul.mubr.msk.f32.vlgmr.msra.gmra.mrb[58].mxu0 %vm288_vm4, %v27935_v36  ;;  %v26478_v48 = vpop.permute.xlu1 %26477  ;;  %v26459_v53 = vunpack.i.l.bf16 %v26458_v25 }
 0x35e   :  { %24865 = vmatpush3.msra.mxu1 %v26429_v60  ;;  %24870 = vmatpush3.msra.mxu0 %v26430_v58  ;;  %v26470_v58 = vunpack.i.h.bf16 %v26468_v40  ;;  %v26469_v60 = vunpack.i.l.bf16 %v26468_v40  ;;  %v26480_v1 = vunpack.i.h.bf16 %v26478_v48 }
 0x35f   :  { %v3991_v4 = vadd.f32 %v3990_v3, %v3989_v0  ;;  %v3732_v5 = vpop.f32.mrb[52].mxu1  ;;  %v3810_v6 = vpop.f32.mrb[52].mxu0  ;;  %24866 = vmatprep.mubr.msk.f32.mxu1 %vm27216_vm1, %v31354_v22  ;;  %24871 = vmatprep.mubr.msk.f32.mxu0 %vm27216_vm1, %v31354_v22  ;;  %v26479_v3 = vunpack.i.l.bf16 %v26478_v48 }
 0x360   :  { %v3992_v9 = vsel %vm288_vm4, %v3732_v5, 0.0  ;;  %v24828_v10 = vpop.f32.mrb[53].mxu1  ;;  %v24833_v11 = vpop.f32.mrb[53].mxu0  ;;  %24874 = vmatprep.subr.mxu1 %v31354_v22  ;;  %24879 = vmatprep.subr.mxu0 %v31354_v22  ;;  %v3994_v14 = vsel %vm288_vm4, %v3810_v6, 0.0 }
 0x361   :  { %v3993_v12 = vadd.f32 %v3992_v9, %v3991_v4  ;;  %24867 = vmatmul.mubr.msk.f32.vlgmr.msra.gmra.mrb[60].mxu1 %vm288_vm4, %v27935_v36  ;;  %24872 = vmatmul.mubr.msk.f32.vlgmr.msra.gmra.mrb[60].mxu0 %vm288_vm4, %v27935_v36  ;;  %v26488_v56 = vpop.permute.xlu1 %26487 }
 0x362   :  { %24875 = vmatpush3.msra.mxu1 %v26434_v8  ;;  %24880 = vmatpush3.msra.mxu0 %v26435_v7  ;;  %v26490_v7 = vunpack.i.h.bf16 %v26488_v56  ;;  %v26489_v8 = vunpack.i.l.bf16 %v26488_v56 }
 0x363   :  { %v3995_v2 = vadd.f32 %v3994_v14, %v3993_v12  ;;  %v3888_v15 = vpop.f32.mrb[54].mxu1  ;;  %v3966_v16 = vpop.f32.mrb[54].mxu0  ;;  %24876 = vmatprep.mubr.msk.f32.mxu1 %vm27216_vm1, %v31354_v22  ;;  %24881 = vmatprep.mubr.msk.f32.mxu0 %vm27216_vm1, %v31354_v22 }
 0x364   :  { %v3996_v20 = vsel %vm288_vm4, %v3888_v15, 0.0  ;;  %v24838_v21 = vpop.f32.mrb[55].mxu1  ;;  %v24843_v23 = vpop.f32.mrb[55].mxu0  ;;  %24884 = vmatprep.subr.mxu1 %v31354_v22  ;;  %24889 = vmatprep.subr.mxu0 %v31354_v22  ;;  %v3998_v28 = vsel %vm288_vm4, %v3966_v16, 0.0 }
 0x365   :  { %v3997_v24 = vadd.f32 %v3996_v20, %v3995_v2  ;;  %24877 = vmatmul.mubr.msk.f32.vlgmr.msra.gmra.mrb[62].mxu1 %vm288_vm4, %v27935_v36  ;;  %24882 = vmatmul.mubr.msk.f32.vlgmr.msra.gmra.mrb[62].mxu0 %vm288_vm4, %v27935_v36  ;;  %v26473_v36 = vpop.permute.xlu0 %26472  ;;  %v26498_v0 = vpop.permute.xlu1 %26497 }
 0x366   :  { %24885 = vmatpush3.msra.mxu1 %v26439_v19  ;;  %24890 = vmatpush3.msra.mxu0 %v26440_v17  ;;  %v26475_v62 = vunpack.i.h.bf16 %v26473_v36  ;;  %v26474_v63 = vunpack.i.l.bf16 %v26473_v36  ;;  %v26500_v12 = vunpack.i.h.bf16 %v26498_v0  ;;  %v26499_v13 = vunpack.i.l.bf16 %v26498_v0 }
 0x367   :  { %v3999_v29 = vadd.f32 %v3998_v28, %v3997_v24  ;;  %24886 = vmatprep.mubr.msk.f32.mxu1 %vm27216_vm1, %v31354_v22  ;;  %24891 = vmatprep.mubr.msk.f32.mxu0 %vm27216_vm1, %v31354_v22 }
 0x368   :  { %24894 = vmatprep.subr.mxu1 %v31354_v22  ;;  %24899 = vmatprep.subr.mxu0 %v31354_v22 }
 0x369   :  { %24887 = vmatmul.mubr.msk.f32.vlgmr.msra.gmra.mrb[64].mxu1 %vm288_vm4, %v3999_v29  ;;  %24892 = vmatmul.mubr.msk.f32.vlgmr.msra.gmra.mrb[64].mxu0 %vm288_vm4, %v3999_v29  ;;  %v26483_v45 = vpop.permute.xlu0 %26482  ;;  %v26508_v9 = vpop.permute.xlu1 %26507 }
 0x36a   :  { %24895 = vmatpush3.msra.mxu1 %v26444_v33  ;;  %24900 = vmatpush3.msra.mxu0 %v26445_v32  ;;  %v26485_v4 = vunpack.i.h.bf16 %v26483_v45  ;;  %v26484_v5 = vunpack.i.l.bf16 %v26483_v45  ;;  %v26510_v17 = vunpack.i.h.bf16 %v26508_v9  ;;  %v26509_v19 = vunpack.i.l.bf16 %v26508_v9 }
 0x36b   :  { %24896 = vmatprep.mubr.msk.f32.mxu1 %vm27216_vm1, %v31354_v22  ;;  %24901 = vmatprep.mubr.msk.f32.mxu0 %vm27216_vm1, %v31354_v22 }
 0x36c   :  { %24904 = vmatprep.subr.mxu1 %v31354_v22  ;;  %24909 = vmatprep.subr.mxu0 %v31354_v22 }
 0x36d   :  { %24897 = vmatmul.mubr.msk.f32.vlgmr.msra.gmra.mrb[66].mxu1 %vm288_vm4, %v3999_v29  ;;  %24902 = vmatmul.mubr.msk.f32.vlgmr.msra.gmra.mrb[66].mxu0 %vm288_vm4, %v3999_v29  ;;  %v26493_v49 = vpop.permute.xlu0 %26492  ;;  %v26518_v16 = vpop.permute.xlu1 %26517 }
 0x36e   :  { %24905 = vmatpush3.msra.mxu1 %v26449_v18  ;;  %24910 = vmatpush3.msra.mxu0 %v26450_v37  ;;  %v26495_v10 = vunpack.i.h.bf16 %v26493_v49  ;;  %v26494_v11 = vunpack.i.l.bf16 %v26493_v49  ;;  %v26520_v24 = vunpack.i.h.bf16 %v26518_v16  ;;  %v26519_v25 = vunpack.i.l.bf16 %v26518_v16 }
 0x36f   :  { %24906 = vmatprep.mubr.msk.f32.mxu1 %vm27216_vm1, %v31354_v22  ;;  %24911 = vmatprep.mubr.msk.f32.mxu0 %vm27216_vm1, %v31354_v22 }
 0x370   :  { %24914 = vmatprep.subr.mxu1 %v31354_v22  ;;  %24919 = vmatprep.subr.mxu0 %v31354_v22 }
 0x371   :  { %24907 = vmatmul.mubr.msk.f32.vlgmr.msra.gmra.mrb[68].mxu1 %vm288_vm4, %v3999_v29  ;;  %24912 = vmatmul.mubr.msk.f32.vlgmr.msra.gmra.mrb[68].mxu0 %vm288_vm4, %v3999_v29  ;;  %v26503_v61 = vpop.permute.xlu0 %26502  ;;  %v26528_v28 = vpop.permute.xlu1 %26527 }
 0x372   :  { %24915 = vmatpush3.msra.mxu1 %v26454_v44  ;;  %24920 = vmatpush3.msra.mxu0 %v26455_v41  ;;  %v26505_v2 = vunpack.i.h.bf16 %v26503_v61  ;;  %v26504_v15 = vunpack.i.l.bf16 %v26503_v61  ;;  %v26530_v33 = vunpack.i.h.bf16 %v26528_v28  ;;  %v26529_v36 = vunpack.i.l.bf16 %v26528_v28 }
 0x373   :  { %24916 = vmatprep.mubr.msk.f32.mxu1 %vm27216_vm1, %v31354_v22  ;;  %24921 = vmatprep.mubr.msk.f32.mxu0 %vm27216_vm1, %v31354_v22 }
 0x374   :  { %24924 = vmatprep.subr.mxu1 %v31354_v22  ;;  %24929 = vmatprep.subr.mxu0 %v31354_v22 }
 0x375   :  { %24917 = vmatmul.mubr.msk.f32.vlgmr.msra.gmra.mrb[70].mxu1 %vm288_vm4, %v3999_v29  ;;  %24922 = vmatmul.mubr.msk.f32.vlgmr.msra.gmra.mrb[70].mxu0 %vm288_vm4, %v3999_v29  ;;  %v26513_v6 = vpop.permute.xlu0 %26512  ;;  %v6345_v18 = vpop.permute.xlu1 %6344 }
 0x376   :  { %24926 = vmatprep.mubr.msk.f32.mxu1 %vm27216_vm1, %v31354_v22  ;;  %24931 = vmatprep.mubr.msk.f32.mxu0 %vm27216_vm1, %v31354_v22  ;;  %v26515_v20 = vunpack.i.h.bf16 %v26513_v6  ;;  %v26514_v21 = vunpack.i.l.bf16 %v26513_v6 }
 0x379   :  { %24925 = vmatpush3.xpose.msk.msra.mxu1 %vm288_vm4, %v26459_v53  ;;  %24930 = vmatpush3.xpose.msk.msra.mxu0 %vm288_vm4, %v26460_v52  ;;  %v26523_v14 = vpop.permute.xlu0 %26522 }
 0x37a   :  { %24934 = vmatprep.subr.mxu1 %v31354_v22  ;;  %24939 = vmatprep.subr.mxu0 %v31354_v22  ;;  %v26525_v29 = vunpack.i.h.bf16 %v26523_v14  ;;  %v26524_v32 = vunpack.i.l.bf16 %v26523_v14 }
 0x37c   :  { %24927 = vmatmul.mubr.msk.f32.vlgmr.msra.gmra.mrb[72].mxu1 %vm288_vm4, %v26464_v59  ;;  %24932 = vmatmul.mubr.msk.f32.vlgmr.msra.gmra.mrb[72].mxu0 %vm288_vm4, %v26465_v57 }
 0x37d   :  { %24935 = vmatpush3.xpose.msk.msra.mxu1 %vm288_vm4, %v26469_v60  ;;  %24940 = vmatpush3.xpose.msk.msra.mxu0 %vm288_vm4, %v26470_v58  ;;  %v6267_v23 = vpop.permute.xlu0 %6266 }
 0x37e   :  { %24936 = vmatprep.mubr.msk.f32.mxu1 %vm27216_vm1, %v31354_v22  ;;  %24941 = vmatprep.mubr.msk.f32.mxu0 %vm27216_vm1, %v31354_v22 }
 0x37f   :  { %24944 = vmatprep.subr.mxu1 %v31354_v22  ;;  %24949 = vmatprep.subr.mxu0 %v31354_v22 }
 0x380   :  { %24937 = vmatmul.mubr.msk.f32.vlgmr.msra.gmra.mrb[74].mxu1 %vm288_vm4, %v26474_v63  ;;  %24942 = vmatmul.mubr.msk.f32.vlgmr.msra.gmra.mrb[74].mxu0 %vm288_vm4, %v26475_v62 }
 0x381   :  { %24945 = vmatpush3.xpose.msk.msra.mxu1 %vm288_vm4, %v26479_v3  ;;  %24950 = vmatpush3.xpose.msk.msra.mxu0 %vm288_vm4, %v26480_v1  ;;  %v26533_v37 = vpop.permute.xlu0 %26532 }
 0x382   :  { %24946 = vmatprep.mubr.msk.f32.mxu1 %vm27216_vm1, %v31354_v22  ;;  %24951 = vmatprep.mubr.msk.f32.mxu0 %vm27216_vm1, %v31354_v22  ;;  %v26535_v40 = vunpack.i.h.bf16 %v26533_v37  ;;  %v26534_v41 = vunpack.i.l.bf16 %v26533_v37 }
 0x383   :  { %24954 = vmatprep.subr.mxu1 %v31354_v22  ;;  %24959 = vmatprep.subr.mxu0 %v31354_v22 }
 0x384   :  { %24947 = vmatmul.mubr.msk.f32.vlgmr.msra.gmra.mrb[76].mxu1 %vm288_vm4, %v26484_v5  ;;  %24952 = vmatmul.mubr.msk.f32.vlgmr.msra.gmra.mrb[76].mxu0 %vm288_vm4, %v26485_v4 }
 0x385   :  { %24955 = vmatpush3.xpose.msk.msra.mxu1 %vm288_vm4, %v26489_v8  ;;  %24960 = vmatpush3.xpose.msk.msra.mxu0 %vm288_vm4, %v26490_v7 }
 0x386   :  { %24956 = vmatprep.mubr.msk.f32.mxu1 %vm27216_vm1, %v31354_v22  ;;  %24961 = vmatprep.mubr.msk.f32.mxu0 %vm27216_vm1, %v31354_v22 }
 0x387   :  { %24964 = vmatprep.subr.mxu1 %v31354_v22  ;;  %24969 = vmatprep.subr.mxu0 %v31354_v22 }
 0x388   :  { %24957 = vmatmul.mubr.msk.f32.vlgmr.msra.gmra.mrb[78].mxu1 %vm288_vm4, %v26494_v11  ;;  %24962 = vmatmul.mubr.msk.f32.vlgmr.msra.gmra.mrb[78].mxu0 %vm288_vm4, %v26495_v10 }
 0x389   :  { %24965 = vmatpush3.xpose.msk.msra.mxu1 %vm288_vm4, %v26499_v13  ;;  %24970 = vmatpush3.xpose.msk.msra.mxu0 %vm288_vm4, %v26500_v12 }
 0x38a   :  { %24966 = vmatprep.mubr.msk.f32.mxu1 %vm27216_vm1, %v31354_v22  ;;  %24971 = vmatprep.mubr.msk.f32.mxu0 %vm27216_vm1, %v31354_v22 }
 0x38b   :  { %24974 = vmatprep.subr.mxu1 %v31354_v22  ;;  %24979 = vmatprep.subr.mxu0 %v31354_v22 }
 0x38c   :  { %24967 = vmatmul.mubr.msk.f32.vlgmr.msra.gmra.mrb[80].mxu1 %vm288_vm4, %v26504_v15  ;;  %24972 = vmatmul.mubr.msk.f32.vlgmr.msra.gmra.mrb[80].mxu0 %vm288_vm4, %v26505_v2 }
 0x38d   :  { %24975 = vmatpush3.xpose.msk.msra.mxu1 %vm288_vm4, %v26509_v19  ;;  %24980 = vmatpush3.xpose.msk.msra.mxu0 %vm288_vm4, %v26510_v17  ;;  %v26538_v19 = vpop.permute.xlu1 %26537 }
 0x38e   :  { %24976 = vmatprep.mubr.msk.f32.mxu1 %vm27216_vm1, %v31354_v22  ;;  %24981 = vmatprep.mubr.msk.f32.mxu0 %vm27216_vm1, %v31354_v22 }
 0x38f   :  { %24984 = vmatprep.subr.mxu1 %v31354_v22  ;;  %24989 = vmatprep.subr.mxu0 %v31354_v22 }
 0x390   :  { %24977 = vmatmul.mubr.msk.f32.vlgmr.msra.gmra.mrb[82].mxu1 %vm288_vm4, %v26514_v21  ;;  %24982 = vmatmul.mubr.msk.f32.vlgmr.msra.gmra.mrb[82].mxu0 %vm288_vm4, %v26515_v20 }
 0x391   :  { %24985 = vmatpush3.xpose.msk.msra.mxu1 %vm288_vm4, %v26519_v25  ;;  %24990 = vmatpush3.xpose.msk.msra.mxu0 %vm288_vm4, %v26520_v24 }
 0x392   :  { %24986 = vmatprep.mubr.msk.f32.mxu1 %vm27216_vm1, %v31354_v22  ;;  %24991 = vmatprep.mubr.msk.f32.mxu0 %vm27216_vm1, %v31354_v22 }
 0x393   :  { %24994 = vmatprep.subr.mxu1 %v31354_v22  ;;  %24999 = vmatprep.subr.mxu0 %v31354_v22 }
 0x394   :  { %24987 = vmatmul.mubr.msk.f32.vlgmr.msra.gmra.mrb[84].mxu1 %vm288_vm4, %v26524_v32  ;;  %24992 = vmatmul.mubr.msk.f32.vlgmr.msra.gmra.mrb[84].mxu0 %vm288_vm4, %v26525_v29  ;;  %v28133_v32 = vpop.permute.xlu1 %26547 }
 0x395   :  { %24995 = vmatpush3.xpose.msk.msra.mxu1 %vm288_vm4, %v26529_v36  ;;  %25000 = vmatpush3.xpose.msk.msra.mxu0 %vm288_vm4, %v26530_v33 }
 0x396   :  { %24996 = vmatprep.mubr.msk.f32.mxu1 %vm27216_vm1, %v31354_v22  ;;  %25001 = vmatprep.mubr.msk.f32.mxu0 %vm27216_vm1, %v31354_v22 }
 0x397   :  { %25004 = vmatprep.subr.mxu1 %v31354_v22  ;;  %25009 = vmatprep.subr.mxu0 %v31354_v22 }
 0x398   :  { %24997 = vmatmul.mubr.msk.f32.vlgmr.msra.gmra.mrb[86].mxu1 %vm288_vm4, %v6267_v23  ;;  %25002 = vmatmul.mubr.msk.f32.vlgmr.msra.gmra.mrb[86].mxu0 %vm288_vm4, %v6345_v18 }
 0x399   :  { %25005 = vmatpush3.msra.mxu1 %v26534_v41  ;;  %25010 = vmatpush3.msra.mxu0 %v26535_v40 }
 0x39a   :  { %25006 = vmatprep.mubr.msk.f32.mxu1 %vm27216_vm1, %v31354_v22  ;;  %25011 = vmatprep.mubr.msk.f32.mxu0 %vm27216_vm1, %v31354_v22 }
 0x39b   :  { %25014 = vmatprep.subr.mxu1 %v31354_v22  ;;  %25019 = vmatprep.subr.mxu0 %v31354_v22 }
 0x42c   :  { %v4072_v44 = vpop.f32.mrb[56].mxu1  ;;  %v4145_v45 = vpop.f32.mrb[56].mxu0 }
 0x42d   :  { %10096 = vrot.lane.b32.xlu0 %v4145_v45, %s27228_s24  ;;  %v24853_v48 = vpop.f32.mrb[57].mxu0  ;;  %10094 = vrot.lane.b32.xlu1 %v4072_v44, %s27228_s24  ;;  %v24848_v49 = vpop.f32.mrb[57].mxu1 }
 0x42e   :  { %v26543_v44 = vpop.permute.xlu0 %26542 }
 0x430   :  { %v4218_v52 = vpop.f32.mrb[58].mxu1  ;;  %v4291_v53 = vpop.f32.mrb[58].mxu0 }
 0x431   :  { %10100 = vrot.lane.b32.xlu0 %v4291_v53, %s27228_s24  ;;  %v24863_v56 = vpop.f32.mrb[59].mxu0  ;;  %10098 = vrot.lane.b32.xlu1 %v4218_v52, %s27228_s24  ;;  %v24858_v57 = vpop.f32.mrb[59].mxu1 }
 0x434   :  { %v4364_v59 = vpop.f32.mrb[60].mxu1  ;;  %v4437_v58 = vpop.f32.mrb[60].mxu0 }
 0x435   :  { %10104 = vrot.lane.b32.xlu0 %v4437_v58, %s27228_s24  ;;  %v24873_v60 = vpop.f32.mrb[61].mxu0  ;;  %10102 = vrot.lane.b32.xlu1 %v4364_v59, %s27228_s24  ;;  %v24868_v61 = vpop.f32.mrb[61].mxu1 }
 0x436   :  { %v28138_v58 = vpop.permute.xlu1 %26557 }
 0x438   :  { %v4510_v62 = vpop.f32.mrb[62].mxu1  ;;  %v4583_v63 = vpop.f32.mrb[62].mxu0 }
 0x439   :  { %10108 = vrot.lane.b32.xlu0 %v4583_v63, %s27228_s24  ;;  %v24883_v0 = vpop.f32.mrb[63].mxu0  ;;  %10106 = vrot.lane.b32.xlu1 %v4510_v62, %s27228_s24  ;;  %v24878_v1 = vpop.f32.mrb[63].mxu1 }
 0x43c   :  { %v4659_v3 = vpop.f32.mrb[64].mxu1  ;;  %v4732_v4 = vpop.f32.mrb[64].mxu0 }
 0x43d   :  { %10112 = vrot.lane.b32.xlu0 %v4732_v4, %s27228_s24  ;;  %v24893_v5 = vpop.f32.mrb[65].mxu0  ;;  %10110 = vrot.lane.b32.xlu1 %v4659_v3, %s27228_s24  ;;  %v24888_v6 = vpop.f32.mrb[65].mxu1 }
 0x43e   :  { %v28142_v5 = vpop.permute.xlu0 %26552 }
 0x440   :  { %v4805_v7 = vpop.f32.mrb[66].mxu1  ;;  %v4878_v8 = vpop.f32.mrb[66].mxu0 }
 0x441   :  { %10116 = vrot.lane.b32.xlu0 %v4878_v8, %s27228_s24  ;;  %v24903_v9 = vpop.f32.mrb[67].mxu0  ;;  %10114 = vrot.lane.b32.xlu1 %v4805_v7, %s27228_s24  ;;  %v24898_v10 = vpop.f32.mrb[67].mxu1 }
 0x442   :  { %v26540_v10 = vunpack.i.h.bf16 %v26538_v19 }
 0x444   :  { %v4951_v11 = vpop.f32.mrb[68].mxu1  ;;  %v5024_v12 = vpop.f32.mrb[68].mxu0 }
 0x445   :  { %10120 = vrot.lane.b32.xlu0 %v5024_v12, %s27228_s24  ;;  %v24913_v13 = vpop.f32.mrb[69].mxu0  ;;  %10118 = vrot.lane.b32.xlu1 %v4951_v11, %s27228_s24  ;;  %v24908_v14 = vpop.f32.mrb[69].mxu1  ;;  %v26539_v11 = vunpack.i.l.bf16 %v26538_v19  ;;  %v26545_v19 = vunpack.i.h.bf16 %v26543_v44 }
 0x448   :  { %v5097_v2 = vpop.f32.mrb[70].mxu1  ;;  %v5170_v15 = vpop.f32.mrb[70].mxu0 }
 0x449   :  { %10124 = vrot.lane.b32.xlu0 %v5170_v15, %s27228_s24  ;;  %v24923_v16 = vpop.f32.mrb[71].mxu0  ;;  %10122 = vrot.lane.b32.xlu1 %v5097_v2, %s27228_s24  ;;  %v24918_v17 = vpop.f32.mrb[71].mxu1 }
 0x44a   :  { %v28153_v16 = vpop.permute.xlu1 %26567 }
 0x44f   :  { %v5248_v20 = vpop.f32.mrb[72].mxu1  ;;  %v5326_v21 = vpop.f32.mrb[72].mxu0 }
 0x450   :  { %v6422_v23 = vsel %vm288_vm4, %v5248_v20, 0.0  ;;  %v6423_v24 = vsel %vm288_vm4, %v5326_v21, 0.0  ;;  %v24928_v25 = vpop.f32.mrb[73].mxu1  ;;  %v24933_v28 = vpop.f32.mrb[73].mxu0  ;;  %v26544_v21 = vunpack.i.l.bf16 %v26543_v44 }
 0x451   :  { %v6424_v29 = vadd.f32 %v6423_v24, %v6422_v23 }
 0x453   :  { %v5404_v33 = vpop.f32.mrb[74].mxu1  ;;  %v5482_v36 = vpop.f32.mrb[74].mxu0 }
 0x454   :  { %v6425_v37 = vsel %vm288_vm4, %v5404_v33, 0.0  ;;  %v24938_v18 = vpop.f32.mrb[75].mxu1  ;;  %v24943_v40 = vpop.f32.mrb[75].mxu0  ;;  %v6427_v45 = vsel %vm288_vm4, %v5482_v36, 0.0 }
 0x455   :  { %v6426_v41 = vadd.f32 %v6425_v37, %v6424_v29  ;;  %v28166_v29 = vpop.permute.xlu0 %26562  ;;  %v26550_v40 = vunpack.i.h.bf16 %v28133_v32 }
 0x457   :  { %v6428_v48 = vadd.f32 %v6427_v45, %v6426_v41  ;;  %v5560_v49 = vpop.f32.mrb[76].mxu1  ;;  %v5638_v52 = vpop.f32.mrb[76].mxu0  ;;  %v26549_v41 = vunpack.i.l.bf16 %v28133_v32 }
 0x458   :  { %v6429_v53 = vsel %vm288_vm4, %v5560_v49, 0.0  ;;  %v24948_v56 = vpop.f32.mrb[77].mxu1  ;;  %v24953_v57 = vpop.f32.mrb[77].mxu0  ;;  %v6431_v60 = vsel %vm288_vm4, %v5638_v52, 0.0 }
 0x459   :  { %v6430_v59 = vadd.f32 %v6429_v53, %v6428_v48  ;;  %v28182_v52 = vpop.permute.xlu1 %26577 }
 0x45b   :  { %v6432_v61 = vadd.f32 %v6431_v60, %v6430_v59  ;;  %v5716_v62 = vpop.f32.mrb[78].mxu1  ;;  %v5794_v63 = vpop.f32.mrb[78].mxu0  ;;  %v26555_v59 = vunpack.i.h.bf16 %v28142_v5  ;;  %v26554_v60 = vunpack.i.l.bf16 %v28142_v5  ;;  %v26560_v5 = vunpack.i.h.bf16 %v28138_v58 }
 0x45c   :  { %v6433_v0 = vsel %vm288_vm4, %v5716_v62, 0.0  ;;  %v24958_v1 = vpop.f32.mrb[79].mxu1  ;;  %v24963_v3 = vpop.f32.mrb[79].mxu0  ;;  %v6435_v6 = vsel %vm288_vm4, %v5794_v63, 0.0 }
 0x45d   :  { %v6434_v4 = vadd.f32 %v6433_v0, %v6432_v61  ;;  %v26573_v1 = vpop.permute.xlu0 %26572 }
 0x45f   :  { %v28145_v7 = vadd.f32 %v6435_v6, %v6434_v4  ;;  %v5872_v8 = vpop.f32.mrb[80].mxu1  ;;  %v5950_v9 = vpop.f32.mrb[80].mxu0  ;;  %v26559_v6 = vunpack.i.l.bf16 %v28138_v58  ;;  %v26564_v58 = vunpack.i.l.bf16 %v28166_v29 }
 0x460   :  { %v6437_v12 = vsel %vm288_vm4, %v5872_v8, 0.0  ;;  %v6438_v13 = vsel %vm288_vm4, %v5950_v9, 0.0  ;;  %v24968_v14 = vpop.f32.mrb[81].mxu1  ;;  %v24973_v2 = vpop.f32.mrb[81].mxu0  ;;  %v26565_v8 = vunpack.i.h.bf16 %v28166_v29 }
 0x461   :  { %v6439_v15 = vadd.f32 %v6438_v13, %v6437_v12  ;;  %25007 = vmatmul.mubr.msk.f32.vlgmr.msra.gmra.mrb[88].mxu1 %vm288_vm4, %v28145_v7  ;;  %25012 = vmatmul.mubr.msk.f32.vlgmr.msra.gmra.mrb[88].mxu0 %vm288_vm4, %v28145_v7  ;;  %v26583_v9 = vpop.permute.xlu0 %26582  ;;  %v26575_v2 = vunpack.i.h.bf16 %v26573_v1 }
 0x462   :  { %25015 = vmatpush3.msra.mxu1 %v26539_v11  ;;  %25020 = vmatpush3.msra.mxu0 %v26540_v10  ;;  %v26570_v10 = vunpack.i.h.bf16 %v28153_v16  ;;  %v26569_v11 = vunpack.i.l.bf16 %v28153_v16 }
 0x463   :  { %v6028_v17 = vpop.f32.mrb[82].mxu1  ;;  %v6106_v20 = vpop.f32.mrb[82].mxu0  ;;  %25016 = vmatprep.mubr.msk.f32.mxu1 %vm27216_vm1, %v31354_v22  ;;  %25021 = vmatprep.mubr.msk.f32.mxu0 %vm27216_vm1, %v31354_v22 }
 0x464   :  { %v6440_v23 = vsel %vm288_vm4, %v6028_v17, 0.0  ;;  %v24978_v24 = vpop.f32.mrb[83].mxu1  ;;  %v24983_v25 = vpop.f32.mrb[83].mxu0  ;;  %25024 = vmatprep.subr.mxu1 %v31354_v22  ;;  %25029 = vmatprep.subr.mxu0 %v31354_v22  ;;  %v6442_v33 = vsel %vm288_vm4, %v6106_v20, 0.0  ;;  %v26580_v17 = vunpack.i.h.bf16 %v28182_v52  ;;  %v26579_v20 = vunpack.i.l.bf16 %v28182_v52 }
 0x465   :  { %v6441_v28 = vadd.f32 %v6440_v23, %v6439_v15  ;;  %25017 = vmatmul.mubr.msk.f32.vlgmr.msra.gmra.mrb[90].mxu1 %vm288_vm4, %v28145_v7  ;;  %25022 = vmatmul.mubr.msk.f32.vlgmr.msra.gmra.mrb[90].mxu0 %vm288_vm4, %v28145_v7  ;;  %v26593_v13 = vpop.permute.xlu0 %26592  ;;  %v26574_v15 = vunpack.i.l.bf16 %v26573_v1 }
 0x466   :  { %25025 = vmatpush3.msra.mxu1 %v26544_v21  ;;  %25030 = vmatpush3.msra.mxu0 %v26545_v19  ;;  %v26585_v19 = vunpack.i.h.bf16 %v26583_v9  ;;  %v26584_v21 = vunpack.i.l.bf16 %v26583_v9  ;;  %v26595_v29 = vunpack.i.h.bf16 %v26593_v13 }
 0x467   :  { %v6443_v36 = vadd.f32 %v6442_v33, %v6441_v28  ;;  %v6184_v37 = vpop.f32.mrb[84].mxu1  ;;  %v6262_v18 = vpop.f32.mrb[84].mxu0  ;;  %25026 = vmatprep.mubr.msk.f32.mxu1 %vm27216_vm1, %v31354_v22  ;;  %25031 = vmatprep.mubr.msk.f32.mxu0 %vm27216_vm1, %v31354_v22  ;;  %v26594_v33 = vunpack.i.l.bf16 %v26593_v13 }
 0x468   :  { %v6444_v44 = vsel %vm288_vm4, %v6184_v37, 0.0  ;;  %v24988_v45 = vpop.f32.mrb[85].mxu1  ;;  %v24993_v48 = vpop.f32.mrb[85].mxu0  ;;  %25034 = vmatprep.subr.mxu1 %v31354_v22  ;;  %25039 = vmatprep.subr.mxu0 %v31354_v22  ;;  %v6446_v53 = vsel %vm288_vm4, %v6262_v18, 0.0 }
 0x469   :  { %v6445_v49 = vadd.f32 %v6444_v44, %v6443_v36  ;;  %25027 = vmatmul.mubr.msk.f32.vlgmr.msra.gmra.mrb[92].mxu1 %vm288_vm4, %v28145_v7  ;;  %25032 = vmatmul.mubr.msk.f32.vlgmr.msra.gmra.mrb[92].mxu0 %vm288_vm4, %v28145_v7  ;;  %v26603_v16 = vpop.permute.xlu0 %26602 }
 0x46a   :  { %25035 = vmatpush3.msra.mxu1 %v26549_v41  ;;  %25040 = vmatpush3.msra.mxu0 %v26550_v40  ;;  %v26605_v40 = vunpack.i.h.bf16 %v26603_v16  ;;  %v26604_v41 = vunpack.i.l.bf16 %v26603_v16 }
 0x46b   :  { %v6447_v32 = vadd.f32 %v6446_v53, %v6445_v49  ;;  %v6340_v56 = vpop.f32.mrb[86].mxu1  ;;  %v6418_v57 = vpop.f32.mrb[86].mxu0  ;;  %25036 = vmatprep.mubr.msk.f32.mxu1 %vm27216_vm1, %v31354_v22  ;;  %25041 = vmatprep.mubr.msk.f32.mxu0 %vm27216_vm1, %v31354_v22 }
 0x46c   :  { %v6448_v61 = vsel %vm288_vm4, %v6340_v56, 0.0  ;;  %v24998_v62 = vpop.f32.mrb[87].mxu1  ;;  %v25003_v63 = vpop.f32.mrb[87].mxu0  ;;  %25044 = vmatprep.subr.mxu1 %v31354_v22  ;;  %25049 = vmatprep.subr.mxu0 %v31354_v22  ;;  %v6450_v3 = vsel %vm288_vm4, %v6418_v57, 0.0 }
 0x46d   :  { %v6449_v0 = vadd.f32 %v6448_v61, %v6447_v32  ;;  %25037 = vmatmul.mubr.msk.f32.vlgmr.msra.gmra.mrb[94].mxu1 %vm288_vm4, %v28145_v7  ;;  %25042 = vmatmul.mubr.msk.f32.vlgmr.msra.gmra.mrb[94].mxu0 %vm288_vm4, %v28145_v7  ;;  %v26588_v7 = vpop.permute.xlu1 %26587  ;;  %v26613_v28 = vpop.permute.xlu0 %26612 }
 0x46e   :  { %25045 = vmatpush3.msra.mxu1 %v26554_v60  ;;  %25050 = vmatpush3.msra.mxu0 %v26555_v59  ;;  %v26590_v24 = vunpack.i.h.bf16 %v26588_v7  ;;  %v26589_v25 = vunpack.i.l.bf16 %v26588_v7  ;;  %v26615_v49 = vunpack.i.h.bf16 %v26613_v28  ;;  %v26614_v52 = vunpack.i.l.bf16 %v26613_v28 }
 0x46f   :  { %v6451_v4 = vadd.f32 %v6450_v3, %v6449_v0  ;;  %25046 = vmatprep.mubr.msk.f32.mxu1 %vm27216_vm1, %v31354_v22  ;;  %25051 = vmatprep.mubr.msk.f32.mxu0 %vm27216_vm1, %v31354_v22 }
 0x470   :  { %25054 = vmatprep.subr.mxu1 %v31354_v22  ;;  %25059 = vmatprep.subr.mxu0 %v31354_v22 }
 0x471   :  { %25047 = vmatmul.mubr.msk.f32.vlgmr.msra.gmra.mrb[96].mxu1 %vm288_vm4, %v6451_v4  ;;  %25052 = vmatmul.mubr.msk.f32.vlgmr.msra.gmra.mrb[96].mxu0 %vm288_vm4, %v6451_v4  ;;  %v26598_v12 = vpop.permute.xlu1 %26597  ;;  %v26623_v44 = vpop.permute.xlu0 %26622 }
 0x472   :  { %25055 = vmatpush3.msra.mxu1 %v26559_v6  ;;  %25060 = vmatpush3.msra.mxu0 %v26560_v5  ;;  %v26600_v36 = vunpack.i.h.bf16 %v26598_v12  ;;  %v26599_v37 = vunpack.i.l.bf16 %v26598_v12  ;;  %v26625_v59 = vunpack.i.h.bf16 %v26623_v44  ;;  %v26624_v60 = vunpack.i.l.bf16 %v26623_v44 }
 0x473   :  { %25056 = vmatprep.mubr.msk.f32.mxu1 %vm27216_vm1, %v31354_v22  ;;  %25061 = vmatprep.mubr.msk.f32.mxu0 %vm27216_vm1, %v31354_v22 }
 0x474   :  { %25064 = vmatprep.subr.mxu1 %v31354_v22  ;;  %25069 = vmatprep.subr.mxu0 %v31354_v22 }
 0x475   :  { %25057 = vmatmul.mubr.msk.f32.vlgmr.msra.gmra.mrb[98].mxu1 %vm288_vm4, %v6451_v4  ;;  %25062 = vmatmul.mubr.msk.f32.vlgmr.msra.gmra.mrb[98].mxu0 %vm288_vm4, %v6451_v4  ;;  %v26608_v14 = vpop.permute.xlu1 %26607  ;;  %v26633_v57 = vpop.permute.xlu0 %26632 }
 0x476   :  { %25065 = vmatpush3.msra.mxu1 %v26564_v58  ;;  %25070 = vmatpush3.msra.mxu0 %v26565_v8  ;;  %v26610_v45 = vunpack.i.h.bf16 %v26608_v14  ;;  %v26609_v48 = vunpack.i.l.bf16 %v26608_v14  ;;  %v26635_v0 = vunpack.i.h.bf16 %v26633_v57  ;;  %v26634_v1 = vunpack.i.l.bf16 %v26633_v57 }
 0x477   :  { %25066 = vmatprep.mubr.msk.f32.mxu1 %vm27216_vm1, %v31354_v22  ;;  %25071 = vmatprep.mubr.msk.f32.mxu0 %vm27216_vm1, %v31354_v22 }
 0x478   :  { %25074 = vmatprep.subr.mxu1 %v31354_v22  ;;  %25079 = vmatprep.subr.mxu0 %v31354_v22 }
 0x479   :  { %25067 = vmatmul.mubr.msk.f32.vlgmr.msra.gmra.mrb[100].mxu1 %vm288_vm4, %v6451_v4  ;;  %25072 = vmatmul.mubr.msk.f32.vlgmr.msra.gmra.mrb[100].mxu0 %vm288_vm4, %v6451_v4  ;;  %v26618_v23 = vpop.permute.xlu1 %26617  ;;  %v26643_v3 = vpop.permute.xlu0 %26642 }
 0x47a   :  { %25075 = vmatpush3.msra.mxu1 %v26569_v11  ;;  %25080 = vmatpush3.msra.mxu0 %v26570_v10  ;;  %v26620_v32 = vunpack.i.h.bf16 %v26618_v23  ;;  %v26619_v56 = vunpack.i.l.bf16 %v26618_v23  ;;  %v26645_v6 = vunpack.i.h.bf16 %v26643_v3  ;;  %v26644_v7 = vunpack.i.l.bf16 %v26643_v3 }
 0x47b   :  { %25076 = vmatprep.mubr.msk.f32.mxu1 %vm27216_vm1, %v31354_v22  ;;  %25081 = vmatprep.mubr.msk.f32.mxu0 %vm27216_vm1, %v31354_v22 }
 0x47c   :  { %25084 = vmatprep.subr.mxu1 %v31354_v22  ;;  %25089 = vmatprep.subr.mxu0 %v31354_v22 }
 0x47d   :  { %25077 = vmatmul.mubr.msk.f32.vlgmr.msra.gmra.mrb[102].mxu1 %vm288_vm4, %v6451_v4  ;;  %25082 = vmatmul.mubr.msk.f32.vlgmr.msra.gmra.mrb[102].mxu0 %vm288_vm4, %v6451_v4  ;;  %v26628_v18 = vpop.permute.xlu1 %26627  ;;  %v8797_v58 = vpop.permute.xlu0 %8796 }
 0x47e   :  { %25086 = vmatprep.mubr.msk.f32.mxu1 %vm27216_vm1, %v31354_v22  ;;  %25091 = vmatprep.mubr.msk.f32.mxu0 %vm27216_vm1, %v31354_v22  ;;  %v26630_v61 = vunpack.i.h.bf16 %v26628_v18  ;;  %v26629_v62 = vunpack.i.l.bf16 %v26628_v18 }
 0x481   :  { %25085 = vmatpush3.xpose.msk.msra.mxu1 %vm288_vm4, %v26574_v15  ;;  %25090 = vmatpush3.xpose.msk.msra.mxu0 %vm288_vm4, %v26575_v2  ;;  %v26638_v53 = vpop.permute.xlu1 %26637 }
 0x482   :  { %25094 = vmatprep.subr.mxu1 %v31354_v22  ;;  %25099 = vmatprep.subr.mxu0 %v31354_v22  ;;  %v26640_v4 = vunpack.i.h.bf16 %v26638_v53  ;;  %v26639_v5 = vunpack.i.l.bf16 %v26638_v53 }
 0x484   :  { %25087 = vmatmul.mubr.msk.f32.vlgmr.msra.gmra.mrb[104].mxu1 %vm288_vm4, %v26579_v20  ;;  %25092 = vmatmul.mubr.msk.f32.vlgmr.msra.gmra.mrb[104].mxu0 %vm288_vm4, %v26580_v17 }
 0x485   :  { %25095 = vmatpush3.xpose.msk.msra.mxu1 %vm288_vm4, %v26584_v21  ;;  %25100 = vmatpush3.xpose.msk.msra.mxu0 %vm288_vm4, %v26585_v19  ;;  %v8719_v63 = vpop.permute.xlu1 %8718 }
 0x486   :  { %25096 = vmatprep.mubr.msk.f32.mxu1 %vm27216_vm1, %v31354_v22  ;;  %25101 = vmatprep.mubr.msk.f32.mxu0 %vm27216_vm1, %v31354_v22 }
 0x487   :  { %25104 = vmatprep.subr.mxu1 %v31354_v22  ;;  %25109 = vmatprep.subr.mxu0 %v31354_v22 }
 0x488   :  { %25097 = vmatmul.mubr.msk.f32.vlgmr.msra.gmra.mrb[106].mxu1 %vm288_vm4, %v26589_v25  ;;  %25102 = vmatmul.mubr.msk.f32.vlgmr.msra.gmra.mrb[106].mxu0 %vm288_vm4, %v26590_v24 }
 0x489   :  { %25105 = vmatpush3.xpose.msk.msra.mxu1 %vm288_vm4, %v26594_v33  ;;  %25110 = vmatpush3.xpose.msk.msra.mxu0 %vm288_vm4, %v26595_v29  ;;  %v26648_v8 = vpop.permute.xlu1 %26647 }
 0x48a   :  { %25106 = vmatprep.mubr.msk.f32.mxu1 %vm27216_vm1, %v31354_v22  ;;  %25111 = vmatprep.mubr.msk.f32.mxu0 %vm27216_vm1, %v31354_v22  ;;  %v26650_v9 = vunpack.i.h.bf16 %v26648_v8  ;;  %v26649_v10 = vunpack.i.l.bf16 %v26648_v8 }
 0x48b   :  { %25114 = vmatprep.subr.mxu1 %v31354_v22  ;;  %25119 = vmatprep.subr.mxu0 %v31354_v22 }
 0x48c   :  { %25107 = vmatmul.mubr.msk.f32.vlgmr.msra.gmra.mrb[108].mxu1 %vm288_vm4, %v26599_v37  ;;  %25112 = vmatmul.mubr.msk.f32.vlgmr.msra.gmra.mrb[108].mxu0 %vm288_vm4, %v26600_v36 }
 0x48d   :  { %25115 = vmatpush3.xpose.msk.msra.mxu1 %vm288_vm4, %v26604_v41  ;;  %25120 = vmatpush3.xpose.msk.msra.mxu0 %vm288_vm4, %v26605_v40 }
 0x48e   :  { %25116 = vmatprep.mubr.msk.f32.mxu1 %vm27216_vm1, %v31354_v22  ;;  %25121 = vmatprep.mubr.msk.f32.mxu0 %vm27216_vm1, %v31354_v22 }
 0x48f   :  { %25124 = vmatprep.subr.mxu1 %v31354_v22  ;;  %25129 = vmatprep.subr.mxu0 %v31354_v22 }
 0x490   :  { %25117 = vmatmul.mubr.msk.f32.vlgmr.msra.gmra.mrb[110].mxu1 %vm288_vm4, %v26609_v48  ;;  %25122 = vmatmul.mubr.msk.f32.vlgmr.msra.gmra.mrb[110].mxu0 %vm288_vm4, %v26610_v45 }
 0x491   :  { %25125 = vmatpush3.xpose.msk.msra.mxu1 %vm288_vm4, %v26614_v52  ;;  %25130 = vmatpush3.xpose.msk.msra.mxu0 %vm288_vm4, %v26615_v49 }
 0x492   :  { %25126 = vmatprep.mubr.msk.f32.mxu1 %vm27216_vm1, %v31354_v22  ;;  %25131 = vmatprep.mubr.msk.f32.mxu0 %vm27216_vm1, %v31354_v22 }
 0x493   :  { %25134 = vmatprep.subr.mxu1 %v31354_v22  ;;  %25139 = vmatprep.subr.mxu0 %v31354_v22 }
 0x494   :  { %25127 = vmatmul.mubr.msk.f32.vlgmr.msra.gmra.mrb[112].mxu1 %vm288_vm4, %v26619_v56  ;;  %25132 = vmatmul.mubr.msk.f32.vlgmr.msra.gmra.mrb[112].mxu0 %vm288_vm4, %v26620_v32 }
 0x495   :  { %25135 = vmatpush3.xpose.msk.msra.mxu1 %vm288_vm4, %v26624_v60  ;;  %25140 = vmatpush3.xpose.msk.msra.mxu0 %vm288_vm4, %v26625_v59 }
 0x496   :  { %25136 = vmatprep.mubr.msk.f32.mxu1 %vm27216_vm1, %v31354_v22  ;;  %25141 = vmatprep.mubr.msk.f32.mxu0 %vm27216_vm1, %v31354_v22 }
 0x497   :  { %25144 = vmatprep.subr.mxu1 %v31354_v22  ;;  %25149 = vmatprep.subr.mxu0 %v31354_v22 }
 0x498   :  { %25137 = vmatmul.mubr.msk.f32.vlgmr.msra.gmra.mrb[114].mxu1 %vm288_vm4, %v26629_v62  ;;  %25142 = vmatmul.mubr.msk.f32.vlgmr.msra.gmra.mrb[114].mxu0 %vm288_vm4, %v26630_v61 }
 0x499   :  { %25145 = vmatpush3.xpose.msk.msra.mxu1 %vm288_vm4, %v26634_v1  ;;  %25150 = vmatpush3.xpose.msk.msra.mxu0 %vm288_vm4, %v26635_v0 }
 0x49a   :  { %25146 = vmatprep.mubr.msk.f32.mxu1 %vm27216_vm1, %v31354_v22  ;;  %25151 = vmatprep.mubr.msk.f32.mxu0 %vm27216_vm1, %v31354_v22 }
 0x49b   :  { %25154 = vmatprep.subr.mxu1 %v31354_v22  ;;  %25159 = vmatprep.subr.mxu0 %v31354_v22 }
 0x49c   :  { %25147 = vmatmul.mubr.msk.f32.vlgmr.msra.gmra.mrb[116].mxu1 %vm288_vm4, %v26639_v5  ;;  %25152 = vmatmul.mubr.msk.f32.vlgmr.msra.gmra.mrb[116].mxu0 %vm288_vm4, %v26640_v4 }
 0x49d   :  { %25155 = vmatpush3.xpose.msk.msra.mxu1 %vm288_vm4, %v26644_v7  ;;  %25160 = vmatpush3.xpose.msk.msra.mxu0 %vm288_vm4, %v26645_v6 }
 0x49e   :  { %25156 = vmatprep.mubr.msk.f32.mxu1 %vm27216_vm1, %v31354_v22  ;;  %25161 = vmatprep.mubr.msk.f32.mxu0 %vm27216_vm1, %v31354_v22 }
 0x49f   :  { %25164 = vmatprep.subr.mxu1 %v31354_v22  ;;  %25169 = vmatprep.subr.mxu0 %v31354_v22 }
 0x4a0   :  { %25157 = vmatmul.mubr.msk.f32.vlgmr.msra.gmra.mrb[118].mxu1 %vm288_vm4, %v8719_v63  ;;  %25162 = vmatmul.mubr.msk.f32.vlgmr.msra.gmra.mrb[118].mxu0 %vm288_vm4, %v8797_v58 }
 0x4a1   :  { %25165 = vmatpush3.msra.mxu1 %v26649_v10  ;;  %25170 = vmatpush3.msra.mxu0 %v26650_v9 }
 0x4a2   :  { %25166 = vmatprep.mubr.msk.f32.mxu1 %vm27216_vm1, %v31354_v22  ;;  %25171 = vmatprep.mubr.msk.f32.mxu0 %vm27216_vm1, %v31354_v22 }
 0x4a3   :  { %25174 = vmatprep.subr.mxu1 %v31354_v22  ;;  %25179 = vmatprep.subr.mxu0 %v31354_v22 }
 0x534   :  { %v6524_v11 = vpop.f32.mrb[88].mxu1  ;;  %v6597_v12 = vpop.f32.mrb[88].mxu0 }
 0x535   :  { %10160 = vrot.lane.b32.xlu0 %v6597_v12, %s27229_s25  ;;  %v25013_v13 = vpop.f32.mrb[89].mxu0  ;;  %10158 = vrot.lane.b32.xlu1 %v6524_v11, %s27229_s25  ;;  %v25008_v14 = vpop.f32.mrb[89].mxu1 }
 0x538   :  { %v6670_v2 = vpop.f32.mrb[90].mxu1  ;;  %v6743_v15 = vpop.f32.mrb[90].mxu0 }
 0x539   :  { %10164 = vrot.lane.b32.xlu0 %v6743_v15, %s27229_s25  ;;  %v25023_v16 = vpop.f32.mrb[91].mxu0  ;;  %10162 = vrot.lane.b32.xlu1 %v6670_v2, %s27229_s25  ;;  %v25018_v17 = vpop.f32.mrb[91].mxu1 }
 0x53c   :  { %v6816_v20 = vpop.f32.mrb[92].mxu1  ;;  %v6889_v19 = vpop.f32.mrb[92].mxu0 }
 0x53d   :  { %10168 = vrot.lane.b32.xlu0 %v6889_v19, %s27229_s25  ;;  %v25033_v21 = vpop.f32.mrb[93].mxu0  ;;  %10166 = vrot.lane.b32.xlu1 %v6816_v20, %s27229_s25  ;;  %v25028_v23 = vpop.f32.mrb[93].mxu1 }
 0x540   :  { %v6962_v24 = vpop.f32.mrb[94].mxu1  ;;  %v7035_v25 = vpop.f32.mrb[94].mxu0 }
 0x541   :  { %10172 = vrot.lane.b32.xlu0 %v7035_v25, %s27229_s25  ;;  %v25043_v28 = vpop.f32.mrb[95].mxu0  ;;  %10170 = vrot.lane.b32.xlu1 %v6962_v24, %s27229_s25  ;;  %v25038_v29 = vpop.f32.mrb[95].mxu1 }
 0x542   :  { %v26653_v25 = vpop.permute.xlu0 %26652 }
 0x544   :  { %v7111_v33 = vpop.f32.mrb[96].mxu1  ;;  %v7184_v36 = vpop.f32.mrb[96].mxu0 }
 0x545   :  { %10176 = vrot.lane.b32.xlu0 %v7184_v36, %s27229_s25  ;;  %v25053_v37 = vpop.f32.mrb[97].mxu0  ;;  %10174 = vrot.lane.b32.xlu1 %v7111_v33, %s27229_s25  ;;  %v25048_v18 = vpop.f32.mrb[97].mxu1 }
 0x546   :  { %v26655_v18 = vunpack.i.h.bf16 %v26653_v25 }
 0x548   :  { %v7257_v40 = vpop.f32.mrb[98].mxu1  ;;  %v7330_v41 = vpop.f32.mrb[98].mxu0 }
 0x549   :  { %10180 = vrot.lane.b32.xlu0 %v7330_v41, %s27229_s25  ;;  %v25063_v44 = vpop.f32.mrb[99].mxu0  ;;  %10178 = vrot.lane.b32.xlu1 %v7257_v40, %s27229_s25  ;;  %v25058_v45 = vpop.f32.mrb[99].mxu1  ;;  %v26654_v40 = vunpack.i.l.bf16 %v26653_v25 }
 0x54c   :  { %v7403_v48 = vpop.f32.mrb[100].mxu1  ;;  %v7476_v49 = vpop.f32.mrb[100].mxu0 }
 0x54d   :  { %10184 = vrot.lane.b32.xlu0 %v7476_v49, %s27229_s25  ;;  %v25073_v52 = vpop.f32.mrb[101].mxu0  ;;  %10182 = vrot.lane.b32.xlu1 %v7403_v48, %s27229_s25  ;;  %v25068_v53 = vpop.f32.mrb[101].mxu1 }
 0x54e   :  { %v26658_v49 = vpop.permute.xlu1 %26657 }
 0x550   :  { %v7549_v32 = vpop.f32.mrb[102].mxu1  ;;  %v7622_v56 = vpop.f32.mrb[102].mxu0 }
 0x551   :  { %10188 = vrot.lane.b32.xlu0 %v7622_v56, %s27229_s25  ;;  %v25083_v57 = vpop.f32.mrb[103].mxu0  ;;  %10186 = vrot.lane.b32.xlu1 %v7549_v32, %s27229_s25  ;;  %v25078_v59 = vpop.f32.mrb[103].mxu1  ;;  %v26660_v56 = vunpack.i.h.bf16 %v26658_v49 }
 0x552   :  { %v26659_v57 = vunpack.i.l.bf16 %v26658_v49  ;;  %v10323_v49 = vld [vmem:[%s31343_s2 + $0x18] sm:$0xff] }
 0x557   :  { %v7700_v60 = vpop.f32.mrb[104].mxu1  ;;  %v7778_v61 = vpop.f32.mrb[104].mxu0 }
 0x558   :  { %v8874_v62 = vsel %vm288_vm4, %v7700_v60, 0.0  ;;  %v8875_v63 = vsel %vm288_vm4, %v7778_v61, 0.0  ;;  %v25088_v0 = vpop.f32.mrb[105].mxu1  ;;  %v25093_v1 = vpop.f32.mrb[105].mxu0 }
 0x559   :  { %v8876_v3 = vadd.f32 %v8875_v63, %v8874_v62  ;;  %v26663_v62 = vpop.permute.xlu0 %26662 }
 0x55b   :  { %v7856_v4 = vpop.f32.mrb[106].mxu1  ;;  %v7934_v5 = vpop.f32.mrb[106].mxu0 }
 0x55c   :  { %v8877_v6 = vsel %vm288_vm4, %v7856_v4, 0.0  ;;  %v25098_v7 = vpop.f32.mrb[107].mxu1  ;;  %v25103_v8 = vpop.f32.mrb[107].mxu0  ;;  %v8879_v9 = vsel %vm288_vm4, %v7934_v5, 0.0  ;;  %v26665_v5 = vunpack.i.h.bf16 %v26663_v62 }
 0x55d   :  { %v8878_v58 = vadd.f32 %v8877_v6, %v8876_v3  ;;  %v26664_v6 = vunpack.i.l.bf16 %v26663_v62 }
 0x55f   :  { %v8880_v10 = vadd.f32 %v8879_v9, %v8878_v58  ;;  %v8012_v11 = vpop.f32.mrb[108].mxu1  ;;  %v8090_v12 = vpop.f32.mrb[108].mxu0 }
 0x560   :  { %v8881_v13 = vsel %vm288_vm4, %v8012_v11, 0.0  ;;  %v25108_v14 = vpop.f32.mrb[109].mxu1  ;;  %v25113_v2 = vpop.f32.mrb[109].mxu0  ;;  %v8883_v16 = vsel %vm288_vm4, %v8090_v12, 0.0 }
 0x561   :  { %v8882_v15 = vadd.f32 %v8881_v13, %v8880_v10  ;;  %v26668_v9 = vpop.permute.xlu1 %26667 }
 0x562   :  { %v26670_v2 = vunpack.i.h.bf16 %v26668_v9 }
 0x563   :  { %v8884_v17 = vadd.f32 %v8883_v16, %v8882_v15  ;;  %v8168_v20 = vpop.f32.mrb[110].mxu1  ;;  %v8246_v19 = vpop.f32.mrb[110].mxu0  ;;  %v26669_v15 = vunpack.i.l.bf16 %v26668_v9 }
 0x564   :  { %v8885_v21 = vsel %vm288_vm4, %v8168_v20, 0.0  ;;  %v25118_v23 = vpop.f32.mrb[111].mxu1  ;;  %v25123_v24 = vpop.f32.mrb[111].mxu0  ;;  %v8887_v29 = vsel %vm288_vm4, %v8246_v19, 0.0 }
 0x565   :  { %v8886_v28 = vadd.f32 %v8885_v21, %v8884_v17  ;;  %v26673_v19 = vpop.permute.xlu0 %26672 }
 0x566   :  { %v26675_v25 = vunpack.i.h.bf16 %v26673_v19 }
 0x567   :  { %v28349_v33 = vadd.f32 %v8887_v29, %v8886_v28  ;;  %v8324_v36 = vpop.f32.mrb[112].mxu1  ;;  %v8402_v37 = vpop.f32.mrb[112].mxu0  ;;  %v26674_v28 = vunpack.i.l.bf16 %v26673_v19 }
 0x568   :  { %v8889_v41 = vsel %vm288_vm4, %v8324_v36, 0.0  ;;  %v8890_v44 = vsel %vm288_vm4, %v8402_v37, 0.0  ;;  %v25128_v45 = vpop.f32.mrb[113].mxu1  ;;  %v25133_v48 = vpop.f32.mrb[113].mxu0 }
 0x569   :  { %v8891_v52 = vadd.f32 %v8890_v44, %v8889_v41  ;;  %25167 = vmatmul.mubr.msk.f32.vlgmr.msra.gmra.mrb[120].mxu1 %vm288_vm4, %v28349_v33  ;;  %25172 = vmatmul.mubr.msk.f32.vlgmr.msra.gmra.mrb[120].mxu0 %vm288_vm4, %v28349_v33  ;;  %v26678_v29 = vpop.permute.xlu1 %26677  ;;  %v26683_v37 = vpop.permute.xlu0 %26682  ;;  %v10320_v41 = vld [vmem:[%s31343_s2] sm:$0xff]  ;;  %v10321_v44 = vld [vmem:[%s31343_s2 + $0x8] sm:$0xff]  ;;  %v10322_v45 = vld [vmem:[%s31343_s2 + $0x10] sm:$0xff] }
 0x56a   :  { %25175 = vmatpush3.msra.mxu1 %v26654_v40  ;;  %25180 = vmatpush3.msra.mxu0 %v26655_v18  ;;  %v26679_v36 = vunpack.i.l.bf16 %v26678_v29  ;;  %v26685_v18 = vunpack.i.h.bf16 %v26683_v37  ;;  %v26684_v40 = vunpack.i.l.bf16 %v26683_v37  ;;  %v26164_v48 = vpack.c.bf16 %v10321_v44, %v10320_v41 }
 0x56b   :  { %v8480_v53 = vpop.f32.mrb[114].mxu1  ;;  %v8558_v32 = vpop.f32.mrb[114].mxu0  ;;  %25176 = vmatprep.mubr.msk.f32.mxu1 %vm27216_vm1, %v31354_v22  ;;  %25181 = vmatprep.mubr.msk.f32.mxu0 %vm27216_vm1, %v31354_v22 }
 0x56c   :  { %v8892_v59 = vsel %vm288_vm4, %v8480_v53, 0.0  ;;  %v25138_v60 = vpop.f32.mrb[115].mxu1  ;;  %v25143_v61 = vpop.f32.mrb[115].mxu0  ;;  %25184 = vmatprep.subr.mxu1 %v31354_v22  ;;  %25189 = vmatprep.subr.mxu0 %v31354_v22  ;;  %v8894_v0 = vsel %vm288_vm4, %v8558_v32, 0.0 }
 0x56d   :  { %v8893_v63 = vadd.f32 %v8892_v59, %v8891_v52  ;;  %25177 = vmatmul.mubr.msk.f32.vlgmr.msra.gmra.mrb[122].mxu1 %vm288_vm4, %v28349_v33  ;;  %25182 = vmatmul.mubr.msk.f32.vlgmr.msra.gmra.mrb[122].mxu0 %vm288_vm4, %v28349_v33  ;;  %v26168_v52 = vpack.c.bf16 %v10323_v49, %v10322_v45 }
 0x56e   :  { %25185 = vmatpush3.msra.mxu1 %v26659_v57  ;;  %25190 = vmatpush3.msra.mxu0 %v26660_v56 }
 0x56f   :  { %v8895_v1 = vadd.f32 %v8894_v0, %v8893_v63  ;;  %v8636_v3 = vpop.f32.mrb[116].mxu1  ;;  %v8714_v4 = vpop.f32.mrb[116].mxu0  ;;  %25186 = vmatprep.mubr.msk.f32.mxu1 %vm27216_vm1, %v31354_v22  ;;  %25191 = vmatprep.mubr.msk.f32.mxu0 %vm27216_vm1, %v31354_v22 }
 0x570   :  { %v8896_v7 = vsel %vm288_vm4, %v8636_v3, 0.0  ;;  %v25148_v8 = vpop.f32.mrb[117].mxu1  ;;  %v25153_v58 = vpop.f32.mrb[117].mxu0  ;;  %25194 = vmatprep.subr.mxu1 %v31354_v22  ;;  %25199 = vmatprep.subr.mxu0 %v31354_v22  ;;  %v8898_v11 = vsel %vm288_vm4, %v8714_v4, 0.0 }
 0x571   :  { %v8897_v10 = vadd.f32 %v8896_v7, %v8895_v1  ;;  %25187 = vmatmul.mubr.msk.f32.vlgmr.msra.gmra.mrb[124].mxu1 %vm288_vm4, %v28349_v33  ;;  %25192 = vmatmul.mubr.msk.f32.vlgmr.msra.gmra.mrb[124].mxu0 %vm288_vm4, %v28349_v33 }
 0x572   :  { %25195 = vmatpush3.msra.mxu1 %v26664_v6  ;;  %25200 = vmatpush3.msra.mxu0 %v26665_v5 }
 0x573   :  { %v8899_v12 = vadd.f32 %v8898_v11, %v8897_v10  ;;  %v8792_v13 = vpop.f32.mrb[118].mxu1  ;;  %v8870_v14 = vpop.f32.mrb[118].mxu0  ;;  %25196 = vmatprep.mubr.msk.f32.mxu1 %vm27216_vm1, %v31354_v22  ;;  %25201 = vmatprep.mubr.msk.f32.mxu0 %vm27216_vm1, %v31354_v22 }
 0x574   :  { %v8900_v16 = vsel %vm288_vm4, %v8792_v13, 0.0  ;;  %v25158_v17 = vpop.f32.mrb[119].mxu1  ;;  %v25163_v20 = vpop.f32.mrb[119].mxu0  ;;  %25204 = vmatprep.subr.mxu1 %v31354_v22  ;;  %25209 = vmatprep.subr.mxu0 %v31354_v22  ;;  %v8902_v23 = vsel %vm288_vm4, %v8870_v14, 0.0 }
 0x575   :  { %v8901_v21 = vadd.f32 %v8900_v16, %v8899_v12  ;;  %25197 = vmatmul.mubr.msk.f32.vlgmr.msra.gmra.mrb[126].mxu1 %vm288_vm4, %v28349_v33  ;;  %25202 = vmatmul.mubr.msk.f32.vlgmr.msra.gmra.mrb[126].mxu0 %vm288_vm4, %v28349_v33  ;;  %v26680_v33 = vunpack.i.h.bf16 %v26678_v29  ;;  %v10097_v11 = vpop.permute.xlu0 %10096  ;;  %v10095_v12 = vpop.permute.xlu1 %10094 }
 0x576   :  { %25205 = vmatpush3.msra.mxu1 %v26669_v15  ;;  %25210 = vmatpush3.msra.mxu0 %v26670_v2 }
 0x577   :  { %v8903_v24 = vadd.f32 %v8902_v23, %v8901_v21  ;;  %25206 = vmatprep.mubr.msk.f32.mxu1 %vm27216_vm1, %v31354_v22  ;;  %25211 = vmatprep.mubr.msk.f32.mxu0 %vm27216_vm1, %v31354_v22 }
 0x578   :  { %25214 = vmatprep.subr.mxu1 %v31354_v22  ;;  %25219 = vmatprep.subr.mxu0 %v31354_v22 }
 0x579   :  { %25207 = vmatmul.mubr.msk.f32.vlgmr.msra.gmra.mrb[128].mxu1 %vm288_vm4, %v8903_v24  ;;  %25212 = vmatmul.mubr.msk.f32.vlgmr.msra.gmra.mrb[128].mxu0 %vm288_vm4, %v8903_v24  ;;  %v10101_v21 = vpop.permute.xlu0 %10100  ;;  %v10099_v23 = vpop.permute.xlu1 %10098 }
 0x57a   :  { %25215 = vmatpush3.msra.mxu1 %v26674_v28  ;;  %25220 = vmatpush3.msra.mxu0 %v26675_v25 }
 0x57b   :  { %25216 = vmatprep.mubr.msk.f32.mxu1 %vm27216_vm1, %v31354_v22  ;;  %25221 = vmatprep.mubr.msk.f32.mxu0 %vm27216_vm1, %v31354_v22 }
 0x57c   :  { %25224 = vmatprep.subr.mxu1 %v31354_v22  ;;  %25229 = vmatprep.subr.mxu0 %v31354_v22 }
 0x57d   :  { %25217 = vmatmul.mubr.msk.f32.vlgmr.msra.gmra.mrb[130].mxu1 %vm288_vm4, %v8903_v24  ;;  %25222 = vmatmul.mubr.msk.f32.vlgmr.msra.gmra.mrb[130].mxu0 %vm288_vm4, %v8903_v24 }
 0x57e   :  { %25225 = vmatpush3.msra.mxu1 %v26679_v36  ;;  %25230 = vmatpush3.msra.mxu0 %v26680_v33  ;;  %v10105_v33 = vpop.permute.xlu0 %10104  ;;  %v10103_v36 = vpop.permute.xlu1 %10102 }
 0x57f   :  { %25226 = vmatprep.mubr.msk.f32.mxu1 %vm27216_vm1, %v31354_v22  ;;  %25231 = vmatprep.mubr.msk.f32.mxu0 %vm27216_vm1, %v31354_v22 }
 0x580   :  { %25234 = vmatprep.subr.mxu1 %v31354_v22  ;;  %25239 = vmatprep.subr.mxu0 %v31354_v22 }
 0x581   :  { %25227 = vmatmul.mubr.msk.f32.vlgmr.msra.gmra.mrb[132].mxu1 %vm288_vm4, %v8903_v24  ;;  %25232 = vmatmul.mubr.msk.f32.vlgmr.msra.gmra.mrb[132].mxu0 %vm288_vm4, %v8903_v24 }
 0x582   :  { %25235 = vmatpush3.msra.mxu1 %v26684_v40  ;;  %25240 = vmatpush3.msra.mxu0 %v26685_v18  ;;  %v10109_v37 = vpop.permute.xlu0 %10108  ;;  %v10107_v18 = vpop.permute.xlu1 %10106 }
 0x583   :  { %25236 = vmatprep.mubr.msk.f32.mxu1 %vm27216_vm1, %v31354_v22  ;;  %25241 = vmatprep.mubr.msk.f32.mxu0 %vm27216_vm1, %v31354_v22 }
 0x584   :  { %26165 = vmatprep.subr.bf16.mxu1 %v26164_v48 }
 0x585   :  { %25237 = vmatmul.mubr.msk.f32.vlgmr.msra.gmra.mrb[134].mxu1 %vm288_vm4, %v8903_v24  ;;  %25242 = vmatmul.mubr.msk.f32.vlgmr.msra.gmra.mrb[134].mxu0 %vm288_vm4, %v8903_v24 }
 0x586   :  { %26167 = vmatpush3.bf16.msra.mxu1 %v26164_v48  ;;  %v28451_v40 = vpop.permute.xlu0 %10112  ;;  %v28453_v41 = vpop.permute.xlu1 %10110 }
 0x587   :  { %26169 = vmatprep.subr.bf16.mxu1 %v26168_v52 }
 0x58a   :  { %26171 = vmatpush3.bf16.msra.mxu1 %v26168_v52  ;;  %v28455_v44 = vpop.permute.xlu0 %10116  ;;  %v28457_v45 = vpop.permute.xlu1 %10114 }
 0x58e   :  { %v28459_v48 = vpop.permute.xlu0 %10120  ;;  %v28461_v49 = vpop.permute.xlu1 %10118 }
 0x592   :  { %v28463_v52 = vpop.permute.xlu0 %10124 }
 0x63c   :  { %v8976_v53 = vpop.f32.mrb[120].mxu1  ;;  %v9049_v32 = vpop.f32.mrb[120].mxu0 }
 0x63d   :  { %10224 = vrot.lane.b32.xlu0 %v9049_v32, %s27230_s10  ;;  %v25173_v56 = vpop.f32.mrb[121].mxu0  ;;  %10222 = vrot.lane.b32.xlu1 %v8976_v53, %s27230_s10  ;;  %v25168_v57 = vpop.f32.mrb[121].mxu1 }
 0x63e   :  { %v28465_v53 = vpop.permute.xlu1 %10122  ;;  %v10161_v32 = vpop.permute.xlu0 %10160 }
 0x640   :  { %v9122_v59 = vpop.f32.mrb[122].mxu1  ;;  %v9195_v60 = vpop.f32.mrb[122].mxu0 }
 0x641   :  { %10228 = vrot.lane.b32.xlu0 %v9195_v60, %s27230_s10  ;;  %v25183_v61 = vpop.f32.mrb[123].mxu0  ;;  %10226 = vrot.lane.b32.xlu1 %v9122_v59, %s27230_s10  ;;  %v25178_v62 = vpop.f32.mrb[123].mxu1 }
 0x642   :  { %v10159_v56 = vpop.permute.xlu1 %10158  ;;  %v10165_v57 = vpop.permute.xlu0 %10164 }
 0x644   :  { %v9268_v63 = vpop.f32.mrb[124].mxu1  ;;  %v9341_v0 = vpop.f32.mrb[124].mxu0 }
 0x645   :  { %10232 = vrot.lane.b32.xlu0 %v9341_v0, %s27230_s10  ;;  %v25193_v1 = vpop.f32.mrb[125].mxu0  ;;  %10230 = vrot.lane.b32.xlu1 %v9268_v63, %s27230_s10  ;;  %v25188_v3 = vpop.f32.mrb[125].mxu1 }
 0x646   :  { %v10163_v59 = vpop.permute.xlu1 %10162  ;;  %v10169_v60 = vpop.permute.xlu0 %10168 }
 0x648   :  { %v9414_v4 = vpop.f32.mrb[126].mxu1  ;;  %v9487_v5 = vpop.f32.mrb[126].mxu0 }
 0x649   :  { %10236 = vrot.lane.b32.xlu0 %v9487_v5, %s27230_s10  ;;  %v25203_v6 = vpop.f32.mrb[127].mxu0  ;;  %10234 = vrot.lane.b32.xlu1 %v9414_v4, %s27230_s10  ;;  %v25198_v7 = vpop.f32.mrb[127].mxu1 }
 0x64a   :  { %v10167_v61 = vpop.permute.xlu1 %10166  ;;  %v10173_v62 = vpop.permute.xlu0 %10172 }
 0x64c   :  { %v9563_v8 = vpop.f32.mrb[128].mxu1  ;;  %v9636_v58 = vpop.f32.mrb[128].mxu0 }
 0x64d   :  { %10240 = vrot.lane.b32.xlu0 %v9636_v58, %s27230_s10  ;;  %v25213_v9 = vpop.f32.mrb[129].mxu0  ;;  %10238 = vrot.lane.b32.xlu1 %v9563_v8, %s27230_s10  ;;  %v25208_v10 = vpop.f32.mrb[129].mxu1  ;;  %v10271_v58 = vsel %vm288_vm4, %v27891_v27, %v10097_v11  ;;  %v10272_v27 = vsel %vm288_vm4, %v27893_v30, %v10099_v23  ;;  %v10274_v30 = vsel %vm288_vm4, %v27897_v34, %v10103_v36 }
 0x64e   :  { %v10171_v63 = vpop.permute.xlu1 %10170  ;;  %v10177_v0 = vpop.permute.xlu0 %10176  ;;  %v10270_v9 = vsel %vm288_vm4, %v27889_v26, %v10095_v12  ;;  %v10288_v10 = vsel %vm10286_vm5, %v10271_v58, %v10161_v32  ;;  %v10289_v11 = vsel %vm10286_vm5, %v10272_v27, %v10163_v59  ;;  %v10291_v23 = vsel %vm10286_vm5, %v10274_v30, %v10167_v61  ;;  %v27202_v30 = vld [vmem:[%s31342_s0 + $0x10] sm:$0xff] }
 0x64f   :  { %v10276_v34 = vsel %vm288_vm4, %v27901_v38, %v10107_v18  ;;  %v10278_v38 = vsel %vm288_vm4, %v27905_v42, %v28453_v41  ;;  %v10280_v42 = vsel %vm288_vm4, %v27909_v46, %v28457_v45  ;;  %v10282_v46 = vsel %vm288_vm4, %v27913_v50, %v28461_v49 }
 0x650   :  { %v9709_v13 = vpop.f32.mrb[130].mxu1  ;;  %v9782_v14 = vpop.f32.mrb[130].mxu0  ;;  %v10293_v36 = vsel %vm10286_vm5, %v10276_v34, %v10171_v63  ;;  %v10285_v50 = vsel %vm288_vm4, %v27919_v55, %v28463_v52 }
 0x651   :  { %10244 = vrot.lane.b32.xlu0 %v9782_v14, %s27230_s10  ;;  %v25223_v2 = vpop.f32.mrb[131].mxu0  ;;  %10242 = vrot.lane.b32.xlu1 %v9709_v13, %s27230_s10  ;;  %v25218_v15 = vpop.f32.mrb[131].mxu1  ;;  %v10287_v13 = vsel %vm10286_vm5, %v10270_v9, %v10159_v56 }
 0x652   :  { %v10175_v1 = vpop.permute.xlu1 %10174  ;;  %v10181_v3 = vpop.permute.xlu0 %10180 }
 0x653   :  { %v10295_v18 = vsel %vm10286_vm5, %v10278_v38, %v10175_v1 }
 0x654   :  { %v9855_v16 = vpop.f32.mrb[132].mxu1  ;;  %v9928_v17 = vpop.f32.mrb[132].mxu0 }
 0x655   :  { %10248 = vrot.lane.b32.xlu0 %v9928_v17, %s27230_s10  ;;  %v25233_v20 = vpop.f32.mrb[133].mxu0  ;;  %10246 = vrot.lane.b32.xlu1 %v9855_v16, %s27230_s10  ;;  %v25228_v19 = vpop.f32.mrb[133].mxu1  ;;  %v10273_v17 = vsel %vm288_vm4, %v27895_v31, %v10101_v21  ;;  %v10275_v31 = vsel %vm288_vm4, %v27899_v35, %v10105_v33  ;;  %v10277_v35 = vsel %vm288_vm4, %v27903_v39, %v10109_v37 }
 0x656   :  { %v10179_v4 = vpop.permute.xlu1 %10178  ;;  %v28467_v5 = vpop.permute.xlu0 %10184  ;;  %v10290_v26 = vsel %vm10286_vm5, %v10273_v17, %v10165_v57  ;;  %v10292_v21 = vsel %vm10286_vm5, %v10275_v31, %v10169_v60  ;;  %v10294_v33 = vsel %vm10286_vm5, %v10277_v35, %v10173_v62  ;;  %v10279_v39 = vsel %vm288_vm4, %v27907_v43, %v28451_v40  ;;  %v27203_v35 = vld [vmem:[%s31342_s0 + $0x28] sm:$0xff] }
 0x657   :  { %v10296_v37 = vsel %vm10286_vm5, %v10279_v39, %v10177_v0  ;;  %v10281_v43 = vsel %vm288_vm4, %v27911_v47, %v28455_v44  ;;  %v10297_v41 = vsel %vm10286_vm5, %v10280_v42, %v10179_v4  ;;  %v10283_v47 = vsel %vm288_vm4, %v27915_v51, %v28459_v48 }
 0x658   :  { %v10001_v24 = vpop.f32.mrb[134].mxu1  ;;  %v10074_v25 = vpop.f32.mrb[134].mxu0  ;;  %v10298_v40 = vsel %vm10286_vm5, %v10281_v43, %v10181_v3  ;;  %v10300_v44 = vsel %vm10286_vm5, %v10283_v47, %v28467_v5  ;;  %v10284_v51 = vsel %vm288_vm4, %v27917_v54, %v28465_v53  ;;  %v27199_v53 = vld [vmem:[%s31342_s0 + $0x8] sm:$0xff] }
 0x659   :  { %10252 = vrot.lane.b32.xlu0 %v10074_v25, %s27230_s10  ;;  %v25243_v28 = vpop.f32.mrb[135].mxu0  ;;  %10250 = vrot.lane.b32.xlu1 %v10001_v24, %s27230_s10  ;;  %v25238_v29 = vpop.f32.mrb[135].mxu1 }
 0x65a   :  { %v28469_v6 = vpop.permute.xlu1 %10182  ;;  %v28471_v7 = vpop.permute.xlu0 %10188 }
 0x65b   :  { %v10299_v45 = vsel %vm10286_vm5, %v10282_v46, %v28469_v6  ;;  %v10302_v48 = vsel %vm10286_vm5, %v10285_v50, %v28471_v7 }
 0x65e   :  { %v28473_v8 = vpop.permute.xlu1 %10186 }
 0x65f   :  { %v10301_v49 = vsel %vm10286_vm5, %v10284_v51, %v28473_v8  ;;  %v27210_v51 = vld [vmem:[%s31342_s0 + $0x50] sm:$0xff] }
 0x6af   :  { %v10225_v14 = vpop.permute.xlu0 %10224  ;;  %v10223_v2 = vpop.permute.xlu1 %10222 }
 0x6b0   :  { %v10305_v15 = vsel %vm10303_vm6, %v10288_v10, %v10225_v14  ;;  %v10304_v16 = vsel %vm10303_vm6, %v10287_v13, %v10223_v2 }
 0x6b1   :  { %25252 = vmatprep.mubr.msk.f32.mxu1 %vm43_vm0, %v10304_v16  ;;  %v27200_v16 = vld [vmem:[%s31342_s0] sm:$0xff] }
 0x6b2   :  { %25253 = vmatmul.mubr.msk.f32.vlgmr.msra.gmra.mrb[136].mxu1 %vm43_vm0, %v10305_v15 }
 0x6b3   :  { %v10229_v12 = vpop.permute.xlu0 %10228  ;;  %v10227_v20 = vpop.permute.xlu1 %10226 }
 0x6b4   :  { %v10307_v19 = vsel %vm10303_vm6, %v10290_v26, %v10229_v12  ;;  %v10306_v24 = vsel %vm10303_vm6, %v10289_v11, %v10227_v20 }
 0x6b5   :  { %25255 = vmatprep.mubr.msk.f32.mxu1 %vm43_vm0, %v10306_v24 }
 0x6b6   :  { %25256 = vmatmul.mubr.msk.f32.gmra.mrb[138].mxu1 %vm43_vm0, %v10307_v19  ;;  %v27201_v19 = vld [vmem:[%s31342_s0 + $0x18] sm:$0xff] }
 0x6b7   :  { %v10233_v25 = vpop.permute.xlu0 %10232  ;;  %v10231_v28 = vpop.permute.xlu1 %10230 }
 0x6b8   :  { %v10309_v29 = vsel %vm10303_vm6, %v10292_v21, %v10233_v25  ;;  %v10308_v32 = vsel %vm10303_vm6, %v10291_v23, %v10231_v28 }
 0x6b9   :  { %25258 = vmatprep.mubr.msk.f32.mxu1 %vm43_vm0, %v10308_v32 }
 0x6ba   :  { %25259 = vmatmul.mubr.msk.f32.gmra.mrb[140].mxu1 %vm43_vm0, %v10309_v29 }
 0x6bb   :  { %v10237_v56 = vpop.permute.xlu0 %10236  ;;  %v10235_v57 = vpop.permute.xlu1 %10234 }
 0x6bc   :  { %v10311_v59 = vsel %vm10303_vm6, %v10294_v33, %v10237_v56  ;;  %v10310_v60 = vsel %vm10303_vm6, %v10293_v36, %v10235_v57  ;;  %v27204_v36 = vld [vmem:[%s31342_s0 + $0x20] sm:$0xff] }
 0x6bd   :  { %25261 = vmatprep.mubr.msk.f32.mxu1 %vm43_vm0, %v10310_v60 }
 0x6be   :  { %25262 = vmatmul.mubr.msk.f32.gmra.mrb[142].mxu1 %vm43_vm0, %v10311_v59 }
 0x6bf   :  { %v10241_v61 = vpop.permute.xlu0 %10240  ;;  %v10239_v62 = vpop.permute.xlu1 %10238 }
 0x6c0   :  { %v10313_v63 = vsel %vm10303_vm6, %v10296_v37, %v10241_v61  ;;  %v10312_v58 = vsel %vm10303_vm6, %v10295_v18, %v10239_v62  ;;  %v27205_v37 = vld [vmem:[%s31342_s0 + $0x38] sm:$0xff]  ;;  %v27206_v62 = vld [vmem:[%s31342_s0 + $0x30] sm:$0xff] }
 0x6c1   :  { %25264 = vmatprep.mubr.msk.f32.mxu1 %vm43_vm0, %v10312_v58 }
 0x6c2   :  { %25265 = vmatmul.mubr.msk.f32.gmra.mrb[144].mxu1 %vm43_vm0, %v10313_v63 }
 0x6c3   :  { %v10245_v0 = vpop.permute.xlu0 %10244  ;;  %v10243_v1 = vpop.permute.xlu1 %10242 }
 0x6c4   :  { %v10315_v9 = vsel %vm10303_vm6, %v10298_v40, %v10245_v0  ;;  %v10314_v10 = vsel %vm10303_vm6, %v10297_v41, %v10243_v1  ;;  %v27207_v0 = vld [vmem:[%s31342_s0 + $0x48] sm:$0xff] }
 0x6c5   :  { %25267 = vmatprep.mubr.msk.f32.mxu1 %vm43_vm0, %v10314_v10  ;;  %v27208_v10 = vld [vmem:[%s31342_s0 + $0x40] sm:$0xff] }
 0x6c6   :  { %25268 = vmatmul.mubr.msk.f32.gmra.mrb[146].mxu1 %vm43_vm0, %v10315_v9 }
 0x6c7   :  { %v10249_v3 = vpop.permute.xlu0 %10248  ;;  %v10247_v4 = vpop.permute.xlu1 %10246 }
 0x6c8   :  { %v10317_v13 = vsel %vm10303_vm6, %v10300_v44, %v10249_v3  ;;  %v10316_v14 = vsel %vm10303_vm6, %v10299_v45, %v10247_v4 }
 0x6c9   :  { %25270 = vmatprep.mubr.msk.f32.mxu1 %vm43_vm0, %v10316_v14 }
 0x6ca   :  { %25271 = vmatmul.mubr.msk.f32.gmra.mrb[148].mxu1 %vm43_vm0, %v10317_v13  ;;  %v27209_v13 = vld [vmem:[%s31342_s0 + $0x58] sm:$0xff] }
 0x6cb   :  { %v10253_v5 = vpop.permute.xlu0 %10252  ;;  %v10251_v6 = vpop.permute.xlu1 %10250 }
 0x6cc   :  { %v10319_v2 = vsel %vm10303_vm6, %v10302_v48, %v10253_v5  ;;  %v10318_v15 = vsel %vm10303_vm6, %v10301_v49, %v10251_v6 }
 0x6cd   :  { %25273 = vmatprep.mubr.msk.f32.mxu1 %vm43_vm0, %v10318_v15 }
 0x6ce   :  { %25274 = vmatmul.mubr.msk.f32.gmra.mrb[150].mxu1 %vm43_vm0, %v10319_v2 }
 0x785   :  { %v25254_v55 = vpop.f32.mrb[136].mxu1 }
 0x786   :  { %vm10518_vm7 = vcmp.gt.f32.partialorder %v25254_v55, 1.0  ;;  %v10438_v54 = vpop.f32.mrb[137].mxu1  ;;  %v27211_v55 = vld [vmem:[%s31342_s0 + $0x68] sm:$0xff] }
 0x787   :  { %v23416_v52 = vsel %vm10518_vm7, 1.0, %v31354_v22  ;;  %vm10517_vm8 = vcmp.gt.f32.partialorder %v10438_v54, 1.0 }
 0x788   :  { %v28571_v7 = vadd.f32 %v27199_v53, %v23416_v52  ;;  %v23415_v8 = vsel %vm10517_vm8, 1.0, %v31354_v22  ;;  %v27212_v53 = vld [vmem:[%s31342_s0 + $0x60] sm:$0xff] }
 0x789   :  { %v28577_v17 = vadd.f32 %v27200_v16, %v23415_v8  ;;  %v25257_v27 = vpop.f32.mrb[138].mxu1 }
 0x78a   :  { %vm10520_vm9 = vcmp.gt.f32.partialorder %v25257_v27, 1.0  ;;  %v10448_v26 = vpop.f32.mrb[139].mxu1  ;;  %v10585_v11 = vsel %vm43_vm0, %v28571_v7, 0.0 }
 0x78b   :  { %v23418_v12 = vsel %vm10520_vm9, 1.0, %v31354_v22  ;;  %vm10519_vm10 = vcmp.gt.f32.partialorder %v10448_v26, 1.0  ;;  %10586 = vadd.xlane.f32.xlu0 %v10585_v11  ;;  %v10582_v20 = vsel %vm43_vm0, %v28577_v17, 0.0 }
 0x78c   :  { %v28587_v24 = vadd.f32 %v27201_v19, %v23418_v12  ;;  %v23417_v31 = vsel %vm10519_vm10, 1.0, %v31354_v22  ;;  %10583 = vadd.xlane.f32.xlu1 %v10582_v20  ;;  %v27213_v20 = vld [vmem:[%s31342_s0 + $0x78] sm:$0xff] }
 0x78d   :  { %v28593_v21 = vadd.f32 %v27202_v30, %v23417_v31  ;;  %v25260_v23 = vpop.f32.mrb[140].mxu1  ;;  %v27214_v30 = vld [vmem:[%s31342_s0 + $0x70] sm:$0xff] }
 0x78e   :  { %vm10522_vm11 = vcmp.gt.f32.partialorder %v25260_v23, 1.0  ;;  %v10458_v25 = vpop.f32.mrb[141].mxu1  ;;  %v10591_v28 = vsel %vm43_vm0, %v28587_v24, 0.0 }
 0x78f   :  { %v23420_v29 = vsel %vm10522_vm11, 1.0, %v31354_v22  ;;  %vm10521_vm12 = vcmp.gt.f32.partialorder %v10458_v25, 1.0  ;;  %v10588_v32 = vsel %vm43_vm0, %v28593_v21, 0.0 }
 0x790   :  { %v28603_v34 = vadd.f32 %v27203_v35, %v23420_v29  ;;  %v23419_v33 = vsel %vm10521_vm12, 1.0, %v31354_v22  ;;  %10592 = vadd.xlane.f32.xlu1 %v10591_v28  ;;  %10589 = vadd.xlane.f32.xlu0 %v10588_v32 }
 0x791   :  { %v28609_v56 = vadd.f32 %v27204_v36, %v23419_v33  ;;  %v25263_v57 = vpop.f32.mrb[142].mxu1 }
 0x792   :  { %vm10524_vm13 = vcmp.gt.f32.partialorder %v25263_v57, 1.0  ;;  %v10468_v59 = vpop.f32.mrb[143].mxu1  ;;  %v10597_v60 = vsel %vm43_vm0, %v28603_v34, 0.0 }
 0x793   :  { %v23422_v39 = vsel %vm10524_vm13, 1.0, %v31354_v22  ;;  %vm10523_vm14 = vcmp.gt.f32.partialorder %v10468_v59, 1.0  ;;  %v10594_v38 = vsel %vm43_vm0, %v28609_v56, 0.0 }
 0x794   :  { %v28619_v18 = vadd.f32 %v27205_v37, %v23422_v39  ;;  %v23421_v61 = vsel %vm10523_vm14, 1.0, %v31354_v22  ;;  %10598 = vadd.xlane.f32.xlu1 %v10597_v60  ;;  %10595 = vadd.xlane.f32.xlu0 %v10594_v38 }
 0x795   :  { %v28625_v63 = vadd.f32 %v27206_v62, %v23421_v61  ;;  %v25266_v58 = vpop.f32.mrb[144].mxu1 }
 0x796   :  { %vm10526_vm15 = vcmp.gt.f32.partialorder %v25266_v58, 1.0  ;;  %v10478_v43 = vpop.f32.mrb[145].mxu1  ;;  %v10603_v42 = vsel %vm43_vm0, %v28619_v18, 0.0 }
 0x797   :  { %v23424_v40 = vsel %vm10526_vm15, 1.0, %v31354_v22  ;;  %vm10525_vm2 = vcmp.gt.f32.partialorder %v10478_v43, 1.0  ;;  %v10600_v41 = vsel %vm43_vm0, %v28625_v63, 0.0 }
 0x798   :  { %v28635_v1 = vadd.f32 %v27207_v0, %v23424_v40  ;;  %v23423_v9 = vsel %vm10525_vm2, 1.0, %v31354_v22  ;;  %10604 = vadd.xlane.f32.xlu1 %v10603_v42  ;;  %10601 = vadd.xlane.f32.xlu0 %v10600_v41 }
 0x799   :  { %v28641_v47 = vadd.f32 %v27208_v10, %v23423_v9  ;;  %v25269_v46 = vpop.f32.mrb[146].mxu1 }
 0x79a   :  { %vm10528_vm3 = vcmp.gt.f32.partialorder %v25269_v46, 1.0  ;;  %v10488_v44 = vpop.f32.mrb[147].mxu1  ;;  %v10609_v45 = vsel %vm43_vm0, %v28635_v1, 0.0 }
 0x79b   :  { %v23426_v3 = vsel %vm10528_vm3, 1.0, %v31354_v22  ;;  %vm10527_vm7 = vcmp.gt.f32.partialorder %v10488_v44, 1.0  ;;  %v10606_v4 = vsel %vm43_vm0, %v28641_v47, 0.0 }
 0x79c   :  { %v28651_v14 = vadd.f32 %v27209_v13, %v23426_v3  ;;  %v23425_v50 = vsel %vm10527_vm7, 1.0, %v31354_v22  ;;  %10610 = vadd.xlane.f32.xlu1 %v10609_v45  ;;  %10607 = vadd.xlane.f32.xlu0 %v10606_v4 }
 0x79d   :  { %v28657_v48 = vadd.f32 %v27210_v51, %v23425_v50  ;;  %v25272_v49 = vpop.f32.mrb[148].mxu1 }
 0x79e   :  { %vm10530_vm8 = vcmp.gt.f32.partialorder %v25272_v49, 1.0  ;;  %v10498_v5 = vpop.f32.mrb[149].mxu1  ;;  %v10615_v6 = vsel %vm43_vm0, %v28651_v14, 0.0 }
 0x79f   :  { %v23428_v2 = vsel %vm10530_vm8, 1.0, %v31354_v22  ;;  %vm10529_vm9 = vcmp.gt.f32.partialorder %v10498_v5, 1.0  ;;  %v10612_v15 = vsel %vm43_vm0, %v28657_v48, 0.0 }
 0x7a0   :  { %v28667_v54 = vadd.f32 %v27211_v55, %v23428_v2  ;;  %v23427_v52 = vsel %vm10529_vm9, 1.0, %v31354_v22  ;;  %10616 = vadd.xlane.f32.xlu1 %v10615_v6  ;;  %10613 = vadd.xlane.f32.xlu0 %v10612_v15 }
 0x7a1   :  { %v28673_v8 = vadd.f32 %v27212_v53, %v23427_v52  ;;  %v25275_v16 = vpop.f32.mrb[150].mxu1 }
 0x7a2   :  { %vm10532_vm10 = vcmp.gt.f32.partialorder %v25275_v16, 1.0  ;;  %v10508_v27 = vpop.f32.mrb[151].mxu1  ;;  %v10621_v26 = vsel %vm43_vm0, %v28667_v54, 0.0 }
 0x7a3   :  { %v23430_v11 = vsel %vm10532_vm10, 1.0, %v31354_v22  ;;  %vm10531_vm11 = vcmp.gt.f32.partialorder %v10508_v27, 1.0  ;;  %v10618_v12 = vsel %vm43_vm0, %v28673_v8, 0.0 }
 0x7a4   :  { %v28683_v19 = vadd.f32 %v27213_v20, %v23430_v11  ;;  %v23429_v31 = vsel %vm10531_vm11, 1.0, %v31354_v22  ;;  %10622 = vadd.xlane.f32.xlu1 %v10621_v26  ;;  %10619 = vadd.xlane.f32.xlu0 %v10618_v12 }
 0x7a5   :  { %v28689_v23 = vadd.f32 %v27214_v30, %v23429_v31 }
 0x7a6   :  { %v10627_v25 = vsel %vm43_vm0, %v28683_v19, 0.0 }
 0x7a7   :  { %v10624_v28 = vsel %vm43_vm0, %v28689_v23, 0.0 }
 0x7a8   :  { %10628 = vadd.xlane.f32.xlu1 %v10627_v25  ;;  %10625 = vadd.xlane.f32.xlu0 %v10624_v28 }
 0x818   :  { %v10587_v29 = vpop.xlane.xlu0 %10586 }
 0x819   :  { %v10632_v32 = vmul.f32 0.03125, %v10587_v29  ;;  %v10584_v35 = vpop.xlane.xlu1 %10583 }
 0x81a   :  { %v10631_v33 = vmul.f32 0.03125, %v10584_v35 }
 0x81b   :  { %v28696_v36 = vsub.f32 %v28571_v7, %v10632_v32 }
 0x81c   :  { %v28699_v57 = vsub.f32 %v28577_v17, %v10631_v33 }
 0x81d   :  { %v10593_v59 = vpop.xlane.xlu1 %10592  ;;  %v10590_v60 = vpop.xlane.xlu0 %10589  ;;  %v10664_v39 = vmul.f32 %v28696_v36, %v28696_v36 }
 0x81e   :  { %v10634_v38 = vmul.f32 0.03125, %v10593_v59  ;;  %v10633_v37 = vmul.f32 0.03125, %v10590_v60  ;;  %v10663_v61 = vmul.f32 %v28699_v57, %v28699_v57 }
 0x81f   :  { %v10682_v62 = vsel %vm43_vm0, %v10664_v39, 0.0 }
 0x820   :  { %v28707_v58 = vsub.f32 %v28587_v24, %v10634_v38  ;;  %v28710_v7 = vsub.f32 %v28593_v21, %v10633_v37  ;;  %10683 = vadd.xlane.f32.xlu1 %v10682_v62  ;;  %v10679_v17 = vsel %vm43_vm0, %v10663_v61, 0.0 }
 0x821   :  { %v10599_v43 = vpop.xlane.xlu1 %10598  ;;  %v10596_v42 = vpop.xlane.xlu0 %10595  ;;  %10680 = vadd.xlane.f32.xlu0 %v10679_v17 }
 0x822   :  { %v10636_v40 = vmul.f32 0.03125, %v10599_v43  ;;  %v10635_v41 = vmul.f32 0.03125, %v10596_v42  ;;  %v10666_v0 = vmul.f32 %v28707_v58, %v28707_v58  ;;  %v10665_v9 = vmul.f32 %v28710_v7, %v28710_v7 }
 0x824   :  { %v28718_v24 = vsub.f32 %v28603_v34, %v10636_v40  ;;  %v28721_v21 = vsub.f32 %v28609_v56, %v10635_v41  ;;  %v10688_v10 = vsel %vm43_vm0, %v10666_v0, 0.0  ;;  %v10685_v46 = vsel %vm43_vm0, %v10665_v9, 0.0 }
 0x825   :  { %v10605_v44 = vpop.xlane.xlu1 %10604  ;;  %v10602_v45 = vpop.xlane.xlu0 %10601  ;;  %10689 = vadd.xlane.f32.xlu1 %v10688_v10  ;;  %10686 = vadd.xlane.f32.xlu0 %v10685_v46 }
 0x826   :  { %v10638_v3 = vmul.f32 0.03125, %v10605_v44  ;;  %v10637_v4 = vmul.f32 0.03125, %v10602_v45  ;;  %v10668_v13 = vmul.f32 %v28718_v24, %v28718_v24  ;;  %v10667_v34 = vmul.f32 %v28721_v21, %v28721_v21  ;;  %v10833_v44 = vld [vmem:[%s31344_s3 + $0x10] sm:$0xff]  ;;  %v10834_v45 = vld [vmem:[%s31344_s3 + $0x18] sm:$0xff] }
 0x828   :  { %v28730_v50 = vsub.f32 %v28619_v18, %v10638_v3  ;;  %v28733_v56 = vsub.f32 %v28625_v63, %v10637_v4  ;;  %v10694_v51 = vsel %vm43_vm0, %v10668_v13, 0.0  ;;  %v10691_v49 = vsel %vm43_vm0, %v10667_v34, 0.0  ;;  %v11124_v4 = vld [vmem:[%s31345_s4] sm:$0xff]  ;;  %v11125_v13 = vld [vmem:[%s31345_s4 + $0x8] sm:$0xff]  ;;  %v11126_v34 = vld [vmem:[%s31345_s4 + $0x10] sm:$0xff] }
 0x829   :  { %v10611_v5 = vpop.xlane.xlu1 %10610  ;;  %v10608_v6 = vpop.xlane.xlu0 %10607  ;;  %10695 = vadd.xlane.f32.xlu1 %v10694_v51  ;;  %10692 = vadd.xlane.f32.xlu0 %v10691_v49  ;;  %v26176_v3 = vpack.c.bf16 %v10834_v45, %v10833_v44  ;;  %v28812_v51 = vpack.c.bf16 %v11125_v13, %v11124_v4  ;;  %v11127_v49 = vld [vmem:[%s31345_s4 + $0x18] sm:$0xff] }
 0x82a   :  { %v10640_v2 = vmul.f32 0.03125, %v10611_v5  ;;  %v10639_v15 = vmul.f32 0.03125, %v10608_v6  ;;  %v10670_v55 = vmul.f32 %v28730_v50, %v28730_v50  ;;  %v10669_v18 = vmul.f32 %v28733_v56, %v28733_v56  ;;  %v11128_v6 = vld [vmem:[%s31345_s4 + $0x20] sm:$0xff] }
 0x82b   :  { %v28818_v5 = vpack.c.bf16 %v11127_v49, %v11126_v34  ;;  %26268 = vmatprep.subr.bf16.mxu1 %v28812_v51 }
 0x82c   :  { %v28742_v52 = vsub.f32 %v28635_v1, %v10640_v2  ;;  %v28745_v63 = vsub.f32 %v28641_v47, %v10639_v15  ;;  %v10700_v53 = vsel %vm43_vm0, %v10670_v55, 0.0  ;;  %v10697_v16 = vsel %vm43_vm0, %v10669_v18, 0.0  ;;  %v11129_v2 = vld [vmem:[%s31345_s4 + $0x28] sm:$0xff]  ;;  %26276 = vmatpush3.bf16.msra.mxu1 %v28812_v51  ;;  %v11130_v55 = vld [vmem:[%s31345_s4 + $0x30] sm:$0xff]  ;;  %v11131_v18 = vld [vmem:[%s31345_s4 + $0x38] sm:$0xff] }
 0x82d   :  { %v10617_v27 = vpop.xlane.xlu1 %10616  ;;  %v10614_v26 = vpop.xlane.xlu0 %10613  ;;  %10701 = vadd.xlane.f32.xlu1 %v10700_v53  ;;  %10698 = vadd.xlane.f32.xlu0 %v10697_v16  ;;  %v28829_v15 = vpack.c.bf16 %v11129_v2, %v11128_v6  ;;  %v28839_v53 = vpack.c.bf16 %v11131_v18, %v11130_v55  ;;  %v11132_v16 = vld [vmem:[%s31345_s4 + $0x40] sm:$0xff] }
 0x82e   :  { %v10642_v11 = vmul.f32 0.03125, %v10617_v27  ;;  %v10641_v12 = vmul.f32 0.03125, %v10614_v26  ;;  %v10672_v20 = vmul.f32 %v28742_v52, %v28742_v52  ;;  %v10671_v1 = vmul.f32 %v28745_v63, %v28745_v63  ;;  %26269 = vmatprep.subr.bf16.mxu1 %v28818_v5  ;;  %v11133_v27 = vld [vmem:[%s31345_s4 + $0x48] sm:$0xff] }
 0x82f   :  { %v28849_v26 = vpack.c.bf16 %v11133_v27, %v11132_v16 }
 0x830   :  { %v28754_v31 = vsub.f32 %v28651_v14, %v10642_v11  ;;  %v28757_v47 = vsub.f32 %v28657_v48, %v10641_v12  ;;  %v10706_v30 = vsel %vm43_vm0, %v10672_v20, 0.0  ;;  %v10703_v25 = vsel %vm43_vm0, %v10671_v1, 0.0  ;;  %26277 = vmatpush3.bf16.msra.mxu1 %v28818_v5  ;;  %v11134_v11 = vld [vmem:[%s31345_s4 + $0x50] sm:$0xff]  ;;  %v11135_v12 = vld [vmem:[%s31345_s4 + $0x58] sm:$0xff]  ;;  %v11136_v1 = vld [vmem:[%s31345_s4 + $0x60] sm:$0xff] }
 0x831   :  { %v10623_v28 = vpop.xlane.xlu1 %10622  ;;  %v10620_v29 = vpop.xlane.xlu0 %10619  ;;  %10707 = vadd.xlane.f32.xlu1 %v10706_v30  ;;  %10704 = vadd.xlane.f32.xlu0 %v10703_v25  ;;  %v28859_v20 = vpack.c.bf16 %v11135_v12, %v11134_v11  ;;  %v11137_v30 = vld [vmem:[%s31345_s4 + $0x68] sm:$0xff] }
 0x832   :  { %v10644_v32 = vmul.f32 0.03125, %v10623_v28  ;;  %v10643_v35 = vmul.f32 0.03125, %v10620_v29  ;;  %v10674_v33 = vmul.f32 %v28754_v31, %v28754_v31  ;;  %v10673_v14 = vmul.f32 %v28757_v47, %v28757_v47  ;;  %26270 = vmatprep.subr.bf16.mxu1 %v28829_v15 }
 0x833   :  { %v28869_v25 = vpack.c.bf16 %v11137_v30, %v11136_v1 }
 0x834   :  { %v28766_v59 = vsub.f32 %v28667_v54, %v10644_v32  ;;  %v28769_v48 = vsub.f32 %v28673_v8, %v10643_v35  ;;  %v10712_v60 = vsel %vm43_vm0, %v10674_v33, 0.0  ;;  %v10709_v39 = vsel %vm43_vm0, %v10673_v14, 0.0  ;;  %26278 = vmatpush3.bf16.msra.mxu1 %v28829_v15 }
 0x835   :  { %10713 = vadd.xlane.f32.xlu1 %v10712_v60  ;;  %v10629_v38 = vpop.xlane.xlu1 %10628  ;;  %10710 = vadd.xlane.f32.xlu0 %v10709_v39  ;;  %v10626_v37 = vpop.xlane.xlu0 %10625  ;;  %v10791_v33 = vlaneseq }
 0x836   :  { %v10646_v61 = vmul.f32 0.03125, %v10629_v38  ;;  %v10645_v62 = vmul.f32 0.03125, %v10626_v37  ;;  %v10676_v17 = vmul.f32 %v28766_v59, %v28766_v59  ;;  %v10675_v54 = vmul.f32 %v28769_v48, %v28769_v48  ;;  %26271 = vmatprep.subr.bf16.mxu1 %v28839_v53 }
 0x838   :  { %v28778_v43 = vsub.f32 %v28683_v19, %v10646_v61  ;;  %v28781_v8 = vsub.f32 %v28689_v23, %v10645_v62  ;;  %v10718_v42 = vsel %vm43_vm0, %v10676_v17, 0.0  ;;  %v10715_v40 = vsel %vm43_vm0, %v10675_v54, 0.0  ;;  %v10831_v19 = vld [vmem:[%s31344_s3] sm:$0xff]  ;;  %v10832_v23 = vld [vmem:[%s31344_s3 + $0x8] sm:$0xff]  ;;  %26279 = vmatpush3.bf16.msra.mxu1 %v28839_v53 }
 0x839   :  { %10719 = vadd.xlane.f32.xlu1 %v10718_v42  ;;  %10716 = vadd.xlane.f32.xlu0 %v10715_v40  ;;  %v26172_v46 = vpack.c.bf16 %v10832_v23, %v10831_v19  ;;  %v28874_v62 = vshrl.u32 %v10791_v33, 7  ;;  %v28880_v23 = vld [vmem:[%s31346_s5] sm:$0xf] }
 0x83a   :  { %v10678_v41 = vmul.f32 %v28778_v43, %v28778_v43  ;;  %v10677_v0 = vmul.f32 %v28781_v8, %v28781_v8  ;;  %26272 = vmatprep.subr.bf16.mxu1 %v28849_v26 }
 0x83b   :  { %26173 = vmatprep.subr.bf16.mxu0 %v26172_v46  ;;  %31367 = vst [vmem:[#allocation2_spill] sm:$0xff] %v28874_v62  ;;  %v31353_v19 = vsub.s32 0, %v28874_v62  ;;  %v31352_v45 = vsub.s32 1, %v28874_v62 }
 0x83c   :  { %v10724_v9 = vsel %vm43_vm0, %v10678_v41, 0.0  ;;  %v10721_v10 = vsel %vm43_vm0, %v10677_v0, 0.0  ;;  %26175 = vmatpush3.bf16.msra.mxu0 %v26172_v46  ;;  %26280 = vmatpush3.bf16.msra.mxu1 %v28849_v26 }
 0x83d   :  { %10725 = vadd.xlane.f32.xlu1 %v10724_v9  ;;  %10722 = vadd.xlane.f32.xlu0 %v10721_v10  ;;  %v28886_v13 = vrot.slane %v28880_v23, %v31353_v19  ;;  %v28893_v11 = vrot.slane %v28880_v23, %v31352_v45 }
 0x83e   :  { %26177 = vmatprep.subr.bf16.mxu0 %v26176_v3  ;;  %26273 = vmatprep.subr.bf16.mxu1 %v28859_v20 }
 0x840   :  { %26179 = vmatpush3.bf16.msra.mxu0 %v26176_v3  ;;  %26281 = vmatpush3.bf16.msra.mxu1 %v28859_v20 }
 0x841   :  { %26181 = vmatprep.subr.bf16.mxu0 %v28812_v51  ;;  %26274 = vmatprep.subr.bf16.mxu1 %v28869_v25 }
 0x844   :  { %26282 = vmatpush3.bf16.msra.mxu1 %v28869_v25 }
 0x8ad   :  { %v10684_v28 = vpop.xlane.xlu1 %10683 }
 0x8ae   :  { %v10728_v29 = vmul.f32 0.03125, %v10684_v28  ;;  %v10681_v32 = vpop.xlane.xlu0 %10680 }
 0x8af   :  { %v10727_v35 = vmul.f32 0.03125, %v10681_v32 }
 0x8b0   :  { %v10744_v14 = vadd.f32 1e-05, %v10728_v29 }
 0x8b1   :  { %v10743_v60 = vadd.f32 1e-05, %v10727_v35 }
 0x8b2   :  { %27071 = vrsqrt.f32 %v10744_v14  ;;  %v10690_v39 = vpop.xlane.xlu1 %10689  ;;  %v10687_v38 = vpop.xlane.xlu0 %10686 }
 0x8b3   :  { %27073 = vrsqrt.f32 %v10743_v60  ;;  %v10730_v37 = vmul.f32 0.03125, %v10690_v39  ;;  %v10729_v61 = vmul.f32 0.03125, %v10687_v38 }
 0x8b5   :  { %v10746_v17 = vadd.f32 1e-05, %v10730_v37  ;;  %v10745_v54 = vadd.f32 1e-05, %v10729_v61 }
 0x8b6   :  { %v10696_v42 = vpop.xlane.xlu1 %10695  ;;  %v10693_v40 = vpop.xlane.xlu0 %10692 }
 0x8b7   :  { %27075 = vrsqrt.f32 %v10746_v17  ;;  %v10732_v41 = vmul.f32 0.03125, %v10696_v42  ;;  %v10731_v0 = vmul.f32 0.03125, %v10693_v40 }
 0x8b8   :  { %27077 = vrsqrt.f32 %v10745_v54 }
 0x8b9   :  { %v10748_v9 = vadd.f32 1e-05, %v10732_v41  ;;  %v10747_v10 = vadd.f32 1e-05, %v10731_v0 }
 0x8ba   :  { %v10702_v46 = vpop.xlane.xlu1 %10701  ;;  %v10699_v44 = vpop.xlane.xlu0 %10698 }
 0x8bb   :  { %27079 = vrsqrt.f32 %v10748_v9  ;;  %v10734_v3 = vmul.f32 0.03125, %v10702_v46  ;;  %v10733_v4 = vmul.f32 0.03125, %v10699_v44 }
 0x8bc   :  { %v27072_v34 = vpop.eup %27071  ;;  %27081 = vrsqrt.f32 %v10747_v10 }
 0x8bd   :  { %v27074_v49 = vpop.eup %27073  ;;  %v10776_v6 = vmul.f32 %v27072_v34, %v28696_v36  ;;  %v10750_v2 = vadd.f32 1e-05, %v10734_v3  ;;  %v10749_v55 = vadd.f32 1e-05, %v10733_v4 }
 0x8be   :  { %v10708_v18 = vpop.xlane.xlu1 %10707  ;;  %v10705_v16 = vpop.xlane.xlu0 %10704  ;;  %v10775_v27 = vmul.f32 %v27074_v49, %v28699_v57 }
 0x8bf   :  { %27083 = vrsqrt.f32 %v10750_v2  ;;  %v10736_v12 = vmul.f32 0.03125, %v10708_v18  ;;  %v10735_v1 = vmul.f32 0.03125, %v10705_v16  ;;  %v10796_v30 = vmul.f32 %v28886_v13, %v10776_v6 }
 0x8c0   :  { %27085 = vrsqrt.f32 %v10749_v55  ;;  %v10795_v28 = vmul.f32 %v28886_v13, %v10775_v27 }
 0x8c1   :  { %v27076_v36 = vpop.eup %27075  ;;  %v10752_v29 = vadd.f32 1e-05, %v10736_v12  ;;  %v10751_v32 = vadd.f32 1e-05, %v10735_v1  ;;  %v28901_v60 = vadd.f32 %v28893_v11, %v10796_v30 }
 0x8c2   :  { %v27078_v35 = vpop.eup %27077  ;;  %v10714_v33 = vpop.xlane.xlu1 %10713  ;;  %v28898_v57 = vadd.f32 %v28893_v11, %v10795_v28  ;;  %v10778_v39 = vmul.f32 %v27076_v36, %v28707_v58 }
 0x8c3   :  { %v10711_v14 = vpop.xlane.xlu0 %10710  ;;  %27087 = vrsqrt.f32 %v10752_v29  ;;  %v10738_v38 = vmul.f32 0.03125, %v10714_v33  ;;  %v10777_v61 = vmul.f32 %v27078_v35, %v28710_v7 }
 0x8c4   :  { %v10737_v37 = vmul.f32 0.03125, %v10711_v14  ;;  %27089 = vrsqrt.f32 %v10751_v32  ;;  %25284 = vmatprep.mubr.msk.f32.mxu0 %vm43_vm0, %v28898_v57  ;;  %v10798_v17 = vmul.f32 %v28886_v13, %v10778_v39 }
 0x8c5   :  { %v27080_v54 = vpop.eup %27079  ;;  %v10754_v42 = vadd.f32 1e-05, %v10738_v38  ;;  %25285 = vmatmul.mubr.msk.f32.vlgmr.msra.gmra.mrb[136].mxu0 %vm43_vm0, %v28901_v60  ;;  %v10797_v41 = vmul.f32 %v28886_v13, %v10777_v61 }
 0x8c6   :  { %v10753_v40 = vadd.f32 1e-05, %v10737_v37  ;;  %v27082_v58 = vpop.eup %27081  ;;  %v10720_v0 = vpop.xlane.xlu1 %10719  ;;  %v28912_v10 = vadd.f32 %v28893_v11, %v10798_v17  ;;  %v10780_v7 = vmul.f32 %v27080_v54, %v28718_v24  ;;  %26183 = vmatpush3.bf16.msra.mxu0 %v28812_v51 }
 0x8c7   :  { %v10717_v9 = vpop.xlane.xlu0 %10716  ;;  %27091 = vrsqrt.f32 %v10754_v42  ;;  %v10740_v46 = vmul.f32 0.03125, %v10720_v0  ;;  %v28917_v3 = vadd.f32 %v28893_v11, %v10797_v41  ;;  %26185 = vmatprep.subr.bf16.mxu0 %v28818_v5  ;;  %v10779_v4 = vmul.f32 %v27082_v58, %v28721_v21 }
 0x8c8   :  { %v10739_v44 = vmul.f32 0.03125, %v10717_v9  ;;  %27093 = vrsqrt.f32 %v10753_v40  ;;  %v10800_v34 = vmul.f32 %v28886_v13, %v10780_v7 }
 0x8c9   :  { %v27084_v49 = vpop.eup %27083  ;;  %v10756_v6 = vadd.f32 1e-05, %v10740_v46  ;;  %25287 = vmatprep.mubr.msk.f32.mxu0 %vm43_vm0, %v28917_v3  ;;  %v10799_v18 = vmul.f32 %v28886_v13, %v10779_v4 }
 0x8ca   :  { %v10755_v2 = vadd.f32 1e-05, %v10739_v44  ;;  %v27086_v24 = vpop.eup %27085  ;;  %25288 = vmatmul.mubr.msk.f32.gmra.mrb[138].mxu0 %vm43_vm0, %v28912_v10  ;;  %v10726_v51 = vpop.xlane.xlu1 %10725  ;;  %v28928_v16 = vadd.f32 %v28893_v11, %v10800_v34  ;;  %v10782_v21 = vmul.f32 %v27084_v49, %v28730_v50 }
 0x8cb   :  { %v10723_v55 = vpop.xlane.xlu0 %10722  ;;  %27095 = vrsqrt.f32 %v10756_v6  ;;  %v10742_v27 = vmul.f32 0.03125, %v10726_v51  ;;  %v10781_v1 = vmul.f32 %v27086_v24, %v28733_v56  ;;  %26187 = vmatpush3.bf16.msra.mxu0 %v28818_v5  ;;  %v28934_v30 = vadd.f32 %v28893_v11, %v10799_v18 }
 0x8cc   :  { %v10741_v12 = vmul.f32 0.03125, %v10723_v55  ;;  %27097 = vrsqrt.f32 %v10755_v2  ;;  %v10802_v28 = vmul.f32 %v28886_v13, %v10782_v21  ;;  %26189 = vmatprep.subr.bf16.mxu0 %v28829_v15  ;;  %v31350_v51 = vmov 1.0  }
 0x8cd   :  { %v27088_v36 = vpop.eup %27087  ;;  %v10758_v29 = vadd.f32 1e-05, %v10742_v27  ;;  %v10801_v50 = vmul.f32 %v28886_v13, %v10781_v1  ;;  %25290 = vmatprep.mubr.msk.f32.mxu0 %vm43_vm0, %v28934_v30 }
 0x8ce   :  { %v10757_v32 = vadd.f32 1e-05, %v10741_v12  ;;  %v27090_v35 = vpop.eup %27089  ;;  %v10784_v56 = vmul.f32 %v27088_v36, %v28742_v52  ;;  %25291 = vmatmul.mubr.msk.f32.gmra.mrb[140].mxu0 %vm43_vm0, %v28928_v16  ;;  %v28948_v33 = vadd.f32 %v28893_v11, %v10802_v28 }
 0x8cf   :  { %27099 = vrsqrt.f32 %v10758_v29  ;;  %v28945_v5 = vadd.f32 %v28893_v11, %v10801_v50  ;;  %v10783_v14 = vmul.f32 %v27090_v35, %v28745_v63  ;;  %26191 = vmatpush3.bf16.msra.mxu0 %v28829_v15 }
 0x8d0   :  { %27101 = vrsqrt.f32 %v10757_v32  ;;  %v10804_v39 = vmul.f32 %v28886_v13, %v10784_v56  ;;  %26193 = vmatprep.subr.bf16.mxu0 %v28839_v53 }
 0x8d1   :  { %v27092_v38 = vpop.eup %27091  ;;  %25293 = vmatprep.mubr.msk.f32.mxu0 %vm43_vm0, %v28945_v5  ;;  %v10803_v52 = vmul.f32 %v28886_v13, %v10783_v14 }
 0x8d2   :  { %v27094_v37 = vpop.eup %27093  ;;  %v10786_v61 = vmul.f32 %v27092_v38, %v28754_v31  ;;  %25294 = vmatmul.mubr.msk.f32.gmra.mrb[142].mxu0 %vm43_vm0, %v28948_v33  ;;  %v28964_v17 = vadd.f32 %v28893_v11, %v10804_v39 }
 0x8d3   :  { %v28961_v63 = vadd.f32 %v28893_v11, %v10803_v52  ;;  %v10785_v15 = vmul.f32 %v27094_v37, %v28757_v47  ;;  %26195 = vmatpush3.bf16.msra.mxu0 %v28839_v53 }
 0x8d4   :  { %v10806_v54 = vmul.f32 %v28886_v13, %v10786_v61  ;;  %26197 = vmatprep.subr.bf16.mxu0 %v28849_v26 }
 0x8d5   :  { %v27096_v42 = vpop.eup %27095  ;;  %25296 = vmatprep.mubr.msk.f32.mxu0 %vm43_vm0, %v28961_v63  ;;  %v10805_v31 = vmul.f32 %v28886_v13, %v10785_v15 }
 0x8d6   :  { %v27098_v40 = vpop.eup %27097  ;;  %v10788_v41 = vmul.f32 %v27096_v42, %v28766_v59  ;;  %25297 = vmatmul.mubr.msk.f32.gmra.mrb[144].mxu0 %vm43_vm0, %v28964_v17  ;;  %v28980_v58 = vadd.f32 %v28893_v11, %v10806_v54 }
 0x8d7   :  { %v28977_v47 = vadd.f32 %v28893_v11, %v10805_v31  ;;  %v10787_v53 = vmul.f32 %v27098_v40, %v28769_v48  ;;  %26199 = vmatpush3.bf16.msra.mxu0 %v28849_v26 }
 0x8d8   :  { %v10808_v0 = vmul.f32 %v28886_v13, %v10788_v41  ;;  %26201 = vmatprep.subr.bf16.mxu0 %v28859_v20 }
 0x8d9   :  { %v27100_v9 = vpop.eup %27099  ;;  %25299 = vmatprep.mubr.msk.f32.mxu0 %vm43_vm0, %v28977_v47  ;;  %v10807_v59 = vmul.f32 %v28886_v13, %v10787_v53 }
 0x8da   :  { %v27102_v7 = vpop.eup %27101  ;;  %v10790_v46 = vmul.f32 %v27100_v9, %v28778_v43  ;;  %25300 = vmatmul.mubr.msk.f32.gmra.mrb[146].mxu0 %vm43_vm0, %v28980_v58  ;;  %v28996_v44 = vadd.f32 %v28893_v11, %v10808_v0 }
 0x8db   :  { %v28993_v48 = vadd.f32 %v28893_v11, %v10807_v59  ;;  %v10789_v26 = vmul.f32 %v27102_v7, %v28781_v8  ;;  %26203 = vmatpush3.bf16.msra.mxu0 %v28859_v20  ;;  %v11138_v8 = vld [vmem:[%s31345_s4 + $0x70] sm:$0xff]  ;;  %v11139_v20 = vld [vmem:[%s31345_s4 + $0x78] sm:$0xff] }
 0x8dc   :  { %v10810_v4 = vmul.f32 %v28886_v13, %v10790_v46  ;;  %26205 = vmatprep.subr.bf16.mxu0 %v28869_v25 }
 0x8dd   :  { %25302 = vmatprep.mubr.msk.f32.mxu0 %vm43_vm0, %v28993_v48  ;;  %v10809_v43 = vmul.f32 %v28886_v13, %v10789_v26  ;;  %v26208_v13 = vpack.c.bf16 %v11139_v20, %v11138_v8 }
 0x8de   :  { %25303 = vmatmul.mubr.msk.f32.gmra.mrb[148].mxu0 %vm43_vm0, %v28996_v44  ;;  %v29011_v49 = vadd.f32 %v28893_v11, %v10810_v4 }
 0x8df   :  { %v29008_v34 = vadd.f32 %v28893_v11, %v10809_v43  ;;  %26207 = vmatpush3.bf16.msra.mxu0 %v28869_v25  ;;  %26275 = vmatprep.subr.bf16.mxu1 %v26208_v13 }
 0x8e0   :  { %26209 = vmatprep.subr.bf16.mxu0 %v26208_v13  ;;  %26283 = vmatpush3.bf16.msra.mxu1 %v26208_v13 }
 0x8e1   :  { %25305 = vmatprep.mubr.msk.f32.mxu0 %vm43_vm0, %v29008_v34  ;;  %25396 = vmatprep.subr.mxu1 %v31354_v22 }
 0x8e2   :  { %25306 = vmatmul.mubr.msk.f32.gmra.mrb[150].mxu0 %vm43_vm0, %v29011_v49 }
 0x8e3   :  { %26211 = vmatpush3.bf16.msra.mxu0 %v26208_v13 }
 0x998   :  { %v25286_v25 = vpop.f32.mrb[136].mxu0 }
 0x999   :  { %vm11029_vm12 = vcmp.gt.f32.partialorder %v25286_v25, 1.0  ;;  %v10949_v11 = vpop.f32.mrb[137].mxu0 }
 0x99a   :  { %v23448_v6 = vsel %vm11029_vm12, 1.0, %v31354_v22  ;;  %vm11028_vm13 = vcmp.gt.f32.partialorder %v10949_v11, 1.0 }
 0x99b   :  { %v23447_v2 = vsel %vm11028_vm13, 1.0, %v31354_v22  ;;  %vm11077_vm15 = vcmp.gt.f32.partialorder %v23448_v6, 1.0 }
 0x99c   :  { %vm11076_vm14 = vcmp.gt.f32.partialorder %v23447_v2, 1.0 }
 0x99d   :  { %v25289_v24 = vpop.f32.mrb[138].mxu0  ;;  %25340 = vmatprep.mubr.msk.f32.mxu0 %vm11076_vm14, %v31350_v51 }
 0x99e   :  { %vm11031_vm2 = vcmp.gt.f32.partialorder %v25289_v24, 1.0  ;;  %v10959_v55 = vpop.f32.mrb[139].mxu0  ;;  %25341 = vmatmul.mubr.msk.f32.vlgmr.msra.gmra.mrb[152].mxu0 %vm11077_vm15, %v31350_v51 }
 0x99f   :  { %v23450_v18 = vsel %vm11031_vm2, 1.0, %v31354_v22  ;;  %vm11030_vm3 = vcmp.gt.f32.partialorder %v10959_v55, 1.0 }
 0x9a0   :  { %v23449_v21 = vsel %vm11030_vm3, 1.0, %v31354_v22  ;;  %vm11079_vm8 = vcmp.gt.f32.partialorder %v23450_v18, 1.0 }
 0x9a1   :  { %vm11078_vm7 = vcmp.gt.f32.partialorder %v23449_v21, 1.0  ;;  %v25292_v27 = vpop.f32.mrb[140].mxu0 }
 0x9a2   :  { %25343 = vmatprep.mubr.msk.f32.mxu0 %vm11078_vm7, %v31350_v51  ;;  %vm11033_vm9 = vcmp.gt.f32.partialorder %v25292_v27, 1.0  ;;  %v10969_v12 = vpop.f32.mrb[141].mxu0 }
 0x9a3   :  { %25344 = vmatmul.mubr.msk.f32.gmra.mrb[154].mxu0 %vm11079_vm8, %v31350_v51  ;;  %v23452_v1 = vsel %vm11033_vm9, 1.0, %v31354_v22  ;;  %vm11032_vm10 = vcmp.gt.f32.partialorder %v10969_v12, 1.0 }
 0x9a4   :  { %v23451_v28 = vsel %vm11032_vm10, 1.0, %v31354_v22  ;;  %vm11081_vm12 = vcmp.gt.f32.partialorder %v23452_v1, 1.0 }
 0x9a5   :  { %vm11080_vm11 = vcmp.gt.f32.partialorder %v23451_v28, 1.0  ;;  %v25295_v36 = vpop.f32.mrb[142].mxu0 }
 0x9a6   :  { %vm11035_vm13 = vcmp.gt.f32.partialorder %v25295_v36, 1.0  ;;  %v10979_v29 = vpop.f32.mrb[143].mxu0  ;;  %25346 = vmatprep.mubr.msk.f32.mxu0 %vm11080_vm11, %v31350_v51 }
 0x9a7   :  { %v23454_v32 = vsel %vm11035_vm13, 1.0, %v31354_v22  ;;  %vm11034_vm14 = vcmp.gt.f32.partialorder %v10979_v29, 1.0  ;;  %25347 = vmatmul.mubr.msk.f32.gmra.mrb[156].mxu0 %vm11081_vm12, %v31350_v51 }
 0x9a8   :  { %v23453_v50 = vsel %vm11034_vm14, 1.0, %v31354_v22  ;;  %vm11083_vm2 = vcmp.gt.f32.partialorder %v23454_v32, 1.0 }
 0x9a9   :  { %vm11082_vm15 = vcmp.gt.f32.partialorder %v23453_v50, 1.0  ;;  %v25298_v35 = vpop.f32.mrb[144].mxu0 }
 0x9aa   :  { %vm11037_vm3 = vcmp.gt.f32.partialorder %v25298_v35, 1.0  ;;  %v10989_v56 = vpop.f32.mrb[145].mxu0  ;;  %25349 = vmatprep.mubr.msk.f32.mxu1 %vm11082_vm15, %v31350_v51 }
 0x9ab   :  { %v23456_v14 = vsel %vm11037_vm3, 1.0, %v31354_v22  ;;  %vm11036_vm7 = vcmp.gt.f32.partialorder %v10989_v56, 1.0  ;;  %25350 = vmatmul.mubr.msk.f32.vlgmr.msra.gmra.mrb[152].mxu1 %vm11083_vm2, %v31350_v51 }
 0x9ac   :  { %v23455_v39 = vsel %vm11036_vm7, 1.0, %v31354_v22  ;;  %vm11085_vm9 = vcmp.gt.f32.partialorder %v23456_v14, 1.0 }
 0x9ad   :  { %vm11084_vm8 = vcmp.gt.f32.partialorder %v23455_v39, 1.0  ;;  %v25301_v38 = vpop.f32.mrb[146].mxu0 }
 0x9ae   :  { %vm11039_vm10 = vcmp.gt.f32.partialorder %v25301_v38, 1.0  ;;  %v10999_v52 = vpop.f32.mrb[147].mxu0  ;;  %25352 = vmatprep.mubr.msk.f32.mxu1 %vm11084_vm8, %v31350_v51 }
 0x9af   :  { %v23458_v37 = vsel %vm11039_vm10, 1.0, %v31354_v22  ;;  %vm11038_vm11 = vcmp.gt.f32.partialorder %v10999_v52, 1.0  ;;  %25353 = vmatmul.mubr.msk.f32.gmra.mrb[154].mxu1 %vm11085_vm9, %v31350_v51 }
 0x9b0   :  { %v23457_v61 = vsel %vm11038_vm11, 1.0, %v31354_v22  ;;  %vm11087_vm13 = vcmp.gt.f32.partialorder %v23458_v37, 1.0 }
 0x9b1   :  { %vm11086_vm12 = vcmp.gt.f32.partialorder %v23457_v61, 1.0  ;;  %v25304_v15 = vpop.f32.mrb[148].mxu0 }
 0x9b2   :  { %vm11041_vm14 = vcmp.gt.f32.partialorder %v25304_v15, 1.0  ;;  %v11009_v54 = vpop.f32.mrb[149].mxu0  ;;  %25355 = vmatprep.mubr.msk.f32.mxu1 %vm11086_vm12, %v31350_v51 }
 0x9b3   :  { %v23460_v42 = vsel %vm11041_vm14, 1.0, %v31354_v22  ;;  %vm11040_vm15 = vcmp.gt.f32.partialorder %v11009_v54, 1.0  ;;  %25356 = vmatmul.mubr.msk.f32.gmra.mrb[156].mxu1 %vm11087_vm13, %v31350_v51 }
 0x9b4   :  { %v23459_v31 = vsel %vm11040_vm15, 1.0, %v31354_v22  ;;  %vm11089_vm3 = vcmp.gt.f32.partialorder %v23460_v42, 1.0 }
 0x9b5   :  { %vm11088_vm2 = vcmp.gt.f32.partialorder %v23459_v31, 1.0  ;;  %v25307_v40 = vpop.f32.mrb[150].mxu0 }
 0x9b6   :  { %vm11043_vm7 = vcmp.gt.f32.partialorder %v25307_v40, 1.0  ;;  %v11019_v41 = vpop.f32.mrb[151].mxu0  ;;  %25358 = vmatprep.mubr.msk.f32.mxu1 %vm11088_vm2, %v31350_v51 }
 0x9b7   :  { %v23462_v53 = vsel %vm11043_vm7, 1.0, %v31354_v22  ;;  %vm11042_vm8 = vcmp.gt.f32.partialorder %v11019_v41, 1.0  ;;  %25359 = vmatmul.mubr.msk.f32.gmra.mrb[158].mxu1 %vm11089_vm3, %v31350_v51 }
 0x9b8   :  { %v23461_v0 = vsel %vm11042_vm8, 1.0, %v31354_v22  ;;  %vm11091_vm10 = vcmp.gt.f32.partialorder %v23462_v53, 1.0 }
 0x9b9   :  { %vm11090_vm9 = vcmp.gt.f32.partialorder %v23461_v0, 1.0 }
 0x9ba   :  { %25361 = vmatprep.mubr.msk.f32.mxu1 %vm11090_vm9, %v31350_v51 }
 0x9bb   :  { %25362 = vmatmul.mubr.msk.f32.gmra.mrb[160].mxu1 %vm11091_vm10, %v31350_v51 }
 0x9bc   :  { %25398 = vmatprep.mubr.msk.f32.mxu1 %vm27216_vm1, %v31354_v22 }
 0xa71   :  { %v25342_v9 = vpop.f32.mrb[152].mxu0 }
 0xa72   :  { %vm11286_vm11 = vcmp.gt.f32.partialorder %v25342_v9, 1.0  ;;  %v11206_v59 = vpop.f32.mrb[153].mxu0 }
 0xa73   :  { %v23496_v7 = vsel %vm11286_vm11, 1.0, %v31354_v22  ;;  %vm11285_vm12 = vcmp.gt.f32.partialorder %v11206_v59, 1.0 }
 0xa74   :  { %v29061_v46 = vadd.f32 %v23496_v7, %v28901_v60  ;;  %v23495_v26 = vsel %vm11285_vm12, 1.0, %v31354_v22 }
 0xa75   :  { %v29065_v4 = vadd.f32 %v23495_v26, %v28898_v57 }
 0xa76   :  { %v25345_v43 = vpop.f32.mrb[154].mxu0  ;;  %v11352_v8 = vsel %vm43_vm0, %v29061_v46, 0.0 }
 0xa77   :  { %vm11288_vm13 = vcmp.gt.f32.partialorder %v25345_v43, 1.0  ;;  %v11216_v20 = vpop.f32.mrb[155].mxu0  ;;  %11353 = vadd.xlane.f32.xlu1 %v11352_v8  ;;  %v11349_v13 = vsel %vm43_vm0, %v29065_v4, 0.0 }
 0xa78   :  { %v23498_v25 = vsel %vm11288_vm13, 1.0, %v31354_v22  ;;  %vm11287_vm14 = vcmp.gt.f32.partialorder %v11216_v20, 1.0  ;;  %11350 = vadd.xlane.f32.xlu0 %v11349_v13 }
 0xa79   :  { %v29073_v60 = vadd.f32 %v23498_v25, %v28912_v10  ;;  %v23497_v57 = vsel %vm11287_vm14, 1.0, %v31354_v22 }
 0xa7a   :  { %v29077_v11 = vadd.f32 %v23497_v57, %v28917_v3  ;;  %v25348_v6 = vpop.f32.mrb[156].mxu0 }
 0xa7b   :  { %v11358_v2 = vsel %vm43_vm0, %v29073_v60, 0.0  ;;  %vm11290_vm15 = vcmp.gt.f32.partialorder %v25348_v6, 1.0  ;;  %v11226_v24 = vpop.f32.mrb[157].mxu0 }
 0xa7c   :  { %11359 = vadd.xlane.f32.xlu1 %v11358_v2  ;;  %v11355_v55 = vsel %vm43_vm0, %v29077_v11, 0.0  ;;  %v23500_v18 = vsel %vm11290_vm15, 1.0, %v31354_v22  ;;  %vm11289_vm2 = vcmp.gt.f32.partialorder %v11226_v24, 1.0 }
 0xa7d   :  { %11356 = vadd.xlane.f32.xlu0 %v11355_v55  ;;  %v29085_v10 = vadd.f32 %v23500_v18, %v28928_v16  ;;  %v23499_v3 = vsel %vm11289_vm2, 1.0, %v31354_v22 }
 0xa7e   :  { %v29089_v21 = vadd.f32 %v23499_v3, %v28934_v30  ;;  %v25351_v27 = vpop.f32.mrb[152].mxu1 }
 0xa7f   :  { %vm11292_vm3 = vcmp.gt.f32.partialorder %v25351_v27, 1.0  ;;  %v11236_v12 = vpop.f32.mrb[153].mxu1  ;;  %v11364_v1 = vsel %vm43_vm0, %v29085_v10, 0.0 }
 0xa80   :  { %v23502_v28 = vsel %vm11292_vm3, 1.0, %v31354_v22  ;;  %vm11291_vm7 = vcmp.gt.f32.partialorder %v11236_v12, 1.0  ;;  %11365 = vadd.xlane.f32.xlu1 %v11364_v1  ;;  %v11361_v36 = vsel %vm43_vm0, %v29089_v21, 0.0 }
 0xa81   :  { %v29097_v16 = vadd.f32 %v23502_v28, %v28948_v33  ;;  %v23501_v29 = vsel %vm11291_vm7, 1.0, %v31354_v22  ;;  %11362 = vadd.xlane.f32.xlu0 %v11361_v36 }
 0xa82   :  { %v29101_v30 = vadd.f32 %v23501_v29, %v28945_v5  ;;  %v25354_v32 = vpop.f32.mrb[154].mxu1 }
 0xa83   :  { %vm11294_vm8 = vcmp.gt.f32.partialorder %v25354_v32, 1.0  ;;  %v11246_v50 = vpop.f32.mrb[155].mxu1  ;;  %v11370_v35 = vsel %vm43_vm0, %v29097_v16, 0.0 }
 0xa84   :  { %v23504_v56 = vsel %vm11294_vm8, 1.0, %v31354_v22  ;;  %vm11293_vm9 = vcmp.gt.f32.partialorder %v11246_v50, 1.0  ;;  %11371 = vadd.xlane.f32.xlu1 %v11370_v35  ;;  %v11367_v33 = vsel %vm43_vm0, %v29101_v30, 0.0 }
 0xa85   :  { %v29109_v14 = vadd.f32 %v23504_v56, %v28964_v17  ;;  %v23503_v39 = vsel %vm11293_vm9, 1.0, %v31354_v22  ;;  %11368 = vadd.xlane.f32.xlu0 %v11367_v33 }
 0xa86   :  { %v29113_v5 = vadd.f32 %v23503_v39, %v28961_v63  ;;  %v25357_v38 = vpop.f32.mrb[156].mxu1 }
 0xa87   :  { %vm11296_vm10 = vcmp.gt.f32.partialorder %v25357_v38, 1.0  ;;  %v11256_v52 = vpop.f32.mrb[157].mxu1  ;;  %v11376_v37 = vsel %vm43_vm0, %v29109_v14, 0.0 }
 0xa88   :  { %v23506_v61 = vsel %vm11296_vm10, 1.0, %v31354_v22  ;;  %vm11295_vm11 = vcmp.gt.f32.partialorder %v11256_v52, 1.0  ;;  %11377 = vadd.xlane.f32.xlu1 %v11376_v37  ;;  %v11373_v17 = vsel %vm43_vm0, %v29113_v5, 0.0 }
 0xa89   :  { %v29121_v15 = vadd.f32 %v23506_v61, %v28980_v58  ;;  %v23505_v54 = vsel %vm11295_vm11, 1.0, %v31354_v22  ;;  %11374 = vadd.xlane.f32.xlu0 %v11373_v17 }
 0xa8a   :  { %v29125_v63 = vadd.f32 %v23505_v54, %v28977_v47  ;;  %v25360_v42 = vpop.f32.mrb[158].mxu1 }
 0xa8b   :  { %vm11298_vm12 = vcmp.gt.f32.partialorder %v25360_v42, 1.0  ;;  %v11266_v31 = vpop.f32.mrb[159].mxu1  ;;  %v11382_v40 = vsel %vm43_vm0, %v29121_v15, 0.0 }
 0xa8c   :  { %v23508_v41 = vsel %vm11298_vm12, 1.0, %v31354_v22  ;;  %vm11297_vm13 = vcmp.gt.f32.partialorder %v11266_v31, 1.0  ;;  %11383 = vadd.xlane.f32.xlu1 %v11382_v40  ;;  %v11379_v58 = vsel %vm43_vm0, %v29125_v63, 0.0 }
 0xa8d   :  { %v29133_v53 = vadd.f32 %v23508_v41, %v28996_v44  ;;  %v23507_v0 = vsel %vm11297_vm13, 1.0, %v31354_v22  ;;  %11380 = vadd.xlane.f32.xlu0 %v11379_v58 }
 0xa8e   :  { %v29137_v47 = vadd.f32 %v23507_v0, %v28993_v48  ;;  %v25363_v9 = vpop.f32.mrb[160].mxu1 }
 0xa8f   :  { %vm11300_vm14 = vcmp.gt.f32.partialorder %v25363_v9, 1.0  ;;  %v11276_v59 = vpop.f32.mrb[161].mxu1  ;;  %v11388_v7 = vsel %vm43_vm0, %v29133_v53, 0.0 }
 0xa90   :  { %v23510_v26 = vsel %vm11300_vm14, 1.0, %v31354_v22  ;;  %vm11299_vm15 = vcmp.gt.f32.partialorder %v11276_v59, 1.0  ;;  %11389 = vadd.xlane.f32.xlu1 %v11388_v7  ;;  %v11385_v44 = vsel %vm43_vm0, %v29137_v47, 0.0 }
 0xa91   :  { %v29145_v43 = vadd.f32 %v23510_v26, %v29011_v49  ;;  %v23509_v8 = vsel %vm11299_vm15, 1.0, %v31354_v22  ;;  %11386 = vadd.xlane.f32.xlu0 %v11385_v44 }
 0xa92   :  { %v29149_v48 = vadd.f32 %v23509_v8, %v29008_v34 }
 0xa93   :  { %v11394_v20 = vsel %vm43_vm0, %v29145_v43, 0.0 }
 0xa94   :  { %11395 = vadd.xlane.f32.xlu1 %v11394_v20  ;;  %v11391_v13 = vsel %vm43_vm0, %v29149_v48, 0.0 }
 0xa95   :  { %11392 = vadd.xlane.f32.xlu0 %v11391_v13 }
 0xb04   :  { %v11354_v25 = vpop.xlane.xlu1 %11353 }
 0xb05   :  { %v11398_v57 = vmul.f32 0.03125, %v11354_v25  ;;  %v11351_v6 = vpop.xlane.xlu0 %11350 }
 0xb06   :  { %v11397_v2 = vmul.f32 0.03125, %v11351_v6 }
 0xb07   :  { %v29156_v49 = vsub.f32 %v29061_v46, %v11398_v57 }
 0xb08   :  { %v29159_v24 = vsub.f32 %v29065_v4, %v11397_v2 }
 0xb09   :  { %v11360_v34 = vpop.xlane.xlu1 %11359  ;;  %v11430_v55 = vmul.f32 %v29156_v49, %v29156_v49 }
 0xb0a   :  { %v11400_v18 = vmul.f32 0.03125, %v11360_v34  ;;  %v11357_v3 = vpop.xlane.xlu0 %11356  ;;  %v11429_v27 = vmul.f32 %v29159_v24, %v29159_v24 }
 0xb0b   :  { %v11399_v12 = vmul.f32 0.03125, %v11357_v3  ;;  %v11448_v1 = vsel %vm43_vm0, %v11430_v55, 0.0 }
 0xb0c   :  { %v29167_v28 = vsub.f32 %v29073_v60, %v11400_v18  ;;  %11449 = vadd.xlane.f32.xlu1 %v11448_v1  ;;  %v11445_v46 = vsel %vm43_vm0, %v11429_v27, 0.0 }
 0xb0d   :  { %v29171_v4 = vsub.f32 %v29077_v11, %v11399_v12  ;;  %11446 = vadd.xlane.f32.xlu0 %v11445_v46  ;;  %v11366_v36 = vpop.xlane.xlu1 %11365 }
 0xb0e   :  { %v11432_v29 = vmul.f32 %v29167_v28, %v29167_v28  ;;  %v11402_v32 = vmul.f32 0.03125, %v11366_v36  ;;  %v11363_v50 = vpop.xlane.xlu0 %11362 }
 0xb0f   :  { %v11431_v35 = vmul.f32 %v29171_v4, %v29171_v4  ;;  %v11401_v56 = vmul.f32 0.03125, %v11363_v50 }
 0xb10   :  { %v11454_v60 = vsel %vm43_vm0, %v11432_v29, 0.0  ;;  %v29179_v33 = vsub.f32 %v29085_v10, %v11402_v32 }
 0xb11   :  { %11455 = vadd.xlane.f32.xlu1 %v11454_v60  ;;  %v11451_v11 = vsel %vm43_vm0, %v11431_v35, 0.0  ;;  %v29183_v39 = vsub.f32 %v29089_v21, %v11401_v56  ;;  %v11372_v38 = vpop.xlane.xlu1 %11371 }
 0xb12   :  { %11452 = vadd.xlane.f32.xlu0 %v11451_v11  ;;  %v11404_v52 = vmul.f32 0.03125, %v11372_v38  ;;  %v11369_v37 = vpop.xlane.xlu0 %11368  ;;  %v11434_v61 = vmul.f32 %v29179_v33, %v29179_v33 }
 0xb13   :  { %v11403_v17 = vmul.f32 0.03125, %v11369_v37  ;;  %v11433_v54 = vmul.f32 %v29183_v39, %v29183_v39  ;;  %v23512_v37 = vld [vmem:[%s31341_s1 + $0x28] sm:$0xff] }
 0xb14   :  { %v29190_v10 = vsub.f32 %v29097_v16, %v11404_v52  ;;  %v11460_v42 = vsel %vm43_vm0, %v11434_v61, 0.0 }
 0xb15   :  { %v29194_v31 = vsub.f32 %v29101_v30, %v11403_v17  ;;  %v11378_v21 = vpop.xlane.xlu1 %11377  ;;  %11461 = vadd.xlane.f32.xlu1 %v11460_v42  ;;  %v11457_v40 = vsel %vm43_vm0, %v11433_v54, 0.0  ;;  %v23513_v54 = vld [vmem:[%s31341_s1 + $0x30] sm:$0xff]  ;;  %v23514_v42 = vld [vmem:[%s31341_s1 + $0x38] sm:$0xff] }
 0xb16   :  { %v11406_v41 = vmul.f32 0.03125, %v11378_v21  ;;  %v11375_v58 = vpop.xlane.xlu0 %11374  ;;  %11458 = vadd.xlane.f32.xlu0 %v11457_v40  ;;  %v11436_v0 = vmul.f32 %v29190_v10, %v29190_v10  ;;  %v26216_v21 = vpack.c.bf16 %v23514_v42, %v23513_v54 }
 0xb17   :  { %v11405_v9 = vmul.f32 0.03125, %v11375_v58  ;;  %v11435_v16 = vmul.f32 %v29194_v31, %v29194_v31 }
 0xb18   :  { %v29202_v59 = vsub.f32 %v29109_v14, %v11406_v41  ;;  %v11466_v30 = vsel %vm43_vm0, %v11436_v0, 0.0 }
 0xb19   :  { %v29206_v7 = vsub.f32 %v29113_v5, %v11405_v9  ;;  %v11384_v26 = vpop.xlane.xlu1 %11383  ;;  %11467 = vadd.xlane.f32.xlu1 %v11466_v30  ;;  %v11463_v44 = vsel %vm43_vm0, %v11435_v16, 0.0 }
 0xb1a   :  { %v11408_v8 = vmul.f32 0.03125, %v11384_v26  ;;  %v11381_v20 = vpop.xlane.xlu0 %11380  ;;  %11464 = vadd.xlane.f32.xlu0 %v11463_v44  ;;  %v11438_v13 = vmul.f32 %v29202_v59, %v29202_v59 }
 0xb1b   :  { %v11407_v25 = vmul.f32 0.03125, %v11381_v20  ;;  %v11437_v14 = vmul.f32 %v29206_v7, %v29206_v7 }
 0xb1c   :  { %v29214_v57 = vsub.f32 %v29121_v15, %v11408_v8  ;;  %v11472_v5 = vsel %vm43_vm0, %v11438_v13, 0.0 }
 0xb1d   :  { %v29218_v6 = vsub.f32 %v29125_v63, %v11407_v25  ;;  %v11390_v2 = vpop.xlane.xlu1 %11389  ;;  %11473 = vadd.xlane.f32.xlu1 %v11472_v5  ;;  %v11469_v34 = vsel %vm43_vm0, %v11437_v14, 0.0  ;;  %v31349_v25 = vsub.s32 2, %v28874_v62 }
 0xb1e   :  { %v11410_v55 = vmul.f32 0.03125, %v11390_v2  ;;  %v11387_v18 = vpop.xlane.xlu0 %11386  ;;  %11470 = vadd.xlane.f32.xlu0 %v11469_v34  ;;  %v11440_v3 = vmul.f32 %v29214_v57, %v29214_v57 }
 0xb1f   :  { %v11409_v27 = vmul.f32 0.03125, %v11387_v18  ;;  %v11439_v15 = vmul.f32 %v29218_v6, %v29218_v6  ;;  %v31348_v18 = vsub.s32 3, %v28874_v62 }
 0xb20   :  { %v29226_v12 = vsub.f32 %v29133_v53, %v11410_v55  ;;  %v11478_v63 = vsel %vm43_vm0, %v11440_v3, 0.0  ;;  %v29269_v3 = vrot.slane %v28880_v23, %v31349_v25 }
 0xb21   :  { %v29230_v1 = vsub.f32 %v29137_v47, %v11409_v27  ;;  %11479 = vadd.xlane.f32.xlu1 %v11478_v63  ;;  %v11396_v46 = vpop.xlane.xlu1 %11395  ;;  %v11475_v36 = vsel %vm43_vm0, %v11439_v15, 0.0 }
 0xb22   :  { %v11412_v29 = vmul.f32 0.03125, %v11396_v46  ;;  %11476 = vadd.xlane.f32.xlu0 %v11475_v36  ;;  %v11393_v32 = vpop.xlane.xlu0 %11392  ;;  %v11442_v50 = vmul.f32 %v29226_v12, %v29226_v12 }
 0xb23   :  { %v11411_v35 = vmul.f32 0.03125, %v11393_v32  ;;  %v11441_v53 = vmul.f32 %v29230_v1, %v29230_v1 }
 0xb24   :  { %v29238_v56 = vsub.f32 %v29145_v43, %v11412_v29  ;;  %v11484_v47 = vsel %vm43_vm0, %v11442_v50, 0.0  ;;  %v23511_v43 = vld [vmem:[%s31341_s1 + $0x20] sm:$0xff] }
 0xb25   :  { %v29242_v60 = vsub.f32 %v29149_v48, %v11411_v35  ;;  %11485 = vadd.xlane.f32.xlu1 %v11484_v47  ;;  %v11481_v11 = vsel %vm43_vm0, %v11441_v53, 0.0  ;;  %v26212_v61 = vpack.c.bf16 %v23512_v37, %v23511_v43  ;;  %v29276_v47 = vrot.slane %v28880_v23, %v31348_v18 }
 0xb26   :  { %11482 = vadd.xlane.f32.xlu0 %v11481_v11  ;;  %v11444_v38 = vmul.f32 %v29238_v56, %v29238_v56 }
 0xb27   :  { %v11443_v52 = vmul.f32 %v29242_v60, %v29242_v60  ;;  %26213 = vmatprep.subr.bf16.mxu0 %v26212_v61 }
 0xb28   :  { %v11490_v48 = vsel %vm43_vm0, %v11444_v38, 0.0  ;;  %26215 = vmatpush3.bf16.msra.mxu0 %v26212_v61 }
 0xb29   :  { %11491 = vadd.xlane.f32.xlu1 %v11490_v48  ;;  %v11487_v17 = vsel %vm43_vm0, %v11443_v52, 0.0  ;;  %26217 = vmatprep.subr.bf16.mxu0 %v26216_v21 }
 0xb2a   :  { %11488 = vadd.xlane.f32.xlu0 %v11487_v17 }
 0xb2c   :  { %26219 = vmatpush3.bf16.msra.mxu0 %v26216_v21 }
 0xb2d   :  { %25401 = vmatprep.subr.mxu0 %v31354_v22 }
 0xb99   :  { %v11450_v40 = vpop.xlane.xlu1 %11449 }
 0xb9a   :  { %v11494_v41 = vmul.f32 0.03125, %v11450_v40  ;;  %v11447_v58 = vpop.xlane.xlu0 %11446 }
 0xb9b   :  { %v11493_v0 = vmul.f32 0.03125, %v11447_v58 }
 0xb9c   :  { %v11510_v9 = vadd.f32 1e-05, %v11494_v41 }
 0xb9d   :  { %v11509_v16 = vadd.f32 1e-05, %v11493_v0 }
 0xb9e   :  { %27103 = vrsqrt.f32 %v11510_v9  ;;  %v11456_v30 = vpop.xlane.xlu1 %11455 }
 0xb9f   :  { %27105 = vrsqrt.f32 %v11509_v16  ;;  %v11496_v26 = vmul.f32 0.03125, %v11456_v30  ;;  %v11453_v44 = vpop.xlane.xlu0 %11452 }
 0xba0   :  { %v11495_v8 = vmul.f32 0.03125, %v11453_v44 }
 0xba1   :  { %v11512_v20 = vadd.f32 1e-05, %v11496_v26 }
 0xba2   :  { %v11511_v13 = vadd.f32 1e-05, %v11495_v8  ;;  %v11462_v14 = vpop.xlane.xlu1 %11461 }
 0xba3   :  { %27107 = vrsqrt.f32 %v11512_v20  ;;  %v11498_v5 = vmul.f32 0.03125, %v11462_v14  ;;  %v11459_v2 = vpop.xlane.xlu0 %11458 }
 0xba4   :  { %27109 = vrsqrt.f32 %v11511_v13  ;;  %v11497_v34 = vmul.f32 0.03125, %v11459_v2 }
 0xba5   :  { %v11514_v55 = vadd.f32 1e-05, %v11498_v5 }
 0xba6   :  { %v11513_v27 = vadd.f32 1e-05, %v11497_v34  ;;  %v11468_v15 = vpop.xlane.xlu1 %11467 }
 0xba7   :  { %27111 = vrsqrt.f32 %v11514_v55  ;;  %v11500_v46 = vmul.f32 0.03125, %v11468_v15  ;;  %v11465_v36 = vpop.xlane.xlu0 %11464 }
 0xba8   :  { %v27104_v63 = vpop.eup %27103  ;;  %27113 = vrsqrt.f32 %v11513_v27  ;;  %v11499_v50 = vmul.f32 0.03125, %v11465_v36 }
 0xba9   :  { %v27106_v29 = vpop.eup %27105  ;;  %v11542_v32 = vmul.f32 %v27104_v63, %v29156_v49  ;;  %v11516_v35 = vadd.f32 1e-05, %v11500_v46 }
 0xbaa   :  { %v11541_v53 = vmul.f32 %v27106_v29, %v29159_v24  ;;  %v11515_v38 = vadd.f32 1e-05, %v11499_v50  ;;  %v11474_v52 = vpop.xlane.xlu1 %11473 }
 0xbab   :  { %v11562_v11 = vmul.f32 %v29269_v3, %v11542_v32  ;;  %27115 = vrsqrt.f32 %v11516_v35  ;;  %v11502_v43 = vmul.f32 0.03125, %v11474_v52  ;;  %v11471_v37 = vpop.xlane.xlu0 %11470 }
 0xbac   :  { %v11561_v48 = vmul.f32 %v29269_v3, %v11541_v53  ;;  %27117 = vrsqrt.f32 %v11515_v38  ;;  %v11501_v61 = vmul.f32 0.03125, %v11471_v37 }
 0xbad   :  { %v27108_v49 = vpop.eup %27107  ;;  %v11518_v54 = vadd.f32 1e-05, %v11502_v43  ;;  %v29285_v40 = vadd.f32 %v29276_v47, %v11562_v11 }
 0xbae   :  { %v27110_v17 = vpop.eup %27109  ;;  %v29281_v24 = vadd.f32 %v29276_v47, %v11561_v48  ;;  %v11544_v23 = vmul.f32 %v27108_v49, %v29167_v28  ;;  %v11517_v42 = vadd.f32 1e-05, %v11501_v61  ;;  %v11480_v21 = vpop.xlane.xlu1 %11479 }
 0xbaf   :  { %v11543_v41 = vmul.f32 %v27110_v17, %v29171_v4  ;;  %27119 = vrsqrt.f32 %v11518_v54  ;;  %v11504_v58 = vmul.f32 0.03125, %v11480_v21  ;;  %v11477_v0 = vpop.xlane.xlu0 %11476 }
 0xbb0   :  { %25372 = vmatprep.mubr.msk.f32.mxu0 %vm43_vm0, %v29281_v24  ;;  %v11564_v9 = vmul.f32 %v29269_v3, %v11544_v23  ;;  %27121 = vrsqrt.f32 %v11517_v42  ;;  %v11503_v16 = vmul.f32 0.03125, %v11477_v0 }
 0xbb1   :  { %25373 = vmatmul.mubr.msk.f32.vlgmr.msra.gmra.mrb[158].mxu0 %vm43_vm0, %v29285_v40  ;;  %v11563_v28 = vmul.f32 %v29269_v3, %v11543_v41  ;;  %v27112_v30 = vpop.eup %27111  ;;  %v11520_v26 = vadd.f32 1e-05, %v11504_v58 }
 0xbb2   :  { %v27114_v44 = vpop.eup %27113  ;;  %v11519_v8 = vadd.f32 1e-05, %v11503_v16  ;;  %v11486_v4 = vpop.xlane.xlu1 %11485  ;;  %v11546_v13 = vmul.f32 %v27112_v30, %v29179_v33  ;;  %v29299_v2 = vadd.f32 %v29276_v47, %v11564_v9 }
 0xbb3   :  { %v29295_v20 = vadd.f32 %v29276_v47, %v11563_v28  ;;  %27123 = vrsqrt.f32 %v11520_v26  ;;  %v11506_v14 = vmul.f32 0.03125, %v11486_v4  ;;  %v11483_v5 = vpop.xlane.xlu0 %11482  ;;  %v11545_v34 = vmul.f32 %v27114_v44, %v29183_v39 }
 0xbb4   :  { %27125 = vrsqrt.f32 %v11519_v8  ;;  %v11505_v55 = vmul.f32 0.03125, %v11483_v5  ;;  %v11566_v27 = vmul.f32 %v29269_v3, %v11546_v13 }
 0xbb5   :  { %25375 = vmatprep.mubr.msk.f32.mxu0 %vm43_vm0, %v29295_v20  ;;  %v27116_v15 = vpop.eup %27115  ;;  %v11522_v63 = vadd.f32 1e-05, %v11506_v14  ;;  %v11565_v33 = vmul.f32 %v29269_v3, %v11545_v34 }
 0xbb6   :  { %25376 = vmatmul.mubr.msk.f32.gmra.mrb[160].mxu0 %vm43_vm0, %v29299_v2  ;;  %v27118_v46 = vpop.eup %27117  ;;  %v11521_v36 = vadd.f32 1e-05, %v11505_v55  ;;  %v11492_v29 = vpop.xlane.xlu1 %11491  ;;  %v11548_v32 = vmul.f32 %v27116_v15, %v29190_v10  ;;  %v29314_v38 = vadd.f32 %v29276_v47, %v11566_v27 }
 0xbb7   :  { %27127 = vrsqrt.f32 %v11522_v63  ;;  %v11508_v39 = vmul.f32 0.03125, %v11492_v29  ;;  %v11489_v50 = vpop.xlane.xlu0 %11488  ;;  %v29310_v35 = vadd.f32 %v29276_v47, %v11565_v33  ;;  %v11547_v53 = vmul.f32 %v27118_v46, %v29194_v31 }
 0xbb8   :  { %27129 = vrsqrt.f32 %v11521_v36  ;;  %v11507_v11 = vmul.f32 0.03125, %v11489_v50  ;;  %v11568_v52 = vmul.f32 %v29269_v3, %v11548_v32 }
 0xbb9   :  { %v27120_v43 = vpop.eup %27119  ;;  %v11524_v37 = vadd.f32 1e-05, %v11508_v39  ;;  %25378 = vmatprep.mubr.msk.f32.mxu0 %vm43_vm0, %v29310_v35  ;;  %v11567_v10 = vmul.f32 %v29269_v3, %v11547_v53 }
 0xbba   :  { %v27122_v48 = vpop.eup %27121  ;;  %v11523_v49 = vadd.f32 1e-05, %v11507_v11  ;;  %25379 = vmatmul.mubr.msk.f32.gmra.mrb[162].mxu0 %vm43_vm0, %v29314_v38  ;;  %v11550_v31 = vmul.f32 %v27120_v43, %v29202_v59  ;;  %v29328_v54 = vadd.f32 %v29276_v47, %v11568_v52 }
 0xbbb   :  { %27131 = vrsqrt.f32 %v11524_v37  ;;  %v29324_v61 = vadd.f32 %v29276_v47, %v11567_v10  ;;  %v11549_v17 = vmul.f32 %v27122_v48, %v29206_v7 }
 0xbbc   :  { %27133 = vrsqrt.f32 %v11523_v49  ;;  %31368 = vst [vmem:[#allocation3_spill] sm:$0xff] %v29328_v54  ;;  %v11570_v23 = vmul.f32 %v29269_v3, %v11550_v31 }
 0xbbd   :  { %v27124_v42 = vpop.eup %27123  ;;  %25381 = vmatprep.mubr.msk.f32.mxu0 %vm43_vm0, %v29324_v61  ;;  %v11569_v21 = vmul.f32 %v29269_v3, %v11549_v17 }
 0xbbe   :  { %v27126_v41 = vpop.eup %27125  ;;  %25382 = vmatmul.mubr.msk.f32.gmra.mrb[164].mxu0 %vm43_vm0, %v29328_v54  ;;  %v11552_v59 = vmul.f32 %v27124_v42, %v29214_v57  ;;  %v29342_v0 = vadd.f32 %v29276_v47, %v11570_v23 }
 0xbbf   :  { %v29338_v7 = vadd.f32 %v29276_v47, %v11569_v21  ;;  %v11551_v58 = vmul.f32 %v27126_v41, %v29218_v6 }
 0xbc0   :  { %31370 = vst [vmem:[#allocation5_spill] sm:$0xff] %v29342_v0  ;;  %v11572_v9 = vmul.f32 %v29269_v3, %v11552_v59 }
 0xbc1   :  { %31369 = vst [vmem:[#allocation4_spill] sm:$0xff] %v29338_v7  ;;  %v27128_v16 = vpop.eup %27127  ;;  %25384 = vmatprep.mubr.msk.f32.mxu0 %vm43_vm0, %v29338_v7  ;;  %v11571_v28 = vmul.f32 %v29269_v3, %v11551_v58 }
 0xbc2   :  { %v27130_v30 = vpop.eup %27129  ;;  %25385 = vmatmul.mubr.msk.f32.gmra.mrb[166].mxu0 %vm43_vm0, %v29342_v0  ;;  %v11554_v57 = vmul.f32 %v27128_v16, %v29226_v12  ;;  %v29356_v44 = vadd.f32 %v29276_v47, %v11572_v9 }
 0xbc3   :  { %v29352_v26 = vadd.f32 %v29276_v47, %v11571_v28  ;;  %v11553_v6 = vmul.f32 %v27130_v30, %v29230_v1 }
 0xbc4   :  { %31372 = vst [vmem:[#allocation7_spill] sm:$0xff] %v29356_v44  ;;  %v11574_v8 = vmul.f32 %v29269_v3, %v11554_v57 }
 0xbc5   :  { %31371 = vst [vmem:[#allocation6_spill] sm:$0xff] %v29352_v26  ;;  %v27132_v4 = vpop.eup %27131  ;;  %25387 = vmatprep.mubr.msk.f32.mxu0 %vm43_vm0, %v29352_v26  ;;  %v11573_v13 = vmul.f32 %v29269_v3, %v11553_v6 }
 0xbc6   :  { %v27134_v14 = vpop.eup %27133  ;;  %25388 = vmatmul.mubr.msk.f32.gmra.mrb[168].mxu0 %vm43_vm0, %v29356_v44  ;;  %v11556_v12 = vmul.f32 %v27132_v4, %v29238_v56  ;;  %v29370_v34 = vadd.f32 %v29276_v47, %v11574_v8 }
 0xbc7   :  { %v29366_v5 = vadd.f32 %v29276_v47, %v11573_v13  ;;  %v11555_v1 = vmul.f32 %v27134_v14, %v29242_v60 }
 0xbc8   :  { %31374 = vst [vmem:[#allocation9_spill] sm:$0xff] %v29370_v34  ;;  %v11576_v55 = vmul.f32 %v29269_v3, %v11556_v12 }
 0xbc9   :  { %31373 = vst [vmem:[#allocation8_spill] sm:$0xff] %v29366_v5  ;;  %25390 = vmatprep.mubr.msk.f32.mxu0 %vm43_vm0, %v29366_v5  ;;  %v11575_v27 = vmul.f32 %v29269_v3, %v11555_v1 }
 0xbca   :  { %25391 = vmatmul.mubr.msk.f32.gmra.mrb[170].mxu0 %vm43_vm0, %v29370_v34  ;;  %v29382_v15 = vadd.f32 %v29276_v47, %v11576_v55 }
 0xbcb   :  { %v29379_v56 = vadd.f32 %v29276_v47, %v11575_v27 }
 0xbcc   :  { %31376 = vst [vmem:[#allocation11_spill] sm:$0xff] %v29382_v15 }
 0xbcd   :  { %31375 = vst [vmem:[#allocation10_spill] sm:$0xff] %v29379_v56  ;;  %25393 = vmatprep.mubr.msk.f32.mxu0 %vm43_vm0, %v29379_v56 }
 0xbce   :  { %25394 = vmatmul.mubr.msk.f32.gmra.mrb[172].mxu0 %vm43_vm0, %v29382_v15 }
 0xbcf   :  { %25403 = vmatprep.mubr.msk.f32.mxu0 %vm27216_vm1, %v31354_v22 }
 0xc84   :  { %v25374_v60 = vpop.f32.mrb[158].mxu0 }
 0xc85   :  { %vm11796_vm2 = vcmp.gt.f32.partialorder %v25374_v60, 1.0  ;;  %v11716_v3 = vpop.f32.mrb[159].mxu0 }
 0xc86   :  { %v29391_v63 = vsel %vm11796_vm2, 1.0, %v31354_v22  ;;  %vm11795_vm3 = vcmp.gt.f32.partialorder %v11716_v3, 1.0 }
 0xc87   :  { %v29394_v33 = vsel %vm11795_vm3, 1.0, %v31354_v22  ;;  %11921 = vrot.lane.b32.xlu1 %v29391_v63, %s27217_s13 }
 0xc88   :  { %11844 = vrot.lane.b32.xlu0 %v29394_v33, %s27217_s13  ;;  %v29476_v8 = vpack.i.bf16 %v29391_v63, %v29394_v33 }
 0xc89   :  { %v25377_v47 = vpop.f32.mrb[160].mxu0 }
 0xc8a   :  { %vm11798_vm7 = vcmp.gt.f32.partialorder %v25377_v47, 1.0  ;;  %v11726_v46 = vpop.f32.mrb[161].mxu0 }
 0xc8b   :  { %v29401_v36 = vsel %vm11798_vm7, 1.0, %v31354_v22  ;;  %vm11797_vm8 = vcmp.gt.f32.partialorder %v11726_v46, 1.0 }
 0xc8c   :  { %v29404_v29 = vsel %vm11797_vm8, 1.0, %v31354_v22  ;;  %12075 = vrot.lane.b32.xlu0 %v29401_v36, %s27217_s13 }
 0xc8d   :  { %11998 = vrot.lane.b32.xlu1 %v29404_v29, %s27217_s13  ;;  %v25380_v32 = vpop.f32.mrb[162].mxu0  ;;  %v29472_v6 = vpack.i.bf16 %v29401_v36, %v29404_v29 }
 0xc8e   :  { %vm11800_vm9 = vcmp.gt.f32.partialorder %v25380_v32, 1.0  ;;  %v11736_v39 = vpop.f32.mrb[163].mxu0 }
 0xc8f   :  { %v29411_v50 = vsel %vm11800_vm9, 1.0, %v31354_v22  ;;  %vm11799_vm10 = vcmp.gt.f32.partialorder %v11736_v39, 1.0 }
 0xc90   :  { %v29414_v53 = vsel %vm11799_vm10, 1.0, %v31354_v22  ;;  %12229 = vrot.lane.b32.xlu0 %v29411_v50, %s27217_s13 }
 0xc91   :  { %12152 = vrot.lane.b32.xlu1 %v29414_v53, %s27217_s13  ;;  %v25383_v11 = vpop.f32.mrb[164].mxu0  ;;  %v29488_v13 = vpack.i.bf16 %v29411_v50, %v29414_v53 }
 0xc92   :  { %vm11802_vm11 = vcmp.gt.f32.partialorder %v25383_v11, 1.0  ;;  %v11746_v52 = vpop.f32.mrb[165].mxu0 }
 0xc93   :  { %v29421_v43 = vsel %vm11802_vm11, 1.0, %v31354_v22  ;;  %vm11801_vm12 = vcmp.gt.f32.partialorder %v11746_v52, 1.0 }
 0xc94   :  { %v29424_v37 = vsel %vm11801_vm12, 1.0, %v31354_v22  ;;  %12383 = vrot.lane.b32.xlu0 %v29421_v43, %s27217_s13 }
 0xc95   :  { %12306 = vrot.lane.b32.xlu1 %v29424_v37, %s27217_s13  ;;  %v25386_v10 = vpop.f32.mrb[166].mxu0  ;;  %v29484_v4 = vpack.i.bf16 %v29421_v43, %v29424_v37 }
 0xc96   :  { %vm11804_vm13 = vcmp.gt.f32.partialorder %v25386_v10, 1.0  ;;  %v11756_v48 = vpop.f32.mrb[167].mxu0 }
 0xc97   :  { %v29431_v49 = vsel %vm11804_vm13, 1.0, %v31354_v22  ;;  %vm11803_vm14 = vcmp.gt.f32.partialorder %v11756_v48, 1.0 }
 0xc98   :  { %v29434_v31 = vsel %vm11803_vm14, 1.0, %v31354_v22  ;;  %12537 = vrot.lane.b32.xlu0 %v29431_v49, %s27217_s13 }
 0xc99   :  { %12460 = vrot.lane.b32.xlu1 %v29434_v31, %s27217_s13  ;;  %v25389_v17 = vpop.f32.mrb[168].mxu0  ;;  %v29500_v12 = vpack.i.bf16 %v29431_v49, %v29434_v31 }
 0xc9a   :  { %vm11806_vm15 = vcmp.gt.f32.partialorder %v25389_v17, 1.0  ;;  %v11766_v23 = vpop.f32.mrb[169].mxu0 }
 0xc9b   :  { %v29441_v42 = vsel %vm11806_vm15, 1.0, %v31354_v22  ;;  %vm11805_vm2 = vcmp.gt.f32.partialorder %v11766_v23, 1.0 }
 0xc9c   :  { %v29444_v21 = vsel %vm11805_vm2, 1.0, %v31354_v22  ;;  %12691 = vrot.lane.b32.xlu0 %v29441_v42, %s27217_s13 }
 0xc9d   :  { %12614 = vrot.lane.b32.xlu1 %v29444_v21, %s27217_s13  ;;  %v25392_v41 = vpop.f32.mrb[170].mxu0  ;;  %v29496_v14 = vpack.i.bf16 %v29441_v42, %v29444_v21 }
 0xc9e   :  { %vm11808_vm3 = vcmp.gt.f32.partialorder %v25392_v41, 1.0  ;;  %v11776_v59 = vpop.f32.mrb[171].mxu0 }
 0xc9f   :  { %v29451_v58 = vsel %vm11808_vm3, 1.0, %v31354_v22  ;;  %vm11807_vm7 = vcmp.gt.f32.partialorder %v11776_v59, 1.0 }
 0xca0   :  { %v29454_v9 = vsel %vm11807_vm7, 1.0, %v31354_v22  ;;  %12845 = vrot.lane.b32.xlu0 %v29451_v58, %s27217_s13 }
 0xca1   :  { %12768 = vrot.lane.b32.xlu1 %v29454_v9, %s27217_s13  ;;  %v25395_v16 = vpop.f32.mrb[172].mxu0  ;;  %v29512_v55 = vpack.i.bf16 %v29451_v58, %v29454_v9 }
 0xca2   :  { %vm11810_vm8 = vcmp.gt.f32.partialorder %v25395_v16, 1.0  ;;  %v11786_v28 = vpop.f32.mrb[173].mxu0 }
 0xca3   :  { %v29461_v30 = vsel %vm11810_vm8, 1.0, %v31354_v22  ;;  %vm11809_vm9 = vcmp.gt.f32.partialorder %v11786_v28, 1.0 }
 0xca4   :  { %v29464_v57 = vsel %vm11809_vm9, 1.0, %v31354_v22  ;;  %12999 = vrot.lane.b32.xlu0 %v29461_v30, %s27217_s13 }
 0xca5   :  { %12922 = vrot.lane.b32.xlu1 %v29464_v57, %s27217_s13  ;;  %v29508_v1 = vpack.i.bf16 %v29461_v30, %v29464_v57 }
 0xca8   :  { %26692 = vrot.lane.b32.xlu0 %v29472_v6, %s27218_s14 }
 0xca9   :  { %26687 = vrot.lane.b32.xlu1 %v29476_v8, %s27218_s14 }
 0xcac   :  { %26702 = vrot.lane.b32.xlu0 %v29484_v4, %s27218_s14 }
 0xcad   :  { %26697 = vrot.lane.b32.xlu1 %v29488_v13, %s27218_s14 }
 0xcb0   :  { %26712 = vrot.lane.b32.xlu0 %v29496_v14, %s27218_s14 }
 0xcb1   :  { %26707 = vrot.lane.b32.xlu1 %v29500_v12, %s27218_s14 }
 0xcb4   :  { %26722 = vrot.lane.b32.xlu0 %v29508_v1, %s27218_s14 }
 0xcb5   :  { %26717 = vrot.lane.b32.xlu1 %v29512_v55, %s27218_s14 }
 0xcb8   :  { %26732 = vrot.lane.b32.xlu0 %v29476_v8, %s27220_s16 }
 0xcb9   :  { %26727 = vrot.lane.b32.xlu1 %v29476_v8, %s27219_s15 }
 0xcbc   :  { %26742 = vrot.lane.b32.xlu0 %v29472_v6, %s27220_s16 }
 0xcbd   :  { %26737 = vrot.lane.b32.xlu1 %v29472_v6, %s27219_s15 }
 0xcc0   :  { %26752 = vrot.lane.b32.xlu0 %v29488_v13, %s27220_s16 }
 0xcc1   :  { %26747 = vrot.lane.b32.xlu1 %v29488_v13, %s27219_s15 }
 0xcc4   :  { %26762 = vrot.lane.b32.xlu0 %v29484_v4, %s27220_s16 }
 0xcc5   :  { %26757 = vrot.lane.b32.xlu1 %v29484_v4, %s27219_s15 }
 0xcc8   :  { %26772 = vrot.lane.b32.xlu0 %v29500_v12, %s27220_s16 }
 0xcc9   :  { %26767 = vrot.lane.b32.xlu1 %v29500_v12, %s27219_s15 }
 0xccc   :  { %26782 = vrot.lane.b32.xlu0 %v29496_v14, %s27220_s16 }
 0xccd   :  { %26777 = vrot.lane.b32.xlu1 %v29496_v14, %s27219_s15 }
 0xcd0   :  { %26792 = vrot.lane.b32.xlu0 %v29512_v55, %s27220_s16 }
 0xcd1   :  { %26787 = vrot.lane.b32.xlu1 %v29512_v55, %s27219_s15 }
 0xcd4   :  { %15371 = vrot.lane.b32.xlu0 %v29464_v57, %s27220_s16 }
 0xcd5   :  { %26797 = vrot.lane.b32.xlu1 %v29508_v1, %s27219_s15 }
 0xcd8   :  { %26802 = vrot.lane.b32.xlu0 %v29476_v8, %s27221_s17 }
 0xcd9   :  { %15449 = vrot.lane.b32.xlu1 %v29461_v30, %s27220_s16 }
 0xcdc   :  { %26812 = vrot.lane.b32.xlu0 %v29488_v13, %s27221_s17 }
 0xcdd   :  { %26807 = vrot.lane.b32.xlu1 %v29472_v6, %s27221_s17 }
 0xce0   :  { %26822 = vrot.lane.b32.xlu0 %v29500_v12, %s27221_s17 }
 0xce1   :  { %26817 = vrot.lane.b32.xlu1 %v29484_v4, %s27221_s17 }
 0xce4   :  { %26832 = vrot.lane.b32.xlu0 %v29512_v55, %s27221_s17 }
 0xce5   :  { %26827 = vrot.lane.b32.xlu1 %v29496_v14, %s27221_s17 }
 0xce8   :  { %26842 = vrot.lane.b32.xlu0 %v29476_v8, %s27222_s18 }
 0xce9   :  { %26837 = vrot.lane.b32.xlu1 %v29508_v1, %s27221_s17 }
 0xcec   :  { %26852 = vrot.lane.b32.xlu0 %v29472_v6, %s27222_s18 }
 0xced   :  { %26847 = vrot.lane.b32.xlu1 %v29476_v8, %s27223_s19 }
 0xcf0   :  { %26862 = vrot.lane.b32.xlu0 %v29488_v13, %s27222_s18 }
 0xcf1   :  { %26857 = vrot.lane.b32.xlu1 %v29472_v6, %s27223_s19 }
 0xcf4   :  { %26872 = vrot.lane.b32.xlu0 %v29484_v4, %s27222_s18 }
 0xcf5   :  { %26867 = vrot.lane.b32.xlu1 %v29488_v13, %s27223_s19 }
 0xcf8   :  { %26882 = vrot.lane.b32.xlu0 %v29500_v12, %s27222_s18 }
 0xcf9   :  { %v11922_v27 = vpop.permute.xlu1 %11921  ;;  %26877 = vrot.lane.b32.xlu1 %v29484_v4, %s27223_s19 }
 0xcfa   :  { %25402 = vmatpush3.xpose.msk.msra.mxu0 %vm288_vm4, %v11922_v27  ;;  %v11845_v60 = vpop.permute.xlu0 %11844 }
 0xcfb   :  { %25397 = vmatpush3.xpose.msk.msra.mxu1 %vm288_vm4, %v11845_v60  ;;  %25411 = vmatprep.subr.mxu0 %v31354_v22 }
 0xcfc   :  { %25406 = vmatprep.subr.mxu1 %v31354_v22  ;;  %26892 = vrot.lane.b32.xlu0 %v29496_v14, %s27222_s18 }
 0xcfd   :  { %25404 = vmatmul.mubr.msk.f32.vlgmr.msra.gmra.mrb[174].mxu0 %vm288_vm4, %v29391_v63  ;;  %26887 = vrot.lane.b32.xlu1 %v29500_v12, %s27223_s19 }
 0xcfe   :  { %25399 = vmatmul.mubr.msk.f32.vlgmr.msra.gmra.mrb[162].mxu1 %vm288_vm4, %v29394_v33  ;;  %v12076_v3 = vpop.permute.xlu0 %12075  ;;  %25413 = vmatprep.mubr.msk.f32.mxu0 %vm27216_vm1, %v31354_v22 }
 0xcff   :  { %v11999_v47 = vpop.permute.xlu1 %11998  ;;  %25412 = vmatpush3.xpose.msk.msra.mxu0 %vm288_vm4, %v12076_v3  ;;  %25408 = vmatprep.mubr.msk.f32.mxu1 %vm27216_vm1, %v31354_v22 }
 0xd00   :  { %25407 = vmatpush3.xpose.msk.msra.mxu1 %vm288_vm4, %v11999_v47  ;;  %26902 = vrot.lane.b32.xlu0 %v29512_v55, %s27222_s18 }
 0xd01   :  { %25416 = vmatprep.subr.mxu1 %v31354_v22  ;;  %26897 = vrot.lane.b32.xlu1 %v29496_v14, %s27223_s19 }
 0xd02   :  { %25414 = vmatmul.mubr.msk.f32.vlgmr.msra.gmra.mrb[176].mxu0 %vm288_vm4, %v29401_v36  ;;  %25421 = vmatprep.subr.mxu0 %v31354_v22  ;;  %v12230_v63 = vpop.permute.xlu0 %12229 }
 0xd03   :  { %25409 = vmatmul.mubr.msk.f32.vlgmr.msra.gmra.mrb[164].mxu1 %vm288_vm4, %v29404_v29  ;;  %v12153_v33 = vpop.permute.xlu1 %12152  ;;  %25422 = vmatpush3.xpose.msk.msra.mxu0 %vm288_vm4, %v12230_v63 }
 0xd04   :  { %25418 = vmatprep.mubr.msk.f32.mxu1 %vm27216_vm1, %v31354_v22  ;;  %25417 = vmatpush3.xpose.msk.msra.mxu1 %vm288_vm4, %v12153_v33 }
 0xd05   :  { %26912 = vrot.lane.b32.xlu0 %v29508_v1, %s27222_s18  ;;  %26907 = vrot.lane.b32.xlu1 %v29512_v55, %s27223_s19 }
 0xd06   :  { %25423 = vmatprep.mubr.msk.f32.mxu0 %vm27216_vm1, %v31354_v22  ;;  %25426 = vmatprep.subr.mxu1 %v31354_v22  ;;  %v12384_v46 = vpop.permute.xlu0 %12383 }
 0xd07   :  { %25424 = vmatmul.mubr.msk.f32.vlgmr.msra.gmra.mrb[178].mxu0 %vm288_vm4, %v29411_v50  ;;  %v12307_v36 = vpop.permute.xlu1 %12306  ;;  %25419 = vmatmul.mubr.msk.f32.vlgmr.msra.gmra.mrb[166].mxu1 %vm288_vm4, %v29414_v53 }
 0xd08   :  { %25431 = vmatprep.subr.mxu0 %v31354_v22  ;;  %25427 = vmatpush3.xpose.msk.msra.mxu1 %vm288_vm4, %v12307_v36 }
 0xd09   :  { %25432 = vmatpush3.xpose.msk.msra.mxu0 %vm288_vm4, %v12384_v46  ;;  %17901 = vrot.lane.b32.xlu0 %v29461_v30, %s27223_s19 }
 0xd0a   :  { %17823 = vrot.lane.b32.xlu1 %v29464_v57, %s27223_s19  ;;  %25428 = vmatprep.mubr.msk.f32.mxu1 %vm27216_vm1, %v31354_v22  ;;  %v12538_v29 = vpop.permute.xlu0 %12537 }
 0xd0b   :  { %25433 = vmatprep.mubr.msk.f32.mxu0 %vm27216_vm1, %v31354_v22  ;;  %v12461_v32 = vpop.permute.xlu1 %12460  ;;  %25429 = vmatmul.mubr.msk.f32.vlgmr.msra.gmra.mrb[168].mxu1 %vm288_vm4, %v29424_v37 }
 0xd0c   :  { %25434 = vmatmul.mubr.msk.f32.vlgmr.msra.gmra.mrb[180].mxu0 %vm288_vm4, %v29421_v43  ;;  %25436 = vmatprep.subr.mxu1 %v31354_v22 }
 0xd0d   :  { %25441 = vmatprep.subr.mxu0 %v31354_v22  ;;  %25437 = vmatpush3.xpose.msk.msra.mxu1 %vm288_vm4, %v12461_v32 }
 0xd0e   :  { %25442 = vmatpush3.xpose.msk.msra.mxu0 %vm288_vm4, %v12538_v29  ;;  %26922 = vrot.lane.b32.xlu0 %v29472_v6, %s27224_s20  ;;  %v12692_v39 = vpop.permute.xlu0 %12691 }
 0xd0f   :  { %26917 = vrot.lane.b32.xlu1 %v29476_v8, %s27224_s20  ;;  %25438 = vmatprep.mubr.msk.f32.mxu1 %vm27216_vm1, %v31354_v22  ;;  %v12615_v50 = vpop.permute.xlu1 %12614 }
 0xd10   :  { %25443 = vmatprep.mubr.msk.f32.mxu0 %vm27216_vm1, %v31354_v22  ;;  %25439 = vmatmul.mubr.msk.f32.vlgmr.msra.gmra.mrb[170].mxu1 %vm288_vm4, %v29434_v31 }
 0xd11   :  { %25444 = vmatmul.mubr.msk.f32.vlgmr.msra.gmra.mrb[182].mxu0 %vm288_vm4, %v29431_v49  ;;  %25446 = vmatprep.subr.mxu1 %v31354_v22 }
 0xd12   :  { %25451 = vmatprep.subr.mxu0 %v31354_v22  ;;  %25447 = vmatpush3.xpose.msk.msra.mxu1 %vm288_vm4, %v12615_v50  ;;  %v12846_v11 = vpop.permute.xlu0 %12845 }
 0xd13   :  { %25452 = vmatpush3.xpose.msk.msra.mxu0 %vm288_vm4, %v12692_v39  ;;  %26932 = vrot.lane.b32.xlu0 %v29484_v4, %s27224_s20  ;;  %v12769_v53 = vpop.permute.xlu1 %12768 }
 0xd14   :  { %26927 = vrot.lane.b32.xlu1 %v29488_v13, %s27224_s20  ;;  %25448 = vmatprep.mubr.msk.f32.mxu1 %vm27216_vm1, %v31354_v22 }
 0xd15   :  { %25453 = vmatprep.mubr.msk.f32.mxu0 %vm27216_vm1, %v31354_v22  ;;  %25449 = vmatmul.mubr.msk.f32.vlgmr.msra.gmra.mrb[172].mxu1 %vm288_vm4, %v29444_v21 }
 0xd16   :  { %25454 = vmatmul.mubr.msk.f32.vlgmr.msra.gmra.mrb[184].mxu0 %vm288_vm4, %v29441_v42  ;;  %25456 = vmatprep.subr.mxu1 %v31354_v22  ;;  %v13000_v43 = vpop.permute.xlu0 %12999 }
 0xd17   :  { %25461 = vmatprep.subr.mxu0 %v31354_v22  ;;  %25457 = vmatpush3.xpose.msk.msra.mxu1 %vm288_vm4, %v12769_v53  ;;  %v12923_v52 = vpop.permute.xlu1 %12922 }
 0xd18   :  { %25462 = vmatpush3.xpose.msk.msra.mxu0 %vm288_vm4, %v12846_v11  ;;  %26942 = vrot.lane.b32.xlu0 %v29496_v14, %s27224_s20 }
 0xd19   :  { %26937 = vrot.lane.b32.xlu1 %v29500_v12, %s27224_s20  ;;  %25458 = vmatprep.mubr.msk.f32.mxu1 %vm27216_vm1, %v31354_v22 }
 0xd1a   :  { %25463 = vmatprep.mubr.msk.f32.mxu0 %vm27216_vm1, %v31354_v22  ;;  %25459 = vmatmul.mubr.msk.f32.vlgmr.msra.gmra.mrb[174].mxu1 %vm288_vm4, %v29454_v9 }
 0xd1b   :  { %25464 = vmatmul.mubr.msk.f32.vlgmr.msra.gmra.mrb[186].mxu0 %vm288_vm4, %v29451_v58  ;;  %25466 = vmatprep.subr.mxu1 %v31354_v22  ;;  %v26688_v37 = vpop.permute.xlu1 %26687 }
 0xd1c   :  { %25471 = vmatprep.subr.mxu0 %v31354_v22  ;;  %25467 = vmatpush3.xpose.msk.msra.mxu1 %vm288_vm4, %v12923_v52  ;;  %v26690_v10 = vunpack.i.h.bf16 %v26688_v37  ;;  %v26689_v48 = vunpack.i.l.bf16 %v26688_v37 }
 0xd1d   :  { %25472 = vmatpush3.xpose.msk.msra.mxu0 %vm288_vm4, %v13000_v43  ;;  %26952 = vrot.lane.b32.xlu0 %v29508_v1, %s27224_s20 }
 0xd1e   :  { %26947 = vrot.lane.b32.xlu1 %v29512_v55, %s27224_s20  ;;  %25468 = vmatprep.mubr.msk.f32.mxu1 %vm27216_vm1, %v31354_v22 }
 0xd1f   :  { %25473 = vmatprep.mubr.msk.f32.mxu0 %vm27216_vm1, %v31354_v22  ;;  %25469 = vmatmul.mubr.msk.f32.vlgmr.msra.gmra.mrb[176].mxu1 %vm288_vm4, %v29464_v57  ;;  %v26698_v32 = vpop.permute.xlu1 %26697 }
 0xd20   :  { %25474 = vmatmul.mubr.msk.f32.vlgmr.msra.gmra.mrb[188].mxu0 %vm288_vm4, %v29461_v30  ;;  %25476 = vmatprep.subr.mxu1 %v31354_v22 }
 0xd21   :  { %25481 = vmatprep.subr.mxu0 %v31354_v22  ;;  %26962 = vrot.lane.b32.xlu0 %v29476_v8, %s27226_s22 }
 0xd22   :  { %26957 = vrot.lane.b32.xlu1 %v29476_v8, %s27225_s21  ;;  %25477 = vmatpush3.msra.mxu1 %v26689_v48 }
 0xd23   :  { %25482 = vmatpush3.msra.mxu0 %v26690_v10  ;;  %25478 = vmatprep.mubr.msk.f32.mxu1 %vm27216_vm1, %v31354_v22 }
 0xd24   :  { %25483 = vmatprep.mubr.msk.f32.mxu0 %vm27216_vm1, %v31354_v22  ;;  %25486 = vmatprep.subr.mxu1 %v31354_v22 }
 0xd25   :  { %25491 = vmatprep.subr.mxu0 %v31354_v22  ;;  %26972 = vrot.lane.b32.xlu0 %v29472_v6, %s27226_s22 }
 0xd26   :  { %26967 = vrot.lane.b32.xlu1 %v29472_v6, %s27225_s21 }
 0xd29   :  { %26982 = vrot.lane.b32.xlu0 %v29488_v13, %s27226_s22 }
 0xd2a   :  { %26977 = vrot.lane.b32.xlu1 %v29488_v13, %s27225_s21 }
 0xd2d   :  { %26992 = vrot.lane.b32.xlu0 %v29484_v4, %s27226_s22 }
 0xd2e   :  { %26987 = vrot.lane.b32.xlu1 %v29484_v4, %s27225_s21 }
 0xd31   :  { %27002 = vrot.lane.b32.xlu0 %v29500_v12, %s27226_s22 }
 0xd32   :  { %26997 = vrot.lane.b32.xlu1 %v29500_v12, %s27225_s21 }
 0xd35   :  { %27012 = vrot.lane.b32.xlu0 %v29496_v14, %s27226_s22 }
 0xd36   :  { %27007 = vrot.lane.b32.xlu1 %v29496_v14, %s27225_s21 }
 0xd39   :  { %27022 = vrot.lane.b32.xlu0 %v29512_v55, %s27226_s22 }
 0xd3a   :  { %27017 = vrot.lane.b32.xlu1 %v29512_v55, %s27225_s21 }
 0xd3d   :  { %20275 = vrot.lane.b32.xlu0 %v29464_v57, %s27226_s22 }
 0xd3e   :  { %27027 = vrot.lane.b32.xlu1 %v29508_v1, %s27225_s21 }
 0xd41   :  { %27032 = vrot.lane.b32.xlu0 %v29476_v8, %s27227_s23 }
 0xd42   :  { %20353 = vrot.lane.b32.xlu1 %v29461_v30, %s27226_s22  ;;  %v26693_v30 = vpop.permute.xlu0 %26692 }
 0xd43   :  { %v26695_v53 = vunpack.i.h.bf16 %v26693_v30  ;;  %v26694_v11 = vunpack.i.l.bf16 %v26693_v30 }
 0xd45   :  { %27042 = vrot.lane.b32.xlu0 %v29488_v13, %s27227_s23 }
 0xd46   :  { %27037 = vrot.lane.b32.xlu1 %v29472_v6, %s27227_s23  ;;  %v26703_v27 = vpop.permute.xlu0 %26702 }
 0xd47   :  { %v26705_v30 = vunpack.i.h.bf16 %v26703_v27 }
 0xd49   :  { %27052 = vrot.lane.b32.xlu0 %v29500_v12, %s27227_s23 }
 0xd4a   :  { %27047 = vrot.lane.b32.xlu1 %v29484_v4, %s27227_s23 }
 0xd4d   :  { %27062 = vrot.lane.b32.xlu0 %v29512_v55, %s27227_s23 }
 0xd4e   :  { %27057 = vrot.lane.b32.xlu1 %v29496_v14, %s27227_s23 }
 0xd52   :  { %27067 = vrot.lane.b32.xlu1 %v29508_v1, %s27227_s23 }
 0xdd0   :  { %v11993_v49 = vpop.f32.mrb[174].mxu0 }
 0xdd1   :  { %v13076_v31 = vsel %vm288_vm4, %v11993_v49, 0.0  ;;  %v11916_v17 = vpop.f32.mrb[162].mxu1  ;;  %v25405_v23 = vpop.f32.mrb[175].mxu0 }
 0xdd2   :  { %v13075_v42 = vsel %vm288_vm4, %v11916_v17, 0.0  ;;  %v25400_v21 = vpop.f32.mrb[163].mxu1  ;;  %v26700_v23 = vunpack.i.h.bf16 %v26698_v32 }
 0xdd3   :  { %v13077_v41 = vadd.f32 %v13076_v31, %v13075_v42  ;;  %v29778_v31 = vpop.permute.xlu0 %26712  ;;  %v26699_v42 = vunpack.i.l.bf16 %v26698_v32  ;;  %v26708_v21 = vpop.permute.xlu1 %26707 }
 0xdd5   :  { %v12147_v59 = vpop.f32.mrb[176].mxu0 }
 0xdd6   :  { %v12070_v58 = vpop.f32.mrb[164].mxu1  ;;  %v25415_v9 = vpop.f32.mrb[177].mxu0  ;;  %v13080_v6 = vsel %vm288_vm4, %v12147_v59, 0.0 }
 0xdd7   :  { %v13078_v16 = vsel %vm288_vm4, %v12070_v58, 0.0  ;;  %v25410_v28 = vpop.f32.mrb[165].mxu1 }
 0xdd8   :  { %v13079_v57 = vadd.f32 %v13078_v16, %v13077_v41 }
 0xdda   :  { %v13081_v8 = vadd.f32 %v13080_v6, %v13079_v57  ;;  %v12301_v4 = vpop.f32.mrb[178].mxu0  ;;  %v12224_v13 = vpop.f32.mrb[166].mxu1  ;;  %v26704_v57 = vunpack.i.l.bf16 %v26703_v27  ;;  %v26710_v27 = vunpack.i.h.bf16 %v26708_v21 }
 0xddb   :  { %v25425_v14 = vpop.f32.mrb[179].mxu0  ;;  %v13082_v12 = vsel %vm288_vm4, %v12224_v13, 0.0  ;;  %v25420_v1 = vpop.f32.mrb[167].mxu1  ;;  %v13084_v60 = vsel %vm288_vm4, %v12301_v4, 0.0 }
 0xddc   :  { %v13083_v55 = vadd.f32 %v13082_v12, %v13081_v8  ;;  %v29793_v6 = vpop.permute.xlu0 %26722 }
 0xdde   :  { %v13085_v3 = vadd.f32 %v13084_v60, %v13083_v55  ;;  %v12378_v47 = vpop.f32.mrb[168].mxu1  ;;  %v26709_v60 = vunpack.i.l.bf16 %v26708_v21 }
 0xddf   :  { %v12455_v63 = vpop.f32.mrb[180].mxu0  ;;  %v13086_v33 = vsel %vm288_vm4, %v12378_v47, 0.0  ;;  %v25430_v46 = vpop.f32.mrb[169].mxu1 }
 0xde0   :  { %v25435_v36 = vpop.f32.mrb[181].mxu0  ;;  %v13087_v29 = vadd.f32 %v13086_v33, %v13085_v3  ;;  %v13088_v39 = vsel %vm288_vm4, %v12455_v63, 0.0  ;;  %v26718_v3 = vpop.permute.xlu1 %26717 }
 0xde1   :  { %v29810_v33 = vpop.permute.xlu0 %26732 }
 0xde2   :  { %v13089_v50 = vadd.f32 %v13088_v39, %v13087_v29 }
 0xde3   :  { %v12532_v52 = vpop.f32.mrb[170].mxu1 }
 0xde4   :  { %v12609_v43 = vpop.f32.mrb[182].mxu0  ;;  %v13090_v37 = vsel %vm288_vm4, %v12532_v52, 0.0  ;;  %v25440_v48 = vpop.f32.mrb[171].mxu1  ;;  %25479 = vmatmul.mubr.msk.f32.vlgmr.msra.gmra.mrb[178].mxu1 %vm288_vm4, %v13089_v50  ;;  %25484 = vmatmul.mubr.msk.f32.vlgmr.msra.gmra.mrb[190].mxu0 %vm288_vm4, %v13089_v50 }
 0xde5   :  { %v13091_v10 = vsel %vm288_vm4, %v12609_v43, 0.0  ;;  %v25445_v49 = vpop.f32.mrb[183].mxu0  ;;  %25487 = vmatpush3.msra.mxu1 %v26694_v11  ;;  %25492 = vmatpush3.msra.mxu0 %v26695_v53  ;;  %v26728_v11 = vpop.permute.xlu1 %26727 }
 0xde6   :  { %v13092_v17 = vadd.f32 %v13091_v10, %v13090_v37  ;;  %25488 = vmatprep.mubr.msk.f32.mxu1 %vm27216_vm1, %v31354_v22  ;;  %25493 = vmatprep.mubr.msk.f32.mxu0 %vm27216_vm1, %v31354_v22  ;;  %v26715_v37 = vunpack.i.h.bf16 %v29778_v31  ;;  %v26714_v10 = vunpack.i.l.bf16 %v29778_v31  ;;  %v26743_v48 = vpop.permute.xlu0 %26742  ;;  %v26720_v49 = vunpack.i.h.bf16 %v26718_v3 }
 0xde7   :  { %25496 = vmatprep.subr.mxu1 %v31354_v22  ;;  %25501 = vmatprep.subr.mxu0 %v31354_v22  ;;  %v26725_v31 = vunpack.i.h.bf16 %v29793_v6 }
 0xde8   :  { %v12686_v41 = vpop.f32.mrb[172].mxu1  ;;  %25489 = vmatmul.mubr.msk.f32.vlgmr.msra.gmra.mrb[180].mxu1 %vm288_vm4, %v13089_v50  ;;  %25494 = vmatmul.mubr.msk.f32.vlgmr.msra.gmra.mrb[192].mxu0 %vm288_vm4, %v13089_v50 }
 0xde9   :  { %v12763_v59 = vpop.f32.mrb[184].mxu0  ;;  %v13093_v58 = vsel %vm288_vm4, %v12686_v41, 0.0  ;;  %v25450_v9 = vpop.f32.mrb[173].mxu1  ;;  %25497 = vmatpush3.msra.mxu1 %v26699_v42  ;;  %25502 = vmatpush3.msra.mxu0 %v26700_v23  ;;  %v26724_v42 = vunpack.i.l.bf16 %v29793_v6 }
 0xdea   :  { %v25455_v16 = vpop.f32.mrb[185].mxu0  ;;  %v13094_v28 = vadd.f32 %v13093_v58, %v13092_v17  ;;  %25498 = vmatprep.mubr.msk.f32.mxu1 %vm27216_vm1, %v31354_v22  ;;  %25503 = vmatprep.mubr.msk.f32.mxu0 %vm27216_vm1, %v31354_v22  ;;  %v13095_v8 = vsel %vm288_vm4, %v12763_v59, 0.0  ;;  %v26719_v17 = vunpack.i.l.bf16 %v26718_v3  ;;  %v26738_v23 = vpop.permute.xlu1 %26737  ;;  %v26730_v58 = vunpack.i.h.bf16 %v26728_v11 }
 0xdeb   :  { %25506 = vmatprep.subr.mxu1 %v31354_v22  ;;  %25511 = vmatprep.subr.mxu0 %v31354_v22  ;;  %v26753_v21 = vpop.permute.xlu0 %26752  ;;  %v26729_v9 = vunpack.i.l.bf16 %v26728_v11  ;;  %v26739_v6 = vunpack.i.l.bf16 %v26738_v23 }
 0xdec   :  { %v13096_v4 = vadd.f32 %v13095_v8, %v13094_v28  ;;  %25499 = vmatmul.mubr.msk.f32.vlgmr.msra.gmra.mrb[182].mxu1 %vm288_vm4, %v13089_v50  ;;  %25504 = vmatmul.mubr.msk.f32.vlgmr.msra.gmra.mrb[194].mxu0 %vm288_vm4, %v13089_v50  ;;  %v26735_v28 = vunpack.i.h.bf16 %v29810_v33 }
 0xded   :  { %v12840_v13 = vpop.f32.mrb[174].mxu1  ;;  %25507 = vmatpush3.msra.mxu1 %v26704_v57  ;;  %25512 = vmatpush3.msra.mxu0 %v26705_v30  ;;  %v26734_v30 = vunpack.i.l.bf16 %v29810_v33  ;;  %v26740_v57 = vunpack.i.h.bf16 %v26738_v23 }
 0xdee   :  { %v12917_v14 = vpop.f32.mrb[186].mxu0  ;;  %v13097_v12 = vsel %vm288_vm4, %v12840_v13, 0.0  ;;  %v25460_v1 = vpop.f32.mrb[175].mxu1  ;;  %25508 = vmatprep.mubr.msk.f32.mxu1 %vm27216_vm1, %v31354_v22  ;;  %25513 = vmatprep.mubr.msk.f32.mxu0 %vm27216_vm1, %v31354_v22  ;;  %v26744_v13 = vunpack.i.l.bf16 %v26743_v48 }
 0xdef   :  { %v25465_v55 = vpop.f32.mrb[187].mxu0  ;;  %v13098_v47 = vadd.f32 %v13097_v12, %v13096_v4  ;;  %25516 = vmatprep.subr.mxu1 %v31354_v22  ;;  %25521 = vmatprep.subr.mxu0 %v31354_v22  ;;  %v13099_v63 = vsel %vm288_vm4, %v12917_v14, 0.0  ;;  %v26748_v41 = vpop.permute.xlu1 %26747  ;;  %v26745_v4 = vunpack.i.h.bf16 %v26743_v48 }
 0xdf0   :  { %25509 = vmatmul.mubr.msk.f32.vlgmr.msra.gmra.mrb[184].mxu1 %vm288_vm4, %v13089_v50  ;;  %25514 = vmatmul.mubr.msk.f32.vlgmr.msra.gmra.mrb[196].mxu0 %vm288_vm4, %v13089_v50  ;;  %v26763_v59 = vpop.permute.xlu0 %26762  ;;  %v26750_v12 = vunpack.i.h.bf16 %v26748_v41  ;;  %v26749_v1 = vunpack.i.l.bf16 %v26748_v41  ;;  %v26755_v55 = vunpack.i.h.bf16 %v26753_v21 }
 0xdf1   :  { %v13100_v46 = vadd.f32 %v13099_v63, %v13098_v47  ;;  %25517 = vmatpush3.msra.mxu1 %v26709_v60  ;;  %25522 = vmatpush3.msra.mxu0 %v26710_v27  ;;  %v26754_v27 = vunpack.i.l.bf16 %v26753_v21  ;;  %v26765_v33 = vunpack.i.h.bf16 %v26763_v59 }
 0xdf2   :  { %v12994_v36 = vpop.f32.mrb[176].mxu1  ;;  %25518 = vmatprep.mubr.msk.f32.mxu1 %vm27216_vm1, %v31354_v22  ;;  %25523 = vmatprep.mubr.msk.f32.mxu0 %vm27216_vm1, %v31354_v22 }
 0xdf3   :  { %v13071_v29 = vpop.f32.mrb[188].mxu0  ;;  %v13101_v32 = vsel %vm288_vm4, %v12994_v36, 0.0  ;;  %v25470_v39 = vpop.f32.mrb[177].mxu1  ;;  %25526 = vmatprep.subr.mxu1 %v31354_v22  ;;  %25531 = vmatprep.subr.mxu0 %v31354_v22 }
 0xdf4   :  { %v25475_v53 = vpop.f32.mrb[189].mxu0  ;;  %v13102_v50 = vadd.f32 %v13101_v32, %v13100_v46  ;;  %v13103_v52 = vsel %vm288_vm4, %v13071_v29, 0.0  ;;  %v26758_v16 = vpop.permute.xlu1 %26757  ;;  %v26764_v46 = vunpack.i.l.bf16 %v26763_v59 }
 0xdf5   :  { %v26773_v8 = vpop.permute.xlu0 %26772  ;;  %v26760_v3 = vunpack.i.h.bf16 %v26758_v16  ;;  %v26759_v47 = vunpack.i.l.bf16 %v26758_v16 }
 0xdf6   :  { %v13104_v43 = vadd.f32 %v13103_v52, %v13102_v50  ;;  %v26775_v39 = vunpack.i.h.bf16 %v26773_v8  ;;  %v26774_v53 = vunpack.i.l.bf16 %v26773_v8 }
 0xdf8   :  { %25519 = vmatmul.mubr.msk.f32.vlgmr.msra.gmra.mrb[186].mxu1 %vm288_vm4, %v13104_v43  ;;  %25524 = vmatmul.mubr.msk.f32.vlgmr.msra.gmra.mrb[198].mxu0 %vm288_vm4, %v13104_v43  ;;  %v26768_v14 = vpop.permute.xlu1 %26767 }
 0xdf9   :  { %25527 = vmatpush3.msra.mxu1 %v26714_v10  ;;  %25532 = vmatpush3.msra.mxu0 %v26715_v37  ;;  %v26783_v60 = vpop.permute.xlu0 %26782  ;;  %v26770_v36 = vunpack.i.h.bf16 %v26768_v14  ;;  %v26769_v29 = vunpack.i.l.bf16 %v26768_v14 }
 0xdfa   :  { %25528 = vmatprep.mubr.msk.f32.mxu1 %vm27216_vm1, %v31354_v22  ;;  %25533 = vmatprep.mubr.msk.f32.mxu0 %vm27216_vm1, %v31354_v22  ;;  %v26784_v37 = vunpack.i.l.bf16 %v26783_v60 }
 0xdfb   :  { %25536 = vmatprep.subr.mxu1 %v31354_v22  ;;  %25541 = vmatprep.subr.mxu0 %v31354_v22 }
 0xdfc   :  { %25529 = vmatmul.mubr.msk.f32.vlgmr.msra.gmra.mrb[188].mxu1 %vm288_vm4, %v13104_v43  ;;  %25534 = vmatmul.mubr.msk.f32.vlgmr.msra.gmra.mrb[200].mxu0 %vm288_vm4, %v13104_v43  ;;  %v26778_v63 = vpop.permute.xlu1 %26777 }
 0xdfd   :  { %25537 = vmatpush3.msra.mxu1 %v26719_v17  ;;  %25542 = vmatpush3.msra.mxu0 %v26720_v49  ;;  %v26793_v32 = vpop.permute.xlu0 %26792  ;;  %v26780_v11 = vunpack.i.h.bf16 %v26778_v63  ;;  %v26779_v52 = vunpack.i.l.bf16 %v26778_v63 }
 0xdfe   :  { %25538 = vmatprep.mubr.msk.f32.mxu1 %vm27216_vm1, %v31354_v22  ;;  %25543 = vmatprep.mubr.msk.f32.mxu0 %vm27216_vm1, %v31354_v22  ;;  %v26795_v23 = vunpack.i.h.bf16 %v26793_v32 }
 0xdff   :  { %25546 = vmatprep.subr.mxu1 %v31354_v22  ;;  %25551 = vmatprep.subr.mxu0 %v31354_v22 }
 0xe00   :  { %25539 = vmatmul.mubr.msk.f32.vlgmr.msra.gmra.mrb[190].mxu1 %vm288_vm4, %v13104_v43  ;;  %25544 = vmatmul.mubr.msk.f32.vlgmr.msra.gmra.mrb[202].mxu0 %vm288_vm4, %v13104_v43  ;;  %v26788_v50 = vpop.permute.xlu1 %26787 }
 0xe01   :  { %25547 = vmatpush3.msra.mxu1 %v26724_v42  ;;  %25552 = vmatpush3.msra.mxu0 %v26725_v31  ;;  %v15372_v10 = vpop.permute.xlu0 %15371  ;;  %v26790_v48 = vunpack.i.h.bf16 %v26788_v50  ;;  %v26789_v49 = vunpack.i.l.bf16 %v26788_v50  ;;  %v26794_v31 = vunpack.i.l.bf16 %v26793_v32 }
 0xe02   :  { %25548 = vmatprep.mubr.msk.f32.mxu1 %vm27216_vm1, %v31354_v22  ;;  %25553 = vmatprep.mubr.msk.f32.mxu0 %vm27216_vm1, %v31354_v22 }
 0xe03   :  { %25556 = vmatprep.subr.mxu1 %v31354_v22  ;;  %25561 = vmatprep.subr.mxu0 %v31354_v22 }
 0xe04   :  { %25549 = vmatmul.mubr.msk.f32.vlgmr.msra.gmra.mrb[192].mxu1 %vm288_vm4, %v13104_v43  ;;  %25554 = vmatmul.mubr.msk.f32.vlgmr.msra.gmra.mrb[204].mxu0 %vm288_vm4, %v13104_v43  ;;  %v26785_v43 = vunpack.i.h.bf16 %v26783_v60  ;;  %v26798_v17 = vpop.permute.xlu1 %26797 }
 0xe05   :  { %25558 = vmatprep.mubr.msk.f32.mxu1 %vm27216_vm1, %v31354_v22  ;;  %25563 = vmatprep.mubr.msk.f32.mxu0 %vm27216_vm1, %v31354_v22  ;;  %v26800_v42 = vunpack.i.h.bf16 %v26798_v17  ;;  %v26799_v21 = vunpack.i.l.bf16 %v26798_v17  ;;  %v26803_v41 = vpop.permute.xlu0 %26802 }
 0xe08   :  { %25557 = vmatpush3.xpose.msk.msra.mxu1 %vm288_vm4, %v26729_v9  ;;  %25562 = vmatpush3.xpose.msk.msra.mxu0 %vm288_vm4, %v26730_v58  ;;  %v15450_v59 = vpop.permute.xlu1 %15449  ;;  %v26805_v58 = vunpack.i.h.bf16 %v26803_v41  ;;  %v26804_v9 = vunpack.i.l.bf16 %v26803_v41 }
 0xe09   :  { %25566 = vmatprep.subr.mxu1 %v31354_v22  ;;  %25571 = vmatprep.subr.mxu0 %v31354_v22 }
 0xe0b   :  { %25559 = vmatmul.mubr.msk.f32.vlgmr.msra.gmra.mrb[194].mxu1 %vm288_vm4, %v26734_v30  ;;  %25564 = vmatmul.mubr.msk.f32.vlgmr.msra.gmra.mrb[206].mxu0 %vm288_vm4, %v26735_v28 }
 0xe0c   :  { %25567 = vmatpush3.xpose.msk.msra.mxu1 %vm288_vm4, %v26739_v6  ;;  %25572 = vmatpush3.xpose.msk.msra.mxu0 %vm288_vm4, %v26740_v57  ;;  %v26808_v17 = vpop.permute.xlu1 %26807 }
 0xe0d   :  { %25568 = vmatprep.mubr.msk.f32.mxu1 %vm27216_vm1, %v31354_v22  ;;  %25573 = vmatprep.mubr.msk.f32.mxu0 %vm27216_vm1, %v31354_v22 }
 0xe0e   :  { %25576 = vmatprep.subr.mxu1 %v31354_v22  ;;  %25581 = vmatprep.subr.mxu0 %v31354_v22 }
 0xe0f   :  { %25569 = vmatmul.mubr.msk.f32.vlgmr.msra.gmra.mrb[196].mxu1 %vm288_vm4, %v26744_v13  ;;  %25574 = vmatmul.mubr.msk.f32.vlgmr.msra.gmra.mrb[208].mxu0 %vm288_vm4, %v26745_v4 }
 0xe10   :  { %25577 = vmatpush3.xpose.msk.msra.mxu1 %vm288_vm4, %v26749_v1  ;;  %25582 = vmatpush3.xpose.msk.msra.mxu0 %vm288_vm4, %v26750_v12 }
 0xe11   :  { %25578 = vmatprep.mubr.msk.f32.mxu1 %vm27216_vm1, %v31354_v22  ;;  %25583 = vmatprep.mubr.msk.f32.mxu0 %vm27216_vm1, %v31354_v22 }
 0xe12   :  { %25586 = vmatprep.subr.mxu1 %v31354_v22  ;;  %25591 = vmatprep.subr.mxu0 %v31354_v22 }
 0xe13   :  { %25579 = vmatmul.mubr.msk.f32.vlgmr.msra.gmra.mrb[198].mxu1 %vm288_vm4, %v26754_v27  ;;  %25584 = vmatmul.mubr.msk.f32.vlgmr.msra.gmra.mrb[210].mxu0 %vm288_vm4, %v26755_v55 }
 0xe14   :  { %25587 = vmatpush3.xpose.msk.msra.mxu1 %vm288_vm4, %v26759_v47  ;;  %25592 = vmatpush3.xpose.msk.msra.mxu0 %vm288_vm4, %v26760_v3 }
 0xe15   :  { %25588 = vmatprep.mubr.msk.f32.mxu1 %vm27216_vm1, %v31354_v22  ;;  %25593 = vmatprep.mubr.msk.f32.mxu0 %vm27216_vm1, %v31354_v22 }
 0xe16   :  { %25596 = vmatprep.subr.mxu1 %v31354_v22  ;;  %25601 = vmatprep.subr.mxu0 %v31354_v22 }
 0xe17   :  { %25589 = vmatmul.mubr.msk.f32.vlgmr.msra.gmra.mrb[200].mxu1 %vm288_vm4, %v26764_v46  ;;  %25594 = vmatmul.mubr.msk.f32.vlgmr.msra.gmra.mrb[212].mxu0 %vm288_vm4, %v26765_v33 }
 0xe18   :  { %25597 = vmatpush3.xpose.msk.msra.mxu1 %vm288_vm4, %v26769_v29  ;;  %25602 = vmatpush3.xpose.msk.msra.mxu0 %vm288_vm4, %v26770_v36 }
 0xe19   :  { %25598 = vmatprep.mubr.msk.f32.mxu1 %vm27216_vm1, %v31354_v22  ;;  %25603 = vmatprep.mubr.msk.f32.mxu0 %vm27216_vm1, %v31354_v22 }
 0xe1a   :  { %25606 = vmatprep.subr.mxu1 %v31354_v22  ;;  %25611 = vmatprep.subr.mxu0 %v31354_v22 }
 0xe1b   :  { %25599 = vmatmul.mubr.msk.f32.vlgmr.msra.gmra.mrb[202].mxu1 %vm288_vm4, %v26774_v53  ;;  %25604 = vmatmul.mubr.msk.f32.vlgmr.msra.gmra.mrb[214].mxu0 %vm288_vm4, %v26775_v39 }
 0xe1c   :  { %25607 = vmatpush3.xpose.msk.msra.mxu1 %vm288_vm4, %v26779_v52  ;;  %25612 = vmatpush3.xpose.msk.msra.mxu0 %vm288_vm4, %v26780_v11 }
 0xe1d   :  { %25608 = vmatprep.mubr.msk.f32.mxu1 %vm27216_vm1, %v31354_v22  ;;  %25613 = vmatprep.mubr.msk.f32.mxu0 %vm27216_vm1, %v31354_v22 }
 0xe1e   :  { %25616 = vmatprep.subr.mxu1 %v31354_v22  ;;  %25621 = vmatprep.subr.mxu0 %v31354_v22 }
 0xe1f   :  { %25609 = vmatmul.mubr.msk.f32.vlgmr.msra.gmra.mrb[204].mxu1 %vm288_vm4, %v26784_v37  ;;  %25614 = vmatmul.mubr.msk.f32.vlgmr.msra.gmra.mrb[216].mxu0 %vm288_vm4, %v26785_v43 }
 0xe20   :  { %25617 = vmatpush3.xpose.msk.msra.mxu1 %vm288_vm4, %v26789_v49  ;;  %25622 = vmatpush3.xpose.msk.msra.mxu0 %vm288_vm4, %v26790_v48 }
 0xe21   :  { %25618 = vmatprep.mubr.msk.f32.mxu1 %vm27216_vm1, %v31354_v22  ;;  %25623 = vmatprep.mubr.msk.f32.mxu0 %vm27216_vm1, %v31354_v22 }
 0xe22   :  { %25626 = vmatprep.subr.mxu1 %v31354_v22  ;;  %25631 = vmatprep.subr.mxu0 %v31354_v22 }
 0xe23   :  { %25619 = vmatmul.mubr.msk.f32.vlgmr.msra.gmra.mrb[206].mxu1 %vm288_vm4, %v26794_v31  ;;  %25624 = vmatmul.mubr.msk.f32.vlgmr.msra.gmra.mrb[218].mxu0 %vm288_vm4, %v26795_v23 }
 0xe24   :  { %25627 = vmatpush3.xpose.msk.msra.mxu1 %vm288_vm4, %v26799_v21  ;;  %25632 = vmatpush3.xpose.msk.msra.mxu0 %vm288_vm4, %v26800_v42 }
 0xe25   :  { %25628 = vmatprep.mubr.msk.f32.mxu1 %vm27216_vm1, %v31354_v22  ;;  %25633 = vmatprep.mubr.msk.f32.mxu0 %vm27216_vm1, %v31354_v22 }
 0xe26   :  { %25636 = vmatprep.subr.mxu1 %v31354_v22  ;;  %25641 = vmatprep.subr.mxu0 %v31354_v22 }
 0xe27   :  { %25629 = vmatmul.mubr.msk.f32.vlgmr.msra.gmra.mrb[208].mxu1 %vm288_vm4, %v15372_v10  ;;  %25634 = vmatmul.mubr.msk.f32.vlgmr.msra.gmra.mrb[220].mxu0 %vm288_vm4, %v15450_v59 }
 0xe28   :  { %25637 = vmatpush3.msra.mxu1 %v26804_v9  ;;  %25642 = vmatpush3.msra.mxu0 %v26805_v58  ;;  %v29972_v9 = vpop.permute.xlu1 %26817 }
 0xe29   :  { %25638 = vmatprep.mubr.msk.f32.mxu1 %vm27216_vm1, %v31354_v22  ;;  %25643 = vmatprep.mubr.msk.f32.mxu0 %vm27216_vm1, %v31354_v22 }
 0xe2a   :  { %25646 = vmatprep.subr.mxu1 %v31354_v22  ;;  %25651 = vmatprep.subr.mxu0 %v31354_v22 }
 0xeb7   :  { %v29938_v16 = vpop.f32.mrb[178].mxu1  ;;  %v29940_v28 = vpop.f32.mrb[190].mxu0 }
 0xeb8   :  { %v25480_v30 = vpop.f32.mrb[179].mxu1  ;;  %v25485_v57 = vpop.f32.mrb[191].mxu0 }
 0xebb   :  { %v29942_v6 = vpop.f32.mrb[180].mxu1  ;;  %v29944_v8 = vpop.f32.mrb[192].mxu0 }
 0xebc   :  { %v25490_v4 = vpop.f32.mrb[181].mxu1  ;;  %v25495_v13 = vpop.f32.mrb[193].mxu0 }
 0xebf   :  { %v29946_v14 = vpop.f32.mrb[182].mxu1  ;;  %v29948_v12 = vpop.f32.mrb[194].mxu0 }
 0xec0   :  { %v25500_v1 = vpop.f32.mrb[183].mxu1  ;;  %v25505_v55 = vpop.f32.mrb[195].mxu0 }
 0xec3   :  { %v29950_v27 = vpop.f32.mrb[184].mxu1  ;;  %v29952_v60 = vpop.f32.mrb[196].mxu0 }
 0xec4   :  { %v25510_v3 = vpop.f32.mrb[185].mxu1  ;;  %v25515_v47 = vpop.f32.mrb[197].mxu0 }
 0xec5   :  { %v26813_v3 = vpop.permute.xlu0 %26812 }
 0xecb   :  { %v29954_v63 = vpop.f32.mrb[186].mxu1  ;;  %v29956_v33 = vpop.f32.mrb[198].mxu0 }
 0xecc   :  { %v25520_v46 = vpop.f32.mrb[187].mxu1  ;;  %v25525_v36 = vpop.f32.mrb[199].mxu0 }
 0xecf   :  { %v29958_v29 = vpop.f32.mrb[188].mxu1  ;;  %v29960_v32 = vpop.f32.mrb[200].mxu0 }
 0xed0   :  { %v25530_v39 = vpop.f32.mrb[189].mxu1  ;;  %v25535_v53 = vpop.f32.mrb[201].mxu0 }
 0xed3   :  { %v29962_v50 = vpop.f32.mrb[190].mxu1  ;;  %v29964_v11 = vpop.f32.mrb[202].mxu0 }
 0xed4   :  { %v25540_v52 = vpop.f32.mrb[191].mxu1  ;;  %v25545_v43 = vpop.f32.mrb[203].mxu0 }
 0xed7   :  { %v29966_v37 = vpop.f32.mrb[192].mxu1  ;;  %v29968_v10 = vpop.f32.mrb[204].mxu0 }
 0xed8   :  { %v25550_v48 = vpop.f32.mrb[193].mxu1  ;;  %v25555_v49 = vpop.f32.mrb[205].mxu0 }
 0xed9   :  { %v29977_v49 = vpop.permute.xlu1 %26827 }
 0xede   :  { %v14353_v23 = vpop.f32.mrb[194].mxu1  ;;  %v14431_v31 = vpop.f32.mrb[206].mxu0 }
 0xedf   :  { %v15527_v42 = vsel %vm288_vm4, %v14353_v23, 0.0  ;;  %v15528_v21 = vsel %vm288_vm4, %v14431_v31, 0.0  ;;  %v25560_v41 = vpop.f32.mrb[195].mxu1  ;;  %v25565_v59 = vpop.f32.mrb[207].mxu0 }
 0xee0   :  { %v15529_v58 = vadd.f32 %v15528_v21, %v15527_v42 }
 0xee2   :  { %v14509_v30 = vpop.f32.mrb[196].mxu1  ;;  %v14587_v57 = vpop.f32.mrb[208].mxu0 }
 0xee3   :  { %v15530_v4 = vsel %vm288_vm4, %v14509_v30, 0.0  ;;  %v25570_v13 = vpop.f32.mrb[197].mxu1  ;;  %v25575_v1 = vpop.f32.mrb[209].mxu0  ;;  %v15532_v47 = vsel %vm288_vm4, %v14587_v57, 0.0 }
 0xee4   :  { %v15531_v55 = vadd.f32 %v15530_v4, %v15529_v58  ;;  %v29981_v57 = vpop.permute.xlu0 %26822 }
 0xee6   :  { %v15533_v46 = vadd.f32 %v15532_v47, %v15531_v55  ;;  %v14665_v36 = vpop.f32.mrb[198].mxu1  ;;  %v14743_v39 = vpop.f32.mrb[210].mxu0  ;;  %v26810_v47 = vunpack.i.h.bf16 %v26808_v17 }
 0xee7   :  { %v15534_v53 = vsel %vm288_vm4, %v14665_v36, 0.0  ;;  %v25580_v52 = vpop.f32.mrb[199].mxu1  ;;  %v25585_v43 = vpop.f32.mrb[211].mxu0  ;;  %v15536_v23 = vsel %vm288_vm4, %v14743_v39, 0.0 }
 0xee8   :  { %v15535_v48 = vadd.f32 %v15534_v53, %v15533_v46  ;;  %v26809_v46 = vunpack.i.l.bf16 %v26808_v17  ;;  %v26815_v17 = vunpack.i.h.bf16 %v26813_v3 }
 0xeea   :  { %v15537_v31 = vadd.f32 %v15536_v23, %v15535_v48  ;;  %v14821_v42 = vpop.f32.mrb[200].mxu1  ;;  %v14899_v21 = vpop.f32.mrb[212].mxu0 }
 0xeeb   :  { %v15538_v41 = vsel %vm288_vm4, %v14821_v42, 0.0  ;;  %v25590_v59 = vpop.f32.mrb[201].mxu1  ;;  %v25595_v58 = vpop.f32.mrb[213].mxu0  ;;  %v15540_v4 = vsel %vm288_vm4, %v14899_v21, 0.0  ;;  %v26814_v42 = vunpack.i.l.bf16 %v26813_v3 }
 0xeec   :  { %v15539_v30 = vadd.f32 %v15538_v41, %v15537_v31  ;;  %v29992_v48 = vpop.permute.xlu1 %26837 }
 0xeee   :  { %v29984_v13 = vadd.f32 %v15540_v4, %v15539_v30  ;;  %v14977_v1 = vpop.f32.mrb[202].mxu1  ;;  %v15055_v55 = vpop.f32.mrb[214].mxu0 }
 0xeef   :  { %v15542_v36 = vsel %vm288_vm4, %v14977_v1, 0.0  ;;  %v15543_v39 = vsel %vm288_vm4, %v15055_v55, 0.0  ;;  %v25600_v53 = vpop.f32.mrb[203].mxu1  ;;  %v25605_v52 = vpop.f32.mrb[215].mxu0 }
 0xef0   :  { %v15544_v43 = vadd.f32 %v15543_v39, %v15542_v36  ;;  %25639 = vmatmul.mubr.msk.f32.vlgmr.msra.gmra.mrb[210].mxu1 %vm288_vm4, %v29984_v13  ;;  %25644 = vmatmul.mubr.msk.f32.vlgmr.msra.gmra.mrb[222].mxu0 %vm288_vm4, %v29984_v13  ;;  %v30005_v30 = vpop.permute.xlu0 %26832 }
 0xef1   :  { %25647 = vmatpush3.msra.mxu1 %v26809_v46  ;;  %25652 = vmatpush3.msra.mxu0 %v26810_v47  ;;  %v26820_v47 = vunpack.i.h.bf16 %v29972_v9  ;;  %v26819_v46 = vunpack.i.l.bf16 %v29972_v9 }
 0xef2   :  { %v15133_v23 = vpop.f32.mrb[204].mxu1  ;;  %v15211_v31 = vpop.f32.mrb[216].mxu0  ;;  %25648 = vmatprep.mubr.msk.f32.mxu1 %vm27216_vm1, %v31354_v22  ;;  %25653 = vmatprep.mubr.msk.f32.mxu0 %vm27216_vm1, %v31354_v22 }
 0xef3   :  { %v15545_v21 = vsel %vm288_vm4, %v15133_v23, 0.0  ;;  %v25610_v41 = vpop.f32.mrb[205].mxu1  ;;  %v25615_v59 = vpop.f32.mrb[217].mxu0  ;;  %25656 = vmatprep.subr.mxu1 %v31354_v22  ;;  %25661 = vmatprep.subr.mxu0 %v31354_v22  ;;  %v15547_v4 = vsel %vm288_vm4, %v15211_v31, 0.0 }
 0xef4   :  { %v15546_v58 = vadd.f32 %v15545_v21, %v15544_v43  ;;  %25649 = vmatmul.mubr.msk.f32.vlgmr.msra.gmra.mrb[212].mxu1 %vm288_vm4, %v29984_v13  ;;  %25654 = vmatmul.mubr.msk.f32.vlgmr.msra.gmra.mrb[224].mxu0 %vm288_vm4, %v29984_v13  ;;  %v30021_v43 = vpop.permute.xlu1 %26847  ;;  %v26824_v21 = vunpack.i.l.bf16 %v29981_v57 }
 0xef5   :  { %25657 = vmatpush3.msra.mxu1 %v26814_v42  ;;  %25662 = vmatpush3.msra.mxu0 %v26815_v17  ;;  %v26825_v42 = vunpack.i.h.bf16 %v29981_v57 }
 0xef6   :  { %v15548_v3 = vadd.f32 %v15547_v4, %v15546_v58  ;;  %v15289_v1 = vpop.f32.mrb[206].mxu1  ;;  %v15367_v55 = vpop.f32.mrb[218].mxu0  ;;  %25658 = vmatprep.mubr.msk.f32.mxu1 %vm27216_vm1, %v31354_v22  ;;  %25663 = vmatprep.mubr.msk.f32.mxu0 %vm27216_vm1, %v31354_v22 }
 0xef7   :  { %v15549_v36 = vsel %vm288_vm4, %v15289_v1, 0.0  ;;  %v25620_v39 = vpop.f32.mrb[207].mxu1  ;;  %v25625_v53 = vpop.f32.mrb[219].mxu0  ;;  %25666 = vmatprep.subr.mxu1 %v31354_v22  ;;  %25671 = vmatprep.subr.mxu0 %v31354_v22  ;;  %v15551_v23 = vsel %vm288_vm4, %v15367_v55, 0.0  ;;  %v26830_v55 = vunpack.i.h.bf16 %v29977_v49 }
 0xef8   :  { %v15550_v52 = vadd.f32 %v15549_v36, %v15548_v3  ;;  %25659 = vmatmul.mubr.msk.f32.vlgmr.msra.gmra.mrb[214].mxu1 %vm288_vm4, %v29984_v13  ;;  %25664 = vmatmul.mubr.msk.f32.vlgmr.msra.gmra.mrb[226].mxu0 %vm288_vm4, %v29984_v13  ;;  %v26843_v3 = vpop.permute.xlu0 %26842  ;;  %v26840_v39 = vunpack.i.h.bf16 %v29992_v48 }
 0xef9   :  { %25667 = vmatpush3.msra.mxu1 %v26819_v46  ;;  %25672 = vmatpush3.msra.mxu0 %v26820_v47  ;;  %v26829_v47 = vunpack.i.l.bf16 %v29977_v49  ;;  %v26835_v46 = vunpack.i.h.bf16 %v30005_v30  ;;  %v26834_v49 = vunpack.i.l.bf16 %v30005_v30  ;;  %v26839_v30 = vunpack.i.l.bf16 %v29992_v48 }
 0xefa   :  { %v15552_v9 = vadd.f32 %v15551_v23, %v15550_v52  ;;  %v15445_v31 = vpop.f32.mrb[208].mxu1  ;;  %v15523_v17 = vpop.f32.mrb[220].mxu0  ;;  %25668 = vmatprep.mubr.msk.f32.mxu1 %vm27216_vm1, %v31354_v22  ;;  %25673 = vmatprep.mubr.msk.f32.mxu0 %vm27216_vm1, %v31354_v22  ;;  %v26845_v23 = vunpack.i.h.bf16 %v26843_v3 }
 0xefb   :  { %v15553_v41 = vsel %vm288_vm4, %v15445_v31, 0.0  ;;  %v25630_v59 = vpop.f32.mrb[209].mxu1  ;;  %v25635_v58 = vpop.f32.mrb[221].mxu0  ;;  %25676 = vmatprep.subr.mxu1 %v31354_v22  ;;  %25681 = vmatprep.subr.mxu0 %v31354_v22  ;;  %v15555_v1 = vsel %vm288_vm4, %v15523_v17, 0.0  ;;  %v26850_v17 = vunpack.i.h.bf16 %v30021_v43 }
 0xefc   :  { %v15554_v4 = vadd.f32 %v15553_v41, %v15552_v9  ;;  %25669 = vmatmul.mubr.msk.f32.vlgmr.msra.gmra.mrb[216].mxu1 %vm288_vm4, %v29984_v13  ;;  %25674 = vmatmul.mubr.msk.f32.vlgmr.msra.gmra.mrb[228].mxu0 %vm288_vm4, %v29984_v13  ;;  %v26858_v13 = vpop.permute.xlu1 %26857  ;;  %v26853_v36 = vpop.permute.xlu0 %26852  ;;  %v26844_v9 = vunpack.i.l.bf16 %v26843_v3 }
 0xefd   :  { %25677 = vmatpush3.msra.mxu1 %v26824_v21  ;;  %25682 = vmatpush3.msra.mxu0 %v26825_v42  ;;  %v26849_v42 = vunpack.i.l.bf16 %v30021_v43  ;;  %v26855_v21 = vunpack.i.h.bf16 %v26853_v36  ;;  %v26854_v41 = vunpack.i.l.bf16 %v26853_v36  ;;  %v26860_v58 = vunpack.i.h.bf16 %v26858_v13 }
 0xefe   :  { %v15556_v57 = vadd.f32 %v15555_v1, %v15554_v4  ;;  %25678 = vmatprep.mubr.msk.f32.mxu1 %vm27216_vm1, %v31354_v22  ;;  %25683 = vmatprep.mubr.msk.f32.mxu0 %vm27216_vm1, %v31354_v22  ;;  %v26859_v4 = vunpack.i.l.bf16 %v26858_v13 }
 0xeff   :  { %25686 = vmatprep.subr.mxu1 %v31354_v22  ;;  %25691 = vmatprep.subr.mxu0 %v31354_v22 }
 0xf00   :  { %25679 = vmatmul.mubr.msk.f32.vlgmr.msra.gmra.mrb[218].mxu1 %vm288_vm4, %v15556_v57  ;;  %25684 = vmatmul.mubr.msk.f32.vlgmr.msra.gmra.mrb[230].mxu0 %vm288_vm4, %v15556_v57  ;;  %v26868_v53 = vpop.permute.xlu1 %26867  ;;  %v26863_v52 = vpop.permute.xlu0 %26862 }
 0xf01   :  { %25687 = vmatpush3.msra.mxu1 %v26829_v47  ;;  %25692 = vmatpush3.msra.mxu0 %v26830_v55  ;;  %v26865_v43 = vunpack.i.h.bf16 %v26863_v52  ;;  %v26864_v1 = vunpack.i.l.bf16 %v26863_v52  ;;  %v26869_v55 = vunpack.i.l.bf16 %v26868_v53 }
 0xf02   :  { %25688 = vmatprep.mubr.msk.f32.mxu1 %vm27216_vm1, %v31354_v22  ;;  %25693 = vmatprep.mubr.msk.f32.mxu0 %vm27216_vm1, %v31354_v22 }
 0xf03   :  { %25696 = vmatprep.subr.mxu1 %v31354_v22  ;;  %25701 = vmatprep.subr.mxu0 %v31354_v22 }
 0xf04   :  { %25689 = vmatmul.mubr.msk.f32.vlgmr.msra.gmra.mrb[220].mxu1 %vm288_vm4, %v15556_v57  ;;  %25694 = vmatmul.mubr.msk.f32.vlgmr.msra.gmra.mrb[232].mxu0 %vm288_vm4, %v15556_v57  ;;  %v26878_v48 = vpop.permute.xlu1 %26877  ;;  %v26873_v31 = vpop.permute.xlu0 %26872 }
 0xf05   :  { %25697 = vmatpush3.msra.mxu1 %v26834_v49  ;;  %25702 = vmatpush3.msra.mxu0 %v26835_v46  ;;  %v26875_v13 = vunpack.i.h.bf16 %v26873_v31  ;;  %v26874_v46 = vunpack.i.l.bf16 %v26873_v31  ;;  %v26880_v36 = vunpack.i.h.bf16 %v26878_v48 }
 0xf06   :  { %25698 = vmatprep.mubr.msk.f32.mxu1 %vm27216_vm1, %v31354_v22  ;;  %25703 = vmatprep.mubr.msk.f32.mxu0 %vm27216_vm1, %v31354_v22 }
 0xf07   :  { %25706 = vmatprep.subr.mxu1 %v31354_v22  ;;  %25711 = vmatprep.subr.mxu0 %v31354_v22 }
 0xf08   :  { %25699 = vmatmul.mubr.msk.f32.vlgmr.msra.gmra.mrb[222].mxu1 %vm288_vm4, %v15556_v57  ;;  %25704 = vmatmul.mubr.msk.f32.vlgmr.msra.gmra.mrb[234].mxu0 %vm288_vm4, %v15556_v57  ;;  %v26888_v59 = vpop.permute.xlu1 %26887  ;;  %v26883_v3 = vpop.permute.xlu0 %26882 }
 0xf09   :  { %25707 = vmatpush3.msra.mxu1 %v26839_v30  ;;  %25712 = vmatpush3.msra.mxu0 %v26840_v39  ;;  %v26879_v39 = vunpack.i.l.bf16 %v26878_v48  ;;  %v26885_v30 = vunpack.i.h.bf16 %v26883_v3  ;;  %v26890_v48 = vunpack.i.h.bf16 %v26888_v59 }
 0xf0a   :  { %25708 = vmatprep.mubr.msk.f32.mxu1 %vm27216_vm1, %v31354_v22  ;;  %25713 = vmatprep.mubr.msk.f32.mxu0 %vm27216_vm1, %v31354_v22 }
 0xf0b   :  { %25716 = vmatprep.subr.mxu1 %v31354_v22  ;;  %25721 = vmatprep.subr.mxu0 %v31354_v22 }
 0xf0c   :  { %25709 = vmatmul.mubr.msk.f32.vlgmr.msra.gmra.mrb[224].mxu1 %vm288_vm4, %v15556_v57  ;;  %25714 = vmatmul.mubr.msk.f32.vlgmr.msra.gmra.mrb[236].mxu0 %vm288_vm4, %v15556_v57  ;;  %v26870_v57 = vunpack.i.h.bf16 %v26868_v53  ;;  %v26898_v47 = vpop.permute.xlu1 %26897  ;;  %v26893_v49 = vpop.permute.xlu0 %26892  ;;  %v26884_v53 = vunpack.i.l.bf16 %v26883_v3 }
 0xf0d   :  { %25718 = vmatprep.mubr.msk.f32.mxu1 %vm27216_vm1, %v31354_v22  ;;  %25723 = vmatprep.mubr.msk.f32.mxu0 %vm27216_vm1, %v31354_v22  ;;  %v26895_v31 = vunpack.i.h.bf16 %v26893_v49 }
 0xf10   :  { %25717 = vmatpush3.xpose.msk.msra.mxu1 %vm288_vm4, %v26844_v9  ;;  %25722 = vmatpush3.xpose.msk.msra.mxu0 %vm288_vm4, %v26845_v23  ;;  %v26908_v52 = vpop.permute.xlu1 %26907  ;;  %v26889_v23 = vunpack.i.l.bf16 %v26888_v59  ;;  %v26903_v9 = vpop.permute.xlu0 %26902 }
 0xf11   :  { %25726 = vmatprep.subr.mxu1 %v31354_v22  ;;  %25731 = vmatprep.subr.mxu0 %v31354_v22  ;;  %v26905_v59 = vunpack.i.h.bf16 %v26903_v9  ;;  %v26910_v3 = vunpack.i.h.bf16 %v26908_v52 }
 0xf13   :  { %25719 = vmatmul.mubr.msk.f32.vlgmr.msra.gmra.mrb[226].mxu1 %vm288_vm4, %v26849_v42  ;;  %25724 = vmatmul.mubr.msk.f32.vlgmr.msra.gmra.mrb[238].mxu0 %vm288_vm4, %v26850_v17  ;;  %v26894_v17 = vunpack.i.l.bf16 %v26893_v49  ;;  %v26900_v42 = vunpack.i.h.bf16 %v26898_v47 }
 0xf14   :  { %25727 = vmatpush3.xpose.msk.msra.mxu1 %vm288_vm4, %v26854_v41  ;;  %25732 = vmatpush3.xpose.msk.msra.mxu0 %vm288_vm4, %v26855_v21  ;;  %v26899_v21 = vunpack.i.l.bf16 %v26898_v47  ;;  %v17824_v41 = vpop.permute.xlu1 %17823 }
 0xf15   :  { %25728 = vmatprep.mubr.msk.f32.mxu1 %vm27216_vm1, %v31354_v22  ;;  %25733 = vmatprep.mubr.msk.f32.mxu0 %vm27216_vm1, %v31354_v22 }
 0xf16   :  { %25736 = vmatprep.subr.mxu1 %v31354_v22  ;;  %25741 = vmatprep.subr.mxu0 %v31354_v22 }
 0xf17   :  { %25729 = vmatmul.mubr.msk.f32.vlgmr.msra.gmra.mrb[228].mxu1 %vm288_vm4, %v26859_v4  ;;  %25734 = vmatmul.mubr.msk.f32.vlgmr.msra.gmra.mrb[240].mxu0 %vm288_vm4, %v26860_v58  ;;  %v26904_v58 = vunpack.i.l.bf16 %v26903_v9  ;;  %v26913_v4 = vpop.permute.xlu0 %26912 }
 0xf18   :  { %25737 = vmatpush3.xpose.msk.msra.mxu1 %vm288_vm4, %v26864_v1  ;;  %25742 = vmatpush3.xpose.msk.msra.mxu0 %vm288_vm4, %v26865_v43  ;;  %v26909_v43 = vunpack.i.l.bf16 %v26908_v52  ;;  %v26915_v1 = vunpack.i.h.bf16 %v26913_v4 }
 0xf19   :  { %25738 = vmatprep.mubr.msk.f32.mxu1 %vm27216_vm1, %v31354_v22  ;;  %25743 = vmatprep.mubr.msk.f32.mxu0 %vm27216_vm1, %v31354_v22 }
 0xf1a   :  { %25746 = vmatprep.subr.mxu1 %v31354_v22  ;;  %25751 = vmatprep.subr.mxu0 %v31354_v22 }
 0xf1b   :  { %25739 = vmatmul.mubr.msk.f32.vlgmr.msra.gmra.mrb[230].mxu1 %vm288_vm4, %v26869_v55  ;;  %25744 = vmatmul.mubr.msk.f32.vlgmr.msra.gmra.mrb[242].mxu0 %vm288_vm4, %v26870_v57  ;;  %v26914_v57 = vunpack.i.l.bf16 %v26913_v4  ;;  %v26918_v55 = vpop.permute.xlu1 %26917  ;;  %v17902_v47 = vpop.permute.xlu0 %17901 }
 0xf1c   :  { %25747 = vmatpush3.xpose.msk.msra.mxu1 %vm288_vm4, %v26874_v46  ;;  %25752 = vmatpush3.xpose.msk.msra.mxu0 %vm288_vm4, %v26875_v13  ;;  %v26920_v13 = vunpack.i.h.bf16 %v26918_v55  ;;  %v26919_v46 = vunpack.i.l.bf16 %v26918_v55 }
 0xf1d   :  { %25748 = vmatprep.mubr.msk.f32.mxu1 %vm27216_vm1, %v31354_v22  ;;  %25753 = vmatprep.mubr.msk.f32.mxu0 %vm27216_vm1, %v31354_v22 }
 0xf1e   :  { %25756 = vmatprep.subr.mxu1 %v31354_v22  ;;  %25761 = vmatprep.subr.mxu0 %v31354_v22 }
 0xf1f   :  { %25749 = vmatmul.mubr.msk.f32.vlgmr.msra.gmra.mrb[232].mxu1 %vm288_vm4, %v26879_v39  ;;  %25754 = vmatmul.mubr.msk.f32.vlgmr.msra.gmra.mrb[244].mxu0 %vm288_vm4, %v26880_v36 }
 0xf20   :  { %25757 = vmatpush3.xpose.msk.msra.mxu1 %vm288_vm4, %v26884_v53  ;;  %25762 = vmatpush3.xpose.msk.msra.mxu0 %vm288_vm4, %v26885_v30 }
 0xf21   :  { %25758 = vmatprep.mubr.msk.f32.mxu1 %vm27216_vm1, %v31354_v22  ;;  %25763 = vmatprep.mubr.msk.f32.mxu0 %vm27216_vm1, %v31354_v22 }
 0xf22   :  { %25766 = vmatprep.subr.mxu1 %v31354_v22  ;;  %25771 = vmatprep.subr.mxu0 %v31354_v22 }
 0xf23   :  { %25759 = vmatmul.mubr.msk.f32.vlgmr.msra.gmra.mrb[234].mxu1 %vm288_vm4, %v26889_v23  ;;  %25764 = vmatmul.mubr.msk.f32.vlgmr.msra.gmra.mrb[246].mxu0 %vm288_vm4, %v26890_v48 }
 0xf24   :  { %25767 = vmatpush3.xpose.msk.msra.mxu1 %vm288_vm4, %v26894_v17  ;;  %25772 = vmatpush3.xpose.msk.msra.mxu0 %vm288_vm4, %v26895_v31 }
 0xf25   :  { %25768 = vmatprep.mubr.msk.f32.mxu1 %vm27216_vm1, %v31354_v22  ;;  %25773 = vmatprep.mubr.msk.f32.mxu0 %vm27216_vm1, %v31354_v22 }
 0xf26   :  { %25776 = vmatprep.subr.mxu1 %v31354_v22  ;;  %25781 = vmatprep.subr.mxu0 %v31354_v22 }
 0xf27   :  { %25769 = vmatmul.mubr.msk.f32.vlgmr.msra.gmra.mrb[236].mxu1 %vm288_vm4, %v26899_v21  ;;  %25774 = vmatmul.mubr.msk.f32.vlgmr.msra.gmra.mrb[248].mxu0 %vm288_vm4, %v26900_v42 }
 0xf28   :  { %25777 = vmatpush3.xpose.msk.msra.mxu1 %vm288_vm4, %v26904_v58  ;;  %25782 = vmatpush3.xpose.msk.msra.mxu0 %vm288_vm4, %v26905_v59 }
 0xf29   :  { %25778 = vmatprep.mubr.msk.f32.mxu1 %vm27216_vm1, %v31354_v22  ;;  %25783 = vmatprep.mubr.msk.f32.mxu0 %vm27216_vm1, %v31354_v22 }
 0xf2a   :  { %25786 = vmatprep.subr.mxu1 %v31354_v22  ;;  %25791 = vmatprep.subr.mxu0 %v31354_v22 }
 0xf2b   :  { %25779 = vmatmul.mubr.msk.f32.vlgmr.msra.gmra.mrb[238].mxu1 %vm288_vm4, %v26909_v43  ;;  %25784 = vmatmul.mubr.msk.f32.vlgmr.msra.gmra.mrb[250].mxu0 %vm288_vm4, %v26910_v3 }
 0xf2c   :  { %25787 = vmatpush3.xpose.msk.msra.mxu1 %vm288_vm4, %v26914_v57  ;;  %25792 = vmatpush3.xpose.msk.msra.mxu0 %vm288_vm4, %v26915_v1 }
 0xf2d   :  { %25788 = vmatprep.mubr.msk.f32.mxu1 %vm27216_vm1, %v31354_v22  ;;  %25793 = vmatprep.mubr.msk.f32.mxu0 %vm27216_vm1, %v31354_v22 }
 0xf2e   :  { %25796 = vmatprep.subr.mxu1 %v31354_v22  ;;  %25801 = vmatprep.subr.mxu0 %v31354_v22 }
 0xf2f   :  { %25789 = vmatmul.mubr.msk.f32.vlgmr.msra.gmra.mrb[240].mxu1 %vm288_vm4, %v17824_v41  ;;  %25794 = vmatmul.mubr.msk.f32.vlgmr.msra.gmra.mrb[252].mxu0 %vm288_vm4, %v17902_v47 }
 0xf30   :  { %25797 = vmatpush3.msra.mxu1 %v26919_v46  ;;  %25802 = vmatpush3.msra.mxu0 %v26920_v13 }
 0xf31   :  { %25798 = vmatprep.mubr.msk.f32.mxu1 %vm27216_vm1, %v31354_v22  ;;  %25803 = vmatprep.mubr.msk.f32.mxu0 %vm27216_vm1, %v31354_v22 }
 0xf32   :  { %25806 = vmatprep.subr.mxu1 %v31354_v22  ;;  %25811 = vmatprep.subr.mxu0 %v31354_v22 }
 0xfc3   :  { %v15629_v49 = vpop.f32.mrb[210].mxu1  ;;  %v15702_v36 = vpop.f32.mrb[222].mxu0 }
 0xfc4   :  { %21653 = vrot.lane.b32.xlu1 %v15702_v36, %s27228_s24  ;;  %v25645_v39 = vpop.f32.mrb[223].mxu0  ;;  %21651 = vrot.lane.b32.xlu0 %v15629_v49, %s27228_s24  ;;  %v25640_v30 = vpop.f32.mrb[211].mxu1 }
 0xfc7   :  { %v15775_v53 = vpop.f32.mrb[212].mxu1  ;;  %v15848_v52 = vpop.f32.mrb[224].mxu0 }
 0xfc8   :  { %21657 = vrot.lane.b32.xlu1 %v15848_v52, %s27228_s24  ;;  %v25655_v48 = vpop.f32.mrb[225].mxu0  ;;  %21655 = vrot.lane.b32.xlu0 %v15775_v53, %s27228_s24  ;;  %v25650_v23 = vpop.f32.mrb[213].mxu1 }
 0xfc9   :  { %v26923_v23 = vpop.permute.xlu0 %26922 }
 0xfcb   :  { %v15921_v9 = vpop.f32.mrb[214].mxu1  ;;  %v15994_v31 = vpop.f32.mrb[226].mxu0 }
 0xfcc   :  { %21661 = vrot.lane.b32.xlu1 %v15994_v31, %s27228_s24  ;;  %v25665_v17 = vpop.f32.mrb[227].mxu0  ;;  %21659 = vrot.lane.b32.xlu0 %v15921_v9, %s27228_s24  ;;  %v25660_v42 = vpop.f32.mrb[215].mxu1 }
 0xfcf   :  { %v16067_v21 = vpop.f32.mrb[216].mxu1  ;;  %v16140_v41 = vpop.f32.mrb[228].mxu0 }
 0xfd0   :  { %21665 = vrot.lane.b32.xlu1 %v16140_v41, %s27228_s24  ;;  %v25675_v59 = vpop.f32.mrb[229].mxu0  ;;  %21663 = vrot.lane.b32.xlu0 %v16067_v21, %s27228_s24  ;;  %v25670_v58 = vpop.f32.mrb[217].mxu1 }
 0xfd1   :  { %v30182_v58 = vpop.permute.xlu0 %26932 }
 0xfd3   :  { %v16216_v4 = vpop.f32.mrb[218].mxu1  ;;  %v16289_v3 = vpop.f32.mrb[230].mxu0 }
 0xfd4   :  { %21669 = vrot.lane.b32.xlu1 %v16289_v3, %s27228_s24  ;;  %v25685_v43 = vpop.f32.mrb[231].mxu0  ;;  %21667 = vrot.lane.b32.xlu0 %v16216_v4, %s27228_s24  ;;  %v25680_v1 = vpop.f32.mrb[219].mxu1 }
 0xfd7   :  { %v16362_v57 = vpop.f32.mrb[220].mxu1  ;;  %v16435_v55 = vpop.f32.mrb[232].mxu0 }
 0xfd8   :  { %21673 = vrot.lane.b32.xlu1 %v16435_v55, %s27228_s24  ;;  %v25695_v47 = vpop.f32.mrb[233].mxu0  ;;  %21671 = vrot.lane.b32.xlu0 %v16362_v57, %s27228_s24  ;;  %v25690_v13 = vpop.f32.mrb[221].mxu1 }
 0xfd9   :  { %v26928_v47 = vpop.permute.xlu1 %26927 }
 0xfdb   :  { %v16508_v46 = vpop.f32.mrb[222].mxu1  ;;  %v16581_v49 = vpop.f32.mrb[234].mxu0 }
 0xfdc   :  { %21677 = vrot.lane.b32.xlu1 %v16581_v49, %s27228_s24  ;;  %v25705_v36 = vpop.f32.mrb[235].mxu0  ;;  %21675 = vrot.lane.b32.xlu0 %v16508_v46, %s27228_s24  ;;  %v25700_v39 = vpop.f32.mrb[223].mxu1 }
 0xfdf   :  { %v16654_v30 = vpop.f32.mrb[224].mxu1  ;;  %v16727_v53 = vpop.f32.mrb[236].mxu0 }
 0xfe0   :  { %21681 = vrot.lane.b32.xlu1 %v16727_v53, %s27228_s24  ;;  %v25715_v52 = vpop.f32.mrb[237].mxu0  ;;  %21679 = vrot.lane.b32.xlu0 %v16654_v30, %s27228_s24  ;;  %v25710_v48 = vpop.f32.mrb[225].mxu1 }
 0xfe1   :  { %v30187_v48 = vpop.permute.xlu0 %26942 }
 0xfe6   :  { %v16805_v9 = vpop.f32.mrb[226].mxu1  ;;  %v16883_v31 = vpop.f32.mrb[238].mxu0 }
 0xfe7   :  { %v17979_v17 = vsel %vm288_vm4, %v16805_v9, 0.0  ;;  %v17980_v42 = vsel %vm288_vm4, %v16883_v31, 0.0  ;;  %v25720_v21 = vpop.f32.mrb[227].mxu1  ;;  %v25725_v41 = vpop.f32.mrb[239].mxu0 }
 0xfe8   :  { %v17981_v59 = vadd.f32 %v17980_v42, %v17979_v17 }
 0xfea   :  { %v16961_v4 = vpop.f32.mrb[228].mxu1  ;;  %v17039_v3 = vpop.f32.mrb[240].mxu0 }
 0xfeb   :  { %v17982_v43 = vsel %vm288_vm4, %v16961_v4, 0.0  ;;  %v25730_v1 = vpop.f32.mrb[229].mxu1  ;;  %v25735_v57 = vpop.f32.mrb[241].mxu0  ;;  %v17984_v13 = vsel %vm288_vm4, %v17039_v3, 0.0 }
 0xfec   :  { %v17983_v55 = vadd.f32 %v17982_v43, %v17981_v59  ;;  %v30191_v3 = vpop.permute.xlu1 %26937 }
 0xfee   :  { %v17985_v46 = vadd.f32 %v17984_v13, %v17983_v55  ;;  %v17117_v49 = vpop.f32.mrb[230].mxu1  ;;  %v17195_v36 = vpop.f32.mrb[242].mxu0  ;;  %v26925_v13 = vunpack.i.h.bf16 %v26923_v23 }
 0xfef   :  { %v17986_v39 = vsel %vm288_vm4, %v17117_v49, 0.0  ;;  %v25740_v30 = vpop.f32.mrb[231].mxu1  ;;  %v25745_v53 = vpop.f32.mrb[243].mxu0  ;;  %v17988_v9 = vsel %vm288_vm4, %v17195_v36, 0.0 }
 0xff0   :  { %v17987_v52 = vadd.f32 %v17986_v39, %v17985_v46  ;;  %v26924_v46 = vunpack.i.l.bf16 %v26923_v23  ;;  %v26930_v23 = vunpack.i.h.bf16 %v26928_v47 }
 0xff2   :  { %v17989_v31 = vadd.f32 %v17988_v9, %v17987_v52  ;;  %v17273_v17 = vpop.f32.mrb[232].mxu1  ;;  %v17351_v42 = vpop.f32.mrb[244].mxu0 }
 0xff3   :  { %v17990_v21 = vsel %vm288_vm4, %v17273_v17, 0.0  ;;  %v25750_v41 = vpop.f32.mrb[233].mxu1  ;;  %v25755_v59 = vpop.f32.mrb[245].mxu0  ;;  %v17992_v43 = vsel %vm288_vm4, %v17351_v42, 0.0  ;;  %v26929_v17 = vunpack.i.l.bf16 %v26928_v47 }
 0xff4   :  { %v17991_v4 = vadd.f32 %v17990_v21, %v17989_v31  ;;  %v30202_v52 = vpop.permute.xlu0 %26952 }
 0xff6   :  { %v30194_v1 = vadd.f32 %v17992_v43, %v17991_v4  ;;  %v17429_v57 = vpop.f32.mrb[234].mxu1  ;;  %v17507_v55 = vpop.f32.mrb[246].mxu0 }
 0xff7   :  { %v17994_v49 = vsel %vm288_vm4, %v17429_v57, 0.0  ;;  %v17995_v36 = vsel %vm288_vm4, %v17507_v55, 0.0  ;;  %v25760_v39 = vpop.f32.mrb[235].mxu1  ;;  %v25765_v30 = vpop.f32.mrb[247].mxu0 }
 0xff8   :  { %v17996_v53 = vadd.f32 %v17995_v36, %v17994_v49  ;;  %25799 = vmatmul.mubr.msk.f32.vlgmr.msra.gmra.mrb[242].mxu1 %vm288_vm4, %v30194_v1  ;;  %25804 = vmatmul.mubr.msk.f32.vlgmr.msra.gmra.mrb[254].mxu0 %vm288_vm4, %v30194_v1  ;;  %v30215_v4 = vpop.permute.xlu1 %26947 }
 0xff9   :  { %25807 = vmatpush3.msra.mxu1 %v26924_v46  ;;  %25812 = vmatpush3.msra.mxu0 %v26925_v13  ;;  %v26935_v13 = vunpack.i.h.bf16 %v30182_v58  ;;  %v26934_v46 = vunpack.i.l.bf16 %v30182_v58 }
 0xffa   :  { %v17585_v9 = vpop.f32.mrb[236].mxu1  ;;  %v17663_v31 = vpop.f32.mrb[248].mxu0  ;;  %25808 = vmatprep.mubr.msk.f32.mxu1 %vm27216_vm1, %v31354_v22  ;;  %25813 = vmatprep.mubr.msk.f32.mxu0 %vm27216_vm1, %v31354_v22 }
 0xffb   :  { %v17997_v42 = vsel %vm288_vm4, %v17585_v9, 0.0  ;;  %v25770_v21 = vpop.f32.mrb[237].mxu1  ;;  %v25775_v41 = vpop.f32.mrb[249].mxu0  ;;  %25816 = vmatprep.subr.mxu1 %v31354_v22  ;;  %25821 = vmatprep.subr.mxu0 %v31354_v22  ;;  %v17999_v43 = vsel %vm288_vm4, %v17663_v31, 0.0 }
 0xffc   :  { %v17998_v59 = vadd.f32 %v17997_v42, %v17996_v53  ;;  %25809 = vmatmul.mubr.msk.f32.vlgmr.msra.gmra.mrb[244].mxu1 %vm288_vm4, %v30194_v1  ;;  %25814 = vmatmul.mubr.msk.f32.vlgmr.msra.gmra.mrb[0].mxu0 %vm288_vm4, %v30194_v1  ;;  %v30231_v53 = vpop.permute.xlu0 %26962  ;;  %v26939_v42 = vunpack.i.l.bf16 %v30191_v3 }
 0xffd   :  { %25817 = vmatpush3.msra.mxu1 %v26929_v17  ;;  %25822 = vmatpush3.msra.mxu0 %v26930_v23  ;;  %v26940_v17 = vunpack.i.h.bf16 %v30191_v3 }
 0xffe   :  { %v18000_v47 = vadd.f32 %v17999_v43, %v17998_v59  ;;  %v17741_v57 = vpop.f32.mrb[238].mxu1  ;;  %v17819_v55 = vpop.f32.mrb[250].mxu0  ;;  %25818 = vmatprep.mubr.msk.f32.mxu1 %vm27216_vm1, %v31354_v22  ;;  %25823 = vmatprep.mubr.msk.f32.mxu0 %vm27216_vm1, %v31354_v22 }
 0xfff   :  { %v18001_v49 = vsel %vm288_vm4, %v17741_v57, 0.0  ;;  %v25780_v36 = vpop.f32.mrb[239].mxu1  ;;  %v25785_v39 = vpop.f32.mrb[251].mxu0  ;;  %25826 = vmatprep.subr.mxu1 %v31354_v22  ;;  %25831 = vmatprep.subr.mxu0 %v31354_v22  ;;  %v18003_v9 = vsel %vm288_vm4, %v17819_v55, 0.0  ;;  %v26945_v55 = vunpack.i.h.bf16 %v30187_v48 }
0x1000   :  { %v18002_v30 = vadd.f32 %v18001_v49, %v18000_v47  ;;  %25819 = vmatmul.mubr.msk.f32.vlgmr.msra.gmra.mrb[246].mxu1 %vm288_vm4, %v30194_v1  ;;  %25824 = vmatmul.mubr.msk.f32.vlgmr.msra.gmra.mrb[2].mxu0 %vm288_vm4, %v30194_v1  ;;  %v26958_v47 = vpop.permute.xlu1 %26957  ;;  %v26955_v36 = vunpack.i.h.bf16 %v30202_v52 }
0x1001   :  { %25827 = vmatpush3.msra.mxu1 %v26934_v46  ;;  %25832 = vmatpush3.msra.mxu0 %v26935_v13  ;;  %v26944_v13 = vunpack.i.l.bf16 %v30187_v48  ;;  %v26950_v46 = vunpack.i.h.bf16 %v30215_v4  ;;  %v26949_v48 = vunpack.i.l.bf16 %v30215_v4  ;;  %v26954_v4 = vunpack.i.l.bf16 %v30202_v52 }
0x1002   :  { %v18004_v58 = vadd.f32 %v18003_v9, %v18002_v30  ;;  %v17897_v31 = vpop.f32.mrb[240].mxu1  ;;  %v17975_v23 = vpop.f32.mrb[252].mxu0  ;;  %25828 = vmatprep.mubr.msk.f32.mxu1 %vm27216_vm1, %v31354_v22  ;;  %25833 = vmatprep.mubr.msk.f32.mxu0 %vm27216_vm1, %v31354_v22  ;;  %v26960_v9 = vunpack.i.h.bf16 %v26958_v47 }
0x1003   :  { %v18005_v21 = vsel %vm288_vm4, %v17897_v31, 0.0  ;;  %v25790_v41 = vpop.f32.mrb[241].mxu1  ;;  %v25795_v59 = vpop.f32.mrb[253].mxu0  ;;  %25836 = vmatprep.subr.mxu1 %v31354_v22  ;;  %25841 = vmatprep.subr.mxu0 %v31354_v22  ;;  %v18007_v57 = vsel %vm288_vm4, %v17975_v23, 0.0  ;;  %v26965_v23 = vunpack.i.h.bf16 %v30231_v53 }
0x1004   :  { %v18006_v43 = vadd.f32 %v18005_v21, %v18004_v58  ;;  %25829 = vmatmul.mubr.msk.f32.vlgmr.msra.gmra.mrb[248].mxu1 %vm288_vm4, %v30194_v1  ;;  %25834 = vmatmul.mubr.msk.f32.vlgmr.msra.gmra.mrb[4].mxu0 %vm288_vm4, %v30194_v1  ;;  %v26973_v1 = vpop.permute.xlu0 %26972  ;;  %v26968_v49 = vpop.permute.xlu1 %26967  ;;  %v26959_v58 = vunpack.i.l.bf16 %v26958_v47 }
0x1005   :  { %25837 = vmatpush3.msra.mxu1 %v26939_v42  ;;  %25842 = vmatpush3.msra.mxu0 %v26940_v17  ;;  %v26964_v17 = vunpack.i.l.bf16 %v30231_v53  ;;  %v26970_v42 = vunpack.i.h.bf16 %v26968_v49  ;;  %v26969_v21 = vunpack.i.l.bf16 %v26968_v49  ;;  %v26975_v59 = vunpack.i.h.bf16 %v26973_v1 }
0x1006   :  { %v18008_v3 = vadd.f32 %v18007_v57, %v18006_v43  ;;  %25838 = vmatprep.mubr.msk.f32.mxu1 %vm27216_vm1, %v31354_v22  ;;  %25843 = vmatprep.mubr.msk.f32.mxu0 %vm27216_vm1, %v31354_v22  ;;  %v26974_v43 = vunpack.i.l.bf16 %v26973_v1 }
0x1007   :  { %25846 = vmatprep.subr.mxu1 %v31354_v22  ;;  %25851 = vmatprep.subr.mxu0 %v31354_v22 }
0x1008   :  { %25839 = vmatmul.mubr.msk.f32.vlgmr.msra.gmra.mrb[250].mxu1 %vm288_vm4, %v18008_v3  ;;  %25844 = vmatmul.mubr.msk.f32.vlgmr.msra.gmra.mrb[6].mxu0 %vm288_vm4, %v18008_v3  ;;  %v26983_v39 = vpop.permute.xlu0 %26982  ;;  %v26978_v30 = vpop.permute.xlu1 %26977 }
0x1009   :  { %25847 = vmatpush3.msra.mxu1 %v26944_v13  ;;  %25852 = vmatpush3.msra.mxu0 %v26945_v55  ;;  %v26980_v53 = vunpack.i.h.bf16 %v26978_v30  ;;  %v26979_v57 = vunpack.i.l.bf16 %v26978_v30  ;;  %v26984_v55 = vunpack.i.l.bf16 %v26983_v39 }
0x100a   :  { %25848 = vmatprep.mubr.msk.f32.mxu1 %vm27216_vm1, %v31354_v22  ;;  %25853 = vmatprep.mubr.msk.f32.mxu0 %vm27216_vm1, %v31354_v22 }
0x100b   :  { %25856 = vmatprep.subr.mxu1 %v31354_v22  ;;  %25861 = vmatprep.subr.mxu0 %v31354_v22 }
0x100c   :  { %25849 = vmatmul.mubr.msk.f32.vlgmr.msra.gmra.mrb[252].mxu1 %vm288_vm4, %v18008_v3  ;;  %25854 = vmatmul.mubr.msk.f32.vlgmr.msra.gmra.mrb[8].mxu0 %vm288_vm4, %v18008_v3  ;;  %v26993_v52 = vpop.permute.xlu0 %26992  ;;  %v26988_v31 = vpop.permute.xlu1 %26987 }
0x100d   :  { %25857 = vmatpush3.msra.mxu1 %v26949_v48  ;;  %25862 = vmatpush3.msra.mxu0 %v26950_v46  ;;  %v26990_v1 = vunpack.i.h.bf16 %v26988_v31  ;;  %v26989_v46 = vunpack.i.l.bf16 %v26988_v31  ;;  %v26995_v49 = vunpack.i.h.bf16 %v26993_v52 }
0x100e   :  { %25858 = vmatprep.mubr.msk.f32.mxu1 %vm27216_vm1, %v31354_v22  ;;  %25863 = vmatprep.mubr.msk.f32.mxu0 %vm27216_vm1, %v31354_v22 }
0x100f   :  { %25866 = vmatprep.subr.mxu1 %v31354_v22  ;;  %25871 = vmatprep.subr.mxu0 %v31354_v22 }
0x1010   :  { %25859 = vmatmul.mubr.msk.f32.vlgmr.msra.gmra.mrb[254].mxu1 %vm288_vm4, %v18008_v3  ;;  %25864 = vmatmul.mubr.msk.f32.vlgmr.msra.gmra.mrb[10].mxu0 %vm288_vm4, %v18008_v3  ;;  %v27003_v41 = vpop.permute.xlu0 %27002  ;;  %v26998_v47 = vpop.permute.xlu1 %26997 }
0x1011   :  { %25867 = vmatpush3.msra.mxu1 %v26954_v4  ;;  %25872 = vmatpush3.msra.mxu0 %v26955_v36  ;;  %v26994_v36 = vunpack.i.l.bf16 %v26993_v52  ;;  %v27000_v4 = vunpack.i.h.bf16 %v26998_v47  ;;  %v27005_v52 = vunpack.i.h.bf16 %v27003_v41 }
0x1012   :  { %25868 = vmatprep.mubr.msk.f32.mxu1 %vm27216_vm1, %v31354_v22  ;;  %25873 = vmatprep.mubr.msk.f32.mxu0 %vm27216_vm1, %v31354_v22 }
0x1013   :  { %25876 = vmatprep.subr.mxu1 %v31354_v22  ;;  %25881 = vmatprep.subr.mxu0 %v31354_v22 }
0x1014   :  { %25869 = vmatmul.mubr.msk.f32.vlgmr.msra.gmra.mrb[0].mxu1 %vm288_vm4, %v18008_v3  ;;  %25874 = vmatmul.mubr.msk.f32.vlgmr.msra.gmra.mrb[12].mxu0 %vm288_vm4, %v18008_v3  ;;  %v26985_v3 = vunpack.i.h.bf16 %v26983_v39  ;;  %v27013_v13 = vpop.permute.xlu0 %27012  ;;  %v27008_v48 = vpop.permute.xlu1 %27007  ;;  %v26999_v39 = vunpack.i.l.bf16 %v26998_v47 }
0x1015   :  { %25878 = vmatprep.mubr.msk.f32.mxu1 %vm27216_vm1, %v31354_v22  ;;  %25883 = vmatprep.mubr.msk.f32.mxu0 %vm27216_vm1, %v31354_v22  ;;  %v27010_v31 = vunpack.i.h.bf16 %v27008_v48 }
0x1018   :  { %25877 = vmatpush3.xpose.msk.msra.mxu1 %vm288_vm4, %v26959_v58  ;;  %25882 = vmatpush3.xpose.msk.msra.mxu0 %vm288_vm4, %v26960_v9  ;;  %v27023_v30 = vpop.permute.xlu0 %27022  ;;  %v27004_v9 = vunpack.i.l.bf16 %v27003_v41  ;;  %v27018_v58 = vpop.permute.xlu1 %27017 }
0x1019   :  { %25886 = vmatprep.subr.mxu1 %v31354_v22  ;;  %25891 = vmatprep.subr.mxu0 %v31354_v22  ;;  %v27020_v41 = vunpack.i.h.bf16 %v27018_v58  ;;  %v27025_v47 = vunpack.i.h.bf16 %v27023_v30 }
0x101b   :  { %25879 = vmatmul.mubr.msk.f32.vlgmr.msra.gmra.mrb[2].mxu1 %vm288_vm4, %v26964_v17  ;;  %25884 = vmatmul.mubr.msk.f32.vlgmr.msra.gmra.mrb[14].mxu0 %vm288_vm4, %v26965_v23  ;;  %v27009_v23 = vunpack.i.l.bf16 %v27008_v48  ;;  %v27015_v17 = vunpack.i.h.bf16 %v27013_v13 }
0x101c   :  { %25887 = vmatpush3.xpose.msk.msra.mxu1 %vm288_vm4, %v26969_v21  ;;  %25892 = vmatpush3.xpose.msk.msra.mxu0 %vm288_vm4, %v26970_v42  ;;  %v27014_v42 = vunpack.i.l.bf16 %v27013_v13  ;;  %v20276_v21 = vpop.permute.xlu0 %20275 }
0x101d   :  { %25888 = vmatprep.mubr.msk.f32.mxu1 %vm27216_vm1, %v31354_v22  ;;  %25893 = vmatprep.mubr.msk.f32.mxu0 %vm27216_vm1, %v31354_v22 }
0x101e   :  { %25896 = vmatprep.subr.mxu1 %v31354_v22  ;;  %25901 = vmatprep.subr.mxu0 %v31354_v22 }
0x101f   :  { %25889 = vmatmul.mubr.msk.f32.vlgmr.msra.gmra.mrb[4].mxu1 %vm288_vm4, %v26974_v43  ;;  %25894 = vmatmul.mubr.msk.f32.vlgmr.msra.gmra.mrb[16].mxu0 %vm288_vm4, %v26975_v59  ;;  %v27019_v59 = vunpack.i.l.bf16 %v27018_v58  ;;  %v27028_v43 = vpop.permute.xlu1 %27027 }
0x1020   :  { %25897 = vmatpush3.xpose.msk.msra.mxu1 %vm288_vm4, %v26979_v57  ;;  %25902 = vmatpush3.xpose.msk.msra.mxu0 %vm288_vm4, %v26980_v53  ;;  %v27024_v53 = vunpack.i.l.bf16 %v27023_v30  ;;  %v27030_v57 = vunpack.i.h.bf16 %v27028_v43 }
0x1021   :  { %25898 = vmatprep.mubr.msk.f32.mxu1 %vm27216_vm1, %v31354_v22  ;;  %25903 = vmatprep.mubr.msk.f32.mxu0 %vm27216_vm1, %v31354_v22 }
0x1022   :  { %25906 = vmatprep.subr.mxu1 %v31354_v22  ;;  %25911 = vmatprep.subr.mxu0 %v31354_v22 }
0x1023   :  { %25899 = vmatmul.mubr.msk.f32.vlgmr.msra.gmra.mrb[6].mxu1 %vm288_vm4, %v26984_v55  ;;  %25904 = vmatmul.mubr.msk.f32.vlgmr.msra.gmra.mrb[18].mxu0 %vm288_vm4, %v26985_v3  ;;  %v27029_v3 = vunpack.i.l.bf16 %v27028_v43  ;;  %v27033_v55 = vpop.permute.xlu0 %27032  ;;  %v20354_v13 = vpop.permute.xlu1 %20353 }
0x1024   :  { %25907 = vmatpush3.xpose.msk.msra.mxu1 %vm288_vm4, %v26989_v46  ;;  %25912 = vmatpush3.xpose.msk.msra.mxu0 %vm288_vm4, %v26990_v1  ;;  %v27035_v1 = vunpack.i.h.bf16 %v27033_v55  ;;  %v27034_v46 = vunpack.i.l.bf16 %v27033_v55 }
0x1025   :  { %25908 = vmatprep.mubr.msk.f32.mxu1 %vm27216_vm1, %v31354_v22  ;;  %25913 = vmatprep.mubr.msk.f32.mxu0 %vm27216_vm1, %v31354_v22 }
0x1026   :  { %25916 = vmatprep.subr.mxu1 %v31354_v22  ;;  %25921 = vmatprep.subr.mxu0 %v31354_v22 }
0x1027   :  { %25909 = vmatmul.mubr.msk.f32.vlgmr.msra.gmra.mrb[8].mxu1 %vm288_vm4, %v26994_v36  ;;  %25914 = vmatmul.mubr.msk.f32.vlgmr.msra.gmra.mrb[20].mxu0 %vm288_vm4, %v26995_v49 }
0x1028   :  { %25917 = vmatpush3.xpose.msk.msra.mxu1 %vm288_vm4, %v26999_v39  ;;  %25922 = vmatpush3.xpose.msk.msra.mxu0 %vm288_vm4, %v27000_v4 }
0x1029   :  { %25918 = vmatprep.mubr.msk.f32.mxu1 %vm27216_vm1, %v31354_v22  ;;  %25923 = vmatprep.mubr.msk.f32.mxu0 %vm27216_vm1, %v31354_v22 }
0x102a   :  { %25926 = vmatprep.subr.mxu1 %v31354_v22  ;;  %25931 = vmatprep.subr.mxu0 %v31354_v22 }
0x102b   :  { %25919 = vmatmul.mubr.msk.f32.vlgmr.msra.gmra.mrb[10].mxu1 %vm288_vm4, %v27004_v9  ;;  %25924 = vmatmul.mubr.msk.f32.vlgmr.msra.gmra.mrb[22].mxu0 %vm288_vm4, %v27005_v52 }
0x102c   :  { %25927 = vmatpush3.xpose.msk.msra.mxu1 %vm288_vm4, %v27009_v23  ;;  %25932 = vmatpush3.xpose.msk.msra.mxu0 %vm288_vm4, %v27010_v31 }
0x102d   :  { %25928 = vmatprep.mubr.msk.f32.mxu1 %vm27216_vm1, %v31354_v22  ;;  %25933 = vmatprep.mubr.msk.f32.mxu0 %vm27216_vm1, %v31354_v22 }
0x102e   :  { %25936 = vmatprep.subr.mxu1 %v31354_v22  ;;  %25941 = vmatprep.subr.mxu0 %v31354_v22 }
0x102f   :  { %25929 = vmatmul.mubr.msk.f32.vlgmr.msra.gmra.mrb[12].mxu1 %vm288_vm4, %v27014_v42  ;;  %25934 = vmatmul.mubr.msk.f32.vlgmr.msra.gmra.mrb[24].mxu0 %vm288_vm4, %v27015_v17 }
0x1030   :  { %25937 = vmatpush3.xpose.msk.msra.mxu1 %vm288_vm4, %v27019_v59  ;;  %25942 = vmatpush3.xpose.msk.msra.mxu0 %vm288_vm4, %v27020_v41 }
0x1031   :  { %25938 = vmatprep.mubr.msk.f32.mxu1 %vm27216_vm1, %v31354_v22  ;;  %25943 = vmatprep.mubr.msk.f32.mxu0 %vm27216_vm1, %v31354_v22 }
0x1032   :  { %25946 = vmatprep.subr.mxu1 %v31354_v22  ;;  %25951 = vmatprep.subr.mxu0 %v31354_v22 }
0x1033   :  { %25939 = vmatmul.mubr.msk.f32.vlgmr.msra.gmra.mrb[14].mxu1 %vm288_vm4, %v27024_v53  ;;  %25944 = vmatmul.mubr.msk.f32.vlgmr.msra.gmra.mrb[26].mxu0 %vm288_vm4, %v27025_v47 }
0x1034   :  { %25947 = vmatpush3.xpose.msk.msra.mxu1 %vm288_vm4, %v27029_v3  ;;  %25952 = vmatpush3.xpose.msk.msra.mxu0 %vm288_vm4, %v27030_v57 }
0x1035   :  { %25948 = vmatprep.mubr.msk.f32.mxu1 %vm27216_vm1, %v31354_v22  ;;  %25953 = vmatprep.mubr.msk.f32.mxu0 %vm27216_vm1, %v31354_v22 }
0x1036   :  { %25956 = vmatprep.subr.mxu1 %v31354_v22  ;;  %25961 = vmatprep.subr.mxu0 %v31354_v22 }
0x1037   :  { %25949 = vmatmul.mubr.msk.f32.vlgmr.msra.gmra.mrb[16].mxu1 %vm288_vm4, %v20276_v21  ;;  %25954 = vmatmul.mubr.msk.f32.vlgmr.msra.gmra.mrb[28].mxu0 %vm288_vm4, %v20354_v13 }
0x1038   :  { %25957 = vmatpush3.msra.mxu1 %v27034_v46  ;;  %25962 = vmatpush3.msra.mxu0 %v27035_v1 }
0x1039   :  { %25958 = vmatprep.mubr.msk.f32.mxu1 %vm27216_vm1, %v31354_v22  ;;  %25963 = vmatprep.mubr.msk.f32.mxu0 %vm27216_vm1, %v31354_v22 }
0x103a   :  { %25966 = vmatprep.subr.mxu1 %v31354_v22  ;;  %25971 = vmatprep.subr.mxu0 %v31354_v22 }
0x10cb   :  { %v18081_v48 = vpop.f32.mrb[242].mxu1  ;;  %v18154_v49 = vpop.f32.mrb[254].mxu0 }
0x10cc   :  { %21717 = vrot.lane.b32.xlu1 %v18154_v49, %s27229_s25  ;;  %v25805_v36 = vpop.f32.mrb[255].mxu0  ;;  %21715 = vrot.lane.b32.xlu0 %v18081_v48, %s27229_s25  ;;  %v25800_v4 = vpop.f32.mrb[243].mxu1 }
0x10cf   :  { %v18227_v39 = vpop.f32.mrb[244].mxu1  ;;  %v18300_v30 = vpop.f32.mrb[0].mxu0 }
0x10d0   :  { %21721 = vrot.lane.b32.xlu1 %v18300_v30, %s27229_s25  ;;  %v25815_v52 = vpop.f32.mrb[1].mxu0  ;;  %21719 = vrot.lane.b32.xlu0 %v18227_v39, %s27229_s25  ;;  %v25810_v9 = vpop.f32.mrb[245].mxu1 }
0x10d3   :  { %v18373_v58 = vpop.f32.mrb[246].mxu1  ;;  %v18446_v31 = vpop.f32.mrb[2].mxu0 }
0x10d4   :  { %21725 = vrot.lane.b32.xlu1 %v18446_v31, %s27229_s25  ;;  %v25825_v23 = vpop.f32.mrb[3].mxu0  ;;  %21723 = vrot.lane.b32.xlu0 %v18373_v58, %s27229_s25  ;;  %v25820_v17 = vpop.f32.mrb[247].mxu1 }
0x10d7   :  { %v18519_v42 = vpop.f32.mrb[248].mxu1  ;;  %v18592_v21 = vpop.f32.mrb[4].mxu0 }
0x10d8   :  { %21729 = vrot.lane.b32.xlu1 %v18592_v21, %s27229_s25  ;;  %v25835_v41 = vpop.f32.mrb[5].mxu0  ;;  %21727 = vrot.lane.b32.xlu0 %v18519_v42, %s27229_s25  ;;  %v25830_v59 = vpop.f32.mrb[249].mxu1 }
0x10db   :  { %v18668_v43 = vpop.f32.mrb[250].mxu1  ;;  %v18741_v47 = vpop.f32.mrb[6].mxu0 }
0x10dc   :  { %21733 = vrot.lane.b32.xlu1 %v18741_v47, %s27229_s25  ;;  %v25845_v53 = vpop.f32.mrb[7].mxu0  ;;  %21731 = vrot.lane.b32.xlu0 %v18668_v43, %s27229_s25  ;;  %v25840_v57 = vpop.f32.mrb[251].mxu1 }
0x10df   :  { %v18814_v3 = vpop.f32.mrb[252].mxu1  ;;  %v18887_v55 = vpop.f32.mrb[8].mxu0 }
0x10e0   :  { %21737 = vrot.lane.b32.xlu1 %v18887_v55, %s27229_s25  ;;  %v25855_v13 = vpop.f32.mrb[9].mxu0  ;;  %21735 = vrot.lane.b32.xlu0 %v18814_v3, %s27229_s25  ;;  %v25850_v1 = vpop.f32.mrb[253].mxu1 }
0x10e3   :  { %v18960_v46 = vpop.f32.mrb[254].mxu1  ;;  %v19033_v48 = vpop.f32.mrb[10].mxu0 }
0x10e4   :  { %21741 = vrot.lane.b32.xlu1 %v19033_v48, %s27229_s25  ;;  %v25865_v49 = vpop.f32.mrb[11].mxu0  ;;  %21739 = vrot.lane.b32.xlu0 %v18960_v46, %s27229_s25  ;;  %v25860_v36 = vpop.f32.mrb[255].mxu1 }
0x10e7   :  { %v19106_v4 = vpop.f32.mrb[0].mxu1  ;;  %v19179_v39 = vpop.f32.mrb[12].mxu0 }
0x10e8   :  { %21745 = vrot.lane.b32.xlu1 %v19179_v39, %s27229_s25  ;;  %v25875_v30 = vpop.f32.mrb[13].mxu0  ;;  %21743 = vrot.lane.b32.xlu0 %v19106_v4, %s27229_s25  ;;  %v25870_v52 = vpop.f32.mrb[1].mxu1 }
0x10ee   :  { %v19257_v9 = vpop.f32.mrb[2].mxu1  ;;  %v19335_v58 = vpop.f32.mrb[14].mxu0 }
0x10ef   :  { %v20431_v31 = vsel %vm288_vm4, %v19257_v9, 0.0  ;;  %v20432_v23 = vsel %vm288_vm4, %v19335_v58, 0.0  ;;  %v25880_v17 = vpop.f32.mrb[3].mxu1  ;;  %v25885_v42 = vpop.f32.mrb[15].mxu0 }
0x10f0   :  { %v20433_v21 = vadd.f32 %v20432_v23, %v20431_v31  ;;  %v27038_v23 = vpop.permute.xlu1 %27037 }
0x10f2   :  { %v19413_v41 = vpop.f32.mrb[4].mxu1  ;;  %v19491_v59 = vpop.f32.mrb[16].mxu0 }
0x10f3   :  { %v20434_v43 = vsel %vm288_vm4, %v19413_v41, 0.0  ;;  %v25890_v47 = vpop.f32.mrb[5].mxu1  ;;  %v25895_v53 = vpop.f32.mrb[17].mxu0  ;;  %v20436_v3 = vsel %vm288_vm4, %v19491_v59, 0.0 }
0x10f4   :  { %v20435_v57 = vadd.f32 %v20434_v43, %v20433_v21  ;;  %v27040_v43 = vunpack.i.h.bf16 %v27038_v23  ;;  %v27039_v47 = vunpack.i.l.bf16 %v27038_v23 }
0x10f6   :  { %v20437_v55 = vadd.f32 %v20436_v3, %v20435_v57  ;;  %v19569_v13 = vpop.f32.mrb[6].mxu1  ;;  %v19647_v1 = vpop.f32.mrb[18].mxu0 }
0x10f7   :  { %v20438_v46 = vsel %vm288_vm4, %v19569_v13, 0.0  ;;  %v25900_v48 = vpop.f32.mrb[7].mxu1  ;;  %v25905_v49 = vpop.f32.mrb[19].mxu0  ;;  %v20440_v4 = vsel %vm288_vm4, %v19647_v1, 0.0 }
0x10f8   :  { %v20439_v36 = vadd.f32 %v20438_v46, %v20437_v55  ;;  %v27043_v13 = vpop.permute.xlu0 %27042 }
0x10f9   :  { %v27045_v49 = vunpack.i.h.bf16 %v27043_v13 }
0x10fa   :  { %v20441_v39 = vadd.f32 %v20440_v4, %v20439_v36  ;;  %v19725_v30 = vpop.f32.mrb[8].mxu1  ;;  %v19803_v52 = vpop.f32.mrb[20].mxu0  ;;  %v27044_v36 = vunpack.i.l.bf16 %v27043_v13 }
0x10fb   :  { %v20442_v9 = vsel %vm288_vm4, %v19725_v30, 0.0  ;;  %v25910_v58 = vpop.f32.mrb[9].mxu1  ;;  %v25915_v31 = vpop.f32.mrb[21].mxu0  ;;  %v20444_v42 = vsel %vm288_vm4, %v19803_v52, 0.0 }
0x10fc   :  { %v20443_v17 = vadd.f32 %v20442_v9, %v20441_v39  ;;  %v27048_v52 = vpop.permute.xlu1 %27047 }
0x10fe   :  { %v30398_v21 = vadd.f32 %v20444_v42, %v20443_v17  ;;  %v19881_v41 = vpop.f32.mrb[10].mxu1  ;;  %v19959_v59 = vpop.f32.mrb[22].mxu0  ;;  %v27050_v42 = vunpack.i.h.bf16 %v27048_v52 }
0x10ff   :  { %v20446_v53 = vsel %vm288_vm4, %v19881_v41, 0.0  ;;  %v20447_v57 = vsel %vm288_vm4, %v19959_v59, 0.0  ;;  %v25920_v3 = vpop.f32.mrb[11].mxu1  ;;  %v25925_v55 = vpop.f32.mrb[23].mxu0  ;;  %v27049_v41 = vunpack.i.l.bf16 %v27048_v52 }
0x1100   :  { %v20448_v1 = vadd.f32 %v20447_v57, %v20446_v53  ;;  %25959 = vmatmul.mubr.msk.f32.vlgmr.msra.gmra.mrb[18].mxu1 %vm288_vm4, %v30398_v21  ;;  %25964 = vmatmul.mubr.msk.f32.vlgmr.msra.gmra.mrb[30].mxu0 %vm288_vm4, %v30398_v21  ;;  %v27053_v53 = vpop.permute.xlu0 %27052 }
0x1101   :  { %25967 = vmatpush3.msra.mxu1 %v27039_v47  ;;  %25972 = vmatpush3.msra.mxu0 %v27040_v43 }
0x1102   :  { %v20037_v46 = vpop.f32.mrb[12].mxu1  ;;  %v20115_v48 = vpop.f32.mrb[24].mxu0  ;;  %25968 = vmatprep.mubr.msk.f32.mxu1 %vm27216_vm1, %v31354_v22  ;;  %25973 = vmatprep.mubr.msk.f32.mxu0 %vm27216_vm1, %v31354_v22 }
0x1103   :  { %v20449_v4 = vsel %vm288_vm4, %v20037_v46, 0.0  ;;  %v25930_v39 = vpop.f32.mrb[13].mxu1  ;;  %v25935_v30 = vpop.f32.mrb[25].mxu0  ;;  %25976 = vmatprep.subr.mxu1 %v31354_v22  ;;  %25981 = vmatprep.subr.mxu0 %v31354_v22  ;;  %v20451_v58 = vsel %vm288_vm4, %v20115_v48, 0.0  ;;  %v27055_v46 = vunpack.i.h.bf16 %v27053_v53  ;;  %v27054_v48 = vunpack.i.l.bf16 %v27053_v53  ;;  %v23741_v53 = vld [vmem:[%s31343_s2 + $0x30] sm:$0xff] }
0x1104   :  { %v20450_v9 = vadd.f32 %v20449_v4, %v20448_v1  ;;  %25969 = vmatmul.mubr.msk.f32.vlgmr.msra.gmra.mrb[20].mxu1 %vm288_vm4, %v30398_v21  ;;  %25974 = vmatmul.mubr.msk.f32.vlgmr.msra.gmra.mrb[32].mxu0 %vm288_vm4, %v30398_v21  ;;  %v27058_v39 = vpop.permute.xlu1 %27057 }
0x1105   :  { %25977 = vmatpush3.msra.mxu1 %v27044_v36  ;;  %25982 = vmatpush3.msra.mxu0 %v27045_v49 }
0x1106   :  { %v20452_v31 = vadd.f32 %v20451_v58, %v20450_v9  ;;  %v20193_v23 = vpop.f32.mrb[14].mxu1  ;;  %v20271_v17 = vpop.f32.mrb[26].mxu0  ;;  %25978 = vmatprep.mubr.msk.f32.mxu1 %vm27216_vm1, %v31354_v22  ;;  %25983 = vmatprep.mubr.msk.f32.mxu0 %vm27216_vm1, %v31354_v22  ;;  %v27060_v58 = vunpack.i.h.bf16 %v27058_v39 }
0x1107   :  { %v20453_v59 = vsel %vm288_vm4, %v20193_v23, 0.0  ;;  %v25940_v43 = vpop.f32.mrb[15].mxu1  ;;  %v25945_v47 = vpop.f32.mrb[27].mxu0  ;;  %25986 = vmatprep.subr.mxu1 %v31354_v22  ;;  %25991 = vmatprep.subr.mxu0 %v31354_v22  ;;  %v20455_v3 = vsel %vm288_vm4, %v20271_v17, 0.0 }
0x1108   :  { %v20454_v57 = vadd.f32 %v20453_v59, %v20452_v31  ;;  %25979 = vmatmul.mubr.msk.f32.vlgmr.msra.gmra.mrb[22].mxu1 %vm288_vm4, %v30398_v21  ;;  %25984 = vmatmul.mubr.msk.f32.vlgmr.msra.gmra.mrb[34].mxu0 %vm288_vm4, %v30398_v21  ;;  %v27059_v31 = vunpack.i.l.bf16 %v27058_v39  ;;  %v27063_v23 = vpop.permute.xlu0 %27062  ;;  %v23739_v43 = vld [vmem:[%s31343_s2 + $0x20] sm:$0xff]  ;;  %v23740_v47 = vld [vmem:[%s31343_s2 + $0x28] sm:$0xff] }
0x1109   :  { %25987 = vmatpush3.msra.mxu1 %v27049_v41  ;;  %25992 = vmatpush3.msra.mxu0 %v27050_v42  ;;  %v27064_v17 = vunpack.i.l.bf16 %v27063_v23  ;;  %v27068_v42 = vpop.permute.xlu1 %27067 }
0x110a   :  { %v20456_v55 = vadd.f32 %v20455_v3, %v20454_v57  ;;  %v20349_v13 = vpop.f32.mrb[16].mxu1  ;;  %v20427_v1 = vpop.f32.mrb[28].mxu0  ;;  %25988 = vmatprep.mubr.msk.f32.mxu1 %vm27216_vm1, %v31354_v22  ;;  %25993 = vmatprep.mubr.msk.f32.mxu0 %vm27216_vm1, %v31354_v22  ;;  %v27070_v41 = vunpack.i.h.bf16 %v27068_v42  ;;  %v27069_v59 = vunpack.i.l.bf16 %v27068_v42  ;;  %v26220_v57 = vpack.c.bf16 %v23740_v47, %v23739_v43  ;;  %v23742_v3 = vld [vmem:[%s31343_s2 + $0x38] sm:$0xff] }
0x110b   :  { %v20457_v49 = vsel %vm288_vm4, %v20349_v13, 0.0  ;;  %v25950_v36 = vpop.f32.mrb[17].mxu1  ;;  %v25955_v4 = vpop.f32.mrb[29].mxu0  ;;  %25996 = vmatprep.subr.mxu1 %v31354_v22  ;;  %26001 = vmatprep.subr.mxu0 %v31354_v22  ;;  %v20459_v52 = vsel %vm288_vm4, %v20427_v1, 0.0 }
0x110c   :  { %v20458_v30 = vadd.f32 %v20457_v49, %v20456_v55  ;;  %25989 = vmatmul.mubr.msk.f32.vlgmr.msra.gmra.mrb[24].mxu1 %vm288_vm4, %v30398_v21  ;;  %25994 = vmatmul.mubr.msk.f32.vlgmr.msra.gmra.mrb[36].mxu0 %vm288_vm4, %v30398_v21  ;;  %v27065_v21 = vunpack.i.h.bf16 %v27063_v23  ;;  %v26224_v55 = vpack.c.bf16 %v23742_v3, %v23741_v53  ;;  %v21652_v53 = vpop.permute.xlu0 %21651 }
0x110d   :  { %25997 = vmatpush3.msra.mxu1 %v27054_v48  ;;  %26002 = vmatpush3.msra.mxu0 %v27055_v46  ;;  %v21654_v47 = vpop.permute.xlu1 %21653  ;;  %v21827_v56 = vsel %vm288_vm4, %v29938_v16, %v21652_v53 }
0x110e   :  { %v20460_v9 = vadd.f32 %v20459_v52, %v20458_v30  ;;  %25998 = vmatprep.mubr.msk.f32.mxu1 %vm27216_vm1, %v31354_v22  ;;  %26003 = vmatprep.mubr.msk.f32.mxu0 %vm27216_vm1, %v31354_v22  ;;  %v21828_v15 = vsel %vm288_vm4, %v29940_v28, %v21654_v47 }
0x110f   :  { %26006 = vmatprep.subr.mxu1 %v31354_v22  ;;  %26011 = vmatprep.subr.mxu0 %v31354_v22 }
0x1110   :  { %25999 = vmatmul.mubr.msk.f32.vlgmr.msra.gmra.mrb[26].mxu1 %vm288_vm4, %v20460_v9  ;;  %26004 = vmatmul.mubr.msk.f32.vlgmr.msra.gmra.mrb[38].mxu0 %vm288_vm4, %v20460_v9 }
0x1111   :  { %26007 = vmatpush3.msra.mxu1 %v27059_v31  ;;  %26012 = vmatpush3.msra.mxu0 %v27060_v58 }
0x1112   :  { %26008 = vmatprep.mubr.msk.f32.mxu1 %vm27216_vm1, %v31354_v22  ;;  %26013 = vmatprep.mubr.msk.f32.mxu0 %vm27216_vm1, %v31354_v22 }
0x1113   :  { %26016 = vmatprep.subr.mxu1 %v31354_v22  ;;  %26021 = vmatprep.subr.mxu0 %v31354_v22 }
0x1114   :  { %26009 = vmatmul.mubr.msk.f32.vlgmr.msra.gmra.mrb[28].mxu1 %vm288_vm4, %v20460_v9  ;;  %26014 = vmatmul.mubr.msk.f32.vlgmr.msra.gmra.mrb[40].mxu0 %vm288_vm4, %v20460_v9 }
0x1115   :  { %26017 = vmatpush3.msra.mxu1 %v27064_v17  ;;  %26022 = vmatpush3.msra.mxu0 %v27065_v21 }
0x1116   :  { %26018 = vmatprep.mubr.msk.f32.mxu1 %vm27216_vm1, %v31354_v22  ;;  %26023 = vmatprep.mubr.msk.f32.mxu0 %vm27216_vm1, %v31354_v22 }
0x1117   :  { %26026 = vmatprep.subr.mxu1 %v31354_v22  ;;  %26031 = vmatprep.subr.mxu0 %v31354_v22 }
0x1118   :  { %26019 = vmatmul.mubr.msk.f32.vlgmr.msra.gmra.mrb[30].mxu1 %vm288_vm4, %v20460_v9  ;;  %26024 = vmatmul.mubr.msk.f32.vlgmr.msra.gmra.mrb[42].mxu0 %vm288_vm4, %v20460_v9 }
0x1119   :  { %26027 = vmatpush3.msra.mxu1 %v27069_v59  ;;  %26032 = vmatpush3.msra.mxu0 %v27070_v41 }
0x111a   :  { %26028 = vmatprep.mubr.msk.f32.mxu1 %vm27216_vm1, %v31354_v22  ;;  %26033 = vmatprep.mubr.msk.f32.mxu0 %vm27216_vm1, %v31354_v22 }
0x111b   :  { %26221 = vmatprep.subr.bf16.mxu1 %v26220_v57 }
0x111c   :  { %26029 = vmatmul.mubr.msk.f32.vlgmr.msra.gmra.mrb[32].mxu1 %vm288_vm4, %v20460_v9  ;;  %26034 = vmatmul.mubr.msk.f32.vlgmr.msra.gmra.mrb[44].mxu0 %vm288_vm4, %v20460_v9 }
0x111d   :  { %26223 = vmatpush3.bf16.msra.mxu1 %v26220_v57 }
0x111e   :  { %26225 = vmatprep.subr.bf16.mxu1 %v26224_v55 }
0x1121   :  { %26227 = vmatpush3.bf16.msra.mxu1 %v26224_v55 }
0x11d3   :  { %v20533_v13 = vpop.f32.mrb[18].mxu1  ;;  %v20606_v1 = vpop.f32.mrb[30].mxu0 }
0x11d4   :  { %21781 = vrot.lane.b32.xlu1 %v20606_v1, %s27230_s10  ;;  %v25965_v46 = vpop.f32.mrb[31].mxu0  ;;  %21779 = vrot.lane.b32.xlu0 %v20533_v13, %s27230_s10  ;;  %v25960_v48 = vpop.f32.mrb[19].mxu1 }
0x11d7   :  { %v20679_v49 = vpop.f32.mrb[20].mxu1  ;;  %v20752_v36 = vpop.f32.mrb[32].mxu0 }
0x11d8   :  { %21785 = vrot.lane.b32.xlu1 %v20752_v36, %s27230_s10  ;;  %v25975_v4 = vpop.f32.mrb[33].mxu0  ;;  %21783 = vrot.lane.b32.xlu0 %v20679_v49, %s27230_s10  ;;  %v25970_v39 = vpop.f32.mrb[21].mxu1 }
0x11d9   :  { %v21658_v36 = vpop.permute.xlu1 %21657  ;;  %v21656_v4 = vpop.permute.xlu0 %21655 }
0x11da   :  { %v21830_v54 = vsel %vm288_vm4, %v29944_v8, %v21658_v36  ;;  %v21829_v28 = vsel %vm288_vm4, %v29942_v6, %v21656_v4 }
0x11db   :  { %v20825_v30 = vpop.f32.mrb[22].mxu1  ;;  %v20898_v52 = vpop.f32.mrb[34].mxu0 }
0x11dc   :  { %21789 = vrot.lane.b32.xlu1 %v20898_v52, %s27230_s10  ;;  %v25985_v9 = vpop.f32.mrb[35].mxu0  ;;  %21787 = vrot.lane.b32.xlu0 %v20825_v30, %s27230_s10  ;;  %v25980_v58 = vpop.f32.mrb[23].mxu1 }
0x11dd   :  { %v21662_v58 = vpop.permute.xlu1 %21661 }
0x11df   :  { %v20971_v31 = vpop.f32.mrb[24].mxu1  ;;  %v21044_v23 = vpop.f32.mrb[36].mxu0 }
0x11e0   :  { %21793 = vrot.lane.b32.xlu1 %v21044_v23, %s27230_s10  ;;  %v25995_v21 = vpop.f32.mrb[37].mxu0  ;;  %21791 = vrot.lane.b32.xlu0 %v20971_v31, %s27230_s10  ;;  %v25990_v17 = vpop.f32.mrb[25].mxu1 }
0x11e1   :  { %v21660_v31 = vpop.permute.xlu0 %21659  ;;  %v21666_v23 = vpop.permute.xlu1 %21665 }
0x11e3   :  { %v21120_v42 = vpop.f32.mrb[26].mxu1  ;;  %v21193_v41 = vpop.f32.mrb[38].mxu0 }
0x11e4   :  { %21797 = vrot.lane.b32.xlu1 %v21193_v41, %s27230_s10  ;;  %v26005_v59 = vpop.f32.mrb[39].mxu0  ;;  %21795 = vrot.lane.b32.xlu0 %v21120_v42, %s27230_s10  ;;  %v26000_v43 = vpop.f32.mrb[27].mxu1 }
0x11e5   :  { %v21664_v21 = vpop.permute.xlu0 %21663  ;;  %v30500_v17 = vpop.permute.xlu1 %21669 }
0x11e7   :  { %v21266_v57 = vpop.f32.mrb[28].mxu1  ;;  %v21339_v3 = vpop.f32.mrb[40].mxu0 }
0x11e8   :  { %21801 = vrot.lane.b32.xlu1 %v21339_v3, %s27230_s10  ;;  %v26015_v55 = vpop.f32.mrb[41].mxu0  ;;  %21799 = vrot.lane.b32.xlu0 %v21266_v57, %s27230_s10  ;;  %v26010_v13 = vpop.f32.mrb[29].mxu1 }
0x11e9   :  { %v30502_v42 = vpop.permute.xlu0 %21667  ;;  %v30504_v41 = vpop.permute.xlu1 %21673 }
0x11eb   :  { %v21412_v1 = vpop.f32.mrb[30].mxu1  ;;  %v21485_v46 = vpop.f32.mrb[42].mxu0 }
0x11ec   :  { %21805 = vrot.lane.b32.xlu1 %v21485_v46, %s27230_s10  ;;  %v26025_v48 = vpop.f32.mrb[43].mxu0  ;;  %21803 = vrot.lane.b32.xlu0 %v21412_v1, %s27230_s10  ;;  %v26020_v49 = vpop.f32.mrb[31].mxu1 }
0x11ed   :  { %v30506_v59 = vpop.permute.xlu0 %21671  ;;  %v30508_v43 = vpop.permute.xlu1 %21677 }
0x11ef   :  { %v21558_v39 = vpop.f32.mrb[32].mxu1  ;;  %v21631_v30 = vpop.f32.mrb[44].mxu0 }
0x11f0   :  { %21809 = vrot.lane.b32.xlu1 %v21631_v30, %s27230_s10  ;;  %v26035_v52 = vpop.f32.mrb[45].mxu0  ;;  %21807 = vrot.lane.b32.xlu0 %v21558_v39, %s27230_s10  ;;  %v26030_v9 = vpop.f32.mrb[33].mxu1 }
0x11f1   :  { %v30510_v57 = vpop.permute.xlu0 %21675  ;;  %v30512_v3 = vpop.permute.xlu1 %21681 }
0x11f5   :  { %v30514_v55 = vpop.permute.xlu0 %21679  ;;  %v21718_v13 = vpop.permute.xlu1 %21717 }
0x11f6   :  { %v21844_v34 = vsel %vm10286_vm5, %v21828_v15, %v21718_v13 }
0x11f9   :  { %v21716_v1 = vpop.permute.xlu0 %21715  ;;  %v21722_v46 = vpop.permute.xlu1 %21721 }
0x11fa   :  { %v21843_v5 = vsel %vm10286_vm5, %v21827_v56, %v21716_v1  ;;  %v21846_v15 = vsel %vm10286_vm5, %v21830_v54, %v21722_v46 }
0x11fd   :  { %v21720_v48 = vpop.permute.xlu0 %21719  ;;  %v21726_v49 = vpop.permute.xlu1 %21725 }
0x11fe   :  { %v21845_v56 = vsel %vm10286_vm5, %v21829_v28, %v21720_v48 }
0x1201   :  { %v21724_v39 = vpop.permute.xlu0 %21723  ;;  %v21730_v30 = vpop.permute.xlu1 %21729 }
0x1205   :  { %v21728_v52 = vpop.permute.xlu0 %21727  ;;  %v21734_v9 = vpop.permute.xlu1 %21733 }
0x1209   :  { %v21732_v18 = vpop.permute.xlu0 %21731  ;;  %v21738_v25 = vpop.permute.xlu1 %21737 }
0x120d   :  { %v21736_v51 = vpop.permute.xlu0 %21735  ;;  %v30516_v45 = vpop.permute.xlu1 %21741 }
0x1211   :  { %v30518_v19 = vpop.permute.xlu0 %21739  ;;  %v30520_v22 = vpop.permute.xlu1 %21745 }
0x1215   :  { %v30522_v62 = vpop.permute.xlu0 %21743 }
0x1246   :  { %v21782_v44 = vpop.permute.xlu1 %21781  ;;  %v21780_v26 = vpop.permute.xlu0 %21779 }
0x1247   :  { %v21860_v0 = vsel %vm10303_vm6, %v21844_v34, %v21782_v44  ;;  %v21859_v7 = vsel %vm10303_vm6, %v21843_v5, %v21780_v26  ;;  %v21831_v5 = vsel %vm288_vm4, %v29946_v14, %v21660_v31  ;;  %v21833_v14 = vsel %vm288_vm4, %v29950_v27, %v21664_v21 }
0x1248   :  { %26044 = vmatprep.mubr.msk.f32.mxu1 %vm43_vm0, %v21859_v7  ;;  %v21832_v7 = vsel %vm288_vm4, %v29948_v12, %v21662_v58  ;;  %v21834_v12 = vsel %vm288_vm4, %v29952_v60, %v21666_v23  ;;  %v21849_v4 = vsel %vm10286_vm5, %v21833_v14, %v21728_v52  ;;  %v21836_v60 = vsel %vm288_vm4, %v29956_v33, %v30500_v17 }
0x1249   :  { %26045 = vmatmul.mubr.msk.f32.vlgmr.msra.gmra.mrb[34].mxu1 %vm43_vm0, %v21860_v0  ;;  %v21848_v54 = vsel %vm10286_vm5, %v21832_v7, %v21726_v49  ;;  %v21847_v0 = vsel %vm10286_vm5, %v21831_v5, %v21724_v39  ;;  %v21850_v36 = vsel %vm10286_vm5, %v21834_v12, %v21730_v30  ;;  %v21835_v27 = vsel %vm288_vm4, %v29954_v63, %v30502_v42 }
0x124a   :  { %v21786_v16 = vpop.permute.xlu1 %21785  ;;  %v21784_v47 = vpop.permute.xlu0 %21783  ;;  %v21852_v23 = vsel %vm10286_vm5, %v21836_v60, %v21734_v9  ;;  %v21851_v21 = vsel %vm10286_vm5, %v21835_v27, %v21732_v18  ;;  %v21838_v33 = vsel %vm288_vm4, %v29960_v32, %v30504_v41  ;;  %v21837_v63 = vsel %vm288_vm4, %v29958_v29, %v30506_v59  ;;  %v31378_v60 = vld [vmem:[#allocation3_spill] sm:$0xff] }
0x124b   :  { %v21862_v44 = vsel %vm10303_vm6, %v21846_v15, %v21786_v16  ;;  %v21861_v26 = vsel %vm10303_vm6, %v21845_v56, %v21784_v47  ;;  %v21854_v18 = vsel %vm10286_vm5, %v21838_v33, %v21738_v25  ;;  %v21853_v17 = vsel %vm10286_vm5, %v21837_v63, %v21736_v51  ;;  %v31380_v63 = vld [vmem:[#allocation5_spill] sm:$0xff] }
0x124c   :  { %26047 = vmatprep.mubr.msk.f32.mxu1 %vm43_vm0, %v21861_v26  ;;  %v21840_v32 = vsel %vm288_vm4, %v29964_v11, %v30508_v43  ;;  %v21839_v29 = vsel %vm288_vm4, %v29962_v50, %v30510_v57  ;;  %v21842_v50 = vsel %vm288_vm4, %v29968_v10, %v30512_v3  ;;  %v21841_v11 = vsel %vm288_vm4, %v29966_v37, %v30514_v55 }
0x124d   :  { %26048 = vmatmul.mubr.msk.f32.gmra.mrb[36].mxu1 %vm43_vm0, %v21862_v44  ;;  %v21856_v51 = vsel %vm10286_vm5, %v21840_v32, %v30516_v45  ;;  %v21855_v25 = vsel %vm10286_vm5, %v21839_v29, %v30518_v19  ;;  %v21858_v19 = vsel %vm10286_vm5, %v21842_v50, %v30520_v22  ;;  %v21857_v45 = vsel %vm10286_vm5, %v21841_v11, %v30522_v62  ;;  %v31383_v11 = vld [vmem:[#allocation8_spill] sm:$0xff] }
0x124e   :  { %v21790_v34 = vpop.permute.xlu1 %21789  ;;  %v21788_v6 = vpop.permute.xlu0 %21787  ;;  %v31377_v3 = vmov 0.0  }
0x124f   :  { %v21864_v8 = vsel %vm10303_vm6, %v21848_v54, %v21790_v34  ;;  %v21863_v53 = vsel %vm10303_vm6, %v21847_v0, %v21788_v6 }
0x1250   :  { %26050 = vmatprep.mubr.msk.f32.mxu1 %vm43_vm0, %v21863_v53 }
0x1251   :  { %26051 = vmatmul.mubr.msk.f32.gmra.mrb[38].mxu1 %vm43_vm0, %v21864_v8 }
0x1252   :  { %v21794_v58 = vpop.permute.xlu1 %21793  ;;  %v21792_v31 = vpop.permute.xlu0 %21791 }
0x1253   :  { %v21866_v13 = vsel %vm10303_vm6, %v21850_v36, %v21794_v58  ;;  %v21865_v1 = vsel %vm10303_vm6, %v21849_v4, %v21792_v31 }
0x1254   :  { %26053 = vmatprep.mubr.msk.f32.mxu1 %vm43_vm0, %v21865_v1 }
0x1255   :  { %26054 = vmatmul.mubr.msk.f32.gmra.mrb[40].mxu1 %vm43_vm0, %v21866_v13 }
0x1256   :  { %v21798_v46 = vpop.permute.xlu1 %21797  ;;  %v21796_v48 = vpop.permute.xlu0 %21795 }
0x1257   :  { %v21868_v49 = vsel %vm10303_vm6, %v21852_v23, %v21798_v46  ;;  %v21867_v39 = vsel %vm10303_vm6, %v21851_v21, %v21796_v48 }
0x1258   :  { %26056 = vmatprep.mubr.msk.f32.mxu1 %vm43_vm0, %v21867_v39 }
0x1259   :  { %26057 = vmatmul.mubr.msk.f32.gmra.mrb[42].mxu1 %vm43_vm0, %v21868_v49 }
0x125a   :  { %v21802_v42 = vpop.permute.xlu1 %21801  ;;  %v21800_v30 = vpop.permute.xlu0 %21799 }
0x125b   :  { %v21870_v52 = vsel %vm10303_vm6, %v21854_v18, %v21802_v42  ;;  %v21869_v9 = vsel %vm10303_vm6, %v21853_v17, %v21800_v30 }
0x125c   :  { %26059 = vmatprep.mubr.msk.f32.mxu1 %vm43_vm0, %v21869_v9  ;;  %v31381_v9 = vld [vmem:[#allocation6_spill] sm:$0xff] }
0x125d   :  { %26060 = vmatmul.mubr.msk.f32.gmra.mrb[44].mxu1 %vm43_vm0, %v21870_v52 }
0x125e   :  { %v21806_v41 = vpop.permute.xlu1 %21805  ;;  %v21804_v59 = vpop.permute.xlu0 %21803 }
0x125f   :  { %v21872_v28 = vsel %vm10303_vm6, %v21856_v51, %v21806_v41  ;;  %v21871_v15 = vsel %vm10303_vm6, %v21855_v25, %v21804_v59  ;;  %v31382_v25 = vld [vmem:[#allocation7_spill] sm:$0xff] }
0x1260   :  { %26062 = vmatprep.mubr.msk.f32.mxu1 %vm43_vm0, %v21871_v15 }
0x1261   :  { %26063 = vmatmul.mubr.msk.f32.gmra.mrb[46].mxu1 %vm43_vm0, %v21872_v28 }
0x1262   :  { %v21810_v43 = vpop.permute.xlu1 %21809  ;;  %v21808_v57 = vpop.permute.xlu0 %21807 }
0x1263   :  { %v21874_v56 = vsel %vm10303_vm6, %v21858_v19, %v21810_v43  ;;  %v21873_v16 = vsel %vm10303_vm6, %v21857_v45, %v21808_v57  ;;  %v31384_v57 = vld [vmem:[#allocation9_spill] sm:$0xff] }
0x1264   :  { %26065 = vmatprep.mubr.msk.f32.mxu1 %vm43_vm0, %v21873_v16 }
0x1265   :  { %26066 = vmatmul.mubr.msk.f32.gmra.mrb[48].mxu1 %vm43_vm0, %v21874_v56 }
0x131c   :  { %v26046_v10 = vpop.f32.mrb[34].mxu1 }
0x131d   :  { %vm22074_vm1 = vcmp.gt.f32.partialorder %v26046_v10, 1.0  ;;  %v21994_v37 = vpop.f32.mrb[35].mxu1 }
0x131e   :  { %v23760_v55 = vsel %vm22074_vm1, 1.0, %v31377_v3  ;;  %vm22073_vm4 = vcmp.gt.f32.partialorder %v21994_v37, 1.0 }
0x131f   :  { %v30618_v22 = vadd.f32 %v23760_v55, %v29285_v40  ;;  %v23759_v62 = vsel %vm22073_vm4, 1.0, %v31377_v3 }
0x1320   :  { %v30622_v47 = vadd.f32 %v23759_v62, %v29281_v24  ;;  %v26049_v44 = vpop.f32.mrb[36].mxu1  ;;  %v31385_v62 = vld [vmem:[#allocation10_spill] sm:$0xff] }
0x1321   :  { %vm22076_vm5 = vcmp.gt.f32.partialorder %v26049_v44, 1.0  ;;  %v22004_v26 = vpop.f32.mrb[37].mxu1  ;;  %v22142_v7 = vsel %vm43_vm0, %v30618_v22, 0.0 }
0x1322   :  { %vm22075_vm6 = vcmp.gt.f32.partialorder %v22004_v26, 1.0  ;;  %22143 = vadd.xlane.f32.xlu1 %v22142_v7  ;;  %v22139_v5 = vsel %vm43_vm0, %v30622_v47, 0.0  ;;  %v23762_v54 = vsel %vm22076_vm5, 1.0, %v31377_v3  ;;  %v31386_v26 = vld [vmem:[#allocation11_spill] sm:$0xff] }
0x1323   :  { %v23761_v40 = vsel %vm22075_vm6, 1.0, %v31377_v3  ;;  %22140 = vadd.xlane.f32.xlu0 %v22139_v5  ;;  %v30634_v6 = vadd.f32 %v23762_v54, %v29299_v2 }
0x1324   :  { %v30631_v0 = vadd.f32 %v23761_v40, %v29295_v20  ;;  %v26052_v24 = vpop.f32.mrb[38].mxu1 }
0x1325   :  { %vm22078_vm10 = vcmp.gt.f32.partialorder %v26052_v24, 1.0  ;;  %v22014_v34 = vpop.f32.mrb[39].mxu1  ;;  %v22148_v2 = vsel %vm43_vm0, %v30634_v6, 0.0 }
0x1326   :  { %vm22077_vm11 = vcmp.gt.f32.partialorder %v22014_v34, 1.0  ;;  %v22145_v8 = vsel %vm43_vm0, %v30631_v0, 0.0  ;;  %v23764_v53 = vsel %vm22078_vm10, 1.0, %v31377_v3 }
0x1327   :  { %v23763_v12 = vsel %vm22077_vm11, 1.0, %v31377_v3  ;;  %22146 = vadd.xlane.f32.xlu0 %v22145_v8  ;;  %v30644_v4 = vadd.f32 %v23764_v53, %v29314_v38 }
0x1328   :  { %v30641_v14 = vadd.f32 %v23763_v12, %v29310_v35  ;;  %v26055_v20 = vpop.f32.mrb[40].mxu1 }
0x1329   :  { %vm22080_vm12 = vcmp.gt.f32.partialorder %v26055_v20, 1.0  ;;  %v22024_v36 = vpop.f32.mrb[41].mxu1  ;;  %v22154_v23 = vsel %vm43_vm0, %v30644_v4, 0.0 }
0x132a   :  { %vm22079_vm13 = vcmp.gt.f32.partialorder %v22024_v36, 1.0  ;;  %v22151_v58 = vsel %vm43_vm0, %v30641_v14, 0.0  ;;  %v23766_v31 = vsel %vm22080_vm12, 1.0, %v31377_v3 }
0x132b   :  { %v23765_v13 = vsel %vm22079_vm13, 1.0, %v31377_v3  ;;  %22149 = vadd.xlane.f32.xlu0 %v22148_v2  ;;  %22152 = vadd.xlane.f32.xlu1 %v22151_v58  ;;  %v30656_v27 = vadd.f32 %v23766_v31, %v31378_v60 }
0x132c   :  { %v30653_v35 = vadd.f32 %v23765_v13, %v29324_v61  ;;  %v26058_v1 = vpop.f32.mrb[42].mxu1  ;;  %v31379_v61 = vld [vmem:[#allocation4_spill] sm:$0xff] }
0x132d   :  { %vm22082_vm14 = vcmp.gt.f32.partialorder %v26058_v1, 1.0  ;;  %v22034_v38 = vpop.f32.mrb[43].mxu1  ;;  %v22160_v17 = vsel %vm43_vm0, %v30656_v27, 0.0 }
0x132e   :  { %vm22081_vm15 = vcmp.gt.f32.partialorder %v22034_v38, 1.0  ;;  %v22157_v21 = vsel %vm43_vm0, %v30653_v35, 0.0  ;;  %v23768_v46 = vsel %vm22082_vm14, 1.0, %v31377_v3 }
0x132f   :  { %v23767_v48 = vsel %vm22081_vm15, 1.0, %v31377_v3  ;;  %22155 = vadd.xlane.f32.xlu0 %v22154_v23  ;;  %22158 = vadd.xlane.f32.xlu1 %v22157_v21  ;;  %v30668_v18 = vadd.f32 %v23768_v46, %v31380_v63 }
0x1330   :  { %v30665_v49 = vadd.f32 %v23767_v48, %v31379_v61  ;;  %v26061_v39 = vpop.f32.mrb[44].mxu1 }
0x1331   :  { %vm22084_vm2 = vcmp.gt.f32.partialorder %v26061_v39, 1.0  ;;  %v22044_v33 = vpop.f32.mrb[45].mxu1  ;;  %v22166_v59 = vsel %vm43_vm0, %v30668_v18, 0.0 }
0x1332   :  { %vm22083_vm3 = vcmp.gt.f32.partialorder %v22044_v33, 1.0  ;;  %v22163_v42 = vsel %vm43_vm0, %v30665_v49, 0.0  ;;  %v23770_v30 = vsel %vm22084_vm2, 1.0, %v31377_v3 }
0x1333   :  { %v23769_v52 = vsel %vm22083_vm3, 1.0, %v31377_v3  ;;  %22161 = vadd.xlane.f32.xlu0 %v22160_v17  ;;  %22164 = vadd.xlane.f32.xlu1 %v22163_v42  ;;  %v30680_v41 = vadd.f32 %v23770_v30, %v31382_v25 }
0x1334   :  { %v30677_v32 = vadd.f32 %v23769_v52, %v31381_v9  ;;  %v26064_v29 = vpop.f32.mrb[46].mxu1 }
0x1335   :  { %vm22086_vm7 = vcmp.gt.f32.partialorder %v26064_v29, 1.0  ;;  %v22054_v51 = vpop.f32.mrb[47].mxu1  ;;  %v22172_v16 = vsel %vm43_vm0, %v30680_v41, 0.0 }
0x1336   :  { %vm22085_vm8 = vcmp.gt.f32.partialorder %v22054_v51, 1.0  ;;  %v22169_v28 = vsel %vm43_vm0, %v30677_v32, 0.0  ;;  %v23772_v15 = vsel %vm22086_vm7, 1.0, %v31377_v3 }
0x1337   :  { %v23771_v50 = vsel %vm22085_vm8, 1.0, %v31377_v3  ;;  %22167 = vadd.xlane.f32.xlu0 %v22166_v59  ;;  %22170 = vadd.xlane.f32.xlu1 %v22169_v28  ;;  %v30692_v56 = vadd.f32 %v23772_v15, %v31384_v57 }
0x1338   :  { %v30689_v19 = vadd.f32 %v23771_v50, %v31383_v11  ;;  %v26067_v45 = vpop.f32.mrb[48].mxu1 }
0x1339   :  { %vm22088_vm9 = vcmp.gt.f32.partialorder %v26067_v45, 1.0  ;;  %v22064_v43 = vpop.f32.mrb[49].mxu1  ;;  %v22178_v5 = vsel %vm43_vm0, %v30692_v56, 0.0 }
0x133a   :  { %vm22087_vm1 = vcmp.gt.f32.partialorder %v22064_v43, 1.0  ;;  %v22175_v10 = vsel %vm43_vm0, %v30689_v19, 0.0  ;;  %v23774_v37 = vsel %vm22088_vm9, 1.0, %v31377_v3 }
0x133b   :  { %v23773_v55 = vsel %vm22087_vm1, 1.0, %v31377_v3  ;;  %22173 = vadd.xlane.f32.xlu0 %v22172_v16  ;;  %22176 = vadd.xlane.f32.xlu1 %v22175_v10  ;;  %v30704_v7 = vadd.f32 %v23774_v37, %v31386_v26 }
0x133c   :  { %v30701_v44 = vadd.f32 %v23773_v55, %v31385_v62 }
0x133d   :  { %v22184_v40 = vsel %vm43_vm0, %v30704_v7, 0.0 }
0x133e   :  { %v22181_v54 = vsel %vm43_vm0, %v30701_v44, 0.0 }
0x133f   :  { %22179 = vadd.xlane.f32.xlu0 %v22178_v5  ;;  %22182 = vadd.xlane.f32.xlu1 %v22181_v54 }
0x1343   :  { %22185 = vadd.xlane.f32.xlu0 %v22184_v40 }
0x13af   :  { %v22144_v24 = vpop.xlane.xlu1 %22143 }
0x13b0   :  { %v22188_v34 = vmul.f32 0.03125, %v22144_v24  ;;  %v22141_v8 = vpop.xlane.xlu0 %22140 }
0x13b1   :  { %v22187_v53 = vmul.f32 0.03125, %v22141_v8 }
0x13b2   :  { %v30713_v12 = vsub.f32 %v30618_v22, %v22188_v34 }
0x13b3   :  { %v30716_v20 = vsub.f32 %v30622_v47, %v22187_v53 }
0x13b4   :  { %v22147_v36 = vpop.xlane.xlu0 %22146  ;;  %v22220_v2 = vmul.f32 %v30713_v12, %v30713_v12 }
0x13b5   :  { %v22189_v58 = vmul.f32 0.03125, %v22147_v36  ;;  %v22219_v31 = vmul.f32 %v30716_v20, %v30716_v20 }
0x13b6   :  { %v22238_v13 = vsel %vm43_vm0, %v22220_v2, 0.0 }
0x13b7   :  { %v30724_v1 = vsub.f32 %v30631_v0, %v22189_v58  ;;  %22239 = vadd.xlane.f32.xlu0 %v22238_v13  ;;  %v22235_v22 = vsel %vm43_vm0, %v22219_v31, 0.0 }
0x13b8   :  { %v22150_v38 = vpop.xlane.xlu0 %22149  ;;  %v22153_v60 = vpop.xlane.xlu1 %22152  ;;  %22236 = vadd.xlane.f32.xlu1 %v22235_v22 }
0x13b9   :  { %v22190_v47 = vmul.f32 0.03125, %v22150_v38  ;;  %v22191_v23 = vmul.f32 0.03125, %v22153_v60  ;;  %v22221_v21 = vmul.f32 %v30724_v1, %v30724_v1 }
0x13bb   :  { %v30730_v46 = vsub.f32 %v30634_v6, %v22190_v47  ;;  %v30733_v48 = vsub.f32 %v30641_v14, %v22191_v23  ;;  %v22241_v0 = vsel %vm43_vm0, %v22221_v21, 0.0 }
0x13bc   :  { %v22156_v61 = vpop.xlane.xlu0 %22155  ;;  %v22159_v39 = vpop.xlane.xlu1 %22158  ;;  %22242 = vadd.xlane.f32.xlu1 %v22241_v0 }
0x13bd   :  { %v22192_v33 = vmul.f32 0.03125, %v22156_v61  ;;  %v22193_v63 = vmul.f32 0.03125, %v22159_v39  ;;  %v22222_v17 = vmul.f32 %v30730_v46, %v30730_v46  ;;  %v22223_v42 = vmul.f32 %v30733_v48, %v30733_v48 }
0x13bf   :  { %v30741_v30 = vsub.f32 %v30644_v4, %v22192_v33  ;;  %v30744_v6 = vsub.f32 %v30653_v35, %v22193_v63  ;;  %v22244_v14 = vsel %vm43_vm0, %v22222_v17, 0.0  ;;  %v22247_v52 = vsel %vm43_vm0, %v22223_v42, 0.0  ;;  %v23778_v17 = vld [vmem:[%s31344_s3 + $0x30] sm:$0xff] }
0x13c0   :  { %v22162_v9 = vpop.xlane.xlu0 %22161  ;;  %v22165_v29 = vpop.xlane.xlu1 %22164  ;;  %22245 = vadd.xlane.f32.xlu0 %v22244_v14  ;;  %22248 = vadd.xlane.f32.xlu1 %v22247_v52  ;;  %v23828_v52 = vld [vmem:[%s31345_s4 + $0x80] sm:$0xff] }
0x13c1   :  { %v22194_v51 = vmul.f32 0.03125, %v22162_v9  ;;  %v22195_v25 = vmul.f32 0.03125, %v22165_v29  ;;  %v22224_v59 = vmul.f32 %v30741_v30, %v30741_v30  ;;  %v22225_v4 = vmul.f32 %v30744_v6, %v30744_v6  ;;  %v23829_v9 = vld [vmem:[%s31345_s4 + $0x88] sm:$0xff]  ;;  %v23830_v29 = vld [vmem:[%s31345_s4 + $0x90] sm:$0xff] }
0x13c3   :  { %v30753_v28 = vsub.f32 %v30656_v27, %v22194_v51  ;;  %v30756_v35 = vsub.f32 %v30665_v49, %v22195_v25  ;;  %v22250_v15 = vsel %vm43_vm0, %v22224_v59, 0.0  ;;  %v22253_v50 = vsel %vm43_vm0, %v22225_v4, 0.0  ;;  %v23831_v25 = vld [vmem:[%s31345_s4 + $0x98] sm:$0xff]  ;;  %v23832_v4 = vld [vmem:[%s31345_s4 + $0xa0] sm:$0xff] }
0x13c4   :  { %v22168_v11 = vpop.xlane.xlu0 %22167  ;;  %v22171_v45 = vpop.xlane.xlu1 %22170  ;;  %22251 = vadd.xlane.f32.xlu0 %v22250_v15  ;;  %22254 = vadd.xlane.f32.xlu1 %v22253_v50  ;;  %v26236_v51 = vpack.c.bf16 %v23829_v9, %v23828_v52  ;;  %v26240_v59 = vpack.c.bf16 %v23831_v25, %v23830_v29  ;;  %v23833_v15 = vld [vmem:[%s31345_s4 + $0xa8] sm:$0xff] }
0x13c5   :  { %v22196_v43 = vmul.f32 0.03125, %v22168_v11  ;;  %v22197_v57 = vmul.f32 0.03125, %v22171_v45  ;;  %v22226_v16 = vmul.f32 %v30753_v28, %v30753_v28  ;;  %v22227_v27 = vmul.f32 %v30756_v35, %v30756_v35  ;;  %v23834_v11 = vld [vmem:[%s31345_s4 + $0xb0] sm:$0xff]  ;;  %v23835_v45 = vld [vmem:[%s31345_s4 + $0xb8] sm:$0xff] }
0x13c6   :  { %26237 = vmatprep.subr.bf16.mxu1 %v26236_v51  ;;  %v26244_v50 = vpack.c.bf16 %v23833_v15, %v23832_v4 }
0x13c7   :  { %v30765_v10 = vsub.f32 %v30668_v18, %v22196_v43  ;;  %v30768_v49 = vsub.f32 %v30677_v32, %v22197_v57  ;;  %v22256_v37 = vsel %vm43_vm0, %v22226_v16, 0.0  ;;  %v22259_v55 = vsel %vm43_vm0, %v22227_v27, 0.0  ;;  %26239 = vmatpush3.bf16.msra.mxu1 %v26236_v51  ;;  %v23836_v57 = vld [vmem:[%s31345_s4 + $0xc0] sm:$0xff]  ;;  %v23837_v16 = vld [vmem:[%s31345_s4 + $0xc8] sm:$0xff] }
0x13c8   :  { %v22174_v62 = vpop.xlane.xlu0 %22173  ;;  %v22177_v26 = vpop.xlane.xlu1 %22176  ;;  %22257 = vadd.xlane.f32.xlu0 %v22256_v37  ;;  %22260 = vadd.xlane.f32.xlu1 %v22259_v55  ;;  %v26248_v43 = vpack.c.bf16 %v23835_v45, %v23834_v11  ;;  %v26252_v27 = vpack.c.bf16 %v23837_v16, %v23836_v57  ;;  %v23838_v37 = vld [vmem:[%s31345_s4 + $0xd0] sm:$0xff]  ;;  %v23839_v55 = vld [vmem:[%s31345_s4 + $0xd8] sm:$0xff] }
0x13c9   :  { %v22198_v5 = vmul.f32 0.03125, %v22174_v62  ;;  %v22199_v54 = vmul.f32 0.03125, %v22177_v26  ;;  %v22228_v40 = vmul.f32 %v30765_v10, %v30765_v10  ;;  %v22229_v18 = vmul.f32 %v30768_v49, %v30768_v49  ;;  %26241 = vmatprep.subr.bf16.mxu1 %v26240_v59  ;;  %v23840_v26 = vld [vmem:[%s31345_s4 + $0xe0] sm:$0xff] }
0x13ca   :  { %v26256_v62 = vpack.c.bf16 %v23839_v55, %v23838_v37 }
0x13cb   :  { %v30777_v24 = vsub.f32 %v30680_v41, %v22198_v5  ;;  %v30780_v32 = vsub.f32 %v30689_v19, %v22199_v54  ;;  %v22262_v34 = vsel %vm43_vm0, %v22228_v40, 0.0  ;;  %v22265_v8 = vsel %vm43_vm0, %v22229_v18, 0.0  ;;  %26243 = vmatpush3.bf16.msra.mxu1 %v26240_v59  ;;  %v23841_v5 = vld [vmem:[%s31345_s4 + $0xe8] sm:$0xff] }
0x13cc   :  { %v22180_v53 = vpop.xlane.xlu0 %22179  ;;  %22263 = vadd.xlane.f32.xlu0 %v22262_v34  ;;  %22266 = vadd.xlane.f32.xlu1 %v22265_v8  ;;  %v22183_v36 = vpop.xlane.xlu1 %22182  ;;  %v26260_v54 = vpack.c.bf16 %v23841_v5, %v23840_v26 }
0x13cd   :  { %v22200_v2 = vmul.f32 0.03125, %v22180_v53  ;;  %v22201_v58 = vmul.f32 0.03125, %v22183_v36  ;;  %v22230_v31 = vmul.f32 %v30777_v24, %v30777_v24  ;;  %v22231_v41 = vmul.f32 %v30780_v32, %v30780_v32  ;;  %26245 = vmatprep.subr.bf16.mxu1 %v26244_v50 }
0x13cf   :  { %v30789_v13 = vsub.f32 %v30692_v56, %v22200_v2  ;;  %v30792_v19 = vsub.f32 %v30701_v44, %v22201_v58  ;;  %v22268_v22 = vsel %vm43_vm0, %v22230_v31, 0.0  ;;  %v22271_v38 = vsel %vm43_vm0, %v22231_v41, 0.0  ;;  %v23776_v56 = vld [vmem:[%s31344_s3 + $0x20] sm:$0xff]  ;;  %v23777_v44 = vld [vmem:[%s31344_s3 + $0x28] sm:$0xff]  ;;  %26247 = vmatpush3.bf16.msra.mxu1 %v26244_v50 }
0x13d0   :  { %22269 = vadd.xlane.f32.xlu0 %v22268_v22  ;;  %v22186_v60 = vpop.xlane.xlu0 %22185  ;;  %22272 = vadd.xlane.f32.xlu1 %v22271_v38  ;;  %v26228_v33 = vpack.c.bf16 %v23777_v44, %v23776_v56 }
0x13d1   :  { %v22202_v47 = vmul.f32 0.03125, %v22186_v60  ;;  %v22232_v23 = vmul.f32 %v30789_v13, %v30789_v13  ;;  %v22233_v21 = vmul.f32 %v30792_v19, %v30792_v19  ;;  %26249 = vmatprep.subr.bf16.mxu1 %v26248_v43 }
0x13d2   :  { %26229 = vmatprep.subr.bf16.mxu0 %v26228_v33 }
0x13d3   :  { %v30807_v0 = vsub.f32 %v30704_v7, %v22202_v47  ;;  %v22274_v61 = vsel %vm43_vm0, %v22232_v23, 0.0  ;;  %v22277_v39 = vsel %vm43_vm0, %v22233_v21, 0.0  ;;  %26231 = vmatpush3.bf16.msra.mxu0 %v26228_v33  ;;  %v23779_v7 = vld [vmem:[%s31344_s3 + $0x38] sm:$0xff]  ;;  %26251 = vmatpush3.bf16.msra.mxu1 %v26248_v43  ;;  %v30865_v47 = vld [vmem:[%s31346_s5 + $0x4] sm:$0xf] }
0x13d4   :  { %22275 = vadd.xlane.f32.xlu0 %v22274_v61  ;;  %22278 = vadd.xlane.f32.xlu1 %v22277_v39  ;;  %v26232_v14 = vpack.c.bf16 %v23779_v7, %v23778_v17  ;;  %v31387_v61 = vld [vmem:[#allocation2_spill] sm:$0xff] }
0x13d5   :  { %v22234_v63 = vmul.f32 %v30807_v0, %v30807_v0  ;;  %26253 = vmatprep.subr.bf16.mxu1 %v26252_v27  ;;  %v31388_v39 = vsub.s32 0, %v31387_v61  ;;  %v31389_v29 = vsub.s32 1, %v31387_v61 }
0x13d6   :  { %26233 = vmatprep.subr.bf16.mxu0 %v26232_v14 }
0x13d7   :  { %v22280_v42 = vsel %vm43_vm0, %v22234_v63, 0.0  ;;  %26235 = vmatpush3.bf16.msra.mxu0 %v26232_v14  ;;  %26255 = vmatpush3.bf16.msra.mxu1 %v26252_v27  ;;  %v30870_v33 = vrot.slane %v30865_v47, %v31388_v39  ;;  %v30876_v51 = vrot.slane %v30865_v47, %v31389_v29 }
0x13d8   :  { %22281 = vadd.xlane.f32.xlu0 %v22280_v42  ;;  %26257 = vmatprep.subr.bf16.mxu1 %v26256_v62 }
0x13db   :  { %26259 = vmatpush3.bf16.msra.mxu1 %v26256_v62 }
0x13dc   :  { %26261 = vmatprep.subr.bf16.mxu1 %v26260_v54 }
0x13df   :  { %26263 = vmatpush3.bf16.msra.mxu1 %v26260_v54 }
0x1444   :  { %v22240_v40 = vpop.xlane.xlu0 %22239 }
0x1445   :  { %v22284_v18 = vmul.f32 0.03125, %v22240_v40  ;;  %v22237_v34 = vpop.xlane.xlu1 %22236 }
0x1446   :  { %v22283_v8 = vmul.f32 0.03125, %v22237_v34 }
0x1447   :  { %v22300_v53 = vadd.f32 1e-05, %v22284_v18 }
0x1448   :  { %v22299_v36 = vadd.f32 1e-05, %v22283_v8 }
0x1449   :  { %27135 = vrsqrt.f32 %v22300_v53  ;;  %v22243_v2 = vpop.xlane.xlu1 %22242 }
0x144a   :  { %27137 = vrsqrt.f32 %v22299_v36  ;;  %v22285_v58 = vmul.f32 0.03125, %v22243_v2 }
0x144c   :  { %v22301_v31 = vadd.f32 1e-05, %v22285_v58 }
0x144d   :  { %v22246_v41 = vpop.xlane.xlu0 %22245  ;;  %v22249_v22 = vpop.xlane.xlu1 %22248 }
0x144e   :  { %27139 = vrsqrt.f32 %v22301_v31  ;;  %v22286_v38 = vmul.f32 0.03125, %v22246_v41  ;;  %v22287_v60 = vmul.f32 0.03125, %v22249_v22 }
0x1450   :  { %v22302_v23 = vadd.f32 1e-05, %v22286_v38  ;;  %v22303_v21 = vadd.f32 1e-05, %v22287_v60 }
0x1451   :  { %v22252_v56 = vpop.xlane.xlu0 %22251  ;;  %v22255_v44 = vpop.xlane.xlu1 %22254 }
0x1452   :  { %27141 = vrsqrt.f32 %v22302_v23  ;;  %v22288_v63 = vmul.f32 0.03125, %v22252_v56  ;;  %v22289_v17 = vmul.f32 0.03125, %v22255_v44 }
0x1453   :  { %v27136_v7 = vpop.eup %27135  ;;  %27143 = vrsqrt.f32 %v22303_v21 }
0x1454   :  { %v27138_v42 = vpop.eup %27137  ;;  %v22332_v14 = vmul.f32 %v27136_v7, %v30713_v12  ;;  %v22304_v52 = vadd.f32 1e-05, %v22288_v63  ;;  %v22305_v9 = vadd.f32 1e-05, %v22289_v17 }
0x1455   :  { %v22258_v25 = vpop.xlane.xlu0 %22257  ;;  %v22261_v59 = vpop.xlane.xlu1 %22260  ;;  %v22331_v4 = vmul.f32 %v27138_v42, %v30716_v20 }
0x1456   :  { %v22352_v15 = vmul.f32 %v30870_v33, %v22332_v14  ;;  %27145 = vrsqrt.f32 %v22304_v52  ;;  %v22290_v50 = vmul.f32 0.03125, %v22258_v25  ;;  %v22291_v11 = vmul.f32 0.03125, %v22261_v59 }
0x1457   :  { %27147 = vrsqrt.f32 %v22305_v9  ;;  %v22351_v45 = vmul.f32 %v30870_v33, %v22331_v4 }
0x1458   :  { %v27140_v12 = vpop.eup %27139  ;;  %v22306_v43 = vadd.f32 1e-05, %v22290_v50  ;;  %v22307_v57 = vadd.f32 1e-05, %v22291_v11  ;;  %v30886_v20 = vadd.f32 %v30876_v51, %v22352_v15 }
0x1459   :  { %v22264_v16 = vpop.xlane.xlu0 %22263  ;;  %v22267_v27 = vpop.xlane.xlu1 %22266  ;;  %v30882_v37 = vadd.f32 %v30876_v51, %v22351_v45  ;;  %v22333_v55 = vmul.f32 %v27140_v12, %v30724_v1 }
0x145a   :  { %27149 = vrsqrt.f32 %v22306_v43  ;;  %v22292_v62 = vmul.f32 0.03125, %v22264_v16  ;;  %v22293_v26 = vmul.f32 0.03125, %v22267_v27 }
0x145b   :  { %27151 = vrsqrt.f32 %v22307_v57  ;;  %26076 = vmatprep.mubr.msk.f32.mxu0 %vm43_vm0, %v30882_v37  ;;  %v22353_v5 = vmul.f32 %v30870_v33, %v22333_v55 }
0x145c   :  { %v27142_v54 = vpop.eup %27141  ;;  %v22308_v40 = vadd.f32 1e-05, %v22292_v62  ;;  %v22309_v18 = vadd.f32 1e-05, %v22293_v26  ;;  %26077 = vmatmul.mubr.msk.f32.vlgmr.msra.gmra.mrb[46].mxu0 %vm43_vm0, %v30886_v20 }
0x145d   :  { %v27144_v34 = vpop.eup %27143  ;;  %v22334_v1 = vmul.f32 %v27142_v54, %v30730_v46  ;;  %v22270_v8 = vpop.xlane.xlu0 %22269  ;;  %v30895_v36 = vadd.f32 %v30876_v51, %v22353_v5 }
0x145e   :  { %v22273_v53 = vpop.xlane.xlu1 %22272  ;;  %27153 = vrsqrt.f32 %v22308_v40  ;;  %v22294_v2 = vmul.f32 0.03125, %v22270_v8  ;;  %v22335_v31 = vmul.f32 %v27144_v34, %v30733_v48 }
0x145f   :  { %v22295_v58 = vmul.f32 0.03125, %v22273_v53  ;;  %v22354_v41 = vmul.f32 %v30870_v33, %v22334_v1  ;;  %27155 = vrsqrt.f32 %v22309_v18  ;;  %26079 = vmatprep.mubr.msk.f32.mxu0 %vm43_vm0, %v30895_v36 }
0x1460   :  { %v27146_v22 = vpop.eup %27145  ;;  %v22310_v38 = vadd.f32 1e-05, %v22294_v2  ;;  %v22355_v46 = vmul.f32 %v30870_v33, %v22335_v31 }
0x1461   :  { %v22311_v60 = vadd.f32 1e-05, %v22295_v58  ;;  %v27148_v23 = vpop.eup %27147  ;;  %v30903_v21 = vadd.f32 %v30876_v51, %v22354_v41  ;;  %v22336_v56 = vmul.f32 %v27146_v22, %v30741_v30  ;;  %v22276_v44 = vpop.xlane.xlu0 %22275 }
0x1462   :  { %v22279_v39 = vpop.xlane.xlu1 %22278  ;;  %27157 = vrsqrt.f32 %v22310_v38  ;;  %v22296_v48 = vmul.f32 0.03125, %v22276_v44  ;;  %v30907_v17 = vadd.f32 %v30876_v51, %v22355_v46  ;;  %v22337_v42 = vmul.f32 %v27148_v23, %v30744_v6 }
0x1463   :  { %v22297_v63 = vmul.f32 0.03125, %v22279_v39  ;;  %v22356_v7 = vmul.f32 %v30870_v33, %v22336_v56  ;;  %27159 = vrsqrt.f32 %v22311_v60  ;;  %26080 = vmatmul.mubr.msk.f32.gmra.mrb[48].mxu0 %vm43_vm0, %v30903_v21  ;;  %v31390_v39 = vmov 1.0  }
0x1464   :  { %v27150_v14 = vpop.eup %27149  ;;  %v22312_v52 = vadd.f32 1e-05, %v22296_v48  ;;  %26082 = vmatprep.mubr.msk.f32.mxu0 %vm43_vm0, %v30907_v17  ;;  %v22357_v4 = vmul.f32 %v30870_v33, %v22337_v42 }
0x1465   :  { %v22313_v9 = vadd.f32 1e-05, %v22297_v63  ;;  %v27152_v30 = vpop.eup %27151  ;;  %v30916_v29 = vadd.f32 %v30876_v51, %v22356_v7  ;;  %v22338_v25 = vmul.f32 %v27150_v14, %v30753_v28  ;;  %v22282_v59 = vpop.xlane.xlu0 %22281 }
0x1466   :  { %27161 = vrsqrt.f32 %v22312_v52  ;;  %v22298_v15 = vmul.f32 0.03125, %v22282_v59  ;;  %v22339_v50 = vmul.f32 %v27152_v30, %v30756_v35  ;;  %v30925_v11 = vadd.f32 %v30876_v51, %v22357_v4 }
0x1467   :  { %v22358_v6 = vmul.f32 %v30870_v33, %v22338_v25  ;;  %27163 = vrsqrt.f32 %v22313_v9  ;;  %26083 = vmatmul.mubr.msk.f32.gmra.mrb[50].mxu0 %vm43_vm0, %v30916_v29 }
0x1468   :  { %v27154_v45 = vpop.eup %27153  ;;  %v22314_v12 = vadd.f32 1e-05, %v22298_v15  ;;  %v22359_v28 = vmul.f32 %v30870_v33, %v22339_v50  ;;  %26085 = vmatprep.mubr.msk.f32.mxu0 %vm43_vm0, %v30925_v11 }
0x1469   :  { %v27156_v43 = vpop.eup %27155  ;;  %v30929_v57 = vadd.f32 %v30876_v51, %v22358_v6  ;;  %v22340_v16 = vmul.f32 %v27154_v45, %v30765_v10 }
0x146a   :  { %27165 = vrsqrt.f32 %v22314_v12  ;;  %v30935_v35 = vadd.f32 %v30876_v51, %v22359_v28  ;;  %v22341_v27 = vmul.f32 %v27156_v43, %v30768_v49 }
0x146b   :  { %v22360_v55 = vmul.f32 %v30870_v33, %v22340_v16  ;;  %26086 = vmatmul.mubr.msk.f32.gmra.mrb[52].mxu0 %vm43_vm0, %v30929_v57 }
0x146c   :  { %v27158_v62 = vpop.eup %27157  ;;  %26088 = vmatprep.mubr.msk.f32.mxu0 %vm43_vm0, %v30935_v35  ;;  %v22361_v10 = vmul.f32 %v30870_v33, %v22341_v27 }
0x146d   :  { %v27160_v26 = vpop.eup %27159  ;;  %v30945_v5 = vadd.f32 %v30876_v51, %v22360_v55  ;;  %v22342_v54 = vmul.f32 %v27158_v62, %v30777_v24 }
0x146e   :  { %v30949_v40 = vadd.f32 %v30876_v51, %v22361_v10  ;;  %v22343_v49 = vmul.f32 %v27160_v26, %v30780_v32 }
0x146f   :  { %v22362_v18 = vmul.f32 %v30870_v33, %v22342_v54  ;;  %26089 = vmatmul.mubr.msk.f32.gmra.mrb[54].mxu0 %vm43_vm0, %v30945_v5 }
0x1470   :  { %v27162_v34 = vpop.eup %27161  ;;  %26091 = vmatprep.mubr.msk.f32.mxu0 %vm43_vm0, %v30949_v40  ;;  %v22363_v1 = vmul.f32 %v30870_v33, %v22343_v49 }
0x1471   :  { %v27164_v8 = vpop.eup %27163  ;;  %v30959_v53 = vadd.f32 %v30876_v51, %v22362_v18  ;;  %v22344_v24 = vmul.f32 %v27162_v34, %v30789_v13 }
0x1472   :  { %v30963_v2 = vadd.f32 %v30876_v51, %v22363_v1  ;;  %v22345_v32 = vmul.f32 %v27164_v8, %v30792_v19 }
0x1473   :  { %v22364_v58 = vmul.f32 %v30870_v33, %v22344_v24  ;;  %26092 = vmatmul.mubr.msk.f32.gmra.mrb[56].mxu0 %vm43_vm0, %v30959_v53 }
0x1474   :  { %v27166_v31 = vpop.eup %27165  ;;  %26094 = vmatprep.mubr.msk.f32.mxu0 %vm43_vm0, %v30963_v2  ;;  %v22365_v41 = vmul.f32 %v30870_v33, %v22345_v32 }
0x1475   :  { %v30973_v22 = vadd.f32 %v30876_v51, %v22364_v58  ;;  %v22346_v13 = vmul.f32 %v27166_v31, %v30807_v0  ;;  %v23842_v0 = vld [vmem:[%s31345_s4 + $0xf0] sm:$0xff] }
0x1476   :  { %v30977_v38 = vadd.f32 %v30876_v51, %v22365_v41 }
0x1477   :  { %v22366_v19 = vmul.f32 %v30870_v33, %v22346_v13  ;;  %26095 = vmatmul.mubr.msk.f32.gmra.mrb[58].mxu0 %vm43_vm0, %v30973_v22  ;;  %v23843_v33 = vld [vmem:[%s31345_s4 + $0xf8] sm:$0xff] }
0x1478   :  { %26097 = vmatprep.mubr.msk.f32.mxu0 %vm43_vm0, %v30977_v38  ;;  %v26264_v46 = vpack.c.bf16 %v23843_v33, %v23842_v0 }
0x1479   :  { %v30985_v60 = vadd.f32 %v30876_v51, %v22366_v19 }
0x147a   :  { %26265 = vmatprep.subr.bf16.mxu1 %v26264_v46 }
0x147b   :  { %26098 = vmatmul.mubr.msk.f32.gmra.mrb[60].mxu0 %vm43_vm0, %v30985_v60  ;;  %26267 = vmatpush3.bf16.msra.mxu1 %v26264_v46 }
0x152f   :  { %v26078_v23 = vpop.f32.mrb[46].mxu0 }
0x1530   :  { %vm22586_vm4 = vcmp.gt.f32.partialorder %v26078_v23, 1.0  ;;  %v22506_v56 = vpop.f32.mrb[47].mxu0 }
0x1531   :  { %v23797_v51 = vsel %vm22586_vm4, 1.0, %v31377_v3  ;;  %vm22585_vm5 = vcmp.gt.f32.partialorder %v22506_v56, 1.0 }
0x1532   :  { %v23796_v44 = vsel %vm22585_vm5, 1.0, %v31377_v3  ;;  %vm22634_vm10 = vcmp.gt.f32.partialorder %v23797_v51, 1.0 }
0x1533   :  { %vm22633_vm6 = vcmp.gt.f32.partialorder %v23796_v44, 1.0 }
0x1534   :  { %26132 = vmatprep.mubr.msk.f32.mxu1 %vm22633_vm6, %v31390_v39 }
0x1535   :  { %26133 = vmatmul.mubr.msk.f32.vlgmr.msra.gmra.mrb[50].mxu1 %vm22634_vm10, %v31390_v39 }
0x1536   :  { %v26081_v48 = vpop.f32.mrb[48].mxu0 }
0x1537   :  { %vm22588_vm11 = vcmp.gt.f32.partialorder %v26081_v48, 1.0  ;;  %v22516_v63 = vpop.f32.mrb[49].mxu0 }
0x1538   :  { %v23799_v7 = vsel %vm22588_vm11, 1.0, %v31377_v3  ;;  %vm22587_vm12 = vcmp.gt.f32.partialorder %v22516_v63, 1.0 }
0x1539   :  { %v23798_v42 = vsel %vm22587_vm12, 1.0, %v31377_v3  ;;  %vm22636_vm14 = vcmp.gt.f32.partialorder %v23799_v7, 1.0 }
0x153a   :  { %vm22635_vm13 = vcmp.gt.f32.partialorder %v23798_v42, 1.0  ;;  %v26084_v14 = vpop.f32.mrb[50].mxu0 }
0x153b   :  { %vm22590_vm15 = vcmp.gt.f32.partialorder %v26084_v14, 1.0  ;;  %v22526_v52 = vpop.f32.mrb[51].mxu0  ;;  %26135 = vmatprep.mubr.msk.f32.mxu1 %vm22635_vm13, %v31390_v39 }
0x153c   :  { %v23801_v9 = vsel %vm22590_vm15, 1.0, %v31377_v3  ;;  %vm22589_vm2 = vcmp.gt.f32.partialorder %v22526_v52, 1.0  ;;  %26136 = vmatmul.mubr.msk.f32.gmra.mrb[52].mxu1 %vm22636_vm14, %v31390_v39 }
0x153d   :  { %v23800_v30 = vsel %vm22589_vm2, 1.0, %v31377_v3  ;;  %vm22638_vm7 = vcmp.gt.f32.partialorder %v23801_v9, 1.0 }
0x153e   :  { %vm22637_vm3 = vcmp.gt.f32.partialorder %v23800_v30, 1.0  ;;  %v26087_v25 = vpop.f32.mrb[52].mxu0 }
0x153f   :  { %vm22592_vm8 = vcmp.gt.f32.partialorder %v26087_v25, 1.0  ;;  %v22536_v59 = vpop.f32.mrb[53].mxu0  ;;  %26138 = vmatprep.mubr.msk.f32.mxu1 %vm22637_vm3, %v31390_v39 }
0x1540   :  { %v23803_v4 = vsel %vm22592_vm8, 1.0, %v31377_v3  ;;  %vm22591_vm9 = vcmp.gt.f32.partialorder %v22536_v59, 1.0  ;;  %26139 = vmatmul.mubr.msk.f32.gmra.mrb[54].mxu1 %vm22638_vm7, %v31390_v39 }
0x1541   :  { %v23802_v15 = vsel %vm22591_vm9, 1.0, %v31377_v3  ;;  %vm22640_vm4 = vcmp.gt.f32.partialorder %v23803_v4, 1.0 }
0x1542   :  { %vm22639_vm1 = vcmp.gt.f32.partialorder %v23802_v15, 1.0  ;;  %v26090_v50 = vpop.f32.mrb[54].mxu0 }
0x1543   :  { %vm22594_vm5 = vcmp.gt.f32.partialorder %v26090_v50, 1.0  ;;  %v22546_v6 = vpop.f32.mrb[55].mxu0  ;;  %26141 = vmatprep.mubr.msk.f32.mxu1 %vm22639_vm1, %v31390_v39 }
0x1544   :  { %v23805_v45 = vsel %vm22594_vm5, 1.0, %v31377_v3  ;;  %vm22593_vm6 = vcmp.gt.f32.partialorder %v22546_v6, 1.0  ;;  %26142 = vmatmul.mubr.msk.f32.gmra.mrb[56].mxu1 %vm22640_vm4, %v31390_v39 }
0x1545   :  { %v23804_v12 = vsel %vm22593_vm6, 1.0, %v31377_v3  ;;  %vm22642_vm11 = vcmp.gt.f32.partialorder %v23805_v45, 1.0 }
0x1546   :  { %vm22641_vm10 = vcmp.gt.f32.partialorder %v23804_v12, 1.0  ;;  %v26093_v28 = vpop.f32.mrb[56].mxu0 }
0x1547   :  { %vm22596_vm12 = vcmp.gt.f32.partialorder %v26093_v28, 1.0  ;;  %v22556_v43 = vpop.f32.mrb[57].mxu0  ;;  %26144 = vmatprep.mubr.msk.f32.mxu1 %vm22641_vm10, %v31390_v39 }
0x1548   :  { %v23807_v16 = vsel %vm22596_vm12, 1.0, %v31377_v3  ;;  %vm22595_vm13 = vcmp.gt.f32.partialorder %v22556_v43, 1.0  ;;  %26145 = vmatmul.mubr.msk.f32.gmra.mrb[58].mxu1 %vm22642_vm11, %v31390_v39 }
0x1549   :  { %v23806_v27 = vsel %vm22595_vm13, 1.0, %v31377_v3  ;;  %vm22644_vm15 = vcmp.gt.f32.partialorder %v23807_v16, 1.0 }
0x154a   :  { %vm22643_vm14 = vcmp.gt.f32.partialorder %v23806_v27, 1.0  ;;  %v26096_v55 = vpop.f32.mrb[58].mxu0 }
0x154b   :  { %vm22598_vm2 = vcmp.gt.f32.partialorder %v26096_v55, 1.0  ;;  %v22566_v62 = vpop.f32.mrb[59].mxu0  ;;  %26147 = vmatprep.mubr.msk.f32.mxu1 %vm22643_vm14, %v31390_v39 }
0x154c   :  { %v23809_v10 = vsel %vm22598_vm2, 1.0, %v31377_v3  ;;  %vm22597_vm3 = vcmp.gt.f32.partialorder %v22566_v62, 1.0  ;;  %26148 = vmatmul.mubr.msk.f32.gmra.mrb[60].mxu1 %vm22644_vm15, %v31390_v39 }
0x154d   :  { %v23808_v26 = vsel %vm22597_vm3, 1.0, %v31377_v3  ;;  %vm22646_vm8 = vcmp.gt.f32.partialorder %v23809_v10, 1.0 }
0x154e   :  { %vm22645_vm7 = vcmp.gt.f32.partialorder %v23808_v26, 1.0  ;;  %v26099_v54 = vpop.f32.mrb[60].mxu0 }
0x154f   :  { %vm22600_vm9 = vcmp.gt.f32.partialorder %v26099_v54, 1.0  ;;  %v22576_v49 = vpop.f32.mrb[61].mxu0  ;;  %26150 = vmatprep.mubr.msk.f32.mxu1 %vm22645_vm7, %v31390_v39 }
0x1550   :  { %v23811_v18 = vsel %vm22600_vm9, 1.0, %v31377_v3  ;;  %vm22599_vm1 = vcmp.gt.f32.partialorder %v22576_v49, 1.0  ;;  %26151 = vmatmul.mubr.msk.f32.gmra.mrb[62].mxu1 %vm22646_vm8, %v31390_v39 }
0x1551   :  { %v23810_v34 = vsel %vm22599_vm1, 1.0, %v31377_v3  ;;  %vm22648_vm5 = vcmp.gt.f32.partialorder %v23811_v18, 1.0 }
0x1552   :  { %vm22647_vm4 = vcmp.gt.f32.partialorder %v23810_v34, 1.0 }
0x1553   :  { %26153 = vmatprep.mubr.msk.f32.mxu1 %vm22647_vm4, %v31390_v39 }
0x1554   :  { %26154 = vmatmul.mubr.msk.f32.gmra.mrb[64].mxu1 %vm22648_vm5, %v31390_v39 }
0x1608   :  { %v26134_v1 = vpop.f32.mrb[50].mxu1 }
0x1609   :  { %vm22844_vm6 = vcmp.gt.f32.partialorder %v26134_v1, 1.0  ;;  %v22764_v8 = vpop.f32.mrb[51].mxu1 }
0x160a   :  { %v23861_v24 = vsel %vm22844_vm6, 1.0, %v31377_v3  ;;  %vm22843_vm10 = vcmp.gt.f32.partialorder %v22764_v8, 1.0 }
0x160b   :  { %v31029_v32 = vadd.f32 %v23861_v24, %v30886_v20  ;;  %v23860_v58 = vsel %vm22843_vm10, 1.0, %v31377_v3 }
0x160c   :  { %v31033_v31 = vadd.f32 %v23860_v58, %v30882_v37 }
0x160d   :  { %v22910_v41 = vsel %vm43_vm0, %v31029_v32, 0.0 }
0x160e   :  { %22911 = vadd.xlane.f32.xlu0 %v22910_v41  ;;  %v22907_v13 = vsel %vm43_vm0, %v31033_v31, 0.0 }
0x160f   :  { %22908 = vadd.xlane.f32.xlu1 %v22907_v13  ;;  %v26137_v19 = vpop.f32.mrb[52].mxu1 }
0x1610   :  { %vm22846_vm11 = vcmp.gt.f32.partialorder %v26137_v19, 1.0  ;;  %v22774_v0 = vpop.f32.mrb[53].mxu1 }
0x1611   :  { %v23863_v33 = vsel %vm22846_vm11, 1.0, %v31377_v3  ;;  %vm22845_vm12 = vcmp.gt.f32.partialorder %v22774_v0, 1.0 }
0x1612   :  { %v31041_v20 = vadd.f32 %v23863_v33, %v30903_v21  ;;  %v23862_v37 = vsel %vm22845_vm12, 1.0, %v31377_v3 }
0x1613   :  { %v31045_v46 = vadd.f32 %v23862_v37, %v30895_v36  ;;  %v26140_v23 = vpop.f32.mrb[54].mxu1 }
0x1614   :  { %vm22848_vm13 = vcmp.gt.f32.partialorder %v26140_v23, 1.0  ;;  %v22784_v56 = vpop.f32.mrb[55].mxu1  ;;  %v22916_v51 = vsel %vm43_vm0, %v31041_v20, 0.0 }
0x1615   :  { %v23865_v44 = vsel %vm22848_vm13, 1.0, %v31377_v3  ;;  %vm22847_vm14 = vcmp.gt.f32.partialorder %v22784_v56, 1.0  ;;  %22917 = vadd.xlane.f32.xlu0 %v22916_v51  ;;  %v22913_v39 = vsel %vm43_vm0, %v31045_v46, 0.0 }
0x1616   :  { %v31053_v21 = vadd.f32 %v23865_v44, %v30916_v29  ;;  %v23864_v48 = vsel %vm22847_vm14, 1.0, %v31377_v3  ;;  %22914 = vadd.xlane.f32.xlu1 %v22913_v39 }
0x1617   :  { %v31057_v36 = vadd.f32 %v23864_v48, %v30907_v17  ;;  %v26143_v63 = vpop.f32.mrb[56].mxu1 }
0x1618   :  { %vm22850_vm15 = vcmp.gt.f32.partialorder %v26143_v63, 1.0  ;;  %v22794_v7 = vpop.f32.mrb[57].mxu1  ;;  %v22922_v42 = vsel %vm43_vm0, %v31053_v21, 0.0 }
0x1619   :  { %v23867_v14 = vsel %vm22850_vm15, 1.0, %v31377_v3  ;;  %vm22849_vm2 = vcmp.gt.f32.partialorder %v22794_v7, 1.0  ;;  %22923 = vadd.xlane.f32.xlu0 %v22922_v42  ;;  %v22919_v29 = vsel %vm43_vm0, %v31057_v36, 0.0 }
0x161a   :  { %v31065_v52 = vadd.f32 %v23867_v14, %v30929_v57  ;;  %v23866_v9 = vsel %vm22849_vm2, 1.0, %v31377_v3  ;;  %22920 = vadd.xlane.f32.xlu1 %v22919_v29 }
0x161b   :  { %v31069_v17 = vadd.f32 %v23866_v9, %v30925_v11  ;;  %v26146_v30 = vpop.f32.mrb[58].mxu1 }
0x161c   :  { %vm22852_vm3 = vcmp.gt.f32.partialorder %v26146_v30, 1.0  ;;  %v22804_v25 = vpop.f32.mrb[59].mxu1  ;;  %v22928_v59 = vsel %vm43_vm0, %v31065_v52, 0.0 }
0x161d   :  { %v23869_v4 = vsel %vm22852_vm3, 1.0, %v31377_v3  ;;  %vm22851_vm7 = vcmp.gt.f32.partialorder %v22804_v25, 1.0  ;;  %22929 = vadd.xlane.f32.xlu0 %v22928_v59  ;;  %v22925_v57 = vsel %vm43_vm0, %v31069_v17, 0.0 }
0x161e   :  { %v31077_v15 = vadd.f32 %v23869_v4, %v30945_v5  ;;  %v23868_v50 = vsel %vm22851_vm7, 1.0, %v31377_v3  ;;  %22926 = vadd.xlane.f32.xlu1 %v22925_v57 }
0x161f   :  { %v31081_v11 = vadd.f32 %v23868_v50, %v30935_v35  ;;  %v26149_v6 = vpop.f32.mrb[60].mxu1 }
0x1620   :  { %vm22854_vm8 = vcmp.gt.f32.partialorder %v26149_v6, 1.0  ;;  %v22814_v45 = vpop.f32.mrb[61].mxu1  ;;  %v22934_v12 = vsel %vm43_vm0, %v31077_v15, 0.0 }
0x1621   :  { %v23871_v28 = vsel %vm22854_vm8, 1.0, %v31377_v3  ;;  %vm22853_vm9 = vcmp.gt.f32.partialorder %v22814_v45, 1.0  ;;  %22935 = vadd.xlane.f32.xlu0 %v22934_v12  ;;  %v22931_v5 = vsel %vm43_vm0, %v31081_v11, 0.0 }
0x1622   :  { %v31089_v43 = vadd.f32 %v23871_v28, %v30959_v53  ;;  %v23870_v16 = vsel %vm22853_vm9, 1.0, %v31377_v3  ;;  %22932 = vadd.xlane.f32.xlu1 %v22931_v5 }
0x1623   :  { %v31093_v35 = vadd.f32 %v23870_v16, %v30949_v40  ;;  %v26152_v27 = vpop.f32.mrb[62].mxu1 }
0x1624   :  { %vm22856_vm1 = vcmp.gt.f32.partialorder %v26152_v27, 1.0  ;;  %v22824_v55 = vpop.f32.mrb[63].mxu1  ;;  %v22940_v62 = vsel %vm43_vm0, %v31089_v43, 0.0 }
0x1625   :  { %v23873_v10 = vsel %vm22856_vm1, 1.0, %v31377_v3  ;;  %vm22855_vm4 = vcmp.gt.f32.partialorder %v22824_v55, 1.0  ;;  %22941 = vadd.xlane.f32.xlu0 %v22940_v62  ;;  %v22937_v53 = vsel %vm43_vm0, %v31093_v35, 0.0 }
0x1626   :  { %v31101_v26 = vadd.f32 %v23873_v10, %v30973_v22  ;;  %v23872_v54 = vsel %vm22855_vm4, 1.0, %v31377_v3  ;;  %22938 = vadd.xlane.f32.xlu1 %v22937_v53 }
0x1627   :  { %v31105_v40 = vadd.f32 %v23872_v54, %v30963_v2  ;;  %v26155_v49 = vpop.f32.mrb[64].mxu1 }
0x1628   :  { %vm22858_vm5 = vcmp.gt.f32.partialorder %v26155_v49, 1.0  ;;  %v22834_v18 = vpop.f32.mrb[65].mxu1  ;;  %v22946_v34 = vsel %vm43_vm0, %v31101_v26, 0.0 }
0x1629   :  { %v23875_v1 = vsel %vm22858_vm5, 1.0, %v31377_v3  ;;  %vm22857_vm6 = vcmp.gt.f32.partialorder %v22834_v18, 1.0  ;;  %22947 = vadd.xlane.f32.xlu0 %v22946_v34  ;;  %v22943_v22 = vsel %vm43_vm0, %v31105_v40, 0.0 }
0x162a   :  { %v31113_v8 = vadd.f32 %v23875_v1, %v30985_v60  ;;  %v23874_v24 = vsel %vm22857_vm6, 1.0, %v31377_v3  ;;  %22944 = vadd.xlane.f32.xlu1 %v22943_v22 }
0x162b   :  { %v31117_v2 = vadd.f32 %v23874_v24, %v30977_v38 }
0x162c   :  { %v22952_v58 = vsel %vm43_vm0, %v31113_v8, 0.0 }
0x162d   :  { %22953 = vadd.xlane.f32.xlu0 %v22952_v58  ;;  %v22949_v41 = vsel %vm43_vm0, %v31117_v2, 0.0 }
0x162e   :  { %22950 = vadd.xlane.f32.xlu1 %v22949_v41 }
0x169b   :  { %v22912_v13 = vpop.xlane.xlu0 %22911 }
0x169c   :  { %v22956_v19 = vmul.f32 0.03125, %v22912_v13  ;;  %v22909_v0 = vpop.xlane.xlu1 %22908 }
0x169d   :  { %v22955_v33 = vmul.f32 0.03125, %v22909_v0 }
0x169e   :  { %v31124_v60 = vsub.f32 %v31029_v32, %v22956_v19 }
0x169f   :  { %v31127_v3 = vsub.f32 %v31033_v31, %v22955_v33 }
0x16a0   :  { %v22988_v38 = vmul.f32 %v31124_v60, %v31124_v60 }
0x16a1   :  { %v22987_v37 = vmul.f32 %v31127_v3, %v31127_v3 }
0x16a2   :  { %v22918_v23 = vpop.xlane.xlu0 %22917  ;;  %v23006_v56 = vsel %vm43_vm0, %v22988_v38, 0.0 }
0x16a3   :  { %v22958_v51 = vmul.f32 0.03125, %v22918_v23  ;;  %23007 = vadd.xlane.f32.xlu0 %v23006_v56  ;;  %v22915_v44 = vpop.xlane.xlu1 %22914  ;;  %v23003_v39 = vsel %vm43_vm0, %v22987_v37, 0.0 }
0x16a4   :  { %v22957_v48 = vmul.f32 0.03125, %v22915_v44  ;;  %23004 = vadd.xlane.f32.xlu1 %v23003_v39 }
0x16a5   :  { %v31136_v32 = vsub.f32 %v31041_v20, %v22958_v51 }
0x16a6   :  { %v31139_v31 = vsub.f32 %v31045_v46, %v22957_v48  ;;  %v22924_v63 = vpop.xlane.xlu0 %22923 }
0x16a7   :  { %v22960_v7 = vmul.f32 0.03125, %v22924_v63  ;;  %v22921_v42 = vpop.xlane.xlu1 %22920  ;;  %v22990_v14 = vmul.f32 %v31136_v32, %v31136_v32 }
0x16a8   :  { %v22959_v29 = vmul.f32 0.03125, %v22921_v42  ;;  %v22989_v9 = vmul.f32 %v31139_v31, %v31139_v31 }
0x16a9   :  { %v31146_v30 = vsub.f32 %v31053_v21, %v22960_v7  ;;  %v23012_v25 = vsel %vm43_vm0, %v22990_v14, 0.0 }
0x16aa   :  { %v31150_v20 = vsub.f32 %v31057_v36, %v22959_v29  ;;  %v22930_v46 = vpop.xlane.xlu0 %22929  ;;  %23013 = vadd.xlane.f32.xlu0 %v23012_v25  ;;  %v23009_v59 = vsel %vm43_vm0, %v22989_v9, 0.0 }
0x16ab   :  { %v22962_v4 = vmul.f32 0.03125, %v22930_v46  ;;  %23010 = vadd.xlane.f32.xlu1 %v23009_v59  ;;  %v22927_v57 = vpop.xlane.xlu1 %22926  ;;  %v22992_v50 = vmul.f32 %v31146_v30, %v31146_v30 }
0x16ac   :  { %v22961_v6 = vmul.f32 0.03125, %v22927_v57  ;;  %v22991_v21 = vmul.f32 %v31150_v20, %v31150_v20 }
0x16ad   :  { %v31158_v45 = vsub.f32 %v31065_v52, %v22962_v4  ;;  %v23018_v36 = vsel %vm43_vm0, %v22992_v50, 0.0 }
0x16ae   :  { %v31162_v12 = vsub.f32 %v31069_v17, %v22961_v6  ;;  %v22936_v28 = vpop.xlane.xlu0 %22935  ;;  %23019 = vadd.xlane.f32.xlu0 %v23018_v36  ;;  %v23015_v5 = vsel %vm43_vm0, %v22991_v21, 0.0 }
0x16af   :  { %v22964_v16 = vmul.f32 0.03125, %v22936_v28  ;;  %23016 = vadd.xlane.f32.xlu1 %v23015_v5  ;;  %v22933_v27 = vpop.xlane.xlu1 %22932  ;;  %v22994_v55 = vmul.f32 %v31158_v45, %v31158_v45 }
0x16b0   :  { %v22963_v62 = vmul.f32 0.03125, %v22933_v27  ;;  %v22993_v52 = vmul.f32 %v31162_v12, %v31162_v12 }
0x16b1   :  { %v31170_v10 = vsub.f32 %v31077_v15, %v22964_v16  ;;  %v23024_v17 = vsel %vm43_vm0, %v22994_v55, 0.0 }
0x16b2   :  { %v31174_v53 = vsub.f32 %v31081_v11, %v22963_v62  ;;  %v22942_v54 = vpop.xlane.xlu0 %22941  ;;  %23025 = vadd.xlane.f32.xlu0 %v23024_v17  ;;  %v23021_v49 = vsel %vm43_vm0, %v22993_v52, 0.0  ;;  %v31391_v17 = vsub.s32 2, %v31387_v61 }
0x16b3   :  { %v22966_v18 = vmul.f32 0.03125, %v22942_v54  ;;  %23022 = vadd.xlane.f32.xlu1 %v23021_v49  ;;  %v22939_v34 = vpop.xlane.xlu1 %22938  ;;  %v22996_v1 = vmul.f32 %v31170_v10, %v31170_v10 }
0x16b4   :  { %v22965_v22 = vmul.f32 0.03125, %v22939_v34  ;;  %v22995_v15 = vmul.f32 %v31174_v53, %v31174_v53  ;;  %v31222_v54 = vrot.slane %v30865_v47, %v31391_v17 }
0x16b5   :  { %v31182_v24 = vsub.f32 %v31089_v43, %v22966_v18  ;;  %v23030_v11 = vsel %vm43_vm0, %v22996_v1, 0.0 }
0x16b6   :  { %v31186_v58 = vsub.f32 %v31093_v35, %v22965_v22  ;;  %v22948_v41 = vpop.xlane.xlu0 %22947  ;;  %23031 = vadd.xlane.f32.xlu0 %v23030_v11  ;;  %v23027_v13 = vsel %vm43_vm0, %v22995_v15, 0.0  ;;  %v31392_v15 = vsub.s32 3, %v31387_v61 }
0x16b7   :  { %v22968_v19 = vmul.f32 0.03125, %v22948_v41  ;;  %23028 = vadd.xlane.f32.xlu1 %v23027_v13  ;;  %v22945_v0 = vpop.xlane.xlu1 %22944  ;;  %v22998_v33 = vmul.f32 %v31182_v24, %v31182_v24 }
0x16b8   :  { %v22967_v38 = vmul.f32 0.03125, %v22945_v0  ;;  %v22997_v43 = vmul.f32 %v31186_v58, %v31186_v58  ;;  %v31227_v11 = vrot.slane %v30865_v47, %v31392_v15 }
0x16b9   :  { %v31194_v37 = vsub.f32 %v31101_v26, %v22968_v19  ;;  %v23036_v35 = vsel %vm43_vm0, %v22998_v33, 0.0 }
0x16ba   :  { %v31198_v23 = vsub.f32 %v31105_v40, %v22967_v38  ;;  %23037 = vadd.xlane.f32.xlu0 %v23036_v35  ;;  %v22954_v56 = vpop.xlane.xlu0 %22953  ;;  %v23033_v51 = vsel %vm43_vm0, %v22997_v43, 0.0 }
0x16bb   :  { %v22970_v44 = vmul.f32 0.03125, %v22954_v56  ;;  %23034 = vadd.xlane.f32.xlu1 %v23033_v51  ;;  %v22951_v39 = vpop.xlane.xlu1 %22950  ;;  %v23000_v48 = vmul.f32 %v31194_v37, %v31194_v37 }
0x16bc   :  { %v22969_v63 = vmul.f32 0.03125, %v22951_v39  ;;  %v22999_v26 = vmul.f32 %v31198_v23, %v31198_v23 }
0x16bd   :  { %v31206_v7 = vsub.f32 %v31113_v8, %v22970_v44  ;;  %v23042_v40 = vsel %vm43_vm0, %v23000_v48, 0.0 }
0x16be   :  { %v31210_v42 = vsub.f32 %v31117_v2, %v22969_v63  ;;  %23043 = vadd.xlane.f32.xlu0 %v23042_v40  ;;  %v23039_v14 = vsel %vm43_vm0, %v22999_v26, 0.0 }
0x16bf   :  { %23040 = vadd.xlane.f32.xlu1 %v23039_v14  ;;  %v23002_v29 = vmul.f32 %v31206_v7, %v31206_v7 }
0x16c0   :  { %v23001_v9 = vmul.f32 %v31210_v42, %v31210_v42 }
0x16c1   :  { %v23048_v25 = vsel %vm43_vm0, %v23002_v29, 0.0 }
0x16c2   :  { %23049 = vadd.xlane.f32.xlu0 %v23048_v25  ;;  %v23045_v8 = vsel %vm43_vm0, %v23001_v9, 0.0 }
0x16c3   :  { %23046 = vadd.xlane.f32.xlu1 %v23045_v8 }
0x1730   :  { %v23008_v46 = vpop.xlane.xlu0 %23007 }
0x1731   :  { %v23052_v59 = vmul.f32 0.03125, %v23008_v46  ;;  %v23005_v2 = vpop.xlane.xlu1 %23004 }
0x1732   :  { %v23051_v4 = vmul.f32 0.03125, %v23005_v2 }
0x1733   :  { %v23068_v57 = vadd.f32 1e-05, %v23052_v59 }
0x1734   :  { %v23067_v50 = vadd.f32 1e-05, %v23051_v4 }
0x1735   :  { %27167 = vrsqrt.f32 %v23068_v57 }
0x1736   :  { %27169 = vrsqrt.f32 %v23067_v50 }
0x1737   :  { %v23014_v6 = vpop.xlane.xlu0 %23013 }
0x1738   :  { %v23054_v21 = vmul.f32 0.03125, %v23014_v6  ;;  %v23011_v36 = vpop.xlane.xlu1 %23010 }
0x1739   :  { %v23053_v28 = vmul.f32 0.03125, %v23011_v36 }
0x173a   :  { %v23070_v5 = vadd.f32 1e-05, %v23054_v21 }
0x173b   :  { %v23069_v16 = vadd.f32 1e-05, %v23053_v28  ;;  %v23020_v27 = vpop.xlane.xlu0 %23019 }
0x173c   :  { %27171 = vrsqrt.f32 %v23070_v5  ;;  %v23056_v55 = vmul.f32 0.03125, %v23020_v27  ;;  %v23017_v62 = vpop.xlane.xlu1 %23016 }
0x173d   :  { %27173 = vrsqrt.f32 %v23069_v16  ;;  %v23055_v52 = vmul.f32 0.03125, %v23017_v62 }
0x173e   :  { %v23072_v49 = vadd.f32 1e-05, %v23056_v55 }
0x173f   :  { %v27168_v18 = vpop.eup %27167  ;;  %v23071_v34 = vadd.f32 1e-05, %v23055_v52  ;;  %v23026_v1 = vpop.xlane.xlu0 %23025 }
0x1740   :  { %v27170_v22 = vpop.eup %27169  ;;  %v23100_v41 = vmul.f32 %v27168_v18, %v31124_v60  ;;  %27175 = vrsqrt.f32 %v23072_v49  ;;  %v23058_v13 = vmul.f32 0.03125, %v23026_v1  ;;  %v23023_v19 = vpop.xlane.xlu1 %23022 }
0x1741   :  { %v23099_v0 = vmul.f32 %v27170_v22, %v31127_v3  ;;  %27177 = vrsqrt.f32 %v23071_v34  ;;  %v23057_v33 = vmul.f32 0.03125, %v23023_v19 }
0x1742   :  { %v23120_v38 = vmul.f32 %v31222_v54, %v23100_v41  ;;  %v23074_v43 = vadd.f32 1e-05, %v23058_v13 }
0x1743   :  { %v23119_v35 = vmul.f32 %v31222_v54, %v23099_v0  ;;  %v23073_v56 = vadd.f32 1e-05, %v23057_v33  ;;  %v23032_v51 = vpop.xlane.xlu0 %23031 }
0x1744   :  { %v23140_v61 = vadd.f32 %v31227_v11, %v23120_v38  ;;  %27179 = vrsqrt.f32 %v23074_v43  ;;  %v23060_v47 = vmul.f32 0.03125, %v23032_v51  ;;  %v23029_v44 = vpop.xlane.xlu1 %23028 }
0x1745   :  { %v23139_v60 = vadd.f32 %v31227_v11, %v23119_v35  ;;  %27181 = vrsqrt.f32 %v23073_v56  ;;  %v23059_v39 = vmul.f32 0.03125, %v23029_v44 }
0x1746   :  { %v27172_v48 = vpop.eup %27171  ;;  %23156 = vst.msk [vmem:[%s31347_s6 + $0x8] sm:$0xff] %vm43_vm0, %v23140_v61  ;;  %v23076_v3 = vadd.f32 1e-05, %v23060_v47 }
0x1747   :  { %v27174_v63 = vpop.eup %27173  ;;  %23155 = vst.msk [vmem:[%s31347_s6] sm:$0xff] %vm43_vm0, %v23139_v60  ;;  %v23102_v26 = vmul.f32 %v27172_v48, %v31136_v32  ;;  %v23075_v40 = vadd.f32 1e-05, %v23059_v39  ;;  %v23038_v14 = vpop.xlane.xlu0 %23037 }
0x1748   :  { %v23101_v29 = vmul.f32 %v27174_v63, %v31139_v31  ;;  %27183 = vrsqrt.f32 %v23076_v3  ;;  %v23062_v9 = vmul.f32 0.03125, %v23038_v14  ;;  %v23035_v25 = vpop.xlane.xlu1 %23034 }
0x1749   :  { %v23122_v8 = vmul.f32 %v31222_v54, %v23102_v26  ;;  %27185 = vrsqrt.f32 %v23075_v40  ;;  %v23061_v46 = vmul.f32 0.03125, %v23035_v25 }
0x174a   :  { %v27176_v59 = vpop.eup %27175  ;;  %v23121_v2 = vmul.f32 %v31222_v54, %v23101_v29  ;;  %v23078_v4 = vadd.f32 1e-05, %v23062_v9 }
0x174b   :  { %v27178_v57 = vpop.eup %27177  ;;  %v23142_v50 = vadd.f32 %v31227_v11, %v23122_v8  ;;  %v23104_v32 = vmul.f32 %v27176_v59, %v31146_v30  ;;  %v23077_v6 = vadd.f32 1e-05, %v23061_v46  ;;  %v23044_v21 = vpop.xlane.xlu0 %23043 }
0x174c   :  { %v23141_v31 = vadd.f32 %v31227_v11, %v23121_v2  ;;  %v23103_v36 = vmul.f32 %v27178_v57, %v31150_v20  ;;  %27187 = vrsqrt.f32 %v23078_v4  ;;  %v23064_v28 = vmul.f32 0.03125, %v23044_v21  ;;  %v23041_v5 = vpop.xlane.xlu1 %23040 }
0x174d   :  { %23158 = vst.msk [vmem:[%s31347_s6 + $0x18] sm:$0xff] %vm43_vm0, %v23142_v50  ;;  %v23124_v16 = vmul.f32 %v31222_v54, %v23104_v32  ;;  %27189 = vrsqrt.f32 %v23077_v6  ;;  %v23063_v27 = vmul.f32 0.03125, %v23041_v5 }
0x174e   :  { %v27180_v55 = vpop.eup %27179  ;;  %23157 = vst.msk [vmem:[%s31347_s6 + $0x10] sm:$0xff] %vm43_vm0, %v23141_v31  ;;  %v23123_v30 = vmul.f32 %v31222_v54, %v23103_v36  ;;  %v23080_v20 = vadd.f32 1e-05, %v23064_v28 }
0x174f   :  { %v27182_v62 = vpop.eup %27181  ;;  %v23144_v52 = vadd.f32 %v31227_v11, %v23124_v16  ;;  %v23106_v17 = vmul.f32 %v27180_v55, %v31158_v45  ;;  %v23079_v49 = vadd.f32 1e-05, %v23063_v27  ;;  %v23050_v18 = vpop.xlane.xlu0 %23049 }
0x1750   :  { %v23143_v34 = vadd.f32 %v31227_v11, %v23123_v30  ;;  %v23105_v1 = vmul.f32 %v27182_v62, %v31162_v12  ;;  %27191 = vrsqrt.f32 %v23080_v20  ;;  %v23066_v22 = vmul.f32 0.03125, %v23050_v18  ;;  %v23047_v15 = vpop.xlane.xlu1 %23046 }
0x1751   :  { %23160 = vst.msk [vmem:[%s31347_s6 + $0x28] sm:$0xff] %vm43_vm0, %v23144_v52  ;;  %v23126_v41 = vmul.f32 %v31222_v54, %v23106_v17  ;;  %27193 = vrsqrt.f32 %v23079_v49  ;;  %v23065_v13 = vmul.f32 0.03125, %v23047_v15 }
0x1752   :  { %v27184_v19 = vpop.eup %27183  ;;  %23159 = vst.msk [vmem:[%s31347_s6 + $0x20] sm:$0xff] %vm43_vm0, %v23143_v34  ;;  %v23125_v45 = vmul.f32 %v31222_v54, %v23105_v1  ;;  %v23082_v12 = vadd.f32 1e-05, %v23066_v22 }
0x1753   :  { %v27186_v0 = vpop.eup %27185  ;;  %v23146_v33 = vadd.f32 %v31227_v11, %v23126_v41  ;;  %v23108_v38 = vmul.f32 %v27184_v19, %v31170_v10  ;;  %v23081_v43 = vadd.f32 1e-05, %v23065_v13 }
0x1754   :  { %v23145_v35 = vadd.f32 %v31227_v11, %v23125_v45  ;;  %v23107_v56 = vmul.f32 %v27186_v0, %v31174_v53  ;;  %27195 = vrsqrt.f32 %v23082_v12 }
0x1755   :  { %23162 = vst.msk [vmem:[%s31347_s6 + $0x38] sm:$0xff] %vm43_vm0, %v23146_v33  ;;  %v23128_v51 = vmul.f32 %v31222_v54, %v23108_v38  ;;  %27197 = vrsqrt.f32 %v23081_v43 }
0x1756   :  { %v27188_v61 = vpop.eup %27187  ;;  %23161 = vst.msk [vmem:[%s31347_s6 + $0x30] sm:$0xff] %vm43_vm0, %v23145_v35  ;;  %v23127_v10 = vmul.f32 %v31222_v54, %v23107_v56 }
0x1757   :  { %v27190_v47 = vpop.eup %27189  ;;  %v23148_v53 = vadd.f32 %v31227_v11, %v23128_v51  ;;  %v23110_v44 = vmul.f32 %v27188_v61, %v31182_v24 }
0x1758   :  { %v23147_v60 = vadd.f32 %v31227_v11, %v23127_v10  ;;  %v23109_v39 = vmul.f32 %v27190_v47, %v31186_v58 }
0x1759   :  { %23164 = vst.msk [vmem:[%s31347_s6 + $0x48] sm:$0xff] %vm43_vm0, %v23148_v53  ;;  %v23130_v48 = vmul.f32 %v31222_v54, %v23110_v44 }
0x175a   :  { %v27192_v3 = vpop.eup %27191  ;;  %23163 = vst.msk [vmem:[%s31347_s6 + $0x40] sm:$0xff] %vm43_vm0, %v23147_v60  ;;  %v23129_v63 = vmul.f32 %v31222_v54, %v23109_v39 }
0x175b   :  { %v27194_v24 = vpop.eup %27193  ;;  %v23150_v26 = vadd.f32 %v31227_v11, %v23130_v48  ;;  %v23112_v58 = vmul.f32 %v27192_v3, %v31194_v37 }
0x175c   :  { %v23149_v40 = vadd.f32 %v31227_v11, %v23129_v63  ;;  %v23111_v14 = vmul.f32 %v27194_v24, %v31198_v23 }
0x175d   :  { %23166 = vst.msk [vmem:[%s31347_s6 + $0x58] sm:$0xff] %vm43_vm0, %v23150_v26  ;;  %v23132_v29 = vmul.f32 %v31222_v54, %v23112_v58 }
0x175e   :  { %v27196_v9 = vpop.eup %27195  ;;  %23165 = vst.msk [vmem:[%s31347_s6 + $0x50] sm:$0xff] %vm43_vm0, %v23149_v40  ;;  %v23131_v25 = vmul.f32 %v31222_v54, %v23111_v14 }
0x175f   :  { %v27198_v37 = vpop.eup %27197  ;;  %v23152_v8 = vadd.f32 %v31227_v11, %v23132_v29  ;;  %v23114_v23 = vmul.f32 %v27196_v9, %v31206_v7 }
0x1760   :  { %v23151_v46 = vadd.f32 %v31227_v11, %v23131_v25  ;;  %v23113_v59 = vmul.f32 %v27198_v37, %v31210_v42 }
0x1761   :  { %23168 = vst.msk [vmem:[%s31347_s6 + $0x68] sm:$0xff] %vm43_vm0, %v23152_v8  ;;  %v23134_v2 = vmul.f32 %v31222_v54, %v23114_v23 }
0x1762   :  { %23167 = vst.msk [vmem:[%s31347_s6 + $0x60] sm:$0xff] %vm43_vm0, %v23151_v46  ;;  %v23133_v4 = vmul.f32 %v31222_v54, %v23113_v59 }
0x1763   :  { %v23154_v7 = vadd.f32 %v31227_v11, %v23134_v2 }
0x1764   :  { %v23153_v57 = vadd.f32 %v31227_v11, %v23133_v4 }
0x1765   :  { %23170 = vst.msk [vmem:[%s31347_s6 + $0x78] sm:$0xff] %vm43_vm0, %v23154_v7 }
0x1766   :  { %23169 = vst.msk [vmem:[%s31347_s6 + $0x70] sm:$0xff] %vm43_vm0, %v23153_v57 }

</bundles_post_ra>
